<compile_context>
chip_gen: v6e
topology: v6e:2x2x1
jax: 0.10.0
libtpu: 0.0.40
codegen_flags: <defaults>
</compile_context>

<pallas_src>
import functools
import jax
import jax.numpy as jnp
from jax.experimental import pallas as pl
from jax.experimental.pallas import tpu as pltpu

# PyTorch defaults.
D = 8
W = 256
INPUT_CH = 3
INPUT_CH_VIEWS = 3
OUTPUT_CH = 4
IN_FEAT = INPUT_CH + INPUT_CH_VIEWS
OUT_PAD = 128                 # lane-dense padded output width (wrapper slices [:, :4])
NUM_HIDDEN = D - 2            # pts_linears[1 .. D-2]; layers D-1 and D are dead in forward
assert D >= 3, "alpha/feature tap at i == D-2 requires D >= 3"


def nerf_mlp_kernel(x_ref, w0_ref, b0_ref, wstack_ref, bstack_ref,
                    views_wf_ref, views_wx_ref, views_b_ref,
                    rgb_wp_ref, alpha_wp_ref, out_b_ref, out_ref):
    x = x_ref[...]                                   # (TB, 6) f32
    x_bf = x.astype(jnp.bfloat16)

    # pts_linears[0]: Linear(input_ch, W). w0 is zero-padded to (6, W) so the view
    # columns of x contribute nothing -> no in-kernel split of x.
    h = jnp.dot(x_bf, w0_ref[...], preferred_element_type=jnp.float32) + b0_ref[...]
    h = jnp.maximum(h, 0.0)

    # pts_linears[1 .. D-2]. Layers D-1 and D are computed-then-discarded in the PyTorch
    # forward, so they are skipped here (output identical).
    bstack = bstack_ref[...]                         # (NUM_HIDDEN, W) f32
    for idx in range(NUM_HIDDEN):
        h = jnp.dot(h.astype(jnp.bfloat16), wstack_ref[idx],
                    preferred_element_type=jnp.float32) + bstack[idx]
        h = jnp.maximum(h, 0.0)

    feature = h                                      # tap at i == D-2
    feat_bf = feature.astype(jnp.bfloat16)

    # views_linears[0] applied to cat([feature, input_views]):
    #   == feature @ views_w[:W] + x @ views_wx  (views_wx zero on the pts columns)
    # -> no lane-axis concat, clean (8,128)-aligned operands.
    h2 = (jnp.dot(feat_bf, views_wf_ref[...], preferred_element_type=jnp.float32)
          + jnp.dot(x_bf, views_wx_ref[...], preferred_element_type=jnp.float32)
          + views_b_ref[...])
    h2 = jnp.maximum(h2, 0.0)                        # (TB, W//2)

    # Fused rgb_linear + alpha_linear into one lane-dense (TB, 128) store:
    # columns 0..2 = rgb, column 3 = alpha, columns 4.. = 0.
    out = (jnp.dot(h2.astype(jnp.bfloat16), rgb_wp_ref[...],
                   preferred_element_type=jnp.float32)
           + jnp.dot(feat_bf, alpha_wp_ref[...], preferred_element_type=jnp.float32)
           + out_b_ref[...])
    out_ref[...] = out


def _pack_params(p):
    """Host-side layout plumbing: bf16 weights, zero-padded splits/fusions, f32 biases."""
    bf, f32 = jnp.bfloat16, jnp.float32
    w0_pad = jnp.zeros((IN_FEAT, W), f32).at[:INPUT_CH].set(p["w0"]).astype(bf)
    wstack = p["wstack"][:NUM_HIDDEN].astype(bf)            # dead layers never shipped
    bstack = p["bstack"][:NUM_HIDDEN].astype(f32)
    views_wf = p["views_w"][:W].astype(bf)                  # (W, W//2) for feature
    views_wx = (jnp.zeros((IN_FEAT, W // 2), f32)
                .at[INPUT_CH:].set(p["views_w"][W:]).astype(bf))   # (6, W//2) for x(views)
    rgb_wp = jnp.zeros((W // 2, OUT_PAD), f32).at[:, :3].set(p["rgb_w"]).astype(bf)
    alpha_wp = jnp.zeros((W, OUT_PAD), f32).at[:, 3:4].set(p["alpha_w"]).astype(bf)
    out_b = (jnp.zeros((1, OUT_PAD), f32)
             .at[:, :3].set(p["rgb_b"]).at[:, 3:4].set(p["alpha_b"]))
    return dict(w0=w0_pad, b0=p["b0"].astype(f32), wstack=wstack, bstack=bstack,
                views_wf=views_wf, views_wx=views_wx, views_b=p["views_b"].astype(f32),
                rgb_wp=rgb_wp, alpha_wp=alpha_wp, out_b=out_b)


def nerf_mlp_forward(x, params, *, block_rows=512):
    n, feat = x.shape
    assert feat == IN_FEAT
    kp = _pack_params(params)

    n_pad = -(-n // block_rows) * block_rows
    if n_pad != n:
        x = jnp.pad(x, ((0, n_pad - n), (0, 0)))
    grid = (n_pad // block_rows,)

    def const_spec(arr):
        nd = arr.ndim
        return pl.BlockSpec(arr.shape, lambda i, _nd=nd: (0,) * _nd)

    weights = [kp["w0"], kp["b0"], kp["wstack"], kp["bstack"],
               kp["views_wf"], kp["views_wx"], kp["views_b"],
               kp["rgb_wp"], kp["alpha_wp"], kp["out_b"]]

    in_specs = ([pl.BlockSpec((block_rows, IN_FEAT), lambda i: (i, 0))]
                + [const_spec(a) for a in weights])
    out_specs = pl.BlockSpec((block_rows, OUT_PAD), lambda i: (i, 0))

    out = pl.pallas_call(
        nerf_mlp_kernel,
        out_shape=jax.ShapeDtypeStruct((n_pad, OUT_PAD), jnp.float32),
        grid_spec=pltpu.PrefetchScalarGridSpec(
            num_scalar_prefetch=0,
            grid=grid,
            in_specs=in_specs,
            out_specs=out_specs,
        ),
        compiler_params=pltpu.CompilerParams(dimension_semantics=("parallel",)),
    )(x, *weights)
    return out[:n, :OUTPUT_CH]


def init_params(key):
    ks = jax.random.split(key, 10)
    s = 0.1
    f32 = jnp.float32
    return {
        # pts_linears[0]: Linear(input_ch, W)
        "w0": s * jax.random.normal(ks[0], (INPUT_CH, W), f32),
        "b0": s * jax.random.normal(ks[1], (1, W), f32),
        # pts_linears[1..D]: D x Linear(W, W) (last two are dead in forward)
        "wstack": s * jax.random.normal(ks[2], (D, W, W), f32),
        "bstack": s * jax.random.normal(ks[3], (D, W), f32),
        # alpha_linear: Linear(W, 1)
        "alpha_w": s * jax.random.normal(ks[4], (W, 1), f32),
        "alpha_b": s * jax.random.normal(ks[5], (1, 1), f32),
        # views_linears[0]: Linear(W + input_ch_views, W//2)  (cat order: [feature, views])
        "views_w": s * jax.random.normal(ks[6], (W + INPUT_CH_VIEWS, W // 2), f32),
        "views_b": s * jax.random.normal(ks[7], (1, W // 2), f32),
        # rgb_linear: Linear(W//2, 3)
        "rgb_w": s * jax.random.normal(ks[8], (W // 2, 3), f32),
        "rgb_b": s * jax.random.normal(ks[9], (1, 3), f32),
    }


def _bf16_round_weights(p):
    """Round the weight matrices (not biases) through bf16 so the reference uses the
    exact same weight values the kernel sees."""
    out = dict(p)
    for k in ("w0", "wstack", "alpha_w", "views_w", "rgb_w"):
        out[k] = p[k].astype(jnp.bfloat16).astype(jnp.float32)
    return out


def nerf_mlp_reference(x, params):
    """Pure-JAX f32 reference matching the PyTorch forward (incl. the dead layers)."""
    dot = functools.partial(jnp.dot, precision=jax.lax.Precision.HIGHEST)
    input_pts, input_views = x[:, :INPUT_CH], x[:, INPUT_CH:]
    h = jax.nn.relu(dot(input_pts, params["w0"]) + params["b0"])
    alpha = jnp.zeros((x.shape[0], 1), jnp.float32)
    feature = h
    for i in range(1, D + 1):                       # pts_linears[1..D]
        h = jax.nn.relu(dot(h, params["wstack"][i - 1]) + params["bstack"][i - 1])
        if i == D - 2:
            alpha = dot(h, params["alpha_w"]) + params["alpha_b"]
            feature = h
    h = jnp.concatenate([feature, input_views], axis=-1)
    h = jax.nn.relu(dot(h, params["views_w"]) + params["views_b"])
    rgb = dot(h, params["rgb_w"]) + params["rgb_b"]
    return jnp.concatenate([rgb, alpha], axis=-1)


if __name__ == "__main__":
    key = jax.random.PRNGKey(0)
    kx, kp = jax.random.split(key)
    n = 1024                                        # block_rows=512 -> grid of 2
    x = jax.random.normal(kx, (n, IN_FEAT), jnp.float32)
    params = init_params(kp)

    out = jax.block_until_ready(nerf_mlp_forward(x, params, block_rows=512))
    assert out.shape == (n, OUTPUT_CH), out.shape

    ref = nerf_mlp_reference(x, _bf16_round_weights(params))
    max_err = float(jnp.max(jnp.abs(out - ref)))
    # bf16 activations in the kernel vs f32 reference -> relaxed tolerance.
    assert jnp.allclose(out, ref, atol=3e-2, rtol=3e-2), f"max abs err = {max_err}"
    print("KERNEL_OK")
</pallas_src>

<mosaic_0001>
module attributes {stable_mosaic.version = 11 : i64} {
  func.func @nerf_mlp_kernel(%arg0: i32, %arg1: memref<512x6xf32, #tpu.memory_space<vmem>>, %arg2: memref<6x256xbf16, #tpu.memory_space<vmem>>, %arg3: memref<1x256xf32, #tpu.memory_space<vmem>>, %arg4: memref<6x256x256xbf16, #tpu.memory_space<vmem>>, %arg5: memref<6x256xf32, #tpu.memory_space<vmem>>, %arg6: memref<256x128xbf16, #tpu.memory_space<vmem>>, %arg7: memref<6x128xbf16, #tpu.memory_space<vmem>>, %arg8: memref<1x128xf32, #tpu.memory_space<vmem>>, %arg9: memref<128x128xbf16, #tpu.memory_space<vmem>>, %arg10: memref<256x128xbf16, #tpu.memory_space<vmem>>, %arg11: memref<1x128xf32, #tpu.memory_space<vmem>>, %arg12: memref<512x128xf32, #tpu.memory_space<vmem>>) attributes {dimension_semantics = [#tpu.dimension_semantics<parallel>], iteration_bounds = array<i64: 2>, scalar_prefetch = 0 : i64, scratch_operands = 0 : i64, tpu.core_type = #tpu.core_type<tc>, window_params = [{transform_indices = @transform_0, window_bounds = array<i64: 512, 6>}, {pipeline_mode = #tpu.pipeline_mode<synchronous>, transform_indices = @transform_1, window_bounds = array<i64: 6, 256>}, {pipeline_mode = #tpu.pipeline_mode<synchronous>, transform_indices = @transform_2, window_bounds = array<i64: 1, 256>}, {pipeline_mode = #tpu.pipeline_mode<synchronous>, transform_indices = @transform_3, window_bounds = array<i64: 6, 256, 256>}, {pipeline_mode = #tpu.pipeline_mode<synchronous>, transform_indices = @transform_4, window_bounds = array<i64: 6, 256>}, {pipeline_mode = #tpu.pipeline_mode<synchronous>, transform_indices = @transform_5, window_bounds = array<i64: 256, 128>}, {pipeline_mode = #tpu.pipeline_mode<synchronous>, transform_indices = @transform_6, window_bounds = array<i64: 6, 128>}, {pipeline_mode = #tpu.pipeline_mode<synchronous>, transform_indices = @transform_7, window_bounds = array<i64: 1, 128>}, {pipeline_mode = #tpu.pipeline_mode<synchronous>, transform_indices = @transform_8, window_bounds = array<i64: 128, 128>}, {pipeline_mode = #tpu.pipeline_mode<synchronous>, transform_indices = @transform_9, window_bounds = array<i64: 256, 128>}, {pipeline_mode = #tpu.pipeline_mode<synchronous>, transform_indices = @transform_10, window_bounds = array<i64: 1, 128>}, {transform_indices = @transform_11, window_bounds = array<i64: 512, 128>}]} {
    %c0 = arith.constant 0 : index
    %c0_0 = arith.constant 0 : index
    %0 = vector.load %arg1[%c0, %c0_0] : memref<512x6xf32, #tpu.memory_space<vmem>>, vector<512x6xf32>
    %1 = arith.truncf %0 : vector<512x6xf32> to vector<512x6xbf16>
    %c0_1 = arith.constant 0 : index
    %c0_2 = arith.constant 0 : index
    %2 = vector.load %arg2[%c0_1, %c0_2] : memref<6x256xbf16, #tpu.memory_space<vmem>>, vector<6x256xbf16>
    %cst = arith.constant dense<0.000000e+00> : vector<512x256xf32>
    %3 = tpu.matmul %1, %2, %cst {dimension_numbers = #tpu.dot_dimension_numbers<[1], [0], [0], [1], [0, 0, 1, 1], [], []>} : vector<512x6xbf16>, vector<6x256xbf16>, vector<512x256xf32> -> vector<512x256xf32>
    %c0_3 = arith.constant 0 : index
    %c0_4 = arith.constant 0 : index
    %4 = vector.load %arg3[%c0_3, %c0_4] : memref<1x256xf32, #tpu.memory_space<vmem>>, vector<1x256xf32>
    %5 = vector.broadcast %4 : vector<1x256xf32> to vector<512x256xf32>
    %6 = arith.addf %3, %5 : vector<512x256xf32>
    %cst_5 = arith.constant 0.000000e+00 : f32
    %7 = vector.broadcast %cst_5 : f32 to vector<512x256xf32>
    %8 = arith.maximumf %6, %7 : vector<512x256xf32>
    %c0_6 = arith.constant 0 : index
    %c0_7 = arith.constant 0 : index
    %9 = vector.load %arg5[%c0_6, %c0_7] : memref<6x256xf32, #tpu.memory_space<vmem>>, vector<6x256xf32>
    %10 = arith.truncf %8 : vector<512x256xf32> to vector<512x256xbf16>
    %c0_8 = arith.constant 0 : index
    %c0_9 = arith.constant 0 : index
    %c0_10 = arith.constant 0 : index
    %11 = vector.load %arg4[%c0_8, %c0_9, %c0_10] : memref<6x256x256xbf16, #tpu.memory_space<vmem>>, vector<1x256x256xbf16>
    %12 = vector.shape_cast %11 : vector<1x256x256xbf16> to vector<256x256xbf16>
    %cst_11 = arith.constant dense<0.000000e+00> : vector<512x256xf32>
    %13 = tpu.matmul %10, %12, %cst_11 {dimension_numbers = #tpu.dot_dimension_numbers<[1], [0], [0], [1], [0, 0, 1, 1], [], []>} : vector<512x256xbf16>, vector<256x256xbf16>, vector<512x256xf32> -> vector<512x256xf32>
    %14 = vector.extract_strided_slice %9 {offsets = [0, 0], sizes = [1, 256], strides = [1, 1]} : vector<6x256xf32> to vector<1x256xf32>
    %15 = vector.shape_cast %14 : vector<1x256xf32> to vector<256xf32>
    %16 = vector.shape_cast %15 : vector<256xf32> to vector<1x256xf32>
    %17 = vector.broadcast %16 : vector<1x256xf32> to vector<512x256xf32>
    %18 = arith.addf %13, %17 : vector<512x256xf32>
    %cst_12 = arith.constant 0.000000e+00 : f32
    %19 = vector.broadcast %cst_12 : f32 to vector<512x256xf32>
    %20 = arith.maximumf %18, %19 : vector<512x256xf32>
    %21 = arith.truncf %20 : vector<512x256xf32> to vector<512x256xbf16>
    %c1 = arith.constant 1 : index
    %c0_13 = arith.constant 0 : index
    %c0_14 = arith.constant 0 : index
    %22 = vector.load %arg4[%c1, %c0_13, %c0_14] : memref<6x256x256xbf16, #tpu.memory_space<vmem>>, vector<1x256x256xbf16>
    %23 = vector.shape_cast %22 : vector<1x256x256xbf16> to vector<256x256xbf16>
    %cst_15 = arith.constant dense<0.000000e+00> : vector<512x256xf32>
    %24 = tpu.matmul %21, %23, %cst_15 {dimension_numbers = #tpu.dot_dimension_numbers<[1], [0], [0], [1], [0, 0, 1, 1], [], []>} : vector<512x256xbf16>, vector<256x256xbf16>, vector<512x256xf32> -> vector<512x256xf32>
    %25 = vector.extract_strided_slice %9 {offsets = [1, 0], sizes = [1, 256], strides = [1, 1]} : vector<6x256xf32> to vector<1x256xf32>
    %26 = vector.shape_cast %25 : vector<1x256xf32> to vector<256xf32>
    %27 = vector.shape_cast %26 : vector<256xf32> to vector<1x256xf32>
    %28 = vector.broadcast %27 : vector<1x256xf32> to vector<512x256xf32>
    %29 = arith.addf %24, %28 : vector<512x256xf32>
    %cst_16 = arith.constant 0.000000e+00 : f32
    %30 = vector.broadcast %cst_16 : f32 to vector<512x256xf32>
    %31 = arith.maximumf %29, %30 : vector<512x256xf32>
    %32 = arith.truncf %31 : vector<512x256xf32> to vector<512x256xbf16>
    %c2 = arith.constant 2 : index
    %c0_17 = arith.constant 0 : index
    %c0_18 = arith.constant 0 : index
    %33 = vector.load %arg4[%c2, %c0_17, %c0_18] : memref<6x256x256xbf16, #tpu.memory_space<vmem>>, vector<1x256x256xbf16>
    %34 = vector.shape_cast %33 : vector<1x256x256xbf16> to vector<256x256xbf16>
    %cst_19 = arith.constant dense<0.000000e+00> : vector<512x256xf32>
    %35 = tpu.matmul %32, %34, %cst_19 {dimension_numbers = #tpu.dot_dimension_numbers<[1], [0], [0], [1], [0, 0, 1, 1], [], []>} : vector<512x256xbf16>, vector<256x256xbf16>, vector<512x256xf32> -> vector<512x256xf32>
    %36 = vector.extract_strided_slice %9 {offsets = [2, 0], sizes = [1, 256], strides = [1, 1]} : vector<6x256xf32> to vector<1x256xf32>
    %37 = vector.shape_cast %36 : vector<1x256xf32> to vector<256xf32>
    %38 = vector.shape_cast %37 : vector<256xf32> to vector<1x256xf32>
    %39 = vector.broadcast %38 : vector<1x256xf32> to vector<512x256xf32>
    %40 = arith.addf %35, %39 : vector<512x256xf32>
    %cst_20 = arith.constant 0.000000e+00 : f32
    %41 = vector.broadcast %cst_20 : f32 to vector<512x256xf32>
    %42 = arith.maximumf %40, %41 : vector<512x256xf32>
    %43 = arith.truncf %42 : vector<512x256xf32> to vector<512x256xbf16>
    %c3 = arith.constant 3 : index
    %c0_21 = arith.constant 0 : index
    %c0_22 = arith.constant 0 : index
    %44 = vector.load %arg4[%c3, %c0_21, %c0_22] : memref<6x256x256xbf16, #tpu.memory_space<vmem>>, vector<1x256x256xbf16>
    %45 = vector.shape_cast %44 : vector<1x256x256xbf16> to vector<256x256xbf16>
    %cst_23 = arith.constant dense<0.000000e+00> : vector<512x256xf32>
    %46 = tpu.matmul %43, %45, %cst_23 {dimension_numbers = #tpu.dot_dimension_numbers<[1], [0], [0], [1], [0, 0, 1, 1], [], []>} : vector<512x256xbf16>, vector<256x256xbf16>, vector<512x256xf32> -> vector<512x256xf32>
    %47 = vector.extract_strided_slice %9 {offsets = [3, 0], sizes = [1, 256], strides = [1, 1]} : vector<6x256xf32> to vector<1x256xf32>
    %48 = vector.shape_cast %47 : vector<1x256xf32> to vector<256xf32>
    %49 = vector.shape_cast %48 : vector<256xf32> to vector<1x256xf32>
    %50 = vector.broadcast %49 : vector<1x256xf32> to vector<512x256xf32>
    %51 = arith.addf %46, %50 : vector<512x256xf32>
    %cst_24 = arith.constant 0.000000e+00 : f32
    %52 = vector.broadcast %cst_24 : f32 to vector<512x256xf32>
    %53 = arith.maximumf %51, %52 : vector<512x256xf32>
    %54 = arith.truncf %53 : vector<512x256xf32> to vector<512x256xbf16>
    %c4 = arith.constant 4 : index
    %c0_25 = arith.constant 0 : index
    %c0_26 = arith.constant 0 : index
    %55 = vector.load %arg4[%c4, %c0_25, %c0_26] : memref<6x256x256xbf16, #tpu.memory_space<vmem>>, vector<1x256x256xbf16>
    %56 = vector.shape_cast %55 : vector<1x256x256xbf16> to vector<256x256xbf16>
    %cst_27 = arith.constant dense<0.000000e+00> : vector<512x256xf32>
    %57 = tpu.matmul %54, %56, %cst_27 {dimension_numbers = #tpu.dot_dimension_numbers<[1], [0], [0], [1], [0, 0, 1, 1], [], []>} : vector<512x256xbf16>, vector<256x256xbf16>, vector<512x256xf32> -> vector<512x256xf32>
    %58 = vector.extract_strided_slice %9 {offsets = [4, 0], sizes = [1, 256], strides = [1, 1]} : vector<6x256xf32> to vector<1x256xf32>
    %59 = vector.shape_cast %58 : vector<1x256xf32> to vector<256xf32>
    %60 = vector.shape_cast %59 : vector<256xf32> to vector<1x256xf32>
    %61 = vector.broadcast %60 : vector<1x256xf32> to vector<512x256xf32>
    %62 = arith.addf %57, %61 : vector<512x256xf32>
    %cst_28 = arith.constant 0.000000e+00 : f32
    %63 = vector.broadcast %cst_28 : f32 to vector<512x256xf32>
    %64 = arith.maximumf %62, %63 : vector<512x256xf32>
    %65 = arith.truncf %64 : vector<512x256xf32> to vector<512x256xbf16>
    %c5 = arith.constant 5 : index
    %c0_29 = arith.constant 0 : index
    %c0_30 = arith.constant 0 : index
    %66 = vector.load %arg4[%c5, %c0_29, %c0_30] : memref<6x256x256xbf16, #tpu.memory_space<vmem>>, vector<1x256x256xbf16>
    %67 = vector.shape_cast %66 : vector<1x256x256xbf16> to vector<256x256xbf16>
    %cst_31 = arith.constant dense<0.000000e+00> : vector<512x256xf32>
    %68 = tpu.matmul %65, %67, %cst_31 {dimension_numbers = #tpu.dot_dimension_numbers<[1], [0], [0], [1], [0, 0, 1, 1], [], []>} : vector<512x256xbf16>, vector<256x256xbf16>, vector<512x256xf32> -> vector<512x256xf32>
    %69 = vector.extract_strided_slice %9 {offsets = [5, 0], sizes = [1, 256], strides = [1, 1]} : vector<6x256xf32> to vector<1x256xf32>
    %70 = vector.shape_cast %69 : vector<1x256xf32> to vector<256xf32>
    %71 = vector.shape_cast %70 : vector<256xf32> to vector<1x256xf32>
    %72 = vector.broadcast %71 : vector<1x256xf32> to vector<512x256xf32>
    %73 = arith.addf %68, %72 : vector<512x256xf32>
    %cst_32 = arith.constant 0.000000e+00 : f32
    %74 = vector.broadcast %cst_32 : f32 to vector<512x256xf32>
    %75 = arith.maximumf %73, %74 : vector<512x256xf32>
    %76 = arith.truncf %75 : vector<512x256xf32> to vector<512x256xbf16>
    %c0_33 = arith.constant 0 : index
    %c0_34 = arith.constant 0 : index
    %77 = vector.load %arg6[%c0_33, %c0_34] : memref<256x128xbf16, #tpu.memory_space<vmem>>, vector<256x128xbf16>
    %cst_35 = arith.constant dense<0.000000e+00> : vector<512x128xf32>
    %78 = tpu.matmul %76, %77, %cst_35 {dimension_numbers = #tpu.dot_dimension_numbers<[1], [0], [0], [1], [0, 0, 1, 1], [], []>} : vector<512x256xbf16>, vector<256x128xbf16>, vector<512x128xf32> -> vector<512x128xf32>
    %c0_36 = arith.constant 0 : index
    %c0_37 = arith.constant 0 : index
    %79 = vector.load %arg7[%c0_36, %c0_37] : memref<6x128xbf16, #tpu.memory_space<vmem>>, vector<6x128xbf16>
    %cst_38 = arith.constant dense<0.000000e+00> : vector<512x128xf32>
    %80 = tpu.matmul %1, %79, %cst_38 {dimension_numbers = #tpu.dot_dimension_numbers<[1], [0], [0], [1], [0, 0, 1, 1], [], []>} : vector<512x6xbf16>, vector<6x128xbf16>, vector<512x128xf32> -> vector<512x128xf32>
    %81 = arith.addf %78, %80 : vector<512x128xf32>
    %c0_39 = arith.constant 0 : index
    %c0_40 = arith.constant 0 : index
    %82 = vector.load %arg8[%c0_39, %c0_40] : memref<1x128xf32, #tpu.memory_space<vmem>>, vector<1x128xf32>
    %83 = vector.broadcast %82 : vector<1x128xf32> to vector<512x128xf32>
    %84 = arith.addf %81, %83 : vector<512x128xf32>
    %cst_41 = arith.constant 0.000000e+00 : f32
    %85 = vector.broadcast %cst_41 : f32 to vector<512x128xf32>
    %86 = arith.maximumf %84, %85 : vector<512x128xf32>
    %87 = arith.truncf %86 : vector<512x128xf32> to vector<512x128xbf16>
    %c0_42 = arith.constant 0 : index
    %c0_43 = arith.constant 0 : index
    %88 = vector.load %arg9[%c0_42, %c0_43] : memref<128x128xbf16, #tpu.memory_space<vmem>>, vector<128x128xbf16>
    %cst_44 = arith.constant dense<0.000000e+00> : vector<512x128xf32>
    %89 = tpu.matmul %87, %88, %cst_44 {dimension_numbers = #tpu.dot_dimension_numbers<[1], [0], [0], [1], [0, 0, 1, 1], [], []>} : vector<512x128xbf16>, vector<128x128xbf16>, vector<512x128xf32> -> vector<512x128xf32>
    %c0_45 = arith.constant 0 : index
    %c0_46 = arith.constant 0 : index
    %90 = vector.load %arg10[%c0_45, %c0_46] : memref<256x128xbf16, #tpu.memory_space<vmem>>, vector<256x128xbf16>
    %cst_47 = arith.constant dense<0.000000e+00> : vector<512x128xf32>
    %91 = tpu.matmul %76, %90, %cst_47 {dimension_numbers = #tpu.dot_dimension_numbers<[1], [0], [0], [1], [0, 0, 1, 1], [], []>} : vector<512x256xbf16>, vector<256x128xbf16>, vector<512x128xf32> -> vector<512x128xf32>
    %92 = arith.addf %89, %91 : vector<512x128xf32>
    %c0_48 = arith.constant 0 : index
    %c0_49 = arith.constant 0 : index
    %93 = vector.load %arg11[%c0_48, %c0_49] : memref<1x128xf32, #tpu.memory_space<vmem>>, vector<1x128xf32>
    %94 = vector.broadcast %93 : vector<1x128xf32> to vector<512x128xf32>
    %95 = arith.addf %92, %94 : vector<512x128xf32>
    %c0_50 = arith.constant 0 : index
    %c0_51 = arith.constant 0 : index
    %96 = vector.load %arg12[%c0_50, %c0_51] : memref<512x128xf32, #tpu.memory_space<vmem>>, vector<512x128xf32>
    tpu.vector_store %arg12[%c0_50, %c0_51], %95 {strides = array<i32>} : memref<512x128xf32, #tpu.memory_space<vmem>>, vector<512x128xf32>,
    return
  }
  func.func @transform_0(%arg0: i32) -> (i32, i32) {
    %c0_i32 = arith.constant 0 : i32
    %c0_i32_0 = arith.constant 0 : i32
    return %arg0, %c0_i32 : i32, i32
  }
  func.func @transform_1(%arg0: i32) -> (i32, i32) {
    %c0_i32 = arith.constant 0 : i32
    %c0_i32_0 = arith.constant 0 : i32
    %c0_i32_1 = arith.constant 0 : i32
    return %c0_i32, %c0_i32_0 : i32, i32
  }
  func.func @transform_2(%arg0: i32) -> (i32, i32) {
    %c0_i32 = arith.constant 0 : i32
    %c0_i32_0 = arith.constant 0 : i32
    %c0_i32_1 = arith.constant 0 : i32
    return %c0_i32, %c0_i32_0 : i32, i32
  }
  func.func @transform_3(%arg0: i32) -> (i32, i32, i32) {
    %c0_i32 = arith.constant 0 : i32
    %c0_i32_0 = arith.constant 0 : i32
    %c0_i32_1 = arith.constant 0 : i32
    %c0_i32_2 = arith.constant 0 : i32
    return %c0_i32, %c0_i32_0, %c0_i32_1 : i32, i32, i32
  }
  func.func @transform_4(%arg0: i32) -> (i32, i32) {
    %c0_i32 = arith.constant 0 : i32
    %c0_i32_0 = arith.constant 0 : i32
    %c0_i32_1 = arith.constant 0 : i32
    return %c0_i32, %c0_i32_0 : i32, i32
  }
  func.func @transform_5(%arg0: i32) -> (i32, i32) {
    %c0_i32 = arith.constant 0 : i32
    %c0_i32_0 = arith.constant 0 : i32
    %c0_i32_1 = arith.constant 0 : i32
    return %c0_i32, %c0_i32_0 : i32, i32
  }
  func.func @transform_6(%arg0: i32) -> (i32, i32) {
    %c0_i32 = arith.constant 0 : i32
    %c0_i32_0 = arith.constant 0 : i32
    %c0_i32_1 = arith.constant 0 : i32
    return %c0_i32, %c0_i32_0 : i32, i32
  }
  func.func @transform_7(%arg0: i32) -> (i32, i32) {
    %c0_i32 = arith.constant 0 : i32
    %c0_i32_0 = arith.constant 0 : i32
    %c0_i32_1 = arith.constant 0 : i32
    return %c0_i32, %c0_i32_0 : i32, i32
  }
  func.func @transform_8(%arg0: i32) -> (i32, i32) {
    %c0_i32 = arith.constant 0 : i32
    %c0_i32_0 = arith.constant 0 : i32
    %c0_i32_1 = arith.constant 0 : i32
    return %c0_i32, %c0_i32_0 : i32, i32
  }
  func.func @transform_9(%arg0: i32) -> (i32, i32) {
    %c0_i32 = arith.constant 0 : i32
    %c0_i32_0 = arith.constant 0 : i32
    %c0_i32_1 = arith.constant 0 : i32
    return %c0_i32, %c0_i32_0 : i32, i32
  }
  func.func @transform_10(%arg0: i32) -> (i32, i32) {
    %c0_i32 = arith.constant 0 : i32
    %c0_i32_0 = arith.constant 0 : i32
    %c0_i32_1 = arith.constant 0 : i32
    return %c0_i32, %c0_i32_0 : i32, i32
  }
  func.func @transform_11(%arg0: i32) -> (i32, i32) {
    %c0_i32 = arith.constant 0 : i32
    %c0_i32_0 = arith.constant 0 : i32
    return %arg0, %c0_i32 : i32, i32
  }
}

</mosaic_0001>

<bundles_post_ra>
// kernel: tpu_custom_call.1
= control target key start
LH: loop header
LB: loop body
LE: loop exit
PB: predicated region body
PF: predicated region fallthrough
CT: control target
= control target key end

     0   :  { %s11067_s0 = inlined_call_operand.vmem [shape: f32[1024,6], index: 0, kind: input, shape index: {}]   ;;  %s11068_s1 = inlined_call_operand.vmem [shape: bf16[6,256], index: 1, kind: input, shape index: {}]   ;;  %s11069_s2 = inlined_call_operand.vmem [shape: f32[1,256], index: 2, kind: input, shape index: {}]   ;;  %s11070_s3 = inlined_call_operand.hbm [shape: bf16[6,256,256], index: 3, kind: input, shape index: {}]   ;;  %s11071_s4 = inlined_call_operand.vmem [shape: f32[6,256], index: 4, kind: input, shape index: {}]   ;;  %s11072_s5 = inlined_call_operand.vmem [shape: bf16[256,128], index: 5, kind: input, shape index: {}]   ;;  %s11073_s6 = inlined_call_operand.vmem [shape: bf16[6,128], index: 6, kind: input, shape index: {}]   ;;  %s11074_s7 = inlined_call_operand.vmem [shape: f32[1,128], index: 7, kind: input, shape index: {}]   ;;  %s11075_s8 = inlined_call_operand.vmem [shape: bf16[128,128], index: 8, kind: input, shape index: {}]   ;;  %s11076_s9 = inlined_call_operand.vmem [shape: bf16[256,128], index: 9, kind: input, shape index: {}]   ;;  %s11077_s10 = inlined_call_operand.vmem [shape: f32[1,128], index: 10, kind: input, shape index: {}]   ;;  %s11078_s11 = inlined_call_operand.hbm [shape: f32[1024,128], index: 11, kind: output, shape index: {}]  }
   0x1   :  { %11083 = sst [smem:[#allocation42_spill]] %s11067_s0 }
   0x2   :  { %16 = vsyncpa [#allocation3], 0 }
   0x3   :  { %17 = vsyncpa [#allocation4], 0 }
   0x4   :  { %19 = vsyncpa [#allocation4 + $0x1], 0  ;;  %s8621_s17 = smov 0   ;;  %s8623_s18 = smov 0  }
   0x5   :  { %s8625_s19 = smov 0   ;;  %s8627_s20 = smov 0  }
   0x6 LB: > { %s8642_s21 = sadd.s32 4294967295, %s8552_s20   ;;  %s7514_s22 = sadd.s32 4294967294, %s8552_s20   ;;  %s8552_s20 = sphi %s8627_s20, %s11175_s20   ;;  %s8548_s19 = sphi %s8625_s19, %s11174_s19   ;;  %s8544_s18 = sphi %s8623_s18, %s11173_s18   ;;  %s8540_s17 = sphi %s8621_s17, %s11172_s17  }
   0x7   : > { %s8646_s23 = sadd.s32 1, %s8552_s20   ;;  %s268_s24 = sadd.s32 1, %s8548_s19 }
   0x8   : > { %s265_s25 = ssub.s32 %s8552_s20, %s8646_s23  ;;  %p278_p0 = scmp.ne.s32.totalorder %s8548_s19, %s8544_s18 }
   0x9   : > { %p266_p1 = scmp.eq.s32.totalorder %s265_s25, 0  ;;  %p279_p2 = scmp.eq.s32.totalorder %s8642_s21, 1 }
   0xa   : > { %p284_p3 = scmp.ne.s32.totalorder %s8544_s18, %s8540_s17  ;;  %p285_p4 = scmp.eq.s32.totalorder %s7514_s22, 1 }
   0xb   : > { %s8657_s26 = scalar_select %p266_p1, %s8548_s19, %s268_s24  }
   0xc   : > { %p8659_p5 = por %p279_p2, %p278_p0  ;;  %p8663_p6 = por %p285_p4, %p284_p3 }
   0xd   : > { %p7515_p7 = scmp.ge.s32.totalorder %s8552_s20, 1  ;;  %p292_p8 = scmp.lt.s32.totalorder %s8552_s20, 3 }
   0xe   : > { %s11085_s28 = scalar_select %p8663_p6, 1, 0 }
   0xf   : > { %p8080_p9 = scmp.eq.s32.totalorder %s8642_s21, 0  ;;  %p8670_p10 = pnand %p7515_p7, %p292_p8 }
  0x10   : > { %s8554_s30 = smov [#allocation2]  }
  0x11   : > { %s310_s12 = sshll.u32 %s8554_s30, 4  ;;  %p8072_p11 = pneg %p8670_p10  ;;  %s311_s12 = int_to_ptr.vmem [resolvable:$true] %s310_s12 }
  0x12   : > { %s8473_s13 = scalar_lea.vmem %s311_s12, 24576  ;;  %p8481_p3 = scmp.lt.s32.totalorder %s311_s12, %s311_s12 }
  0x13   : > { %p8073_p12 = pnand %p8080_p9, %p8072_p11  ;;  %p8474_p0 = scmp.ne.s32.totalorder %s311_s12, %s8473_s13 }
  0x14   : > { %p8482_p4 = scmp.lt.s32.totalorder %s8473_s13, %s8473_s13 }
  0x15   : > { %p8464_p13 = pneg %p8073_p12 }
  0x16   : > { %p8483_p6 = por %p8482_p4, %p8481_p3 }
  0x17   : > { %p8476_p1 = pnand %p8474_p0, %p8464_p13 }
  0x19   : > { %p8477_p2 = pneg %p8476_p1 }
  0x1b   : > { %p8484_p7 = pnand %p8483_p6, %p8477_p2 }
  0x1d   : > { %8487 = shalt.err (!%p8484_p7)
}
  0x1e   : > { %s8555_s14 = smov 128   ;;  %s8556_s15 = smov 8  }
  0x1f   : > { %8075 = dma.hbm_to_vmem [thread:$0]  (!%p8073_p12), %s11070_s3, 24576, %s311_s12, [#allocation3], %s8555_s14, %s8555_s14, %s8556_s15  }
  0x20   : > { %356 = sbr.rel (%p8670_p10) target bundleno = 2160 (0x870), region = 64 }
  0x25   : > { %8531 = dma.done.wait (%p8080_p9), [#allocation3], 24576  }
  0x26   : > { %8533 = vsyncadd (%p8080_p9), [#allocation3], 4294942720  ;;  %s7521_s24 = sshll.u32 %s8642_s21, 6  ;;  %v11079_v0 = vmov 0   ;;  %s11087_s0 = sld [smem:[#allocation42_spill]]  ;;  %vm615_vm0 = vcmask 1042432  }
  0x27   : > { %654 = vmatprep.mubr.bf16.mxu0 %v11079_v0  ;;  %p397_p6 = scmp.lt.s32.totalorder %s7521_s24, 127  ;;  %v500_v1 = vld [vmem:[%s11068_s1] sm:$0x77]  ;;  %vm518_vm1 = vcmask 48128   ;;  %v8123_v11 = vld [vmem:[#allocation2 + $0x74] ss:$8 sps:$4 sm:$0xff]  }
  0x28   : > { %v7524_v4 = vcombine.high %v500_v1, %v500_v1  ;;  %v7523_v5 = vcombine.low %v500_v1, %v500_v1  ;;  %v8125_v14 = vld [vmem:[#allocation2 + $0x70] ss:$8 sps:$4 sm:$0xff]   ;;  %1369 = vmatprep.subr.bf16.mxu1 %v8123_v11  ;;  %v8126_v16 = vld [vmem:[#allocation2 + $0x64] ss:$8 sps:$4 sm:$0xff]   ;;  %v8128_v17 = vld [vmem:[#allocation2 + $0x60] ss:$8 sps:$4 sm:$0xff]  }
  0x29   : > { %s11177_s24 = smov (!%p397_p6, %s7521_s24), 127  ;;  %1370 = vmatpush1.bf16.msra.mxu1 %v8125_v14  ;;  %v8129_v18 = vld [vmem:[#allocation2 + $0x54] ss:$8 sps:$4 sm:$0xff]   ;;  %v8131_v21 = vld [vmem:[#allocation2 + $0x50] ss:$8 sps:$4 sm:$0xff]   ;;  %s393_s22 = sand.u32 1, %s8544_s18  }
  0x2a   : > { %s7522_s25 = sshll.u32 %s11177_s24, 3  ;;  %7525 = vmatprep.subr.msk.bf16.mxu0 %vm615_vm0, %v7524_v4  ;;  %v617_v6 = vsel %vm615_vm0, %v7523_v5, 0  ;;  %1371 = vmatprep.subr.bf16.mxu1 %v8126_v16  ;;  %v8132_v24 = vld [vmem:[#allocation2 + $0x44] ss:$8 sps:$4 sm:$0xff]   ;;  %v8134_v25 = vld [vmem:[#allocation2 + $0x40] ss:$8 sps:$4 sm:$0xff]  }
  0x2b   : > { %637 = vmatpush1.bf16.msra.mxu0 %v617_v6  ;;  %v8135_v26 = vld [vmem:[#allocation2 + $0x170] ss:$8 sps:$4 sm:$0xff]   ;;  %v8137_v28 = vld [vmem:[#allocation2 + $0x174] ss:$8 sps:$4 sm:$0xff]   ;;  %v8141_v32 = vld [vmem:[#allocation2 + $0x24] ss:$8 sps:$4 sm:$0xff]  }
  0x2c   : > { %s8692_s12 = scalar_lea.vmem %s11087_s0, %s7522_s25  ;;  %v8138_v29 = vld [vmem:[#allocation2 + $0x34] ss:$8 sps:$4 sm:$0xff]   ;;  %v8140_v30 = vld [vmem:[#allocation2 + $0x30] ss:$8 sps:$4 sm:$0xff]   ;;  %2115 = vmatprep.subr.bf16.mxu0 %v8137_v28  ;;  %v8143_v33 = vld [vmem:[#allocation2 + $0x20] ss:$8 sps:$4 sm:$0xff]  }
  0x2d   : > { %v404_v2 = vld [vmem:[%s8692_s12] sm:$0xff]  ;;  %v405_v3 = vld [vmem:[%s8692_s12 + $0x8] sm:$0xff]  ;;  %v406_v8 = vld [vmem:[%s8692_s12 + $0x10] sm:$0xff]  ;;  %1372 = vmatpush1.bf16.msra.mxu1 %v8128_v17  ;;  %s7520_s24 = sshll.u32 %s393_s22, 9  ;;  %s8558_s25 = smov [#allocation5]  }
  0x2e   : > { %v8701_v7 = vpack.c.bf16 %v405_v3, %v404_v2  ;;  %v407_v9 = vld [vmem:[%s8692_s12 + $0x18] sm:$0xff]  ;;  %v408_v12 = vld [vmem:[%s8692_s12 + $0x20] sm:$0xff]  ;;  %v409_v13 = vld [vmem:[%s8692_s12 + $0x28] sm:$0xff]  ;;  %1373 = vmatprep.subr.bf16.mxu1 %v8129_v18  ;;  %s10805_s13 = scalar_lea.vmem [#allocation5], %s7520_s24  ;;  %s8492_s30 = sshll.u32 %s8558_s25, 4  ;;  %s8493_s30 = int_to_ptr.vmem [resolvable:$false] %s8492_s30 }
  0x2f   : > { %v8708_v10 = vpack.c.bf16 %v407_v9, %v406_v8  ;;  %v8715_v15 = vpack.c.bf16 %v409_v13, %v408_v12  ;;  %v410_v19 = vld [vmem:[%s8692_s12 + $0x30] sm:$0xff]  ;;  %v411_v20 = vld [vmem:[%s8692_s12 + $0x38] sm:$0xff]  ;;  %v412_v23 = vld [vmem:[%s8692_s12 + $0x40] sm:$0xff]  ;;  %s7440_s29 = sshll.u32 %s10805_s13, 4  ;;  %s11020_s29 = int_to_ptr.vmem [resolvable:$true] %s7440_s29 }
  0x30   : > { %7526 = vmatmul.mubr.msk.bf16.vlgmr.msra.gmra.mxu0 %vm518_vm1, %v8701_v7  ;;  %v8722_v22 = vpack.c.bf16 %v411_v20, %v410_v19  ;;  %v413_v27 = vld [vmem:[%s8692_s12 + $0x48] sm:$0xff]  ;;  %v8144_v34 = vld [vmem:[#allocation2 + $0x14] ss:$8 sps:$4 sm:$0xff]   ;;  %v8146_v37 = vld [vmem:[#allocation2 + $0x10] ss:$8 sps:$4 sm:$0xff]   ;;  %s8488_s24 = scalar_lea.vmem %s11020_s29, 8192  ;;  %p8495_p11 = scmp.lt.s32.totalorder %s11020_s29, %s8493_s30 }
  0x31   : > { %664 = vmatprep.mubr.bf16.mxu0 %v11079_v0  ;;  %1374 = vmatpush1.bf16.msra.mxu1 %v8131_v21  ;;  %v8729_v31 = vpack.c.bf16 %v413_v27, %v412_v23  ;;  %v414_v35 = vld [vmem:[%s8692_s12 + $0x50] sm:$0xff]  ;;  %v415_v36 = vld [vmem:[%s8692_s12 + $0x58] sm:$0xff]  ;;  %v416_v39 = vld [vmem:[%s8692_s12 + $0x60] sm:$0xff]  ;;  %p8489_p8 = scmp.ne.s32.totalorder %s11020_s29, %s8488_s24 }
  0x32   : > { %1375 = vmatprep.subr.bf16.mxu1 %v8132_v24  ;;  %2116 = vmatpush1.bf16.msra.mxu0 %v8135_v26  ;;  %v8736_v38 = vpack.c.bf16 %v415_v36, %v414_v35  ;;  %v8147_v40 = vld [vmem:[#allocation2 + $0x4] ss:$8 sps:$4 sm:$0xff]   ;;  %v8149_v41 = vld [vmem:[#allocation2] ss:$8 sps:$4 sm:$0xff]   ;;  %v8153_v45 = vld [vmem:[#allocation2 + $0xf4] ss:$8 sps:$4 sm:$0xff]  }
  0x33   : > { %v8150_v42 = vld [vmem:[#allocation2 + $0x160] ss:$8 sps:$4 sm:$0xff]   ;;  %v8152_v44 = vld [vmem:[#allocation2 + $0x164] ss:$8 sps:$4 sm:$0xff]   ;;  %v8155_v46 = vld [vmem:[#allocation2 + $0xf0] ss:$8 sps:$4 sm:$0xff]   ;;  %p8490_p9 = pnand %p8489_p8, %p8659_p5 }
  0x34   : > { %v417_v43 = vld [vmem:[%s8692_s12 + $0x68] sm:$0xff]  ;;  %2117 = vmatprep.subr.bf16.mxu0 %v8152_v44  ;;  %v8159_v50 = vld [vmem:[#allocation2 + $0xd4] ss:$8 sps:$4 sm:$0xff]   ;;  %v8161_v53 = vld [vmem:[#allocation2 + $0xd0] ss:$8 sps:$4 sm:$0xff]  }
  0x35   : > { %1376 = vmatpush1.bf16.msra.mxu1 %v8134_v25  ;;  %v8743_v47 = vpack.c.bf16 %v417_v43, %v416_v39  ;;  %v8156_v48 = vld [vmem:[#allocation2 + $0xe4] ss:$8 sps:$4 sm:$0xff]   ;;  %v8158_v49 = vld [vmem:[#allocation2 + $0xe0] ss:$8 sps:$4 sm:$0xff]   ;;  %v418_v51 = vld [vmem:[%s8692_s12 + $0x70] sm:$0xff]  ;;  %p8491_p10 = pneg %p8490_p9 }
  0x36   : > { %1377 = vmatprep.subr.bf16.mxu1 %v8138_v29  ;;  %2118 = vmatpush1.bf16.msra.mxu0 %v8150_v42  ;;  %v419_v52 = vld [vmem:[%s8692_s12 + $0x78] sm:$0xff]  ;;  %v420_v55 = vld [vmem:[%s8692_s12 + $0x80] sm:$0xff]  ;;  %v421_v59 = vld [vmem:[%s8692_s12 + $0x88] sm:$0xff] }
  0x37   : > { %v8750_v54 = vpack.c.bf16 %v419_v52, %v418_v51  ;;  %v8162_v56 = vld [vmem:[#allocation2 + $0xc4] ss:$8 sps:$4 sm:$0xff]   ;;  %v8164_v57 = vld [vmem:[#allocation2 + $0xc0] ss:$8 sps:$4 sm:$0xff]   ;;  %v8165_v58 = vld [vmem:[#allocation2 + $0x150] ss:$8 sps:$4 sm:$0xff]   ;;  %v8757_v63 = vpack.c.bf16 %v421_v59, %v420_v55 }
  0x38   : > { %7527 = vmatmul.mubr.msk.bf16.gmra.mxu0 %vm518_vm1, %v8708_v10  ;;  %v8167_v60 = vld [vmem:[#allocation2 + $0x154] ss:$8 sps:$4 sm:$0xff]   ;;  %v8170_v62 = vld [vmem:[#allocation2 + $0xb0] ss:$8 sps:$4 sm:$0xff]   ;;  %v8171_v3 = vld [vmem:[#allocation2 + $0xa4] ss:$8 sps:$4 sm:$0xff]  }
  0x39   : > { %674 = vmatprep.mubr.bf16.mxu0 %v11079_v0  ;;  %1378 = vmatpush1.bf16.msra.mxu1 %v8140_v30  ;;  %v8168_v61 = vld [vmem:[#allocation2 + $0xb4] ss:$8 sps:$4 sm:$0xff]   ;;  %v8173_v4 = vld [vmem:[#allocation2 + $0xa0] ss:$8 sps:$4 sm:$0xff]   ;;  %v8176_v8 = vld [vmem:[#allocation2 + $0x90] ss:$8 sps:$4 sm:$0xff]  }
  0x3a   : > { %1379 = vmatprep.subr.bf16.mxu1 %v8141_v32  ;;  %2119 = vmatprep.subr.bf16.mxu0 %v8167_v60  ;;  %v422_v1 = vld [vmem:[%s8692_s12 + $0x90] sm:$0xff]  ;;  %v423_v2 = vld [vmem:[%s8692_s12 + $0x98] sm:$0xff]  ;;  %v424_v9 = vld [vmem:[%s8692_s12 + $0xa0] sm:$0xff] }
  0x3b   : > { %2120 = vmatpush1.bf16.msra.mxu0 %v8165_v58  ;;  %v8764_v5 = vpack.c.bf16 %v423_v2, %v422_v1  ;;  %v8174_v6 = vld [vmem:[#allocation2 + $0x94] ss:$8 sps:$4 sm:$0xff]   ;;  %v425_v11 = vld [vmem:[%s8692_s12 + $0xa8] sm:$0xff]  ;;  %v428_v21 = vld [vmem:[%s8692_s12 + $0xc0] sm:$0xff] }
  0x3c   : > { %v8177_v12 = vld [vmem:[#allocation2 + $0x84] ss:$8 sps:$4 sm:$0xff]   ;;  %v8179_v13 = vld [vmem:[#allocation2 + $0x80] ss:$8 sps:$4 sm:$0xff]   ;;  %v8771_v14 = vpack.c.bf16 %v425_v11, %v424_v9  ;;  %v426_v18 = vld [vmem:[%s8692_s12 + $0xb0] sm:$0xff] }
  0x3d   : > { %1380 = vmatpush1.bf16.msra.mxu1 %v8143_v33  ;;  %v8180_v16 = vld [vmem:[#allocation2 + $0x140] ss:$8 sps:$4 sm:$0xff]   ;;  %v8182_v17 = vld [vmem:[#allocation2 + $0x144] ss:$8 sps:$4 sm:$0xff]   ;;  %v427_v19 = vld [vmem:[%s8692_s12 + $0xb8] sm:$0xff] }
  0x3e   : > { %1381 = vmatprep.subr.bf16.mxu1 %v8144_v34  ;;  %2121 = vmatprep.subr.bf16.mxu0 %v8182_v17  ;;  %v8778_v20 = vpack.c.bf16 %v427_v19, %v426_v18  ;;  %v429_v23 = vld [vmem:[%s8692_s12 + $0xc8] sm:$0xff]  ;;  %v8183_v25 = vld [vmem:[#allocation2 + $0x130] ss:$8 sps:$4 sm:$0xff]   ;;  %v8185_v26 = vld [vmem:[#allocation2 + $0x134] ss:$8 sps:$4 sm:$0xff]   ;;  %v503_v17 = vlaneseq }
  0x3f   : > { %2122 = vmatpush1.bf16.msra.mxu0 %v8180_v16  ;;  %v8785_v24 = vpack.c.bf16 %v429_v23, %v428_v21  ;;  %v430_v27 = vld [vmem:[%s8692_s12 + $0xd0] sm:$0xff]  ;;  %v431_v28 = vld [vmem:[%s8692_s12 + $0xd8] sm:$0xff]  ;;  %v432_v30 = vld [vmem:[%s8692_s12 + $0xe0] sm:$0xff] }
  0x40   : > { %7528 = vmatmul.mubr.msk.bf16.gmra.mxu0 %vm518_vm1, %v8715_v15  ;;  %2123 = vmatprep.subr.bf16.mxu0 %v8185_v26  ;;  %v8792_v29 = vpack.c.bf16 %v431_v28, %v430_v27  ;;  %v433_v32 = vld [vmem:[%s8692_s12 + $0xe8] sm:$0xff]  ;;  %v434_v36 = vld [vmem:[%s8692_s12 + $0xf0] sm:$0xff]  ;;  %v444_v58 = vld [vmem:[%s8692_s12 + $0x140] sm:$0xff]  ;;  %v8869_v21 = vshrl.u32 %v503_v17, 7 }
  0x41   : > { %684 = vmatprep.mubr.bf16.mxu0 %v11079_v0  ;;  %1382 = vmatpush1.bf16.msra.mxu1 %v8146_v37  ;;  %v8799_v33 = vpack.c.bf16 %v433_v32, %v432_v30  ;;  %v8186_v34 = vld [vmem:[#allocation2 + $0x120] ss:$8 sps:$4 sm:$0xff]   ;;  %v8188_v35 = vld [vmem:[#allocation2 + $0x124] ss:$8 sps:$4 sm:$0xff]   ;;  %v435_v37 = vld [vmem:[%s8692_s12 + $0xf8] sm:$0xff] }
  0x42   : > { %1383 = vmatprep.subr.bf16.mxu1 %v8147_v40  ;;  %v8806_v39 = vpack.c.bf16 %v435_v37, %v434_v36  ;;  %v436_v40 = vld [vmem:[%s8692_s12 + $0x100] sm:$0xff]  ;;  %v8189_v43 = vld [vmem:[#allocation2 + $0x110] ss:$8 sps:$4 sm:$0xff]   ;;  %v8191_v44 = vld [vmem:[#allocation2 + $0x114] ss:$8 sps:$4 sm:$0xff]   ;;  %v8877_v28 = vsub.s32 0, %v8869_v21 }
  0x43   : > { %2124 = vmatpush1.bf16.msra.mxu0 %v8183_v25  ;;  %v8192_v52 = vld [vmem:[#allocation2 + $0x100] ss:$8 sps:$4 sm:$0xff]   ;;  %v442_v55 = vld [vmem:[%s8692_s12 + $0x130] sm:$0xff]  ;;  %v447_v2 = vld [vmem:[%s8692_s12 + $0x158] sm:$0xff]  ;;  %v8874_v25 = vsub.s32 1, %v8869_v21 }
  0x44   : > { %2125 = vmatprep.subr.bf16.mxu0 %v8188_v35  ;;  %v445_v59 = vld [vmem:[%s8692_s12 + $0x148] sm:$0xff]  ;;  %v446_v1 = vld [vmem:[%s8692_s12 + $0x150] sm:$0xff]  ;;  %v452_v18 = vld [vmem:[%s8692_s12 + $0x180] sm:$0xff] }
  0x45   : > { %1384 = vmatpush1.bf16.msra.mxu1 %v8149_v41  ;;  %v437_v41 = vld [vmem:[%s8692_s12 + $0x108] sm:$0xff]  ;;  %v8841_v60 = vpack.c.bf16 %v445_v59, %v444_v58  ;;  %v8201_v26 = vld [vmem:[#allocation2 + $0x1d0] ss:$8 sps:$4 sm:$0xff]   ;;  %v8203_v27 = vld [vmem:[#allocation2 + $0x1d4] ss:$8 sps:$4 sm:$0xff]  }
  0x46   : > { %1385 = vmatprep.subr.bf16.mxu1 %v8153_v45  ;;  %v8813_v42 = vpack.c.bf16 %v437_v41, %v436_v40  ;;  %v438_v45 = vld [vmem:[%s8692_s12 + $0x110] sm:$0xff]  ;;  %v8198_v9 = vld [vmem:[#allocation2 + $0x1e0] ss:$8 sps:$4 sm:$0xff]   ;;  %v8200_v11 = vld [vmem:[#allocation2 + $0x1e4] ss:$8 sps:$4 sm:$0xff]  }
  0x47   : > { %2126 = vmatpush1.bf16.msra.mxu0 %v8186_v34  ;;  %v453_v19 = vld [vmem:[%s8692_s12 + $0x188] sm:$0xff]  ;;  %v501_v30 = vld [vmem:[%s11069_s2] sm:$0x3]  ;;  %v454_v35 = vld [vmem:[%s8692_s12 + $0x190] sm:$0xff] }
  0x48   : > { %7529 = vmatmul.mubr.msk.bf16.gmra.mxu0 %vm518_vm1, %v8722_v22  ;;  %2127 = vmatprep.subr.bf16.mxu0 %v8191_v44  ;;  %v8871_v23 = vpack.c.bf16 %v453_v19, %v452_v18  ;;  %v8885_v34 = vrot.slane %v501_v30, %v8874_v25  ;;  %v455_v36 = vld [vmem:[%s8692_s12 + $0x198] sm:$0xff]  ;;  %v8891_v37 = vrot.slane %v501_v30, %v8877_v28  ;;  %v456_v58 = vld [vmem:[%s8692_s12 + $0x1a0] sm:$0xff]  ;;  %v457_v59 = vld [vmem:[%s8692_s12 + $0x1a8] sm:$0xff] }
  0x49   : > { %694 = vmatprep.mubr.bf16.mxu0 %v11079_v0  ;;  %1386 = vmatpush2.bf16.msra.mxu1 %v8155_v46  ;;  %v439_v46 = vld [vmem:[%s8692_s12 + $0x118] sm:$0xff] }
  0x4a   : > { %1387 = vmatprep.subr.bf16.mxu1 %v8156_v48  ;;  %v8820_v48 = vpack.c.bf16 %v439_v46, %v438_v45 }
  0x4b   : > { %2128 = vmatpush1.bf16.msra.mxu0 %v8189_v43  ;;  %v8893_v43 = vpack.c.bf16 %v455_v36, %v454_v35  ;;  %v458_v35 = vld [vmem:[%s8692_s12 + $0x1b0] sm:$0xff]  ;;  %v459_v36 = vld [vmem:[%s8692_s12 + $0x1b8] sm:$0xff] }
  0x4d   : > { %1388 = vmatpush2.bf16.msra.mxu1 %v8158_v49  ;;  %v440_v49 = vld [vmem:[%s8692_s12 + $0x120] sm:$0xff] }
  0x4e   : > { %1389 = vmatprep.subr.bf16.mxu1 %v8159_v50  ;;  %v441_v50 = vld [vmem:[%s8692_s12 + $0x128] sm:$0xff] }
  0x4f   : > { %v8827_v51 = vpack.c.bf16 %v441_v50, %v440_v49 }
  0x50   : > { %7530 = vmatmul.mubr.msk.bf16.gmra.mxu0 %vm518_vm1, %v8729_v31 }
  0x51   : > { %704 = vmatprep.mubr.bf16.mxu0 %v11079_v0  ;;  %1390 = vmatpush2.bf16.msra.mxu1 %v8161_v53  ;;  %v8194_v53 = vld [vmem:[#allocation2 + $0x104] ss:$8 sps:$4 sm:$0xff]  }
  0x52   : > { %1391 = vmatprep.subr.bf16.mxu1 %v8162_v56  ;;  %2129 = vmatprep.subr.bf16.mxu0 %v8194_v53  ;;  %v443_v56 = vld [vmem:[%s8692_s12 + $0x138] sm:$0xff] }
  0x53   : > { %2130 = vmatpush1.bf16.msra.mxu0 %v8192_v52 }
  0x55   : > { %1392 = vmatpush2.bf16.msra.mxu1 %v8164_v57  ;;  %v8834_v57 = vpack.c.bf16 %v443_v56, %v442_v55 }
  0x56   : > { %1393 = vmatprep.subr.bf16.mxu1 %v8168_v61  ;;  %v8195_v61 = vld [vmem:[#allocation2 + $0x1f0] ss:$8 sps:$4 sm:$0xff]  }
  0x58   : > { %7531 = vmatmul.mubr.msk.bf16.gmra.mxu0 %vm518_vm1, %v8736_v38 }
  0x59   : > { %714 = vmatprep.mubr.bf16.mxu0 %v11079_v0  ;;  %1394 = vmatpush2.bf16.msra.mxu1 %v8170_v62  ;;  %v8197_v62 = vld [vmem:[#allocation2 + $0x1f4] ss:$8 sps:$4 sm:$0xff]  }
  0x5a   : > { %1395 = vmatprep.subr.bf16.mxu1 %v8171_v3  ;;  %2131 = vmatprep.subr.bf16.mxu0 %v8197_v62  ;;  %v8848_v3 = vpack.c.bf16 %v447_v2, %v446_v1 }
  0x5b   : > { %2132 = vmatpush2.bf16.msra.mxu0 %v8195_v61 }
  0x5c   : > { %2133 = vmatprep.subr.bf16.mxu0 %v8200_v11 }
  0x5d   : > { %1396 = vmatpush2.bf16.msra.mxu1 %v8173_v4  ;;  %v448_v4 = vld [vmem:[%s8692_s12 + $0x160] sm:$0xff] }
  0x5e   : > { %1397 = vmatprep.subr.bf16.mxu1 %v8174_v6  ;;  %v449_v6 = vld [vmem:[%s8692_s12 + $0x168] sm:$0xff] }
  0x5f   : > { %2134 = vmatpush2.bf16.msra.mxu0 %v8198_v9 }
  0x60   : > { %7532 = vmatmul.mubr.msk.bf16.gmra.mxu0 %vm518_vm1, %v8743_v47  ;;  %2135 = vmatprep.subr.bf16.mxu0 %v8203_v27 }
  0x61   : > { %724 = vmatprep.mubr.bf16.mxu0 %v11079_v0  ;;  %1398 = vmatpush2.bf16.msra.mxu1 %v8176_v8  ;;  %v8855_v8 = vpack.c.bf16 %v449_v6, %v448_v4  ;;  %v8904_v6 = vpack.c.bf16 %v457_v59, %v456_v58 }
  0x62   : > { %1399 = vmatprep.subr.bf16.mxu1 %v8177_v12  ;;  %v450_v12 = vld [vmem:[%s8692_s12 + $0x170] sm:$0xff] }
  0x63   : > { %2136 = vmatpush2.bf16.msra.mxu0 %v8201_v26 }
  0x65   : > { %1400 = vmatpush2.bf16.msra.mxu1 %v8179_v13  ;;  %v451_v13 = vld [vmem:[%s8692_s12 + $0x178] sm:$0xff] }
  0x66   : > { %v8862_v16 = vpack.c.bf16 %v451_v13, %v450_v12  ;;  %v8204_v12 = vld [vmem:[#allocation2 + $0x1c0] ss:$8 sps:$4 sm:$0xff]   ;;  %v8206_v13 = vld [vmem:[#allocation2 + $0x1c4] ss:$8 sps:$4 sm:$0xff]  }
  0x67   : > { %2137 = vmatprep.subr.bf16.mxu0 %v8206_v13 }
  0x68   : > { %7533 = vmatmul.mubr.msk.bf16.gmra.mxu0 %vm518_vm1, %v8750_v54 }
  0x69   : > { %734 = vmatprep.mubr.bf16.mxu0 %v11079_v0  ;;  %2138 = vmatpush2.bf16.msra.mxu0 %v8204_v12 }
  0x70   : > { %7534 = vmatmul.mubr.msk.bf16.gmra.mxu0 %vm518_vm1, %v8757_v63 }
  0x71   : > { %744 = vmatprep.mubr.bf16.mxu0 %v11079_v0 }
  0x78   : > { %7535 = vmatmul.mubr.msk.bf16.gmra.mxu0 %vm518_vm1, %v8764_v5 }
  0x79   : > { %754 = vmatprep.mubr.bf16.mxu0 %v11079_v0 }
  0x80   : > { %7536 = vmatmul.mubr.msk.bf16.gmra.mxu0 %vm518_vm1, %v8771_v14 }
  0x81   : > { %764 = vmatprep.mubr.bf16.mxu0 %v11079_v0 }
  0x88   : > { %7537 = vmatmul.mubr.msk.bf16.gmra.mxu0 %vm518_vm1, %v8778_v20 }
  0x89   : > { %774 = vmatprep.mubr.bf16.mxu0 %v11079_v0 }
  0x90   : > { %7538 = vmatmul.mubr.msk.bf16.gmra.mxu0 %vm518_vm1, %v8785_v24 }
  0x91   : > { %784 = vmatprep.mubr.bf16.mxu0 %v11079_v0 }
  0x98   : > { %7539 = vmatmul.mubr.msk.bf16.gmra.mxu0 %vm518_vm1, %v8792_v29 }
  0x99   : > { %794 = vmatprep.mubr.bf16.mxu0 %v11079_v0 }
  0xa0   : > { %7540 = vmatmul.mubr.msk.bf16.gmra.mxu0 %vm518_vm1, %v8799_v33 }
  0xa1   : > { %804 = vmatprep.mubr.bf16.mxu0 %v11079_v0 }
  0xa8   : > { %7541 = vmatmul.mubr.msk.bf16.gmra.mxu0 %vm518_vm1, %v8806_v39 }
  0xa9   : > { %814 = vmatprep.mubr.bf16.mxu0 %v11079_v0 }
  0xb0   : > { %7542 = vmatmul.mubr.msk.bf16.gmra.mxu0 %vm518_vm1, %v8813_v42 }
  0xb1   : > { %824 = vmatprep.mubr.bf16.mxu0 %v11079_v0 }
  0xb8   : > { %7543 = vmatmul.mubr.msk.bf16.gmra.mxu0 %vm518_vm1, %v8820_v48 }
  0xb9   : > { %834 = vmatprep.mubr.bf16.mxu0 %v11079_v0 }
  0xc0   : > { %7544 = vmatmul.mubr.msk.bf16.gmra.mxu0 %vm518_vm1, %v8827_v51 }
  0xc1   : > { %844 = vmatprep.mubr.bf16.mxu0 %v11079_v0 }
  0xc8   : > { %7545 = vmatmul.mubr.msk.bf16.gmra.mxu0 %vm518_vm1, %v8834_v57 }
  0xc9   : > { %854 = vmatprep.mubr.bf16.mxu0 %v11079_v0 }
  0xd0   : > { %7546 = vmatmul.mubr.msk.bf16.gmra.mxu0 %vm518_vm1, %v8841_v60 }
  0xd1   : > { %864 = vmatprep.mubr.bf16.mxu0 %v11079_v0 }
  0xd8   : > { %7547 = vmatmul.mubr.msk.bf16.gmra.mxu0 %vm518_vm1, %v8848_v3 }
  0xd9   : > { %874 = vmatprep.mubr.bf16.mxu0 %v11079_v0 }
  0xe0   : > { %7548 = vmatmul.mubr.msk.bf16.gmra.mxu0 %vm518_vm1, %v8855_v8 }
  0xe1   : > { %884 = vmatprep.mubr.bf16.mxu0 %v11079_v0 }
  0xe8   : > { %7549 = vmatmul.mubr.msk.bf16.gmra.mxu0 %vm518_vm1, %v8862_v16 }
  0xe9   : > { %894 = vmatprep.mubr.bf16.mxu0 %v11079_v0 }
  0xf0   : > { %v656_v32 = vpop.f32.mrf.mxu0  ;;  %7550 = vmatmul.mubr.msk.bf16.gmra.mxu0 %vm518_vm1, %v8871_v23 }
  0xf1   : > { %904 = vmatprep.mubr.bf16.mxu0 %v11079_v0  ;;  %v657_v46 = vadd.f32 %v656_v32, %v8891_v37 }
  0xf2   : > { %v658_v40 = vpop.f32.mrf.mxu0 }
  0xf3   : > { %v659_v44 = vadd.f32 %v658_v40, %v8885_v34  ;;  %v975_v61 = vmax.f32 %v657_v46, 0.0 }
  0xf4   : > { %v660_v41 = vpop.f32.mrf.mxu0 }
  0xf5   : > { %v661_v45 = vadd.f32 %v660_v41, %v8891_v37  ;;  %v976_v55 = vmax.f32 %v659_v44, 0.0 }
  0xf6   : > { %v662_v49 = vpop.f32.mrf.mxu0 }
  0xf7   : > { %v663_v50 = vadd.f32 %v662_v49, %v8885_v34  ;;  %v977_v52 = vmax.f32 %v661_v45, 0.0  ;;  %v8915_v49 = vpack.c.bf16 %v459_v36, %v458_v35 }
  0xf8   : > { %v666_v53 = vpop.f32.mrf.mxu0  ;;  %7551 = vmatmul.mubr.msk.bf16.gmra.mxu0 %vm518_vm1, %v8893_v43 }
  0xf9   : > { %v978_v56 = vmax.f32 %v663_v50, 0.0  ;;  %914 = vmatprep.mubr.bf16.mxu0 %v11079_v0  ;;  %v1105_v2 = vpack.c.bf16 %v977_v52, %v975_v61  ;;  %v667_v17 = vadd.f32 %v666_v53, %v8891_v37 }
  0xfa   : > { %v668_v62 = vpop.f32.mrf.mxu0 }
  0xfb   : > { %v1106_v1 = vpack.c.bf16 %v978_v56, %v976_v55  ;;  %v669_v9 = vadd.f32 %v668_v62, %v8885_v34  ;;  %v979_v40 = vmax.f32 %v667_v17, 0.0 }
  0xfc   : > { %v670_v4 = vpop.f32.mrf.mxu0 }
  0xfd   : > { %v671_v11 = vadd.f32 %v670_v4, %v8891_v37  ;;  %1401 = vmatprep.mubr.bf16.mxu1 %v1106_v1  ;;  %v980_v30 = vmax.f32 %v669_v9, 0.0  ;;  %v460_v1 = vld [vmem:[%s8692_s12 + $0x1c0] sm:$0xff] }
  0xfe   : > { %v672_v18 = vpop.f32.mrf.mxu0  ;;  %1402 = vmatmul.mubr.bf16.vlgmr.msra.gmra.mxu1 %v1105_v2  ;;  %v461_v2 = vld [vmem:[%s8692_s12 + $0x1c8] sm:$0xff] }
  0xff   : > { %v673_v19 = vadd.f32 %v672_v18, %v8885_v34  ;;  %v981_v26 = vmax.f32 %v671_v11, 0.0  ;;  %v8926_v17 = vpack.c.bf16 %v461_v2, %v460_v1 }
 0x100   : > { %v676_v27 = vpop.f32.mrf.mxu0  ;;  %7552 = vmatmul.mubr.msk.bf16.gmra.mxu0 %vm518_vm1, %v8904_v6 }
 0x101   : > { %v982_v32 = vmax.f32 %v673_v19, 0.0  ;;  %924 = vmatprep.mubr.bf16.mxu0 %v11079_v0  ;;  %v1107_v45 = vpack.c.bf16 %v981_v26, %v979_v40  ;;  %v677_v53 = vadd.f32 %v676_v27, %v8891_v37  ;;  %v8207_v26 = vld [vmem:[#allocation2 + $0x1b0] ss:$8 sps:$4 sm:$0xff]   ;;  %v8209_v27 = vld [vmem:[#allocation2 + $0x1b4] ss:$8 sps:$4 sm:$0xff]  }
 0x102   : > { %v678_v41 = vpop.f32.mrf.mxu0  ;;  %2139 = vmatprep.subr.bf16.mxu0 %v8209_v27 }
 0x103   : > { %v1108_v44 = vpack.c.bf16 %v982_v32, %v980_v30  ;;  %v679_v50 = vadd.f32 %v678_v41, %v8885_v34  ;;  %v983_v4 = vmax.f32 %v677_v53, 0.0  ;;  %2140 = vmatpush2.bf16.msra.mxu0 %v8207_v26 }
 0x104   : > { %v680_v46 = vpop.f32.mrf.mxu0 }
 0x105   : > { %v681_v52 = vadd.f32 %v680_v46, %v8891_v37  ;;  %1411 = vmatprep.mubr.bf16.mxu1 %v1108_v44  ;;  %v984_v61 = vmax.f32 %v679_v50, 0.0  ;;  %v463_v46 = vld [vmem:[%s8692_s12 + $0x1d8] sm:$0xff] }
 0x106   : > { %v682_v55 = vpop.f32.mrf.mxu0  ;;  %1412 = vmatmul.mubr.bf16.gmra.mxu1 %v1107_v45  ;;  %v462_v45 = vld [vmem:[%s8692_s12 + $0x1d0] sm:$0xff] }
 0x107   : > { %v683_v56 = vadd.f32 %v682_v55, %v8885_v34  ;;  %v985_v58 = vmax.f32 %v681_v52, 0.0 }
 0x108   : > { %v686_v59 = vpop.f32.mrf.mxu0  ;;  %7553 = vmatmul.mubr.msk.bf16.gmra.mxu0 %vm518_vm1, %v8915_v49 }
 0x109   : > { %v986_v62 = vmax.f32 %v683_v56, 0.0  ;;  %934 = vmatprep.mubr.bf16.mxu0 %v11079_v0  ;;  %v1109_v12 = vpack.c.bf16 %v985_v58, %v983_v4  ;;  %v687_v30 = vadd.f32 %v686_v59, %v8891_v37  ;;  %v8937_v58 = vpack.c.bf16 %v463_v46, %v462_v45  ;;  %v8213_v45 = vld [vmem:[#allocation2 + $0x1a0] ss:$8 sps:$4 sm:$0xff]   ;;  %v8215_v46 = vld [vmem:[#allocation2 + $0x1a4] ss:$8 sps:$4 sm:$0xff]  }
 0x10a   : > { %v688_v9 = vpop.f32.mrf.mxu0  ;;  %2141 = vmatprep.subr.bf16.mxu0 %v8215_v46 }
 0x10b   : > { %v1110_v11 = vpack.c.bf16 %v986_v62, %v984_v61  ;;  %v689_v18 = vadd.f32 %v688_v9, %v8885_v34  ;;  %v987_v50 = vmax.f32 %v687_v30, 0.0  ;;  %v8210_v30 = vld [vmem:[#allocation2 + $0x270] ss:$8 sps:$4 sm:$0xff]   ;;  %2142 = vmatpush2.bf16.msra.mxu0 %v8213_v45 }
 0x10c   : > { %v690_v13 = vpop.f32.mrf.mxu0 }
 0x10d   : > { %v691_v19 = vadd.f32 %v690_v13, %v8891_v37  ;;  %1421 = vmatprep.mubr.bf16.mxu1 %v1110_v11  ;;  %v988_v41 = vmax.f32 %v689_v18, 0.0  ;;  %v464_v13 = vld [vmem:[%s8692_s12 + $0x1e0] sm:$0xff]  ;;  %v465_v18 = vld [vmem:[%s8692_s12 + $0x1e8] sm:$0xff] }
 0x10e   : > { %v692_v32 = vpop.f32.mrf.mxu0  ;;  %1422 = vmatmul.mubr.bf16.gmra.mxu1 %v1109_v12 }
 0x10f   : > { %v693_v35 = vadd.f32 %v692_v32, %v8885_v34  ;;  %v989_v36 = vmax.f32 %v691_v19, 0.0  ;;  %v8212_v32 = vld [vmem:[#allocation2 + $0x274] ss:$8 sps:$4 sm:$0xff]  }
 0x110   : > { %v696_v40 = vpop.f32.mrf.mxu0  ;;  %7554 = vmatmul.mubr.msk.bf16.gmra.mxu0 %vm518_vm1, %v8926_v17  ;;  %2861 = vmatprep.subr.bf16.mxu1 %v8212_v32 }
 0x111   : > { %v990_v44 = vmax.f32 %v693_v35, 0.0  ;;  %944 = vmatprep.mubr.bf16.mxu0 %v11079_v0  ;;  %v1111_v55 = vpack.c.bf16 %v989_v36, %v987_v50  ;;  %v697_v62 = vadd.f32 %v696_v40, %v8891_v37  ;;  %v8948_v40 = vpack.c.bf16 %v465_v18, %v464_v13  ;;  %2862 = vmatpush1.bf16.msra.mxu1 %v8210_v30 }
 0x112   : > { %v698_v52 = vpop.f32.mrf.mxu0 }
 0x113   : > { %v1112_v53 = vpack.c.bf16 %v990_v44, %v988_v41  ;;  %v699_v59 = vadd.f32 %v698_v52, %v8885_v34  ;;  %v991_v19 = vmax.f32 %v697_v62, 0.0  ;;  %11088 = vst [vmem:[#allocation8_spill] sm:$0xff] %v8948_v40  ;;  %v466_v62 = vld [vmem:[%s8692_s12 + $0x1f0] sm:$0xff] }
 0x114   : > { %v700_v56 = vpop.f32.mrf.mxu0 }
 0x115   : > { %v701_v61 = vadd.f32 %v700_v56, %v8891_v37  ;;  %1431 = vmatprep.mubr.bf16.mxu1 %v1112_v53  ;;  %v992_v11 = vmax.f32 %v699_v59, 0.0 }
 0x116   : > { %v702_v1 = vpop.f32.mrf.mxu0  ;;  %1432 = vmatmul.mubr.bf16.gmra.mxu1 %v1111_v55 }
 0x117   : > { %v703_v2 = vadd.f32 %v702_v1, %v8885_v34  ;;  %v993_v4 = vmax.f32 %v701_v61, 0.0  ;;  %v467_v1 = vld [vmem:[%s8692_s12 + $0x1f8] sm:$0xff]  ;;  %s7829_s12 = sshll.u32 %s8642_s21, 13  ;;  %s11027_s21 = scalar_lea.sflag [#allocation4], %s393_s22 }
 0x118   : > { %v706_v9 = vpop.f32.mrf.mxu0  ;;  %7555 = vmatmul.mubr.msk.bf16.gmra.mxu0 %vm518_vm1, %v8937_v58  ;;  %v8959_v13 = vpack.c.bf16 %v467_v1, %v466_v62  ;;  %v8221_v62 = vld [vmem:[#allocation2 + $0x194] ss:$8 sps:$4 sm:$0xff]   ;;  %s11018_s16 = scalar_lea.hbm %s11078_s11, %s7829_s12  ;;  %s8494_s12 = scalar_lea.vmem %s8493_s30, 16384 }
 0x119   : > { %v994_v12 = vmax.f32 %v703_v2, 0.0  ;;  %954 = vmatprep.mubr.bf16.mxu0 %v11079_v0  ;;  %v1113_v35 = vpack.c.bf16 %v993_v4, %v991_v19  ;;  %v707_v50 = vadd.f32 %v706_v9, %v8891_v37  ;;  %2143 = vmatprep.subr.bf16.mxu0 %v8221_v62  ;;  %v8224_v62 = vld [vmem:[#allocation2 + $0x254] ss:$8 sps:$4 sm:$0xff]   ;;  %p8496_p12 = scmp.lt.s32.totalorder %s8494_s12, %s8488_s24 }
 0x11a   : > { %v708_v26 = vpop.f32.mrf.mxu0  ;;  %11089 = vst [vmem:[#allocation9_spill] sm:$0xff] %v8959_v13 }
 0x11b   : > { %v1114_v27 = vpack.c.bf16 %v994_v12, %v992_v11  ;;  %v709_v41 = vadd.f32 %v708_v26, %v8885_v34  ;;  %v995_v2 = vmax.f32 %v707_v50, 0.0  ;;  %v8216_v50 = vld [vmem:[#allocation2 + $0x260] ss:$8 sps:$4 sm:$0xff]   ;;  %p8497_p13 = por %p8496_p12, %p8495_p11 }
 0x11c   : > { %v710_v36 = vpop.f32.mrf.mxu0 }
 0x11d   : > { %v711_v44 = vadd.f32 %v710_v36, %v8891_v37  ;;  %1441 = vmatprep.mubr.bf16.mxu1 %v1114_v27  ;;  %v996_v59 = vmax.f32 %v709_v41, 0.0  ;;  %p8498_p0 = pnand %p8497_p13, %p8491_p10 }
 0x11e   : > { %v712_v52 = vpop.f32.mrf.mxu0  ;;  %1442 = vmatmul.mubr.bf16.gmra.mxu1 %v1113_v35 }
 0x11f   : > { %v713_v53 = vadd.f32 %v712_v52, %v8885_v34  ;;  %v997_v55 = vmax.f32 %v711_v44, 0.0  ;;  %v8218_v52 = vld [vmem:[#allocation2 + $0x264] ss:$8 sps:$4 sm:$0xff]  }
 0x120   : > { %v716_v56 = vpop.f32.mrf.mxu0  ;;  %7556 = vmatmul.mubr.msk.bf16.gmra.mxu0 %vm518_vm1, %v8948_v40  ;;  %2863 = vmatprep.subr.bf16.mxu1 %v8218_v52 }
 0x121   : > { %v998_v61 = vmax.f32 %v713_v53, 0.0  ;;  %964 = vmatprep.mubr.bf16.mxu0 %v11079_v0  ;;  %v1115_v11 = vpack.c.bf16 %v997_v55, %v995_v2  ;;  %v717_v26 = vadd.f32 %v716_v56, %v8891_v37  ;;  %2864 = vmatpush1.bf16.msra.mxu1 %v8216_v50 }
 0x122   : > { %v718_v4 = vpop.f32.mrf.mxu0  ;;  %2865 = vmatprep.subr.bf16.mxu1 %v8224_v62 }
 0x123   : > { %v1116_v9 = vpack.c.bf16 %v998_v61, %v996_v59  ;;  %v719_v18 = vadd.f32 %v718_v4, %v8885_v34  ;;  %v999_v44 = vmax.f32 %v717_v26, 0.0  ;;  %v8219_v61 = vld [vmem:[#allocation2 + $0x190] ss:$8 sps:$4 sm:$0xff]  }
 0x124   : > { %v720_v12 = vpop.f32.mrf.mxu0  ;;  %2144 = vmatpush2.bf16.msra.mxu0 %v8219_v61  ;;  %v8222_v61 = vld [vmem:[#allocation2 + $0x250] ss:$8 sps:$4 sm:$0xff]  }
 0x125   : > { %v721_v19 = vadd.f32 %v720_v12, %v8891_v37  ;;  %1451 = vmatprep.mubr.bf16.mxu1 %v1116_v9  ;;  %v1000_v36 = vmax.f32 %v719_v18, 0.0  ;;  %2866 = vmatpush1.bf16.msra.mxu1 %v8222_v61 }
 0x126   : > { %v722_v27 = vpop.f32.mrf.mxu0  ;;  %1452 = vmatmul.mubr.bf16.gmra.mxu1 %v1115_v11 }
 0x127   : > { %v723_v30 = vadd.f32 %v722_v27, %v8885_v34  ;;  %v1001_v32 = vmax.f32 %v721_v19, 0.0 }
 0x128   : > { %v726_v35 = vpop.f32.mrf.mxu0  ;;  %7557 = vmatmul.mubr.msk.bf16.gmra.mxu0 %vm518_vm1, %v8959_v13  ;;  %v8252_v13 = vld [vmem:[#allocation2 + $0x2c0] ss:$8 sps:$4 sm:$0xff]  }
 0x129   : > { %v1002_v41 = vmax.f32 %v723_v30, 0.0  ;;  %v1117_v53 = vpack.c.bf16 %v1001_v32, %v999_v44  ;;  %v727_v1 = vadd.f32 %v726_v35, %v8891_v37 }
 0x12a   : > { %v728_v45 = vpop.f32.mrf.mxu0 }
 0x12b   : > { %v1118_v46 = vpack.c.bf16 %v1002_v41, %v1000_v36  ;;  %v729_v56 = vadd.f32 %v728_v45, %v8885_v34  ;;  %v1003_v19 = vmax.f32 %v727_v1, 0.0 }
 0x12c   : > { %v730_v55 = vpop.f32.mrf.mxu0 }
 0x12d   : > { %v731_v59 = vadd.f32 %v730_v55, %v8891_v37  ;;  %1461 = vmatprep.mubr.bf16.mxu1 %v1118_v46  ;;  %v1004_v12 = vmax.f32 %v729_v56, 0.0 }
 0x12e   : > { %v732_v2 = vpop.f32.mrf.mxu0  ;;  %1462 = vmatmul.mubr.bf16.gmra.mxu1 %v1117_v53 }
 0x12f   : > { %v733_v4 = vadd.f32 %v732_v2, %v8885_v34  ;;  %v1005_v9 = vmax.f32 %v731_v59, 0.0 }
 0x130   : > { %v736_v11 = vpop.f32.mrf.mxu0 }
 0x131   : > { %v1006_v18 = vmax.f32 %v733_v4, 0.0  ;;  %v1119_v30 = vpack.c.bf16 %v1005_v9, %v1003_v19  ;;  %v737_v41 = vadd.f32 %v736_v11, %v8891_v37  ;;  %v8225_v11 = vld [vmem:[#allocation2 + $0x180] ss:$8 sps:$4 sm:$0xff]  }
 0x132   : > { %v738_v26 = vpop.f32.mrf.mxu0 }
 0x133   : > { %v1120_v27 = vpack.c.bf16 %v1006_v18, %v1004_v12  ;;  %v739_v36 = vadd.f32 %v738_v26, %v8885_v34  ;;  %v1007_v55 = vmax.f32 %v737_v41, 0.0  ;;  %v8227_v12 = vld [vmem:[#allocation2 + $0x184] ss:$8 sps:$4 sm:$0xff]  }
 0x134   : > { %v740_v32 = vpop.f32.mrf.mxu0  ;;  %2145 = vmatprep.subr.bf16.mxu0 %v8227_v12  ;;  %v8230_v12 = vld [vmem:[#allocation2 + $0x244] ss:$8 sps:$4 sm:$0xff]  }
 0x135   : > { %v741_v35 = vadd.f32 %v740_v32, %v8891_v37  ;;  %1471 = vmatprep.mubr.bf16.mxu1 %v1120_v27  ;;  %v1008_v52 = vmax.f32 %v739_v36, 0.0  ;;  %2146 = vmatpush2.bf16.msra.mxu0 %v8225_v11  ;;  %v8228_v11 = vld [vmem:[#allocation2 + $0x240] ss:$8 sps:$4 sm:$0xff]  }
 0x136   : > { %v742_v44 = vpop.f32.mrf.mxu0  ;;  %1472 = vmatmul.mubr.bf16.gmra.mxu1 %v1119_v30  ;;  %2867 = vmatprep.subr.bf16.mxu1 %v8230_v12 }
 0x137   : > { %v743_v45 = vadd.f32 %v742_v44, %v8885_v34  ;;  %v1009_v46 = vmax.f32 %v741_v35, 0.0  ;;  %2868 = vmatpush1.bf16.msra.mxu1 %v8228_v11 }
 0x138   : > { %v746_v50 = vpop.f32.mrf.mxu0 }
 0x139   : > { %v1010_v53 = vmax.f32 %v743_v45, 0.0  ;;  %v1121_v1 = vpack.c.bf16 %v1009_v46, %v1007_v55  ;;  %v747_v18 = vadd.f32 %v746_v50, %v8891_v37 }
 0x13a   : > { %v748_v56 = vpop.f32.mrf.mxu0 }
 0x13b   : > { %v1122_v59 = vpack.c.bf16 %v1010_v53, %v1008_v52  ;;  %v749_v4 = vadd.f32 %v748_v56, %v8885_v34  ;;  %v1011_v35 = vmax.f32 %v747_v18, 0.0 }
 0x13c   : > { %v750_v2 = vpop.f32.mrf.mxu0 }
 0x13d   : > { %v751_v9 = vadd.f32 %v750_v2, %v8891_v37  ;;  %1481 = vmatprep.mubr.bf16.mxu1 %v1122_v59  ;;  %v1012_v32 = vmax.f32 %v749_v4, 0.0 }
 0x13e   : > { %v752_v19 = vpop.f32.mrf.mxu0  ;;  %1482 = vmatmul.mubr.bf16.gmra.mxu1 %v1121_v1 }
 0x13f   : > { %v753_v26 = vadd.f32 %v752_v19, %v8885_v34  ;;  %v1013_v27 = vmax.f32 %v751_v9, 0.0 }
 0x140   : > { %v756_v30 = vpop.f32.mrf.mxu0 }
 0x141   : > { %v1014_v36 = vmax.f32 %v753_v26, 0.0  ;;  %v1123_v45 = vpack.c.bf16 %v1013_v27, %v1011_v35  ;;  %v757_v53 = vadd.f32 %v756_v30, %v8891_v37 }
 0x142   : > { %v758_v41 = vpop.f32.mrf.mxu0 }
 0x143   : > { %v1124_v44 = vpack.c.bf16 %v1014_v36, %v1012_v32  ;;  %v759_v52 = vadd.f32 %v758_v41, %v8885_v34  ;;  %v1015_v2 = vmax.f32 %v757_v53, 0.0 }
 0x144   : > { %v760_v46 = vpop.f32.mrf.mxu0 }
 0x145   : > { %v761_v50 = vadd.f32 %v760_v46, %v8891_v37  ;;  %1491 = vmatprep.mubr.bf16.mxu1 %v1124_v44  ;;  %v1016_v62 = vmax.f32 %v759_v52, 0.0 }
 0x146   : > { %v762_v55 = vpop.f32.mrf.mxu0  ;;  %1492 = vmatmul.mubr.bf16.gmra.mxu1 %v1123_v45 }
 0x147   : > { %v763_v56 = vadd.f32 %v762_v55, %v8885_v34  ;;  %v1017_v59 = vmax.f32 %v761_v50, 0.0 }
 0x148   : > { %v766_v61 = vpop.f32.mrf.mxu0 }
 0x149   : > { %v1018_v1 = vmax.f32 %v763_v56, 0.0  ;;  %v1125_v18 = vpack.c.bf16 %v1017_v59, %v1015_v2  ;;  %v767_v30 = vadd.f32 %v766_v61, %v8891_v37 }
 0x14a   : > { %v768_v4 = vpop.f32.mrf.mxu0 }
 0x14b   : > { %v1126_v9 = vpack.c.bf16 %v1018_v1, %v1016_v62  ;;  %v769_v26 = vadd.f32 %v768_v4, %v8885_v34  ;;  %v1019_v46 = vmax.f32 %v767_v30, 0.0 }
 0x14c   : > { %v770_v19 = vpop.f32.mrf.mxu0 }
 0x14d   : > { %v771_v27 = vadd.f32 %v770_v19, %v8891_v37  ;;  %1501 = vmatprep.mubr.bf16.mxu1 %v1126_v9  ;;  %v1020_v44 = vmax.f32 %v769_v26, 0.0  ;;  %v8231_v26 = vld [vmem:[#allocation2 + $0x230] ss:$8 sps:$4 sm:$0xff]  }
 0x14e   : > { %v772_v32 = vpop.f32.mrf.mxu0  ;;  %1502 = vmatmul.mubr.bf16.gmra.mxu1 %v1125_v18 }
 0x14f   : > { %v773_v36 = vadd.f32 %v772_v32, %v8885_v34  ;;  %v1021_v35 = vmax.f32 %v771_v27, 0.0  ;;  %v8233_v27 = vld [vmem:[#allocation2 + $0x234] ss:$8 sps:$4 sm:$0xff]  }
 0x150   : > { %v776_v41 = vpop.f32.mrf.mxu0  ;;  %2869 = vmatprep.subr.bf16.mxu1 %v8233_v27 }
 0x151   : > { %v1022_v45 = vmax.f32 %v773_v36, 0.0  ;;  %v1127_v53 = vpack.c.bf16 %v1021_v35, %v1019_v46  ;;  %v777_v61 = vadd.f32 %v776_v41, %v8891_v37  ;;  %2870 = vmatpush1.bf16.msra.mxu1 %v8231_v26 }
 0x152   : > { %v778_v52 = vpop.f32.mrf.mxu0 }
 0x153   : > { %v1128_v50 = vpack.c.bf16 %v1022_v45, %v1020_v44  ;;  %v779_v56 = vadd.f32 %v778_v52, %v8885_v34  ;;  %v1023_v12 = vmax.f32 %v777_v61, 0.0 }
 0x154   : > { %v780_v55 = vpop.f32.mrf.mxu0 }
 0x155   : > { %v781_v59 = vadd.f32 %v780_v55, %v8891_v37  ;;  %1511 = vmatprep.mubr.bf16.mxu1 %v1128_v50  ;;  %v1024_v9 = vmax.f32 %v779_v56, 0.0 }
 0x156   : > { %v782_v62 = vpop.f32.mrf.mxu0  ;;  %1512 = vmatmul.mubr.bf16.gmra.mxu1 %v1127_v53 }
 0x157   : > { %v783_v1 = vadd.f32 %v782_v62, %v8885_v34  ;;  %v1025_v2 = vmax.f32 %v781_v59, 0.0 }
 0x158   : > { %v786_v4 = vpop.f32.mrf.mxu0 }
 0x159   : > { %v1026_v11 = vmax.f32 %v783_v1, 0.0  ;;  %v1129_v30 = vpack.c.bf16 %v1025_v2, %v1023_v12  ;;  %v787_v41 = vadd.f32 %v786_v4, %v8891_v37 }
 0x15a   : > { %v788_v18 = vpop.f32.mrf.mxu0 }
 0x15b   : > { %v1130_v19 = vpack.c.bf16 %v1026_v11, %v1024_v9  ;;  %v789_v36 = vadd.f32 %v788_v18, %v8885_v34  ;;  %v1027_v55 = vmax.f32 %v787_v41, 0.0 }
 0x15c   : > { %v790_v32 = vpop.f32.mrf.mxu0 }
 0x15d   : > { %v791_v35 = vadd.f32 %v790_v32, %v8891_v37  ;;  %1521 = vmatprep.mubr.bf16.mxu1 %v1130_v19  ;;  %v1028_v50 = vmax.f32 %v789_v36, 0.0  ;;  %v8234_v36 = vld [vmem:[#allocation2 + $0x220] ss:$8 sps:$4 sm:$0xff]  }
 0x15e   : > { %v792_v44 = vpop.f32.mrf.mxu0  ;;  %1522 = vmatmul.mubr.bf16.gmra.mxu1 %v1129_v30 }
 0x15f   : > { %v793_v45 = vadd.f32 %v792_v44, %v8885_v34  ;;  %v1029_v46 = vmax.f32 %v791_v35, 0.0  ;;  %v8236_v35 = vld [vmem:[#allocation2 + $0x224] ss:$8 sps:$4 sm:$0xff]  }
 0x160   : > { %v796_v52 = vpop.f32.mrf.mxu0  ;;  %2871 = vmatprep.subr.bf16.mxu1 %v8236_v35 }
 0x161   : > { %v1030_v53 = vmax.f32 %v793_v45, 0.0  ;;  %v1131_v61 = vpack.c.bf16 %v1029_v46, %v1027_v55  ;;  %v797_v4 = vadd.f32 %v796_v52, %v8891_v37  ;;  %2872 = vmatpush1.bf16.msra.mxu1 %v8234_v36 }
 0x162   : > { %v798_v56 = vpop.f32.mrf.mxu0 }
 0x163   : > { %v1132_v59 = vpack.c.bf16 %v1030_v53, %v1028_v50  ;;  %v799_v1 = vadd.f32 %v798_v56, %v8885_v34  ;;  %v1031_v27 = vmax.f32 %v797_v4, 0.0 }
 0x164   : > { %v800_v62 = vpop.f32.mrf.mxu0 }
 0x165   : > { %v801_v2 = vadd.f32 %v800_v62, %v8891_v37  ;;  %1531 = vmatprep.mubr.bf16.mxu1 %v1132_v59  ;;  %v1032_v19 = vmax.f32 %v799_v1, 0.0 }
 0x166   : > { %v802_v9 = vpop.f32.mrf.mxu0  ;;  %1532 = vmatmul.mubr.bf16.gmra.mxu1 %v1131_v61 }
 0x167   : > { %v803_v11 = vadd.f32 %v802_v9, %v8885_v34  ;;  %v1033_v12 = vmax.f32 %v801_v2, 0.0 }
 0x168   : > { %v806_v18 = vpop.f32.mrf.mxu0 }
 0x169   : > { %v1034_v26 = vmax.f32 %v803_v11, 0.0  ;;  %v1133_v41 = vpack.c.bf16 %v1033_v12, %v1031_v27  ;;  %v807_v52 = vadd.f32 %v806_v18, %v8891_v37 }
 0x16a   : > { %v808_v30 = vpop.f32.mrf.mxu0 }
 0x16b   : > { %v1134_v32 = vpack.c.bf16 %v1034_v26, %v1032_v19  ;;  %v809_v45 = vadd.f32 %v808_v30, %v8885_v34  ;;  %v1035_v62 = vmax.f32 %v807_v52, 0.0 }
 0x16c   : > { %v810_v44 = vpop.f32.mrf.mxu0 }
 0x16d   : > { %v811_v46 = vadd.f32 %v810_v44, %v8891_v37  ;;  %1541 = vmatprep.mubr.bf16.mxu1 %v1134_v32  ;;  %v1036_v59 = vmax.f32 %v809_v45, 0.0  ;;  %v8237_v45 = vld [vmem:[#allocation2 + $0x210] ss:$8 sps:$4 sm:$0xff]  }
 0x16e   : > { %v812_v50 = vpop.f32.mrf.mxu0  ;;  %1542 = vmatmul.mubr.bf16.gmra.mxu1 %v1133_v41 }
 0x16f   : > { %v813_v53 = vadd.f32 %v812_v50, %v8885_v34  ;;  %v1037_v55 = vmax.f32 %v811_v46, 0.0  ;;  %v8239_v46 = vld [vmem:[#allocation2 + $0x214] ss:$8 sps:$4 sm:$0xff]  }
 0x170   : > { %v816_v56 = vpop.f32.mrf.mxu0  ;;  %2873 = vmatprep.subr.bf16.mxu1 %v8239_v46 }
 0x171   : > { %v1038_v61 = vmax.f32 %v813_v53, 0.0  ;;  %v1135_v4 = vpack.c.bf16 %v1037_v55, %v1035_v62  ;;  %v817_v18 = vadd.f32 %v816_v56, %v8891_v37  ;;  %2874 = vmatpush1.bf16.msra.mxu1 %v8237_v45 }
 0x172   : > { %v818_v1 = vpop.f32.mrf.mxu0 }
 0x173   : > { %v1136_v2 = vpack.c.bf16 %v1038_v61, %v1036_v59  ;;  %v819_v11 = vadd.f32 %v818_v1, %v8885_v34  ;;  %v1039_v35 = vmax.f32 %v817_v18, 0.0 }
 0x174   : > { %v820_v9 = vpop.f32.mrf.mxu0 }
 0x175   : > { %v821_v12 = vadd.f32 %v820_v9, %v8891_v37  ;;  %1551 = vmatprep.mubr.bf16.mxu1 %v1136_v2  ;;  %v1040_v32 = vmax.f32 %v819_v11, 0.0 }
 0x176   : > { %v822_v19 = vpop.f32.mrf.mxu0  ;;  %1552 = vmatmul.mubr.bf16.gmra.mxu1 %v1135_v4 }
 0x177   : > { %v823_v26 = vadd.f32 %v822_v19, %v8885_v34  ;;  %v1041_v27 = vmax.f32 %v821_v12, 0.0 }
 0x178   : > { %v826_v30 = vpop.f32.mrf.mxu0 }
 0x179   : > { %v1042_v36 = vmax.f32 %v823_v26, 0.0  ;;  %v1137_v52 = vpack.c.bf16 %v1041_v27, %v1039_v35  ;;  %v827_v56 = vadd.f32 %v826_v30, %v8891_v37 }
 0x17a   : > { %v828_v41 = vpop.f32.mrf.mxu0 }
 0x17b   : > { %v1138_v44 = vpack.c.bf16 %v1042_v36, %v1040_v32  ;;  %v829_v53 = vadd.f32 %v828_v41, %v8885_v34  ;;  %v1043_v9 = vmax.f32 %v827_v56, 0.0 }
 0x17c   : > { %v830_v50 = vpop.f32.mrf.mxu0 }
 0x17d   : > { %v831_v55 = vadd.f32 %v830_v50, %v8891_v37  ;;  %1561 = vmatprep.mubr.bf16.mxu1 %v1138_v44  ;;  %v1044_v2 = vmax.f32 %v829_v53, 0.0  ;;  %v8240_v53 = vld [vmem:[#allocation2 + $0x200] ss:$8 sps:$4 sm:$0xff]  }
 0x17e   : > { %v832_v59 = vpop.f32.mrf.mxu0  ;;  %1562 = vmatmul.mubr.bf16.gmra.mxu1 %v1137_v52 }
 0x17f   : > { %v833_v61 = vadd.f32 %v832_v59, %v8885_v34  ;;  %v1045_v62 = vmax.f32 %v831_v55, 0.0  ;;  %v8242_v55 = vld [vmem:[#allocation2 + $0x204] ss:$8 sps:$4 sm:$0xff]  }
 0x180   : > { %v836_v1 = vpop.f32.mrf.mxu0  ;;  %2875 = vmatprep.subr.bf16.mxu1 %v8242_v55 }
 0x181   : > { %v1046_v4 = vmax.f32 %v833_v61, 0.0  ;;  %v1139_v18 = vpack.c.bf16 %v1045_v62, %v1043_v9  ;;  %v837_v30 = vadd.f32 %v836_v1, %v8891_v37  ;;  %2876 = vmatpush1.bf16.msra.mxu1 %v8240_v53 }
 0x182   : > { %v838_v11 = vpop.f32.mrf.mxu0 }
 0x183   : > { %v1140_v12 = vpack.c.bf16 %v1046_v4, %v1044_v2  ;;  %v839_v26 = vadd.f32 %v838_v11, %v8885_v34  ;;  %v1047_v46 = vmax.f32 %v837_v30, 0.0 }
 0x184   : > { %v840_v19 = vpop.f32.mrf.mxu0 }
 0x185   : > { %v841_v27 = vadd.f32 %v840_v19, %v8891_v37  ;;  %1571 = vmatprep.mubr.bf16.mxu1 %v1140_v12  ;;  %v1048_v44 = vmax.f32 %v839_v26, 0.0 }
 0x186   : > { %v842_v32 = vpop.f32.mrf.mxu0  ;;  %1572 = vmatmul.mubr.bf16.gmra.mxu1 %v1139_v18 }
 0x187   : > { %v843_v36 = vadd.f32 %v842_v32, %v8885_v34  ;;  %v1049_v35 = vmax.f32 %v841_v27, 0.0 }
 0x188   : > { %v846_v41 = vpop.f32.mrf.mxu0 }
 0x189   : > { %v1050_v45 = vmax.f32 %v843_v36, 0.0  ;;  %v1141_v56 = vpack.c.bf16 %v1049_v35, %v1047_v46  ;;  %v847_v1 = vadd.f32 %v846_v41, %v8891_v37 }
 0x18a   : > { %v848_v52 = vpop.f32.mrf.mxu0 }
 0x18b   : > { %v1142_v50 = vpack.c.bf16 %v1050_v45, %v1048_v44  ;;  %v849_v61 = vadd.f32 %v848_v52, %v8885_v34  ;;  %v1051_v19 = vmax.f32 %v847_v1, 0.0 }
 0x18c   : > { %v850_v59 = vpop.f32.mrf.mxu0 }
 0x18d   : > { %v851_v62 = vadd.f32 %v850_v59, %v8891_v37  ;;  %1581 = vmatprep.mubr.bf16.mxu1 %v1142_v50  ;;  %v1052_v12 = vmax.f32 %v849_v61, 0.0  ;;  %v8243_v61 = vld [vmem:[#allocation2 + $0x2f0] ss:$8 sps:$4 sm:$0xff]  }
 0x18e   : > { %v852_v2 = vpop.f32.mrf.mxu0  ;;  %1582 = vmatmul.mubr.bf16.gmra.mxu1 %v1141_v56 }
 0x18f   : > { %v853_v4 = vadd.f32 %v852_v2, %v8885_v34  ;;  %v1053_v9 = vmax.f32 %v851_v62, 0.0  ;;  %v8245_v62 = vld [vmem:[#allocation2 + $0x2f4] ss:$8 sps:$4 sm:$0xff]  }
 0x190   : > { %v856_v11 = vpop.f32.mrf.mxu0  ;;  %2877 = vmatprep.subr.bf16.mxu1 %v8245_v62 }
 0x191   : > { %v1054_v18 = vmax.f32 %v853_v4, 0.0  ;;  %v1143_v30 = vpack.c.bf16 %v1053_v9, %v1051_v19  ;;  %v857_v41 = vadd.f32 %v856_v11, %v8891_v37  ;;  %2878 = vmatpush2.bf16.msra.mxu1 %v8243_v61 }
 0x192   : > { %v858_v26 = vpop.f32.mrf.mxu0 }
 0x193   : > { %v1144_v27 = vpack.c.bf16 %v1054_v18, %v1052_v12  ;;  %v859_v36 = vadd.f32 %v858_v26, %v8885_v34  ;;  %v1055_v55 = vmax.f32 %v857_v41, 0.0 }
 0x194   : > { %v860_v32 = vpop.f32.mrf.mxu0 }
 0x195   : > { %v861_v35 = vadd.f32 %v860_v32, %v8891_v37  ;;  %1591 = vmatprep.mubr.bf16.mxu1 %v1144_v27  ;;  %v1056_v50 = vmax.f32 %v859_v36, 0.0 }
 0x196   : > { %v862_v44 = vpop.f32.mrf.mxu0  ;;  %1592 = vmatmul.mubr.bf16.gmra.mxu1 %v1143_v30 }
 0x197   : > { %v863_v45 = vadd.f32 %v862_v44, %v8885_v34  ;;  %v1057_v46 = vmax.f32 %v861_v35, 0.0 }
 0x198   : > { %v866_v52 = vpop.f32.mrf.mxu0 }
 0x199   : > { %v1058_v53 = vmax.f32 %v863_v45, 0.0  ;;  %v1145_v1 = vpack.c.bf16 %v1057_v46, %v1055_v55  ;;  %v867_v11 = vadd.f32 %v866_v52, %v8891_v37 }
 0x19a   : > { %v868_v56 = vpop.f32.mrf.mxu0 }
 0x19b   : > { %v1146_v59 = vpack.c.bf16 %v1058_v53, %v1056_v50  ;;  %v869_v4 = vadd.f32 %v868_v56, %v8885_v34  ;;  %v1059_v32 = vmax.f32 %v867_v11, 0.0 }
 0x19c   : > { %v870_v2 = vpop.f32.mrf.mxu0 }
 0x19d   : > { %v871_v9 = vadd.f32 %v870_v2, %v8891_v37  ;;  %1601 = vmatprep.mubr.bf16.mxu1 %v1146_v59  ;;  %v1060_v27 = vmax.f32 %v869_v4, 0.0  ;;  %v8246_v4 = vld [vmem:[#allocation2 + $0x2e0] ss:$8 sps:$4 sm:$0xff]  }
 0x19e   : > { %v872_v12 = vpop.f32.mrf.mxu0  ;;  %1602 = vmatmul.mubr.bf16.gmra.mxu1 %v1145_v1 }
 0x19f   : > { %v873_v18 = vadd.f32 %v872_v12, %v8885_v34  ;;  %v1061_v19 = vmax.f32 %v871_v9, 0.0  ;;  %v8248_v9 = vld [vmem:[#allocation2 + $0x2e4] ss:$8 sps:$4 sm:$0xff]  }
 0x1a0   : > { %v876_v26 = vpop.f32.mrf.mxu0  ;;  %2879 = vmatprep.subr.bf16.mxu1 %v8248_v9 }
 0x1a1   : > { %v1062_v30 = vmax.f32 %v873_v18, 0.0  ;;  %v1147_v41 = vpack.c.bf16 %v1061_v19, %v1059_v32  ;;  %v877_v52 = vadd.f32 %v876_v26, %v8891_v37  ;;  %2880 = vmatpush2.bf16.msra.mxu1 %v8246_v4 }
 0x1a2   : > { %v878_v36 = vpop.f32.mrf.mxu0 }
 0x1a3   : > { %v1148_v35 = vpack.c.bf16 %v1062_v30, %v1060_v27  ;;  %v879_v45 = vadd.f32 %v878_v36, %v8885_v34  ;;  %v1063_v62 = vmax.f32 %v877_v52, 0.0 }
 0x1a4   : > { %v880_v44 = vpop.f32.mrf.mxu0 }
 0x1a5   : > { %v881_v46 = vadd.f32 %v880_v44, %v8891_v37  ;;  %1611 = vmatprep.mubr.bf16.mxu1 %v1148_v35  ;;  %v1064_v59 = vmax.f32 %v879_v45, 0.0 }
 0x1a6   : > { %v882_v50 = vpop.f32.mrf.mxu0  ;;  %1612 = vmatmul.mubr.bf16.gmra.mxu1 %v1147_v41 }
 0x1a7   : > { %v883_v53 = vadd.f32 %v882_v50, %v8885_v34  ;;  %v1065_v55 = vmax.f32 %v881_v46, 0.0 }
 0x1a8   : > { %v886_v56 = vpop.f32.mrf.mxu0 }
 0x1a9   : > { %v1066_v61 = vmax.f32 %v883_v53, 0.0  ;;  %v1149_v11 = vpack.c.bf16 %v1065_v55, %v1063_v62  ;;  %v887_v26 = vadd.f32 %v886_v56, %v8891_v37 }
 0x1aa   : > { %v888_v1 = vpop.f32.mrf.mxu0 }
 0x1ab   : > { %v1150_v2 = vpack.c.bf16 %v1066_v61, %v1064_v59  ;;  %v889_v18 = vadd.f32 %v888_v1, %v8885_v34  ;;  %v1067_v44 = vmax.f32 %v887_v26, 0.0 }
 0x1ac   : > { %v890_v12 = vpop.f32.mrf.mxu0 }
 0x1ad   : > { %v891_v19 = vadd.f32 %v890_v12, %v8891_v37  ;;  %1621 = vmatprep.mubr.bf16.mxu1 %v1150_v2  ;;  %v1068_v35 = vmax.f32 %v889_v18, 0.0  ;;  %v8249_v18 = vld [vmem:[#allocation2 + $0x2d0] ss:$8 sps:$4 sm:$0xff]  }
 0x1ae   : > { %v892_v27 = vpop.f32.mrf.mxu0  ;;  %1622 = vmatmul.mubr.bf16.gmra.mxu1 %v1149_v11 }
 0x1af   : > { %v893_v30 = vadd.f32 %v892_v27, %v8885_v34  ;;  %v1069_v32 = vmax.f32 %v891_v19, 0.0  ;;  %v8251_v19 = vld [vmem:[#allocation2 + $0x2d4] ss:$8 sps:$4 sm:$0xff]  }
 0x1b0   : > { %v896_v36 = vpop.f32.mrf.mxu0  ;;  %2881 = vmatprep.subr.bf16.mxu1 %v8251_v19 }
 0x1b1   : > { %v1070_v41 = vmax.f32 %v893_v30, 0.0  ;;  %v1151_v52 = vpack.c.bf16 %v1069_v32, %v1067_v44  ;;  %v897_v56 = vadd.f32 %v896_v36, %v8891_v37  ;;  %v1104_v36 = vld [vmem:[%s11071_s4 + $0x8] sm:$0x3f]  ;;  %v1103_v44 = vld [vmem:[%s11071_s4] sm:$0x3f]  ;;  %2882 = vmatpush2.bf16.msra.mxu1 %v8249_v18 }
 0x1b2   : > { %v898_v45 = vpop.f32.mrf.mxu0 }
 0x1b3   : > { %v1152_v46 = vpack.c.bf16 %v1070_v41, %v1068_v35  ;;  %v899_v53 = vadd.f32 %v898_v45, %v8885_v34  ;;  %v1071_v9 = vmax.f32 %v897_v56, 0.0 }
 0x1b4   : > { %v900_v50 = vpop.f32.mrf.mxu0 }
 0x1b5   : > { %v901_v55 = vadd.f32 %v900_v50, %v8891_v37  ;;  %1631 = vmatprep.mubr.bf16.mxu1 %v1152_v46  ;;  %v1072_v2 = vmax.f32 %v899_v53, 0.0  ;;  %v9050_v53 = vrot.slane %v1104_v36, %v8877_v28 }
 0x1b6   : > { %v902_v59 = vpop.f32.mrf.mxu0  ;;  %1632 = vmatmul.mubr.bf16.gmra.mxu1 %v1151_v52 }
 0x1b7   : > { %v903_v61 = vadd.f32 %v902_v59, %v8885_v34  ;;  %v1073_v62 = vmax.f32 %v901_v55, 0.0 }
 0x1b8   : > { %v906_v1 = vpop.f32.mrf.mxu0 }
 0x1b9   : > { %v1074_v4 = vmax.f32 %v903_v61, 0.0  ;;  %v1153_v26 = vpack.c.bf16 %v1073_v62, %v1071_v9  ;;  %v907_v35 = vadd.f32 %v906_v1, %v8891_v37  ;;  %v9053_v61 = vrot.slane %v1103_v44, %v8877_v28 }
 0x1ba   : > { %v908_v11 = vpop.f32.mrf.mxu0 }
 0x1bb   : > { %v1154_v12 = vpack.c.bf16 %v1074_v4, %v1072_v2  ;;  %v909_v30 = vadd.f32 %v908_v11, %v8885_v34  ;;  %v1075_v62 = vmax.f32 %v907_v35, 0.0 }
 0x1bc   : > { %v910_v27 = vpop.f32.mrf.mxu0 }
 0x1bd   : > { %v911_v32 = vadd.f32 %v910_v27, %v8891_v37  ;;  %1641 = vmatprep.mubr.bf16.mxu1 %v1154_v12  ;;  %v1076_v56 = vmax.f32 %v909_v30, 0.0 }
 0x1be   : > { %v912_v41 = vpop.f32.mrf.mxu0  ;;  %v1403_v45 = vpop.f32.mrf.mxu1  ;;  %1642 = vmatmul.mubr.bf16.gmra.mxu1 %v1153_v26 }
 0x1bf   : > { %v913_v46 = vadd.f32 %v912_v41, %v8885_v34  ;;  %v1077_v52 = vmax.f32 %v911_v32, 0.0  ;;  %v1404_v26 = vadd.f32 %v1403_v45, %v9053_v61 }
 0x1c0   : > { %v916_v50 = vpop.f32.mrf.mxu0  ;;  %v1405_v55 = vpop.f32.mrf.mxu1 }
 0x1c1   : > { %v1078_v59 = vmax.f32 %v913_v46, 0.0  ;;  %v1155_v11 = vpack.c.bf16 %v1077_v52, %v1075_v62  ;;  %v1406_v12 = vadd.f32 %v1405_v55, %v9050_v53  ;;  %v917_v35 = vadd.f32 %v916_v50, %v8891_v37  ;;  %v8254_v50 = vld [vmem:[#allocation2 + $0x2c4] ss:$8 sps:$4 sm:$0xff]  }
 0x1c2   : > { %v918_v1 = vpop.f32.mrf.mxu0  ;;  %v1407_v2 = vpop.f32.mrf.mxu1  ;;  %v1722_v45 = vmax.f32 %v1404_v26, 0.0  ;;  %2883 = vmatprep.subr.bf16.mxu1 %v8254_v50 }
 0x1c3   : > { %v1408_v4 = vadd.f32 %v1407_v2, %v9053_v61  ;;  %v1156_v9 = vpack.c.bf16 %v1078_v59, %v1076_v56  ;;  %v919_v28 = vadd.f32 %v918_v1, %v8885_v34  ;;  %v1723_v52 = vmax.f32 %v1406_v12, 0.0  ;;  %2884 = vmatpush2.bf16.msra.mxu1 %v8252_v13 }
 0x1c4   : > { %v920_v18 = vpop.f32.mrf.mxu0  ;;  %v1409_v19 = vpop.f32.mrf.mxu1  ;;  %v1079_v1 = vmax.f32 %v917_v35, 0.0 }
 0x1c5   : > { %v921_v27 = vadd.f32 %v920_v18, %v8891_v37  ;;  %v1410_v30 = vadd.f32 %v1409_v19, %v9050_v53  ;;  %1651 = vmatprep.mubr.bf16.mxu1 %v1156_v9  ;;  %v1724_v41 = vmax.f32 %v1408_v4, 0.0  ;;  %v1080_v2 = vmax.f32 %v919_v28, 0.0 }
 0x1c6   : > { %v922_v32 = vpop.f32.mrf.mxu0  ;;  %v1413_v36 = vpop.f32.mrf.mxu1  ;;  %1652 = vmatmul.mubr.bf16.gmra.mxu1 %v1155_v11 }
 0x1c7   : > { %v1725_v44 = vmax.f32 %v1410_v30, 0.0  ;;  %v923_v46 = vadd.f32 %v922_v32, %v8885_v34  ;;  %v1081_v59 = vmax.f32 %v921_v27, 0.0  ;;  %v1850_v0 = vpack.c.bf16 %v1724_v41, %v1722_v45 }
 0x1c8   : > { %v926_v55 = vpop.f32.mrf.mxu0  ;;  %v1415_v56 = vpop.f32.mrf.mxu1  ;;  %v1414_v4 = vadd.f32 %v1413_v36, %v9053_v61 }
 0x1c9   : > { %v1082_v62 = vmax.f32 %v923_v46, 0.0  ;;  %v1851_v19 = vpack.c.bf16 %v1725_v44, %v1723_v52  ;;  %v1416_v30 = vadd.f32 %v1415_v56, %v9050_v53  ;;  %v1157_v27 = vpack.c.bf16 %v1081_v59, %v1079_v1 }
 0x1ca   : > { %v928_v18 = vpop.f32.mrf.mxu0  ;;  %v1417_v9 = vpop.f32.mrf.mxu1  ;;  %v927_v36 = vadd.f32 %v926_v55, %v8891_v37 }
 0x1cb   : > { %v1418_v11 = vadd.f32 %v1417_v9, %v9053_v61  ;;  %2147 = vmatprep.mubr.bf16.mxu0 %v1851_v19  ;;  %v1158_v26 = vpack.c.bf16 %v1082_v62, %v1080_v2  ;;  %v929_v35 = vadd.f32 %v928_v18, %v8885_v34  ;;  %v1727_v59 = vmax.f32 %v1416_v30, 0.0 }
 0x1cc   : > { %v930_v12 = vpop.f32.mrf.mxu0  ;;  %v1419_v32 = vpop.f32.mrf.mxu1  ;;  %2148 = vmatmul.mubr.bf16.vlgmr.msra.gmra.mxu0 %v1850_v0  ;;  %v1726_v9 = vmax.f32 %v1414_v4, 0.0 }
 0x1cd   : > { %v931_v28 = vadd.f32 %v930_v12, %v8891_v37  ;;  %v1420_v46 = vadd.f32 %v1419_v32, %v9050_v53  ;;  %1661 = vmatprep.mubr.bf16.mxu1 %v1158_v26  ;;  %v1728_v52 = vmax.f32 %v1418_v11, 0.0  ;;  %v1084_v1 = vmax.f32 %v929_v35, 0.0 }
 0x1ce   : > { %v932_v41 = vpop.f32.mrf.mxu0  ;;  %v1423_v44 = vpop.f32.mrf.mxu1  ;;  %1662 = vmatmul.mubr.bf16.gmra.mxu1 %v1157_v27  ;;  %v1083_v32 = vmax.f32 %v927_v36, 0.0 }
 0x1cf   : > { %v1729_v56 = vmax.f32 %v1420_v46, 0.0  ;;  %v933_v45 = vadd.f32 %v932_v41, %v8885_v34  ;;  %v1085_v19 = vmax.f32 %v931_v28, 0.0  ;;  %v1852_v26 = vpack.c.bf16 %v1728_v52, %v1726_v9 }
 0x1d0   : > { %v936_v62 = vpop.f32.mrf.mxu0  ;;  %v1425_v2 = vpop.f32.mrf.mxu1  ;;  %v1424_v41 = vadd.f32 %v1423_v44, %v9053_v61 }
 0x1d1   : > { %v1086_v0 = vmax.f32 %v933_v45, 0.0  ;;  %v1853_v12 = vpack.c.bf16 %v1729_v56, %v1727_v59  ;;  %v1426_v55 = vadd.f32 %v1425_v2, %v9050_v53  ;;  %v1159_v30 = vpack.c.bf16 %v1085_v19, %v1083_v32 }
 0x1d2   : > { %v938_v50 = vpop.f32.mrf.mxu0  ;;  %v1427_v18 = vpop.f32.mrf.mxu1  ;;  %v937_v56 = vadd.f32 %v936_v62, %v8891_v37  ;;  %v8255_v62 = vld [vmem:[#allocation2 + $0x2b0] ss:$8 sps:$4 sm:$0xff]  }
 0x1d3   : > { %v1428_v13 = vadd.f32 %v1427_v18, %v9053_v61  ;;  %2157 = vmatprep.mubr.bf16.mxu0 %v1853_v12  ;;  %v1160_v27 = vpack.c.bf16 %v1086_v0, %v1084_v1  ;;  %v939_v35 = vadd.f32 %v938_v50, %v8885_v34  ;;  %v1731_v9 = vmax.f32 %v1426_v55, 0.0 }
 0x1d4   : > { %v940_v11 = vpop.f32.mrf.mxu0  ;;  %v1429_v46 = vpop.f32.mrf.mxu1  ;;  %2158 = vmatmul.mubr.bf16.gmra.mxu0 %v1852_v26  ;;  %v1730_v0 = vmax.f32 %v1424_v41, 0.0 }
 0x1d5   : > { %v941_v4 = vadd.f32 %v940_v11, %v8891_v37  ;;  %v1430_v28 = vadd.f32 %v1429_v46, %v9050_v53  ;;  %1671 = vmatprep.mubr.bf16.mxu1 %v1160_v27  ;;  %v1732_v45 = vmax.f32 %v1428_v13, 0.0  ;;  %v1088_v12 = vmax.f32 %v939_v35, 0.0  ;;  %v8257_v13 = vld [vmem:[#allocation2 + $0x2b4] ss:$8 sps:$4 sm:$0xff]  }
 0x1d6   : > { %v942_v36 = vpop.f32.mrf.mxu0  ;;  %v1433_v52 = vpop.f32.mrf.mxu1  ;;  %1672 = vmatmul.mubr.bf16.gmra.mxu1 %v1159_v30  ;;  %v1087_v11 = vmax.f32 %v937_v56, 0.0  ;;  %2885 = vmatprep.subr.bf16.mxu1 %v8257_v13 }
 0x1d7   : > { %v1733_v59 = vmax.f32 %v1430_v28, 0.0  ;;  %v943_v2 = vadd.f32 %v942_v36, %v8885_v34  ;;  %v1089_v1 = vmax.f32 %v941_v4, 0.0  ;;  %v1854_v46 = vpack.c.bf16 %v1732_v45, %v1730_v0  ;;  %2886 = vmatpush2.bf16.msra.mxu1 %v8255_v62 }
 0x1d8   : > { %v946_v19 = vpop.f32.mrf.mxu0  ;;  %v1435_v44 = vpop.f32.mrf.mxu1  ;;  %v1434_v28 = vadd.f32 %v1433_v52, %v9053_v61 }
 0x1d9   : > { %v1090_v18 = vmax.f32 %v943_v2, 0.0  ;;  %v1855_v50 = vpack.c.bf16 %v1733_v59, %v1731_v9  ;;  %v1436_v30 = vadd.f32 %v1435_v44, %v9050_v53  ;;  %v1161_v4 = vpack.c.bf16 %v1089_v1, %v1087_v11 }
 0x1da   : > { %v948_v32 = vpop.f32.mrf.mxu0  ;;  %v1437_v26 = vpop.f32.mrf.mxu1  ;;  %v947_v52 = vadd.f32 %v946_v19, %v8891_v37 }
 0x1db   : > { %v1438_v27 = vadd.f32 %v1437_v26, %v9053_v61  ;;  %2167 = vmatprep.mubr.bf16.mxu0 %v1855_v50  ;;  %v1162_v41 = vpack.c.bf16 %v1090_v18, %v1088_v12  ;;  %v949_v56 = vadd.f32 %v948_v32, %v8885_v34  ;;  %v1735_v1 = vmax.f32 %v1436_v30, 0.0 }
 0x1dc   : > { %v950_v55 = vpop.f32.mrf.mxu0  ;;  %v1439_v36 = vpop.f32.mrf.mxu1  ;;  %2168 = vmatmul.mubr.bf16.gmra.mxu0 %v1854_v46  ;;  %v1734_v26 = vmax.f32 %v1434_v28, 0.0 }
 0x1dd   : > { %v951_v35 = vadd.f32 %v950_v55, %v8891_v37  ;;  %v1440_v2 = vadd.f32 %v1439_v36, %v9050_v53  ;;  %1681 = vmatprep.mubr.bf16.mxu1 %v1162_v41  ;;  %v1736_v9 = vmax.f32 %v1438_v27, 0.0  ;;  %v1092_v46 = vmax.f32 %v949_v56, 0.0 }
 0x1de   : > { %v952_v45 = vpop.f32.mrf.mxu0  ;;  %v1443_v59 = vpop.f32.mrf.mxu1  ;;  %1682 = vmatmul.mubr.bf16.gmra.mxu1 %v1161_v4  ;;  %v1091_v36 = vmax.f32 %v947_v52, 0.0 }
 0x1df   : > { %v1737_v44 = vmax.f32 %v1440_v2, 0.0  ;;  %v953_v0 = vadd.f32 %v952_v45, %v8885_v34  ;;  %v1093_v50 = vmax.f32 %v951_v35, 0.0  ;;  %v1856_v41 = vpack.c.bf16 %v1736_v9, %v1734_v26 }
 0x1e0   : > { %v956_v18 = vpop.f32.mrf.mxu0  ;;  %v1445_v12 = vpop.f32.mrf.mxu1  ;;  %v1444_v45 = vadd.f32 %v1443_v59, %v9053_v61 }
 0x1e1   : > { %v1094_v11 = vmax.f32 %v953_v0, 0.0  ;;  %v1857_v55 = vpack.c.bf16 %v1737_v44, %v1735_v1  ;;  %v1446_v19 = vadd.f32 %v1445_v12, %v9050_v53  ;;  %v1163_v30 = vpack.c.bf16 %v1093_v50, %v1091_v36  ;;  %v8260_v36 = vld [vmem:[#allocation2 + $0x374] ss:$8 sps:$4 sm:$0xff]  }
 0x1e2   : > { %v958_v13 = vpop.f32.mrf.mxu0  ;;  %v1447_v32 = vpop.f32.mrf.mxu1  ;;  %v957_v56 = vadd.f32 %v956_v18, %v8891_v37  ;;  %3607 = vmatprep.subr.bf16.mxu0 %v8260_v36 }
 0x1e3   : > { %v1448_v62 = vadd.f32 %v1447_v32, %v9053_v61  ;;  %2177 = vmatprep.mubr.bf16.mxu0 %v1857_v55  ;;  %v1164_v4 = vpack.c.bf16 %v1094_v11, %v1092_v46  ;;  %v959_v52 = vadd.f32 %v958_v13, %v8885_v34  ;;  %v1739_v26 = vmax.f32 %v1446_v19, 0.0  ;;  %v8258_v55 = vld [vmem:[#allocation2 + $0x370] ss:$8 sps:$4 sm:$0xff]   ;;  %v8263_v19 = vld [vmem:[#allocation2 + $0x2a4] ss:$8 sps:$4 sm:$0xff]  }
 0x1e4   : > { %v960_v27 = vpop.f32.mrf.mxu0  ;;  %v1449_v2 = vpop.f32.mrf.mxu1  ;;  %2178 = vmatmul.mubr.bf16.gmra.mxu0 %v1856_v41  ;;  %v1738_v46 = vmax.f32 %v1444_v45, 0.0  ;;  %v1095_v41 = vmax.f32 %v957_v56, 0.0  ;;  %2887 = vmatprep.subr.bf16.mxu1 %v8263_v19 }
 0x1e5   : > { %v961_v28 = vadd.f32 %v960_v27, %v8891_v37  ;;  %v1450_v35 = vadd.f32 %v1449_v2, %v9050_v53  ;;  %1691 = vmatprep.mubr.bf16.mxu1 %v1164_v4  ;;  %v1740_v0 = vmax.f32 %v1448_v62, 0.0  ;;  %v1096_v18 = vmax.f32 %v959_v52, 0.0  ;;  %3608 = vmatpush1.bf16.msra.mxu0 %v8258_v55 }
 0x1e6   : > { %v962_v9 = vpop.f32.mrf.mxu0  ;;  %v1453_v44 = vpop.f32.mrf.mxu1  ;;  %1692 = vmatmul.mubr.bf16.gmra.mxu1 %v1163_v30  ;;  %v8261_v30 = vld [vmem:[#allocation2 + $0x2a0] ss:$8 sps:$4 sm:$0xff]  }
 0x1e7   : > { %v1741_v1 = vmax.f32 %v1450_v35, 0.0  ;;  %v963_v12 = vadd.f32 %v962_v9, %v8885_v34  ;;  %v1097_v50 = vmax.f32 %v961_v28, 0.0  ;;  %v1858_v4 = vpack.c.bf16 %v1740_v0, %v1738_v46  ;;  %2888 = vmatpush2.bf16.msra.mxu1 %v8261_v30 }
 0x1e8   : > { %v966_v59 = vpop.f32.mrf.mxu0  ;;  %v1455_v11 = vpop.f32.mrf.mxu1  ;;  %v1454_v9 = vadd.f32 %v1453_v44, %v9053_v61 }
 0x1e9   : > { %v1098_v32 = vmax.f32 %v963_v12, 0.0  ;;  %v1859_v2 = vpack.c.bf16 %v1741_v1, %v1739_v26  ;;  %v1456_v62 = vadd.f32 %v1455_v11, %v9050_v53  ;;  %v1165_v28 = vpack.c.bf16 %v1097_v50, %v1095_v41 }
 0x1ea   : > { %v968_v27 = vpop.f32.mrf.mxu0  ;;  %v1457_v13 = vpop.f32.mrf.mxu1  ;;  %v967_v1 = vadd.f32 %v966_v59, %v8891_v37  ;;  %v1742_v55 = vmax.f32 %v1454_v9, 0.0 }
 0x1eb   : > { %v1458_v35 = vadd.f32 %v1457_v13, %v9053_v61  ;;  %2187 = vmatprep.mubr.bf16.mxu0 %v1859_v2  ;;  %v1166_v40 = vpack.c.bf16 %v1098_v32, %v1096_v18  ;;  %v969_v56 = vadd.f32 %v968_v27, %v8885_v34  ;;  %v1743_v44 = vmax.f32 %v1456_v62, 0.0 }
 0x1ec   : > { %v970_v45 = vpop.f32.mrf.mxu0  ;;  %v1459_v12 = vpop.f32.mrf.mxu1  ;;  %2188 = vmatmul.mubr.bf16.gmra.mxu0 %v1858_v4  ;;  %v1099_v2 = vmax.f32 %v967_v1, 0.0  ;;  %v8264_v1 = vld [vmem:[#allocation2 + $0x360] ss:$8 sps:$4 sm:$0xff]  }
 0x1ed   : > { %v971_v52 = vadd.f32 %v970_v45, %v8891_v37  ;;  %v1460_v0 = vadd.f32 %v1459_v12, %v9050_v53  ;;  %1701 = vmatprep.mubr.bf16.mxu1 %v1166_v40  ;;  %v1744_v11 = vmax.f32 %v1458_v35, 0.0  ;;  %v1100_v41 = vmax.f32 %v969_v56, 0.0 }
 0x1ee   : > { %v972_v26 = vpop.f32.mrf.mxu0  ;;  %v1463_v50 = vpop.f32.mrf.mxu1  ;;  %1702 = vmatmul.mubr.bf16.gmra.mxu1 %v1165_v28 }
 0x1ef   : > { %v1745_v46 = vmax.f32 %v1460_v0, 0.0  ;;  %v973_v32 = vadd.f32 %v972_v26, %v8885_v34  ;;  %v1101_v18 = vmax.f32 %v971_v52, 0.0  ;;  %v1860_v19 = vpack.c.bf16 %v1744_v11, %v1742_v55  ;;  %v8266_v26 = vld [vmem:[#allocation2 + $0x364] ss:$8 sps:$4 sm:$0xff]   ;;  %v8269_v55 = vld [vmem:[#allocation2 + $0x294] ss:$8 sps:$4 sm:$0xff]  }
 0x1f0   : > { %v1465_v36 = vpop.f32.mrf.mxu1  ;;  %v1464_v34 = vadd.f32 %v1463_v50, %v9053_v61  ;;  %3609 = vmatprep.subr.bf16.mxu0 %v8266_v26  ;;  %2889 = vmatprep.subr.bf16.mxu1 %v8269_v55 }
 0x1f1   : > { %v1102_v27 = vmax.f32 %v973_v32, 0.0  ;;  %v1861_v13 = vpack.c.bf16 %v1745_v46, %v1743_v44  ;;  %v1466_v37 = vadd.f32 %v1465_v36, %v9050_v53  ;;  %v1167_v35 = vpack.c.bf16 %v1101_v18, %v1099_v2  ;;  %v8267_v32 = vld [vmem:[#allocation2 + $0x290] ss:$8 sps:$4 sm:$0xff]   ;;  %3610 = vmatpush1.bf16.msra.mxu0 %v8264_v1 }
 0x1f2   : > { %v1467_v4 = vpop.f32.mrf.mxu1  ;;  %v1746_v52 = vmax.f32 %v1464_v34, 0.0  ;;  %2890 = vmatpush2.bf16.msra.mxu1 %v8267_v32 }
 0x1f3   : > { %v1468_v40 = vadd.f32 %v1467_v4, %v9053_v61  ;;  %2197 = vmatprep.mubr.bf16.mxu0 %v1861_v13  ;;  %v1168_v59 = vpack.c.bf16 %v1102_v27, %v1100_v41  ;;  %v1747_v9 = vmax.f32 %v1466_v37, 0.0 }
 0x1f4   : > { %v1469_v62 = vpop.f32.mrf.mxu1  ;;  %2198 = vmatmul.mubr.bf16.gmra.mxu0 %v1860_v19 }
 0x1f5   : > { %v1470_v30 = vadd.f32 %v1469_v62, %v9050_v53  ;;  %1711 = vmatprep.mubr.bf16.mxu1 %v1168_v59  ;;  %v1748_v45 = vmax.f32 %v1468_v40, 0.0 }
 0x1f6   : > { %v1473_v28 = vpop.f32.mrf.mxu1  ;;  %1712 = vmatmul.mubr.bf16.gmra.mxu1 %v1167_v35 }
 0x1f7   : > { %v1749_v12 = vmax.f32 %v1470_v30, 0.0  ;;  %v1862_v11 = vpack.c.bf16 %v1748_v45, %v1746_v52  ;;  %v1474_v41 = vadd.f32 %v1473_v28, %v9053_v61 }
 0x1f8   : > { %v1475_v56 = vpop.f32.mrf.mxu1 }
 0x1f9   : > { %v1863_v0 = vpack.c.bf16 %v1749_v12, %v1747_v9  ;;  %v1476_v46 = vadd.f32 %v1475_v56, %v9050_v53  ;;  %v1750_v37 = vmax.f32 %v1474_v41, 0.0  ;;  %v8275_v41 = vld [vmem:[#allocation2 + $0x284] ss:$8 sps:$4 sm:$0xff]  }
 0x1fa   : > { %v1477_v44 = vpop.f32.mrf.mxu1  ;;  %2891 = vmatprep.subr.bf16.mxu1 %v8275_v41 }
 0x1fb   : > { %v1478_v50 = vadd.f32 %v1477_v44, %v9053_v61  ;;  %2207 = vmatprep.mubr.bf16.mxu0 %v1863_v0  ;;  %v1751_v13 = vmax.f32 %v1476_v46, 0.0  ;;  %v8270_v44 = vld [vmem:[#allocation2 + $0x350] ss:$8 sps:$4 sm:$0xff]  }
 0x1fc   : > { %v1479_v36 = vpop.f32.mrf.mxu1  ;;  %2208 = vmatmul.mubr.bf16.gmra.mxu0 %v1862_v11  ;;  %v8272_v11 = vld [vmem:[#allocation2 + $0x354] ss:$8 sps:$4 sm:$0xff]  }
 0x1fd   : > { %v1480_v18 = vadd.f32 %v1479_v36, %v9050_v53  ;;  %v1752_v2 = vmax.f32 %v1478_v50, 0.0  ;;  %3611 = vmatprep.subr.bf16.mxu0 %v8272_v11  ;;  %v8273_v36 = vld [vmem:[#allocation2 + $0x280] ss:$8 sps:$4 sm:$0xff]  }
 0x1fe   : > { %v1483_v27 = vpop.f32.mrf.mxu1  ;;  %3612 = vmatpush1.bf16.msra.mxu0 %v8270_v44  ;;  %2892 = vmatpush2.bf16.msra.mxu1 %v8273_v36 }
 0x1ff   : > { %v1753_v4 = vmax.f32 %v1480_v18, 0.0  ;;  %v1864_v62 = vpack.c.bf16 %v1752_v2, %v1750_v37  ;;  %v1484_v28 = vadd.f32 %v1483_v27, %v9053_v61 }
 0x200   : > { %v1485_v19 = vpop.f32.mrf.mxu1 }
 0x201   : > { %v1865_v40 = vpack.c.bf16 %v1753_v4, %v1751_v13  ;;  %v1486_v35 = vadd.f32 %v1485_v19, %v9050_v53  ;;  %v1754_v1 = vmax.f32 %v1484_v28, 0.0 }
 0x202   : > { %v1487_v59 = vpop.f32.mrf.mxu1 }
 0x203   : > { %v1488_v34 = vadd.f32 %v1487_v59, %v9053_v61  ;;  %2217 = vmatprep.mubr.bf16.mxu0 %v1865_v40  ;;  %v1755_v12 = vmax.f32 %v1486_v35, 0.0 }
 0x204   : > { %v1489_v30 = vpop.f32.mrf.mxu1  ;;  %2218 = vmatmul.mubr.bf16.gmra.mxu0 %v1864_v62 }
 0x205   : > { %v1490_v9 = vadd.f32 %v1489_v30, %v9050_v53  ;;  %v1756_v56 = vmax.f32 %v1488_v34, 0.0 }
 0x206   : > { %v1493_v45 = vpop.f32.mrf.mxu1 }
 0x207   : > { %v1757_v52 = vmax.f32 %v1490_v9, 0.0  ;;  %v1866_v50 = vpack.c.bf16 %v1756_v56, %v1754_v1  ;;  %v1494_v27 = vadd.f32 %v1493_v45, %v9053_v61 }
 0x208   : > { %v1495_v0 = vpop.f32.mrf.mxu1 }
 0x209   : > { %v1867_v26 = vpack.c.bf16 %v1757_v52, %v1755_v12  ;;  %v1496_v32 = vadd.f32 %v1495_v0, %v9050_v53  ;;  %v1758_v59 = vmax.f32 %v1494_v27, 0.0 }
 0x20a   : > { %v1497_v46 = vpop.f32.mrf.mxu1 }
 0x20b   : > { %v1498_v55 = vadd.f32 %v1497_v46, %v9053_v61  ;;  %2227 = vmatprep.mubr.bf16.mxu0 %v1867_v26  ;;  %v1759_v4 = vmax.f32 %v1496_v32, 0.0  ;;  %v8278_v32 = vld [vmem:[#allocation2 + $0x344] ss:$8 sps:$4 sm:$0xff]  }
 0x20c   : > { %v1499_v18 = vpop.f32.mrf.mxu1  ;;  %2228 = vmatmul.mubr.bf16.gmra.mxu0 %v1866_v50  ;;  %v8276_v50 = vld [vmem:[#allocation2 + $0x340] ss:$8 sps:$4 sm:$0xff]   ;;  %3613 = vmatprep.subr.bf16.mxu0 %v8278_v32  ;;  %v8281_v32 = vld [vmem:[#allocation2 + $0x334] ss:$8 sps:$4 sm:$0xff]  }
 0x20d   : > { %v1500_v13 = vadd.f32 %v1499_v18, %v9050_v53  ;;  %v1760_v19 = vmax.f32 %v1498_v55, 0.0  ;;  %3614 = vmatpush1.bf16.msra.mxu0 %v8276_v50  ;;  %v8279_v50 = vld [vmem:[#allocation2 + $0x330] ss:$8 sps:$4 sm:$0xff]  }
 0x20e   : > { %v1503_v2 = vpop.f32.mrf.mxu1  ;;  %3615 = vmatprep.subr.bf16.mxu0 %v8281_v32  ;;  %v8284_v32 = vld [vmem:[#allocation2 + $0x324] ss:$8 sps:$4 sm:$0xff]  }
 0x20f   : > { %v1761_v37 = vmax.f32 %v1500_v13, 0.0  ;;  %v1868_v34 = vpack.c.bf16 %v1760_v19, %v1758_v59  ;;  %v1504_v45 = vadd.f32 %v1503_v2, %v9053_v61 }
 0x210   : > { %v1505_v40 = vpop.f32.mrf.mxu1 }
 0x211   : > { %v1869_v62 = vpack.c.bf16 %v1761_v37, %v1759_v4  ;;  %v1506_v30 = vadd.f32 %v1505_v40, %v9050_v53  ;;  %v1762_v44 = vmax.f32 %v1504_v45, 0.0  ;;  %3616 = vmatpush1.bf16.msra.mxu0 %v8279_v50  ;;  %v8282_v50 = vld [vmem:[#allocation2 + $0x320] ss:$8 sps:$4 sm:$0xff]  }
 0x212   : > { %v1507_v35 = vpop.f32.mrf.mxu1  ;;  %3617 = vmatprep.subr.bf16.mxu0 %v8284_v32  ;;  %v8287_v32 = vld [vmem:[#allocation2 + $0x314] ss:$8 sps:$4 sm:$0xff]  }
 0x213   : > { %v1508_v28 = vadd.f32 %v1507_v35, %v9053_v61  ;;  %2237 = vmatprep.mubr.bf16.mxu0 %v1869_v62  ;;  %v1763_v52 = vmax.f32 %v1506_v30, 0.0 }
 0x214   : > { %v1509_v9 = vpop.f32.mrf.mxu1  ;;  %2238 = vmatmul.mubr.bf16.gmra.mxu0 %v1868_v34 }
 0x215   : > { %v1510_v12 = vadd.f32 %v1509_v9, %v9050_v53  ;;  %v1764_v0 = vmax.f32 %v1508_v28, 0.0  ;;  %3618 = vmatpush1.bf16.msra.mxu0 %v8282_v50  ;;  %v8285_v50 = vld [vmem:[#allocation2 + $0x310] ss:$8 sps:$4 sm:$0xff]  }
 0x216   : > { %v1513_v56 = vpop.f32.mrf.mxu1  ;;  %3619 = vmatprep.subr.bf16.mxu0 %v8287_v32  ;;  %v8290_v32 = vld [vmem:[#allocation2 + $0x304] ss:$8 sps:$4 sm:$0xff]  }
 0x217   : > { %v1765_v1 = vmax.f32 %v1510_v12, 0.0  ;;  %v1870_v55 = vpack.c.bf16 %v1764_v0, %v1762_v44  ;;  %v1514_v27 = vadd.f32 %v1513_v56, %v9053_v61 }
 0x218   : > { %v1515_v26 = vpop.f32.mrf.mxu1 }
 0x219   : > { %v1871_v11 = vpack.c.bf16 %v1765_v1, %v1763_v52  ;;  %v1516_v36 = vadd.f32 %v1515_v26, %v9050_v53  ;;  %v1766_v59 = vmax.f32 %v1514_v27, 0.0  ;;  %3620 = vmatpush1.bf16.msra.mxu0 %v8285_v50  ;;  %v8288_v50 = vld [vmem:[#allocation2 + $0x300] ss:$8 sps:$4 sm:$0xff]  }
 0x21a   : > { %v1517_v46 = vpop.f32.mrf.mxu1  ;;  %3621 = vmatprep.subr.bf16.mxu0 %v8290_v32  ;;  %v8293_v32 = vld [vmem:[#allocation2 + $0x3f4] ss:$8 sps:$4 sm:$0xff]  }
 0x21b   : > { %v1518_v41 = vadd.f32 %v1517_v46, %v9053_v61  ;;  %2247 = vmatprep.mubr.bf16.mxu0 %v1871_v11  ;;  %v1767_v4 = vmax.f32 %v1516_v36, 0.0 }
 0x21c   : > { %v1519_v18 = vpop.f32.mrf.mxu1  ;;  %2248 = vmatmul.mubr.bf16.gmra.mxu0 %v1870_v55 }
 0x21d   : > { %v1520_v13 = vadd.f32 %v1519_v18, %v9050_v53  ;;  %v1768_v19 = vmax.f32 %v1518_v41, 0.0  ;;  %3622 = vmatpush1.bf16.msra.mxu0 %v8288_v50  ;;  %v8291_v50 = vld [vmem:[#allocation2 + $0x3f0] ss:$8 sps:$4 sm:$0xff]  }
 0x21e   : > { %v1523_v2 = vpop.f32.mrf.mxu1  ;;  %3623 = vmatprep.subr.bf16.mxu0 %v8293_v32  ;;  %v8296_v32 = vld [vmem:[#allocation2 + $0x3e4] ss:$8 sps:$4 sm:$0xff]  }
 0x21f   : > { %v1769_v37 = vmax.f32 %v1520_v13, 0.0  ;;  %v1872_v34 = vpack.c.bf16 %v1768_v19, %v1766_v59  ;;  %v1524_v45 = vadd.f32 %v1523_v2, %v9053_v61 }
 0x220   : > { %v1525_v40 = vpop.f32.mrf.mxu1 }
 0x221   : > { %v1873_v62 = vpack.c.bf16 %v1769_v37, %v1767_v4  ;;  %v1526_v30 = vadd.f32 %v1525_v40, %v9050_v53  ;;  %v1770_v44 = vmax.f32 %v1524_v45, 0.0  ;;  %3624 = vmatpush2.bf16.msra.mxu0 %v8291_v50  ;;  %v8294_v50 = vld [vmem:[#allocation2 + $0x3e0] ss:$8 sps:$4 sm:$0xff]  }
 0x222   : > { %v1527_v35 = vpop.f32.mrf.mxu1  ;;  %3625 = vmatprep.subr.bf16.mxu0 %v8296_v32  ;;  %v8299_v32 = vld [vmem:[#allocation2 + $0x3d4] ss:$8 sps:$4 sm:$0xff]  }
 0x223   : > { %v1528_v28 = vadd.f32 %v1527_v35, %v9053_v61  ;;  %2257 = vmatprep.mubr.bf16.mxu0 %v1873_v62  ;;  %v1771_v52 = vmax.f32 %v1526_v30, 0.0 }
 0x224   : > { %v1529_v9 = vpop.f32.mrf.mxu1  ;;  %2258 = vmatmul.mubr.bf16.gmra.mxu0 %v1872_v34 }
 0x225   : > { %v1530_v12 = vadd.f32 %v1529_v9, %v9050_v53  ;;  %v1772_v0 = vmax.f32 %v1528_v28, 0.0  ;;  %3626 = vmatpush2.bf16.msra.mxu0 %v8294_v50  ;;  %v8297_v50 = vld [vmem:[#allocation2 + $0x3d0] ss:$8 sps:$4 sm:$0xff]  }
 0x226   : > { %v1533_v56 = vpop.f32.mrf.mxu1  ;;  %3627 = vmatprep.subr.bf16.mxu0 %v8299_v32 }
 0x227   : > { %v1773_v1 = vmax.f32 %v1530_v12, 0.0  ;;  %v1874_v55 = vpack.c.bf16 %v1772_v0, %v1770_v44  ;;  %v1534_v27 = vadd.f32 %v1533_v56, %v9053_v61 }
 0x228   : > { %v1535_v26 = vpop.f32.mrf.mxu1 }
 0x229   : > { %v1875_v11 = vpack.c.bf16 %v1773_v1, %v1771_v52  ;;  %v1536_v36 = vadd.f32 %v1535_v26, %v9050_v53  ;;  %v1774_v59 = vmax.f32 %v1534_v27, 0.0  ;;  %3628 = vmatpush2.bf16.msra.mxu0 %v8297_v50 }
 0x22a   : > { %v1537_v46 = vpop.f32.mrf.mxu1 }
 0x22b   : > { %v1538_v41 = vadd.f32 %v1537_v46, %v9053_v61  ;;  %2267 = vmatprep.mubr.bf16.mxu0 %v1875_v11  ;;  %v1775_v4 = vmax.f32 %v1536_v36, 0.0 }
 0x22c   : > { %v1539_v18 = vpop.f32.mrf.mxu1  ;;  %2268 = vmatmul.mubr.bf16.gmra.mxu0 %v1874_v55 }
 0x22d   : > { %v1540_v13 = vadd.f32 %v1539_v18, %v9050_v53  ;;  %v1776_v19 = vmax.f32 %v1538_v41, 0.0 }
 0x22e   : > { %v1543_v2 = vpop.f32.mrf.mxu1 }
 0x22f   : > { %v1777_v37 = vmax.f32 %v1540_v13, 0.0  ;;  %v1876_v34 = vpack.c.bf16 %v1776_v19, %v1774_v59  ;;  %v1544_v45 = vadd.f32 %v1543_v2, %v9053_v61 }
 0x230   : > { %v1545_v40 = vpop.f32.mrf.mxu1 }
 0x231   : > { %v1877_v62 = vpack.c.bf16 %v1777_v37, %v1775_v4  ;;  %v1546_v30 = vadd.f32 %v1545_v40, %v9050_v53  ;;  %v1778_v44 = vmax.f32 %v1544_v45, 0.0 }
 0x232   : > { %v1547_v35 = vpop.f32.mrf.mxu1 }
 0x233   : > { %v1548_v28 = vadd.f32 %v1547_v35, %v9053_v61  ;;  %2277 = vmatprep.mubr.bf16.mxu0 %v1877_v62  ;;  %v1779_v52 = vmax.f32 %v1546_v30, 0.0 }
 0x234   : > { %v1549_v9 = vpop.f32.mrf.mxu1  ;;  %2278 = vmatmul.mubr.bf16.gmra.mxu0 %v1876_v34 }
 0x235   : > { %v1550_v12 = vadd.f32 %v1549_v9, %v9050_v53  ;;  %v1780_v0 = vmax.f32 %v1548_v28, 0.0 }
 0x236   : > { %v1553_v56 = vpop.f32.mrf.mxu1 }
 0x237   : > { %v1781_v1 = vmax.f32 %v1550_v12, 0.0  ;;  %v1878_v55 = vpack.c.bf16 %v1780_v0, %v1778_v44  ;;  %v1554_v27 = vadd.f32 %v1553_v56, %v9053_v61 }
 0x238   : > { %v1555_v26 = vpop.f32.mrf.mxu1 }
 0x239   : > { %v1879_v11 = vpack.c.bf16 %v1781_v1, %v1779_v52  ;;  %v1556_v36 = vadd.f32 %v1555_v26, %v9050_v53  ;;  %v1782_v59 = vmax.f32 %v1554_v27, 0.0 }
 0x23a   : > { %v1557_v46 = vpop.f32.mrf.mxu1 }
 0x23b   : > { %v1558_v41 = vadd.f32 %v1557_v46, %v9053_v61  ;;  %2287 = vmatprep.mubr.bf16.mxu0 %v1879_v11  ;;  %v1783_v4 = vmax.f32 %v1556_v36, 0.0 }
 0x23c   : > { %v1559_v18 = vpop.f32.mrf.mxu1  ;;  %2288 = vmatmul.mubr.bf16.gmra.mxu0 %v1878_v55 }
 0x23d   : > { %v1560_v13 = vadd.f32 %v1559_v18, %v9050_v53  ;;  %v1784_v19 = vmax.f32 %v1558_v41, 0.0 }
 0x23e   : > { %v1563_v2 = vpop.f32.mrf.mxu1 }
 0x23f   : > { %v1785_v37 = vmax.f32 %v1560_v13, 0.0  ;;  %v1880_v34 = vpack.c.bf16 %v1784_v19, %v1782_v59  ;;  %v1564_v45 = vadd.f32 %v1563_v2, %v9053_v61 }
 0x240   : > { %v1565_v40 = vpop.f32.mrf.mxu1 }
 0x241   : > { %v1881_v62 = vpack.c.bf16 %v1785_v37, %v1783_v4  ;;  %v1566_v30 = vadd.f32 %v1565_v40, %v9050_v53  ;;  %v1786_v44 = vmax.f32 %v1564_v45, 0.0 }
 0x242   : > { %v1567_v35 = vpop.f32.mrf.mxu1 }
 0x243   : > { %v1568_v28 = vadd.f32 %v1567_v35, %v9053_v61  ;;  %2297 = vmatprep.mubr.bf16.mxu0 %v1881_v62  ;;  %v1787_v52 = vmax.f32 %v1566_v30, 0.0 }
 0x244   : > { %v1569_v9 = vpop.f32.mrf.mxu1  ;;  %2298 = vmatmul.mubr.bf16.gmra.mxu0 %v1880_v34 }
 0x245   : > { %v1570_v12 = vadd.f32 %v1569_v9, %v9050_v53  ;;  %v1788_v0 = vmax.f32 %v1568_v28, 0.0 }
 0x246   : > { %v1573_v56 = vpop.f32.mrf.mxu1 }
 0x247   : > { %v1789_v1 = vmax.f32 %v1570_v12, 0.0  ;;  %v1882_v55 = vpack.c.bf16 %v1788_v0, %v1786_v44  ;;  %v1574_v27 = vadd.f32 %v1573_v56, %v9053_v61 }
 0x248   : > { %v1575_v26 = vpop.f32.mrf.mxu1 }
 0x249   : > { %v1883_v11 = vpack.c.bf16 %v1789_v1, %v1787_v52  ;;  %v1576_v36 = vadd.f32 %v1575_v26, %v9050_v53  ;;  %v1790_v59 = vmax.f32 %v1574_v27, 0.0 }
 0x24a   : > { %v1577_v46 = vpop.f32.mrf.mxu1 }
 0x24b   : > { %v1578_v41 = vadd.f32 %v1577_v46, %v9053_v61  ;;  %2307 = vmatprep.mubr.bf16.mxu0 %v1883_v11  ;;  %v1791_v4 = vmax.f32 %v1576_v36, 0.0 }
 0x24c   : > { %v1579_v18 = vpop.f32.mrf.mxu1  ;;  %2308 = vmatmul.mubr.bf16.gmra.mxu0 %v1882_v55 }
 0x24d   : > { %v1580_v13 = vadd.f32 %v1579_v18, %v9050_v53  ;;  %v1792_v19 = vmax.f32 %v1578_v41, 0.0 }
 0x24e   : > { %v1583_v2 = vpop.f32.mrf.mxu1 }
 0x24f   : > { %v1793_v37 = vmax.f32 %v1580_v13, 0.0  ;;  %v1884_v34 = vpack.c.bf16 %v1792_v19, %v1790_v59  ;;  %v1584_v45 = vadd.f32 %v1583_v2, %v9053_v61 }
 0x250   : > { %v1585_v40 = vpop.f32.mrf.mxu1 }
 0x251   : > { %v1885_v62 = vpack.c.bf16 %v1793_v37, %v1791_v4  ;;  %v1586_v30 = vadd.f32 %v1585_v40, %v9050_v53  ;;  %v1794_v44 = vmax.f32 %v1584_v45, 0.0 }
 0x252   : > { %v1587_v35 = vpop.f32.mrf.mxu1 }
 0x253   : > { %v1588_v28 = vadd.f32 %v1587_v35, %v9053_v61  ;;  %2317 = vmatprep.mubr.bf16.mxu0 %v1885_v62  ;;  %v1795_v52 = vmax.f32 %v1586_v30, 0.0 }
 0x254   : > { %v1589_v9 = vpop.f32.mrf.mxu1  ;;  %2318 = vmatmul.mubr.bf16.gmra.mxu0 %v1884_v34 }
 0x255   : > { %v1590_v12 = vadd.f32 %v1589_v9, %v9050_v53  ;;  %v1796_v0 = vmax.f32 %v1588_v28, 0.0 }
 0x256   : > { %v1593_v56 = vpop.f32.mrf.mxu1 }
 0x257   : > { %v1797_v1 = vmax.f32 %v1590_v12, 0.0  ;;  %v1886_v55 = vpack.c.bf16 %v1796_v0, %v1794_v44  ;;  %v1594_v27 = vadd.f32 %v1593_v56, %v9053_v61 }
 0x258   : > { %v1595_v26 = vpop.f32.mrf.mxu1 }
 0x259   : > { %v1887_v11 = vpack.c.bf16 %v1797_v1, %v1795_v52  ;;  %v1596_v36 = vadd.f32 %v1595_v26, %v9050_v53  ;;  %v1798_v59 = vmax.f32 %v1594_v27, 0.0 }
 0x25a   : > { %v1597_v46 = vpop.f32.mrf.mxu1 }
 0x25b   : > { %v1598_v41 = vadd.f32 %v1597_v46, %v9053_v61  ;;  %2327 = vmatprep.mubr.bf16.mxu0 %v1887_v11  ;;  %v1799_v4 = vmax.f32 %v1596_v36, 0.0 }
 0x25c   : > { %v1599_v18 = vpop.f32.mrf.mxu1  ;;  %2328 = vmatmul.mubr.bf16.gmra.mxu0 %v1886_v55 }
 0x25d   : > { %v1600_v13 = vadd.f32 %v1599_v18, %v9050_v53  ;;  %v1800_v19 = vmax.f32 %v1598_v41, 0.0 }
 0x25e   : > { %v1603_v2 = vpop.f32.mrf.mxu1 }
 0x25f   : > { %v1801_v37 = vmax.f32 %v1600_v13, 0.0  ;;  %v1888_v34 = vpack.c.bf16 %v1800_v19, %v1798_v59  ;;  %v1604_v45 = vadd.f32 %v1603_v2, %v9053_v61 }
 0x260   : > { %v1605_v40 = vpop.f32.mrf.mxu1 }
 0x261   : > { %v1889_v62 = vpack.c.bf16 %v1801_v37, %v1799_v4  ;;  %v1606_v30 = vadd.f32 %v1605_v40, %v9050_v53  ;;  %v1802_v44 = vmax.f32 %v1604_v45, 0.0 }
 0x262   : > { %v1607_v35 = vpop.f32.mrf.mxu1 }
 0x263   : > { %v1608_v28 = vadd.f32 %v1607_v35, %v9053_v61  ;;  %2337 = vmatprep.mubr.bf16.mxu0 %v1889_v62  ;;  %v1803_v52 = vmax.f32 %v1606_v30, 0.0 }
 0x264   : > { %v1609_v9 = vpop.f32.mrf.mxu1  ;;  %2338 = vmatmul.mubr.bf16.gmra.mxu0 %v1888_v34 }
 0x265   : > { %v1610_v12 = vadd.f32 %v1609_v9, %v9050_v53  ;;  %v1804_v0 = vmax.f32 %v1608_v28, 0.0 }
 0x266   : > { %v1613_v56 = vpop.f32.mrf.mxu1 }
 0x267   : > { %v1805_v1 = vmax.f32 %v1610_v12, 0.0  ;;  %v1890_v55 = vpack.c.bf16 %v1804_v0, %v1802_v44  ;;  %v1614_v27 = vadd.f32 %v1613_v56, %v9053_v61 }
 0x268   : > { %v1615_v26 = vpop.f32.mrf.mxu1 }
 0x269   : > { %v1891_v11 = vpack.c.bf16 %v1805_v1, %v1803_v52  ;;  %v1616_v36 = vadd.f32 %v1615_v26, %v9050_v53  ;;  %v1806_v59 = vmax.f32 %v1614_v27, 0.0 }
 0x26a   : > { %v1617_v46 = vpop.f32.mrf.mxu1 }
 0x26b   : > { %v1618_v41 = vadd.f32 %v1617_v46, %v9053_v61  ;;  %2347 = vmatprep.mubr.bf16.mxu0 %v1891_v11  ;;  %v1807_v4 = vmax.f32 %v1616_v36, 0.0 }
 0x26c   : > { %v1619_v18 = vpop.f32.mrf.mxu1  ;;  %2348 = vmatmul.mubr.bf16.gmra.mxu0 %v1890_v55 }
 0x26d   : > { %v1620_v13 = vadd.f32 %v1619_v18, %v9050_v53  ;;  %v1808_v19 = vmax.f32 %v1618_v41, 0.0 }
 0x26e   : > { %v1623_v2 = vpop.f32.mrf.mxu1 }
 0x26f   : > { %v1809_v37 = vmax.f32 %v1620_v13, 0.0  ;;  %v1892_v34 = vpack.c.bf16 %v1808_v19, %v1806_v59  ;;  %v1624_v45 = vadd.f32 %v1623_v2, %v9053_v61 }
 0x270   : > { %v1625_v40 = vpop.f32.mrf.mxu1 }
 0x271   : > { %v1893_v62 = vpack.c.bf16 %v1809_v37, %v1807_v4  ;;  %v1626_v30 = vadd.f32 %v1625_v40, %v9050_v53  ;;  %v1810_v44 = vmax.f32 %v1624_v45, 0.0 }
 0x272   : > { %v1627_v35 = vpop.f32.mrf.mxu1 }
 0x273   : > { %v1628_v28 = vadd.f32 %v1627_v35, %v9053_v61  ;;  %2357 = vmatprep.mubr.bf16.mxu0 %v1893_v62  ;;  %v1811_v52 = vmax.f32 %v1626_v30, 0.0 }
 0x274   : > { %v1629_v9 = vpop.f32.mrf.mxu1  ;;  %2358 = vmatmul.mubr.bf16.gmra.mxu0 %v1892_v34 }
 0x275   : > { %v1630_v12 = vadd.f32 %v1629_v9, %v9050_v53  ;;  %v1812_v0 = vmax.f32 %v1628_v28, 0.0 }
 0x276   : > { %v1633_v56 = vpop.f32.mrf.mxu1 }
 0x277   : > { %v1813_v1 = vmax.f32 %v1630_v12, 0.0  ;;  %v1894_v55 = vpack.c.bf16 %v1812_v0, %v1810_v44  ;;  %v1634_v27 = vadd.f32 %v1633_v56, %v9053_v61 }
 0x278   : > { %v1635_v26 = vpop.f32.mrf.mxu1 }
 0x279   : > { %v1895_v11 = vpack.c.bf16 %v1813_v1, %v1811_v52  ;;  %v1636_v36 = vadd.f32 %v1635_v26, %v9050_v53  ;;  %v1814_v59 = vmax.f32 %v1634_v27, 0.0 }
 0x27a   : > { %v1637_v46 = vpop.f32.mrf.mxu1 }
 0x27b   : > { %v1638_v41 = vadd.f32 %v1637_v46, %v9053_v61  ;;  %2367 = vmatprep.mubr.bf16.mxu0 %v1895_v11  ;;  %v1815_v4 = vmax.f32 %v1636_v36, 0.0 }
 0x27c   : > { %v1639_v18 = vpop.f32.mrf.mxu1  ;;  %2368 = vmatmul.mubr.bf16.gmra.mxu0 %v1894_v55 }
 0x27d   : > { %v1640_v13 = vadd.f32 %v1639_v18, %v9050_v53  ;;  %v1816_v19 = vmax.f32 %v1638_v41, 0.0 }
 0x27e   : > { %v1643_v2 = vpop.f32.mrf.mxu1 }
 0x27f   : > { %v1817_v37 = vmax.f32 %v1640_v13, 0.0  ;;  %v1896_v34 = vpack.c.bf16 %v1816_v19, %v1814_v59  ;;  %v1644_v45 = vadd.f32 %v1643_v2, %v9053_v61  ;;  %v8451_v59 = vld [vmem:[%s11071_s4 + $0x8] sm:$0x3f] }
 0x280   : > { %v1645_v40 = vpop.f32.mrf.mxu1 }
 0x281   : > { %v1897_v62 = vpack.c.bf16 %v1817_v37, %v1815_v4  ;;  %v1646_v30 = vadd.f32 %v1645_v40, %v9050_v53  ;;  %v1818_v44 = vmax.f32 %v1644_v45, 0.0 }
 0x282   : > { %v1647_v35 = vpop.f32.mrf.mxu1 }
 0x283   : > { %v1648_v28 = vadd.f32 %v1647_v35, %v9053_v61  ;;  %2377 = vmatprep.mubr.bf16.mxu0 %v1897_v62  ;;  %v1819_v52 = vmax.f32 %v1646_v30, 0.0  ;;  %v9187_v62 = vrot.slane %v8451_v59, %v8874_v25 }
 0x284   : > { %v1649_v9 = vpop.f32.mrf.mxu1  ;;  %2378 = vmatmul.mubr.bf16.gmra.mxu0 %v1896_v34  ;;  %v8452_v34 = vld [vmem:[%s11071_s4] sm:$0x3f] }
 0x285   : > { %v1650_v12 = vadd.f32 %v1649_v9, %v9050_v53  ;;  %v1820_v0 = vmax.f32 %v1648_v28, 0.0  ;;  %v9193_v30 = vrot.slane %v8452_v34, %v8874_v25 }
 0x286   : > { %v1653_v56 = vpop.f32.mrf.mxu1 }
 0x287   : > { %v1821_v1 = vmax.f32 %v1650_v12, 0.0  ;;  %v1898_v55 = vpack.c.bf16 %v1820_v0, %v1818_v44  ;;  %v1654_v27 = vadd.f32 %v1653_v56, %v9053_v61 }
 0x288   : > { %v1655_v26 = vpop.f32.mrf.mxu1 }
 0x289   : > { %v1899_v11 = vpack.c.bf16 %v1821_v1, %v1819_v52  ;;  %v1656_v36 = vadd.f32 %v1655_v26, %v9050_v53  ;;  %v1822_v28 = vmax.f32 %v1654_v27, 0.0 }
 0x28a   : > { %v1657_v46 = vpop.f32.mrf.mxu1 }
 0x28b   : > { %v1658_v41 = vadd.f32 %v1657_v46, %v9053_v61  ;;  %2387 = vmatprep.mubr.bf16.mxu0 %v1899_v11  ;;  %v1823_v4 = vmax.f32 %v1656_v36, 0.0 }
 0x28c   : > { %v1659_v18 = vpop.f32.mrf.mxu1  ;;  %v2149_v2 = vpop.f32.mrf.mxu0  ;;  %2388 = vmatmul.mubr.bf16.gmra.mxu0 %v1898_v55 }
 0x28d   : > { %v1660_v13 = vadd.f32 %v1659_v18, %v9050_v53  ;;  %v1824_v19 = vmax.f32 %v1658_v41, 0.0  ;;  %v2150_v44 = vadd.f32 %v2149_v2, %v9193_v30 }
 0x28e   : > { %v1663_v40 = vpop.f32.mrf.mxu1  ;;  %v2151_v35 = vpop.f32.mrf.mxu0 }
 0x28f   : > { %v1825_v37 = vmax.f32 %v1660_v13, 0.0  ;;  %v1900_v52 = vpack.c.bf16 %v1824_v19, %v1822_v28  ;;  %v2152_v0 = vadd.f32 %v2151_v35, %v9187_v62  ;;  %v1664_v55 = vadd.f32 %v1663_v40, %v9053_v61  ;;  %v8302_v40 = vld [vmem:[#allocation2 + $0x3c4] ss:$8 sps:$4 sm:$0xff]  }
 0x290   : > { %v1665_v9 = vpop.f32.mrf.mxu1  ;;  %v2153_v45 = vpop.f32.mrf.mxu0  ;;  %v2468_v19 = vmax.f32 %v2150_v44, 0.0  ;;  %3629 = vmatprep.subr.bf16.mxu0 %v8302_v40 }
 0x291   : > { %v1901_v12 = vpack.c.bf16 %v1825_v37, %v1823_v4  ;;  %v2154_v56 = vadd.f32 %v2153_v45, %v9193_v30  ;;  %v1666_v25 = vadd.f32 %v1665_v9, %v9050_v53  ;;  %v2469_v27 = vmax.f32 %v2152_v0, 0.0 }
 0x292   : > { %v1667_v1 = vpop.f32.mrf.mxu1  ;;  %v2155_v26 = vpop.f32.mrf.mxu0  ;;  %v1826_v9 = vmax.f32 %v1664_v55, 0.0 }
 0x293   : > { %2397 = vmatprep.mubr.bf16.mxu0 %v1901_v12  ;;  %v1668_v11 = vadd.f32 %v1667_v1, %v9053_v61  ;;  %v2156_v46 = vadd.f32 %v2155_v26, %v9187_v62  ;;  %v2470_v36 = vmax.f32 %v2154_v56, 0.0  ;;  %v1827_v59 = vmax.f32 %v1666_v25, 0.0 }
 0x294   : > { %v1669_v50 = vpop.f32.mrf.mxu1  ;;  %v2159_v32 = vpop.f32.mrf.mxu0  ;;  %2398 = vmatmul.mubr.bf16.gmra.mxu0 %v1900_v52  ;;  %v8300_v52 = vld [vmem:[#allocation2 + $0x3c0] ss:$8 sps:$4 sm:$0xff]  }
 0x295   : > { %v2471_v41 = vmax.f32 %v2156_v46, 0.0  ;;  %v1670_v18 = vadd.f32 %v1669_v50, %v9050_v53  ;;  %v1828_v2 = vmax.f32 %v1668_v11, 0.0  ;;  %v2596_v45 = vpack.c.bf16 %v2470_v36, %v2468_v19  ;;  %3630 = vmatpush2.bf16.msra.mxu0 %v8300_v52 }
 0x296   : > { %v1673_v13 = vpop.f32.mrf.mxu1  ;;  %v2161_v4 = vpop.f32.mrf.mxu0  ;;  %v2160_v56 = vadd.f32 %v2159_v32, %v9193_v30 }
 0x297   : > { %v1829_v37 = vmax.f32 %v1670_v18, 0.0  ;;  %v2597_v28 = vpack.c.bf16 %v2471_v41, %v2469_v27  ;;  %v2162_v1 = vadd.f32 %v2161_v4, %v9187_v62  ;;  %v1902_v11 = vpack.c.bf16 %v1828_v2, %v1826_v9 }
 0x298   : > { %v1675_v35 = vpop.f32.mrf.mxu1  ;;  %v2163_v34 = vpop.f32.mrf.mxu0  ;;  %v1674_v32 = vadd.f32 %v1673_v13, %v9053_v61 }
 0x299   : > { %v2164_v12 = vadd.f32 %v2163_v34, %v9193_v30  ;;  %2893 = vmatprep.mubr.bf16.mxu1 %v2597_v28  ;;  %v1903_v44 = vpack.c.bf16 %v1829_v37, %v1827_v59  ;;  %v1676_v50 = vadd.f32 %v1675_v35, %v9050_v53  ;;  %v2473_v4 = vmax.f32 %v2162_v1, 0.0 }
 0x29a   : > { %v1677_v0 = vpop.f32.mrf.mxu1  ;;  %v2165_v26 = vpop.f32.mrf.mxu0  ;;  %2894 = vmatmul.mubr.bf16.vlgmr.msra.gmra.mxu1 %v2596_v45  ;;  %v2472_v37 = vmax.f32 %v2160_v56, 0.0  ;;  %v1830_v40 = vmax.f32 %v1674_v32, 0.0 }
 0x29b   : > { %v1678_v46 = vadd.f32 %v1677_v0, %v9053_v61  ;;  %v2166_v25 = vadd.f32 %v2165_v26, %v9187_v62  ;;  %2407 = vmatprep.mubr.bf16.mxu0 %v1903_v44  ;;  %v2474_v41 = vmax.f32 %v2164_v12, 0.0  ;;  %v1831_v28 = vmax.f32 %v1676_v50, 0.0 }
 0x29c   : > { %v1679_v55 = vpop.f32.mrf.mxu1  ;;  %v2169_v36 = vpop.f32.mrf.mxu0  ;;  %2408 = vmatmul.mubr.bf16.gmra.mxu0 %v1902_v11 }
 0x29d   : > { %v2475_v18 = vmax.f32 %v2166_v25, 0.0  ;;  %v1680_v27 = vadd.f32 %v1679_v55, %v9050_v53  ;;  %v1832_v59 = vmax.f32 %v1678_v46, 0.0  ;;  %v2598_v0 = vpack.c.bf16 %v2474_v41, %v2472_v37 }
 0x29e   : > { %v1683_v19 = vpop.f32.mrf.mxu1  ;;  %v2171_v2 = vpop.f32.mrf.mxu0  ;;  %v2170_v11 = vadd.f32 %v2169_v36, %v9193_v30 }
 0x29f   : > { %v1833_v34 = vmax.f32 %v1680_v27, 0.0  ;;  %v2599_v45 = vpack.c.bf16 %v2475_v18, %v2473_v4  ;;  %v2172_v13 = vadd.f32 %v2171_v2, %v9187_v62  ;;  %v1904_v1 = vpack.c.bf16 %v1832_v59, %v1830_v40 }
 0x2a0   : > { %v1685_v9 = vpop.f32.mrf.mxu1  ;;  %v2173_v35 = vpop.f32.mrf.mxu0  ;;  %v1684_v32 = vadd.f32 %v1683_v19, %v9053_v61  ;;  %v2476_v37 = vmax.f32 %v2170_v11, 0.0  ;;  %v8303_v19 = vld [vmem:[#allocation2 + $0x3b0] ss:$8 sps:$4 sm:$0xff]  }
 0x2a1   : > { %v2174_v52 = vadd.f32 %v2173_v35, %v9193_v30  ;;  %2903 = vmatprep.mubr.bf16.mxu1 %v2599_v45  ;;  %v1905_v44 = vpack.c.bf16 %v1833_v34, %v1831_v28  ;;  %v1686_v25 = vadd.f32 %v1685_v9, %v9050_v53  ;;  %v2477_v4 = vmax.f32 %v2172_v13, 0.0 }
 0x2a2   : > { %v1687_v12 = vpop.f32.mrf.mxu1  ;;  %v2175_v26 = vpop.f32.mrf.mxu0  ;;  %2904 = vmatmul.mubr.bf16.gmra.mxu1 %v2598_v0  ;;  %v1834_v40 = vmax.f32 %v1684_v32, 0.0 }
 0x2a3   : > { %v1688_v56 = vadd.f32 %v1687_v12, %v9053_v61  ;;  %v2176_v46 = vadd.f32 %v2175_v26, %v9187_v62  ;;  %2417 = vmatprep.mubr.bf16.mxu0 %v1905_v44  ;;  %v2478_v41 = vmax.f32 %v2174_v52, 0.0  ;;  %v1835_v28 = vmax.f32 %v1686_v25, 0.0  ;;  %v8305_v52 = vld [vmem:[#allocation2 + $0x3b4] ss:$8 sps:$4 sm:$0xff]  }
 0x2a4   : > { %v1689_v50 = vpop.f32.mrf.mxu1  ;;  %v2179_v55 = vpop.f32.mrf.mxu0  ;;  %2418 = vmatmul.mubr.bf16.gmra.mxu0 %v1904_v1  ;;  %3631 = vmatprep.subr.bf16.mxu0 %v8305_v52 }
 0x2a5   : > { %v2479_v18 = vmax.f32 %v2176_v46, 0.0  ;;  %v1690_v27 = vadd.f32 %v1689_v50, %v9050_v53  ;;  %v1836_v59 = vmax.f32 %v1688_v56, 0.0  ;;  %v2600_v0 = vpack.c.bf16 %v2478_v41, %v2476_v37  ;;  %3632 = vmatpush2.bf16.msra.mxu0 %v8303_v19 }
 0x2a6   : > { %v1693_v2 = vpop.f32.mrf.mxu1  ;;  %v2181_v36 = vpop.f32.mrf.mxu0  ;;  %v2180_v26 = vadd.f32 %v2179_v55, %v9193_v30 }
 0x2a7   : > { %v1837_v34 = vmax.f32 %v1690_v27, 0.0  ;;  %v2601_v9 = vpack.c.bf16 %v2479_v18, %v2477_v4  ;;  %v2182_v44 = vadd.f32 %v2181_v36, %v9187_v62  ;;  %v1906_v56 = vpack.c.bf16 %v1836_v59, %v1834_v40 }
 0x2a8   : > { %v1695_v35 = vpop.f32.mrf.mxu1  ;;  %v2183_v45 = vpop.f32.mrf.mxu0  ;;  %v1694_v55 = vadd.f32 %v1693_v2, %v9053_v61 }
 0x2a9   : > { %v2184_v12 = vadd.f32 %v2183_v45, %v9193_v30  ;;  %2913 = vmatprep.mubr.bf16.mxu1 %v2601_v9  ;;  %v1907_v11 = vpack.c.bf16 %v1837_v34, %v1835_v28  ;;  %v1696_v50 = vadd.f32 %v1695_v35, %v9050_v53  ;;  %v2481_v36 = vmax.f32 %v2182_v44, 0.0 }
 0x2aa   : > { %v1697_v13 = vpop.f32.mrf.mxu1  ;;  %v2185_v1 = vpop.f32.mrf.mxu0  ;;  %2914 = vmatmul.mubr.bf16.gmra.mxu1 %v2600_v0  ;;  %v2480_v34 = vmax.f32 %v2180_v26, 0.0  ;;  %v1838_v52 = vmax.f32 %v1694_v55, 0.0 }
 0x2ab   : > { %v1698_v46 = vadd.f32 %v1697_v13, %v9053_v61  ;;  %v2186_v25 = vadd.f32 %v2185_v1, %v9187_v62  ;;  %2427 = vmatprep.mubr.bf16.mxu0 %v1907_v11  ;;  %v2482_v18 = vmax.f32 %v2184_v12, 0.0  ;;  %v1839_v9 = vmax.f32 %v1696_v50, 0.0 }
 0x2ac   : > { %v1699_v32 = vpop.f32.mrf.mxu1  ;;  %v2189_v41 = vpop.f32.mrf.mxu0  ;;  %2428 = vmatmul.mubr.bf16.gmra.mxu0 %v1906_v56 }
 0x2ad   : > { %v2483_v27 = vmax.f32 %v2186_v25, 0.0  ;;  %v1700_v4 = vadd.f32 %v1699_v32, %v9050_v53  ;;  %v1840_v28 = vmax.f32 %v1698_v46, 0.0  ;;  %v2602_v13 = vpack.c.bf16 %v2482_v18, %v2480_v34 }
 0x2ae   : > { %v1703_v37 = vpop.f32.mrf.mxu1  ;;  %v2191_v59 = vpop.f32.mrf.mxu0  ;;  %v2190_v56 = vadd.f32 %v2189_v41, %v9193_v30 }
 0x2af   : > { %v1841_v45 = vmax.f32 %v1700_v4, 0.0  ;;  %v2603_v0 = vpack.c.bf16 %v2483_v27, %v2481_v36  ;;  %v2192_v2 = vadd.f32 %v2191_v59, %v9187_v62  ;;  %v1908_v44 = vpack.c.bf16 %v1840_v28, %v1838_v52 }
 0x2b0   : > { %v1705_v40 = vpop.f32.mrf.mxu1  ;;  %v2193_v35 = vpop.f32.mrf.mxu0  ;;  %v1704_v25 = vadd.f32 %v1703_v37, %v9053_v61  ;;  %v2484_v28 = vmax.f32 %v2190_v56, 0.0 }
 0x2b1   : > { %v2194_v19 = vadd.f32 %v2193_v35, %v9193_v30  ;;  %2923 = vmatprep.mubr.bf16.mxu1 %v2603_v0  ;;  %v1909_v11 = vpack.c.bf16 %v1841_v45, %v1839_v9  ;;  %v1706_v50 = vadd.f32 %v1705_v40, %v9050_v53  ;;  %v2485_v36 = vmax.f32 %v2192_v2, 0.0  ;;  %v8306_v9 = vld [vmem:[#allocation2 + $0x470] ss:$8 sps:$4 sm:$0xff]   ;;  %v8308_v35 = vld [vmem:[#allocation2 + $0x474] ss:$8 sps:$4 sm:$0xff]  }
 0x2b2   : > { %v1707_v12 = vpop.f32.mrf.mxu1  ;;  %v2195_v1 = vpop.f32.mrf.mxu0  ;;  %2924 = vmatmul.mubr.bf16.gmra.mxu1 %v2602_v13  ;;  %v1842_v0 = vmax.f32 %v1704_v25, 0.0  ;;  %4353 = vmatprep.subr.bf16.mxu1 %v8308_v35  ;;  %v8311_v2 = vld [vmem:[#allocation2 + $0x3a4] ss:$8 sps:$4 sm:$0xff]  }
 0x2b3   : > { %v1708_v26 = vadd.f32 %v1707_v12, %v9053_v61  ;;  %v2196_v46 = vadd.f32 %v2195_v1, %v9187_v62  ;;  %2437 = vmatprep.mubr.bf16.mxu0 %v1909_v11  ;;  %v2486_v18 = vmax.f32 %v2194_v19, 0.0  ;;  %v1843_v37 = vmax.f32 %v1706_v50, 0.0  ;;  %v8309_v11 = vld [vmem:[#allocation2 + $0x3a0] ss:$8 sps:$4 sm:$0xff]   ;;  %4354 = vmatpush1.bf16.msra.mxu1 %v8306_v9 }
 0x2b4   : > { %v1709_v32 = vpop.f32.mrf.mxu1  ;;  %v2199_v55 = vpop.f32.mrf.mxu0  ;;  %2438 = vmatmul.mubr.bf16.gmra.mxu0 %v1908_v44  ;;  %3633 = vmatprep.subr.bf16.mxu0 %v8311_v2 }
 0x2b5   : > { %v2487_v27 = vmax.f32 %v2196_v46, 0.0  ;;  %v1710_v4 = vadd.f32 %v1709_v32, %v9050_v53  ;;  %v1844_v59 = vmax.f32 %v1708_v26, 0.0  ;;  %v2604_v12 = vpack.c.bf16 %v2486_v18, %v2484_v28  ;;  %3634 = vmatpush2.bf16.msra.mxu0 %v8309_v11 }
 0x2b6   : > { %v1713_v41 = vpop.f32.mrf.mxu1  ;;  %v2201_v34 = vpop.f32.mrf.mxu0  ;;  %v2200_v26 = vadd.f32 %v2199_v55, %v9193_v30 }
 0x2b7   : > { %v1845_v45 = vmax.f32 %v1710_v4, 0.0  ;;  %v2605_v13 = vpack.c.bf16 %v2487_v27, %v2485_v36  ;;  %v2202_v19 = vadd.f32 %v2201_v34, %v9187_v62  ;;  %v1910_v44 = vpack.c.bf16 %v1844_v59, %v1842_v0 }
 0x2b8   : > { %v1715_v52 = vpop.f32.mrf.mxu1  ;;  %v2203_v40 = vpop.f32.mrf.mxu0  ;;  %v1714_v27 = vadd.f32 %v1713_v41, %v9053_v61 }
 0x2b9   : > { %v2204_v1 = vadd.f32 %v2203_v40, %v9193_v30  ;;  %2933 = vmatprep.mubr.bf16.mxu1 %v2605_v13  ;;  %v1911_v32 = vpack.c.bf16 %v1845_v45, %v1843_v37  ;;  %v1716_v25 = vadd.f32 %v1715_v52, %v9050_v53  ;;  %v2489_v55 = vmax.f32 %v2202_v19, 0.0 }
 0x2ba   : > { %v1717_v56 = vpop.f32.mrf.mxu1  ;;  %v2205_v46 = vpop.f32.mrf.mxu0  ;;  %2934 = vmatmul.mubr.bf16.gmra.mxu1 %v2604_v12  ;;  %v2488_v45 = vmax.f32 %v2200_v26, 0.0  ;;  %v1846_v40 = vmax.f32 %v1714_v27, 0.0  ;;  %v8314_v27 = vld [vmem:[#allocation2 + $0x464] ss:$8 sps:$4 sm:$0xff]  }
 0x2bb   : > { %v1718_v50 = vadd.f32 %v1717_v56, %v9053_v61  ;;  %v2206_v18 = vadd.f32 %v2205_v46, %v9187_v62  ;;  %2447 = vmatprep.mubr.bf16.mxu0 %v1911_v32  ;;  %v2490_v59 = vmax.f32 %v2204_v1, 0.0  ;;  %v1847_v35 = vmax.f32 %v1716_v25, 0.0  ;;  %4355 = vmatprep.subr.bf16.mxu1 %v8314_v27  ;;  %v8318_v27 = vld [vmem:[#allocation2 + $0x450] ss:$8 sps:$4 sm:$0xff]  }
 0x2bc   : > { %v1719_v4 = vpop.f32.mrf.mxu1  ;;  %v2209_v36 = vpop.f32.mrf.mxu0  ;;  %2448 = vmatmul.mubr.bf16.gmra.mxu0 %v1910_v44 }
 0x2bd   : > { %v2491_v34 = vmax.f32 %v2206_v18, 0.0  ;;  %v1720_v28 = vadd.f32 %v1719_v4, %v9050_v53  ;;  %v1848_v0 = vmax.f32 %v1718_v50, 0.0  ;;  %v2606_v12 = vpack.c.bf16 %v2490_v59, %v2488_v45  ;;  %v8312_v18 = vld [vmem:[#allocation2 + $0x460] ss:$8 sps:$4 sm:$0xff]  }
 0x2be   : > { %v2211_v9 = vpop.f32.mrf.mxu0  ;;  %v2210_v53 = vadd.f32 %v2209_v36, %v9193_v30  ;;  %4356 = vmatpush1.bf16.msra.mxu1 %v8312_v18 }
 0x2bf   : > { %v1849_v37 = vmax.f32 %v1720_v28, 0.0  ;;  %v2607_v52 = vpack.c.bf16 %v2491_v34, %v2489_v55  ;;  %v2212_v61 = vadd.f32 %v2211_v9, %v9187_v62  ;;  %v1912_v11 = vpack.c.bf16 %v1848_v0, %v1846_v40  ;;  %v8315_v34 = vld [vmem:[#allocation2 + $0x390] ss:$8 sps:$4 sm:$0xff]   ;;  %v8317_v28 = vld [vmem:[#allocation2 + $0x394] ss:$8 sps:$4 sm:$0xff]  }
 0x2c0   : > { %v2213_v13 = vpop.f32.mrf.mxu0  ;;  %v2492_v25 = vmax.f32 %v2210_v53, 0.0  ;;  %3635 = vmatprep.subr.bf16.mxu0 %v8317_v28  ;;  %v8321_v28 = vld [vmem:[#allocation2 + $0x380] ss:$8 sps:$4 sm:$0xff]  }
 0x2c1   : > { %v2214_v41 = vadd.f32 %v2213_v13, %v9193_v30  ;;  %2943 = vmatprep.mubr.bf16.mxu1 %v2607_v52  ;;  %v1913_v19 = vpack.c.bf16 %v1849_v37, %v1847_v35  ;;  %v2493_v26 = vmax.f32 %v2212_v61, 0.0  ;;  %3636 = vmatpush2.bf16.msra.mxu0 %v8315_v34 }
 0x2c2   : > { %v2215_v1 = vpop.f32.mrf.mxu0  ;;  %2944 = vmatmul.mubr.bf16.gmra.mxu1 %v2606_v12 }
 0x2c3   : > { %v2216_v2 = vadd.f32 %v2215_v1, %v9187_v62  ;;  %2457 = vmatprep.mubr.bf16.mxu0 %v1913_v19  ;;  %v2494_v56 = vmax.f32 %v2214_v41, 0.0 }
 0x2c4   : > { %v2219_v44 = vpop.f32.mrf.mxu0  ;;  %2458 = vmatmul.mubr.bf16.gmra.mxu0 %v1912_v11 }
 0x2c5   : > { %v2495_v46 = vmax.f32 %v2216_v2, 0.0  ;;  %v2608_v55 = vpack.c.bf16 %v2494_v56, %v2492_v25  ;;  %v2220_v9 = vadd.f32 %v2219_v44, %v9193_v30 }
 0x2c6   : > { %v2221_v32 = vpop.f32.mrf.mxu0 }
 0x2c7   : > { %v2609_v50 = vpack.c.bf16 %v2495_v46, %v2493_v26  ;;  %v2222_v59 = vadd.f32 %v2221_v32, %v9187_v62  ;;  %v2496_v12 = vmax.f32 %v2220_v9, 0.0 }
 0x2c8   : > { %v2223_v4 = vpop.f32.mrf.mxu0 }
 0x2c9   : > { %v2224_v36 = vadd.f32 %v2223_v4, %v9193_v30  ;;  %2953 = vmatprep.mubr.bf16.mxu1 %v2609_v50  ;;  %v2497_v37 = vmax.f32 %v2222_v59, 0.0  ;;  %v8320_v4 = vld [vmem:[#allocation2 + $0x454] ss:$8 sps:$4 sm:$0xff]  }
 0x2ca   : > { %v2225_v45 = vpop.f32.mrf.mxu0  ;;  %2954 = vmatmul.mubr.bf16.gmra.mxu1 %v2608_v55  ;;  %4357 = vmatprep.subr.bf16.mxu1 %v8320_v4 }
 0x2cb   : > { %v2226_v35 = vadd.f32 %v2225_v45, %v9187_v62  ;;  %v2498_v52 = vmax.f32 %v2224_v36, 0.0  ;;  %v8323_v45 = vld [vmem:[#allocation2 + $0x384] ss:$8 sps:$4 sm:$0xff]   ;;  %4358 = vmatpush1.bf16.msra.mxu1 %v8318_v27 }
 0x2cc   : > { %v2229_v0 = vpop.f32.mrf.mxu0  ;;  %3637 = vmatprep.subr.bf16.mxu0 %v8323_v45 }
 0x2cd   : > { %v2499_v40 = vmax.f32 %v2226_v35, 0.0  ;;  %v2610_v19 = vpack.c.bf16 %v2498_v52, %v2496_v12  ;;  %v2230_v2 = vadd.f32 %v2229_v0, %v9193_v30  ;;  %3638 = vmatpush2.bf16.msra.mxu0 %v8321_v28 }
 0x2ce   : > { %v2231_v13 = vpop.f32.mrf.mxu0 }
 0x2cf   : > { %v2611_v61 = vpack.c.bf16 %v2499_v40, %v2497_v37  ;;  %v2232_v1 = vadd.f32 %v2231_v13, %v9187_v62  ;;  %v2500_v50 = vmax.f32 %v2230_v2, 0.0 }
 0x2d0   : > { %v2233_v41 = vpop.f32.mrf.mxu0 }
 0x2d1   : > { %v2234_v11 = vadd.f32 %v2233_v41, %v9193_v30  ;;  %2963 = vmatprep.mubr.bf16.mxu1 %v2611_v61  ;;  %v2501_v56 = vmax.f32 %v2232_v1, 0.0 }
 0x2d2   : > { %v2235_v53 = vpop.f32.mrf.mxu0  ;;  %2964 = vmatmul.mubr.bf16.gmra.mxu1 %v2610_v19 }
 0x2d3   : > { %v2236_v44 = vadd.f32 %v2235_v53, %v9187_v62  ;;  %v2502_v46 = vmax.f32 %v2234_v11, 0.0 }
 0x2d4   : > { %v2239_v26 = vpop.f32.mrf.mxu0 }
 0x2d5   : > { %v2503_v32 = vmax.f32 %v2236_v44, 0.0  ;;  %v2612_v59 = vpack.c.bf16 %v2502_v46, %v2500_v50  ;;  %v2240_v35 = vadd.f32 %v2239_v26, %v9193_v30 }
 0x2d6   : > { %v2241_v25 = vpop.f32.mrf.mxu0 }
 0x2d7   : > { %v2613_v18 = vpack.c.bf16 %v2503_v32, %v2501_v56  ;;  %v2242_v36 = vadd.f32 %v2241_v25, %v9187_v62  ;;  %v2504_v61 = vmax.f32 %v2240_v35, 0.0 }
 0x2d8   : > { %v2243_v55 = vpop.f32.mrf.mxu0 }
 0x2d9   : > { %v2244_v34 = vadd.f32 %v2243_v55, %v9193_v30  ;;  %2973 = vmatprep.mubr.bf16.mxu1 %v2613_v18  ;;  %v2505_v52 = vmax.f32 %v2242_v36, 0.0  ;;  %v8324_v55 = vld [vmem:[#allocation2 + $0x440] ss:$8 sps:$4 sm:$0xff]  }
 0x2da   : > { %v2245_v9 = vpop.f32.mrf.mxu0  ;;  %2974 = vmatmul.mubr.bf16.gmra.mxu1 %v2612_v59  ;;  %v8326_v59 = vld [vmem:[#allocation2 + $0x444] ss:$8 sps:$4 sm:$0xff]  }
 0x2db   : > { %v2246_v0 = vadd.f32 %v2245_v9, %v9187_v62  ;;  %v2506_v40 = vmax.f32 %v2244_v34, 0.0  ;;  %4359 = vmatprep.subr.bf16.mxu1 %v8326_v59 }
 0x2dc   : > { %v2249_v37 = vpop.f32.mrf.mxu0  ;;  %4360 = vmatpush1.bf16.msra.mxu1 %v8324_v55  ;;  %v8329_v55 = vld [vmem:[#allocation2 + $0x434] ss:$8 sps:$4 sm:$0xff]  }
 0x2dd   : > { %v2507_v13 = vmax.f32 %v2246_v0, 0.0  ;;  %v2614_v1 = vpack.c.bf16 %v2506_v40, %v2504_v61  ;;  %v2250_v44 = vadd.f32 %v2249_v37, %v9193_v30  ;;  %4361 = vmatprep.subr.bf16.mxu1 %v8329_v55 }
 0x2de   : > { %v2251_v12 = vpop.f32.mrf.mxu0 }
 0x2df   : > { %v2615_v41 = vpack.c.bf16 %v2507_v13, %v2505_v52  ;;  %v2252_v11 = vadd.f32 %v2251_v12, %v9187_v62  ;;  %v2508_v18 = vmax.f32 %v2250_v44, 0.0 }
 0x2e0   : > { %v2253_v19 = vpop.f32.mrf.mxu0 }
 0x2e1   : > { %v2254_v53 = vadd.f32 %v2253_v19, %v9193_v30  ;;  %2983 = vmatprep.mubr.bf16.mxu1 %v2615_v41  ;;  %v2509_v46 = vmax.f32 %v2252_v11, 0.0 }
 0x2e2   : > { %v2255_v2 = vpop.f32.mrf.mxu0  ;;  %2984 = vmatmul.mubr.bf16.gmra.mxu1 %v2614_v1 }
 0x2e3   : > { %v2256_v26 = vadd.f32 %v2255_v2, %v9187_v62  ;;  %v2510_v32 = vmax.f32 %v2254_v53, 0.0 }
 0x2e4   : > { %v2259_v56 = vpop.f32.mrf.mxu0 }
 0x2e5   : > { %v2511_v25 = vmax.f32 %v2256_v26, 0.0  ;;  %v2616_v36 = vpack.c.bf16 %v2510_v32, %v2508_v18  ;;  %v2260_v9 = vadd.f32 %v2259_v56, %v9193_v30 }
 0x2e6   : > { %v2261_v50 = vpop.f32.mrf.mxu0 }
 0x2e7   : > { %v2617_v27 = vpack.c.bf16 %v2511_v25, %v2509_v46  ;;  %v2262_v34 = vadd.f32 %v2261_v50, %v9187_v62  ;;  %v2512_v12 = vmax.f32 %v2260_v9, 0.0 }
 0x2e8   : > { %v2263_v4 = vpop.f32.mrf.mxu0 }
 0x2e9   : > { %v2264_v28 = vadd.f32 %v2263_v4, %v9193_v30  ;;  %2993 = vmatprep.mubr.bf16.mxu1 %v2617_v27  ;;  %v2513_v37 = vmax.f32 %v2262_v34, 0.0  ;;  %v8327_v4 = vld [vmem:[#allocation2 + $0x430] ss:$8 sps:$4 sm:$0xff]  }
 0x2ea   : > { %v2265_v45 = vpop.f32.mrf.mxu0  ;;  %2994 = vmatmul.mubr.bf16.gmra.mxu1 %v2616_v36 }
 0x2eb   : > { %v2266_v35 = vadd.f32 %v2265_v45, %v9187_v62  ;;  %v2514_v52 = vmax.f32 %v2264_v28, 0.0  ;;  %4362 = vmatpush1.bf16.msra.mxu1 %v8327_v4  ;;  %v8332_v4 = vld [vmem:[#allocation2 + $0x424] ss:$8 sps:$4 sm:$0xff]  }
 0x2ec   : > { %v2269_v0 = vpop.f32.mrf.mxu0  ;;  %4363 = vmatprep.subr.bf16.mxu1 %v8332_v4 }
 0x2ed   : > { %v2515_v40 = vmax.f32 %v2266_v35, 0.0  ;;  %v2618_v19 = vpack.c.bf16 %v2514_v52, %v2512_v12  ;;  %v2270_v2 = vadd.f32 %v2269_v0, %v9193_v30 }
 0x2ee   : > { %v2271_v13 = vpop.f32.mrf.mxu0 }
 0x2ef   : > { %v2619_v61 = vpack.c.bf16 %v2515_v40, %v2513_v37  ;;  %v2272_v1 = vadd.f32 %v2271_v13, %v9187_v62  ;;  %v2516_v50 = vmax.f32 %v2270_v2, 0.0 }
 0x2f0   : > { %v2273_v41 = vpop.f32.mrf.mxu0 }
 0x2f1   : > { %v2274_v11 = vadd.f32 %v2273_v41, %v9193_v30  ;;  %3003 = vmatprep.mubr.bf16.mxu1 %v2619_v61  ;;  %v2517_v56 = vmax.f32 %v2272_v1, 0.0 }
 0x2f2   : > { %v2275_v53 = vpop.f32.mrf.mxu0  ;;  %3004 = vmatmul.mubr.bf16.gmra.mxu1 %v2618_v19 }
 0x2f3   : > { %v2276_v44 = vadd.f32 %v2275_v53, %v9187_v62  ;;  %v2518_v46 = vmax.f32 %v2274_v11, 0.0 }
 0x2f4   : > { %v2279_v26 = vpop.f32.mrf.mxu0 }
 0x2f5   : > { %v2519_v32 = vmax.f32 %v2276_v44, 0.0  ;;  %v2620_v59 = vpack.c.bf16 %v2518_v46, %v2516_v50  ;;  %v2280_v45 = vadd.f32 %v2279_v26, %v9193_v30 }
 0x2f6   : > { %v2281_v25 = vpop.f32.mrf.mxu0 }
 0x2f7   : > { %v2621_v18 = vpack.c.bf16 %v2519_v32, %v2517_v56  ;;  %v2282_v36 = vadd.f32 %v2281_v25, %v9187_v62  ;;  %v2520_v13 = vmax.f32 %v2280_v45, 0.0 }
 0x2f8   : > { %v2283_v27 = vpop.f32.mrf.mxu0 }
 0x2f9   : > { %v2284_v34 = vadd.f32 %v2283_v27, %v9193_v30  ;;  %3013 = vmatprep.mubr.bf16.mxu1 %v2621_v18  ;;  %v2521_v0 = vmax.f32 %v2282_v36, 0.0  ;;  %v8330_v27 = vld [vmem:[#allocation2 + $0x420] ss:$8 sps:$4 sm:$0xff]  }
 0x2fa   : > { %v2285_v28 = vpop.f32.mrf.mxu0  ;;  %3014 = vmatmul.mubr.bf16.gmra.mxu1 %v2620_v59 }
 0x2fb   : > { %v2286_v9 = vadd.f32 %v2285_v28, %v9187_v62  ;;  %v2522_v37 = vmax.f32 %v2284_v34, 0.0  ;;  %4364 = vmatpush1.bf16.msra.mxu1 %v8330_v27  ;;  %v8335_v27 = vld [vmem:[#allocation2 + $0x414] ss:$8 sps:$4 sm:$0xff]  }
 0x2fc   : > { %v2289_v35 = vpop.f32.mrf.mxu0  ;;  %4365 = vmatprep.subr.bf16.mxu1 %v8335_v27 }
 0x2fd   : > { %v2523_v52 = vmax.f32 %v2286_v9, 0.0  ;;  %v2622_v41 = vpack.c.bf16 %v2522_v37, %v2520_v13  ;;  %v2290_v53 = vadd.f32 %v2289_v35, %v9193_v30 }
 0x2fe   : > { %v2291_v40 = vpop.f32.mrf.mxu0 }
 0x2ff   : > { %v2623_v12 = vpack.c.bf16 %v2523_v52, %v2521_v0  ;;  %v2292_v19 = vadd.f32 %v2291_v40, %v9187_v62  ;;  %v2524_v25 = vmax.f32 %v2290_v53, 0.0 }
 0x300   : > { %v2293_v61 = vpop.f32.mrf.mxu0 }
 0x301   : > { %v2294_v1 = vadd.f32 %v2293_v61, %v9193_v30  ;;  %3023 = vmatprep.mubr.bf16.mxu1 %v2623_v12  ;;  %v2525_v26 = vmax.f32 %v2292_v19, 0.0 }
 0x302   : > { %v2295_v11 = vpop.f32.mrf.mxu0  ;;  %3024 = vmatmul.mubr.bf16.gmra.mxu1 %v2622_v41 }
 0x303   : > { %v2296_v2 = vadd.f32 %v2295_v11, %v9187_v62  ;;  %v2526_v56 = vmax.f32 %v2294_v1, 0.0 }
 0x304   : > { %v2299_v44 = vpop.f32.mrf.mxu0 }
 0x305   : > { %v2527_v46 = vmax.f32 %v2296_v2, 0.0  ;;  %v2624_v55 = vpack.c.bf16 %v2526_v56, %v2524_v25  ;;  %v2300_v28 = vadd.f32 %v2299_v44, %v9193_v30 }
 0x306   : > { %v2301_v32 = vpop.f32.mrf.mxu0 }
 0x307   : > { %v2625_v50 = vpack.c.bf16 %v2527_v46, %v2525_v26  ;;  %v2302_v59 = vadd.f32 %v2301_v32, %v9187_v62  ;;  %v2528_v40 = vmax.f32 %v2300_v28, 0.0 }
 0x308   : > { %v2303_v18 = vpop.f32.mrf.mxu0 }
 0x309   : > { %v2304_v36 = vadd.f32 %v2303_v18, %v9193_v30  ;;  %3033 = vmatprep.mubr.bf16.mxu1 %v2625_v50  ;;  %v2529_v35 = vmax.f32 %v2302_v59, 0.0  ;;  %v8333_v18 = vld [vmem:[#allocation2 + $0x410] ss:$8 sps:$4 sm:$0xff]  }
 0x30a   : > { %v2305_v34 = vpop.f32.mrf.mxu0  ;;  %3034 = vmatmul.mubr.bf16.gmra.mxu1 %v2624_v55 }
 0x30b   : > { %v2306_v45 = vadd.f32 %v2305_v34, %v9187_v62  ;;  %v2530_v0 = vmax.f32 %v2304_v36, 0.0  ;;  %4366 = vmatpush1.bf16.msra.mxu1 %v8333_v18  ;;  %v8338_v18 = vld [vmem:[#allocation2 + $0x404] ss:$8 sps:$4 sm:$0xff]  }
 0x30c   : > { %v2309_v9 = vpop.f32.mrf.mxu0  ;;  %4367 = vmatprep.subr.bf16.mxu1 %v8338_v18 }
 0x30d   : > { %v2531_v37 = vmax.f32 %v2306_v45, 0.0  ;;  %v2626_v61 = vpack.c.bf16 %v2530_v0, %v2528_v40  ;;  %v2310_v11 = vadd.f32 %v2309_v9, %v9193_v30 }
 0x30e   : > { %v2311_v52 = vpop.f32.mrf.mxu0 }
 0x30f   : > { %v2627_v13 = vpack.c.bf16 %v2531_v37, %v2529_v35  ;;  %v2312_v41 = vadd.f32 %v2311_v52, %v9187_v62  ;;  %v2532_v32 = vmax.f32 %v2310_v11, 0.0 }
 0x310   : > { %v2313_v12 = vpop.f32.mrf.mxu0 }
 0x311   : > { %v2314_v19 = vadd.f32 %v2313_v12, %v9193_v30  ;;  %3043 = vmatprep.mubr.bf16.mxu1 %v2627_v13  ;;  %v2533_v44 = vmax.f32 %v2312_v41, 0.0 }
 0x312   : > { %v2315_v1 = vpop.f32.mrf.mxu0  ;;  %3044 = vmatmul.mubr.bf16.gmra.mxu1 %v2626_v61 }
 0x313   : > { %v2316_v53 = vadd.f32 %v2315_v1, %v9187_v62  ;;  %v2534_v26 = vmax.f32 %v2314_v19, 0.0 }
 0x314   : > { %v2319_v2 = vpop.f32.mrf.mxu0 }
 0x315   : > { %v2535_v56 = vmax.f32 %v2316_v53, 0.0  ;;  %v2628_v4 = vpack.c.bf16 %v2534_v26, %v2532_v32  ;;  %v2320_v34 = vadd.f32 %v2319_v2, %v9193_v30 }
 0x316   : > { %v2321_v46 = vpop.f32.mrf.mxu0 }
 0x317   : > { %v2629_v25 = vpack.c.bf16 %v2535_v56, %v2533_v44  ;;  %v2322_v55 = vadd.f32 %v2321_v46, %v9187_v62  ;;  %v2536_v52 = vmax.f32 %v2320_v34, 0.0 }
 0x318   : > { %v2323_v50 = vpop.f32.mrf.mxu0 }
 0x319   : > { %v2324_v59 = vadd.f32 %v2323_v50, %v9193_v30  ;;  %3053 = vmatprep.mubr.bf16.mxu1 %v2629_v25  ;;  %v2537_v9 = vmax.f32 %v2322_v55, 0.0  ;;  %v8336_v50 = vld [vmem:[#allocation2 + $0x400] ss:$8 sps:$4 sm:$0xff]  }
 0x31a   : > { %v2325_v36 = vpop.f32.mrf.mxu0  ;;  %3054 = vmatmul.mubr.bf16.gmra.mxu1 %v2628_v4 }
 0x31b   : > { %v2326_v28 = vadd.f32 %v2325_v36, %v9187_v62  ;;  %v2538_v35 = vmax.f32 %v2324_v59, 0.0  ;;  %4368 = vmatpush1.bf16.msra.mxu1 %v8336_v50  ;;  %v8341_v50 = vld [vmem:[#allocation2 + $0x4f4] ss:$8 sps:$4 sm:$0xff]  }
 0x31c   : > { %v2329_v45 = vpop.f32.mrf.mxu0  ;;  %4369 = vmatprep.subr.bf16.mxu1 %v8341_v50 }
 0x31d   : > { %v2539_v0 = vmax.f32 %v2326_v28, 0.0  ;;  %v2630_v12 = vpack.c.bf16 %v2538_v35, %v2536_v52  ;;  %v2330_v1 = vadd.f32 %v2329_v45, %v9193_v30 }
 0x31e   : > { %v2331_v37 = vpop.f32.mrf.mxu0 }
 0x31f   : > { %v2631_v40 = vpack.c.bf16 %v2539_v0, %v2537_v9  ;;  %v2332_v61 = vadd.f32 %v2331_v37, %v9187_v62  ;;  %v2540_v46 = vmax.f32 %v2330_v1, 0.0 }
 0x320   : > { %v2333_v13 = vpop.f32.mrf.mxu0 }
 0x321   : > { %v2334_v41 = vadd.f32 %v2333_v13, %v9193_v30  ;;  %3063 = vmatprep.mubr.bf16.mxu1 %v2631_v40  ;;  %v2541_v2 = vmax.f32 %v2332_v61, 0.0 }
 0x322   : > { %v2335_v19 = vpop.f32.mrf.mxu0  ;;  %3064 = vmatmul.mubr.bf16.gmra.mxu1 %v2630_v12 }
 0x323   : > { %v2336_v11 = vadd.f32 %v2335_v19, %v9187_v62  ;;  %v2542_v44 = vmax.f32 %v2334_v41, 0.0 }
 0x324   : > { %v2339_v53 = vpop.f32.mrf.mxu0 }
 0x325   : > { %v2543_v26 = vmax.f32 %v2336_v11, 0.0  ;;  %v2632_v27 = vpack.c.bf16 %v2542_v44, %v2540_v46  ;;  %v2340_v36 = vadd.f32 %v2339_v53, %v9193_v30 }
 0x326   : > { %v2341_v56 = vpop.f32.mrf.mxu0 }
 0x327   : > { %v2633_v32 = vpack.c.bf16 %v2543_v26, %v2541_v2  ;;  %v2342_v4 = vadd.f32 %v2341_v56, %v9187_v62  ;;  %v2544_v37 = vmax.f32 %v2340_v36, 0.0 }
 0x328   : > { %v2343_v25 = vpop.f32.mrf.mxu0 }
 0x329   : > { %v2344_v55 = vadd.f32 %v2343_v25, %v9193_v30  ;;  %3073 = vmatprep.mubr.bf16.mxu1 %v2633_v32  ;;  %v2545_v45 = vmax.f32 %v2342_v4, 0.0  ;;  %v8339_v25 = vld [vmem:[#allocation2 + $0x4f0] ss:$8 sps:$4 sm:$0xff]  }
 0x32a   : > { %v2345_v59 = vpop.f32.mrf.mxu0  ;;  %3074 = vmatmul.mubr.bf16.gmra.mxu1 %v2632_v27 }
 0x32b   : > { %v2346_v34 = vadd.f32 %v2345_v59, %v9187_v62  ;;  %v2546_v9 = vmax.f32 %v2344_v55, 0.0  ;;  %4370 = vmatpush2.bf16.msra.mxu1 %v8339_v25  ;;  %v8344_v25 = vld [vmem:[#allocation2 + $0x4e4] ss:$8 sps:$4 sm:$0xff]  }
 0x32c   : > { %v2349_v28 = vpop.f32.mrf.mxu0  ;;  %4371 = vmatprep.subr.bf16.mxu1 %v8344_v25 }
 0x32d   : > { %v2547_v35 = vmax.f32 %v2346_v34, 0.0  ;;  %v2634_v13 = vpack.c.bf16 %v2546_v9, %v2544_v37  ;;  %v2350_v19 = vadd.f32 %v2349_v28, %v9193_v30 }
 0x32e   : > { %v2351_v0 = vpop.f32.mrf.mxu0 }
 0x32f   : > { %v2635_v52 = vpack.c.bf16 %v2547_v35, %v2545_v45  ;;  %v2352_v12 = vadd.f32 %v2351_v0, %v9187_v62  ;;  %v2548_v56 = vmax.f32 %v2350_v19, 0.0 }
 0x330   : > { %v2353_v40 = vpop.f32.mrf.mxu0 }
 0x331   : > { %v2354_v61 = vadd.f32 %v2353_v40, %v9193_v30  ;;  %3083 = vmatprep.mubr.bf16.mxu1 %v2635_v52  ;;  %v2549_v53 = vmax.f32 %v2352_v12, 0.0 }
 0x332   : > { %v2355_v41 = vpop.f32.mrf.mxu0  ;;  %3084 = vmatmul.mubr.bf16.gmra.mxu1 %v2634_v13 }
 0x333   : > { %v2356_v1 = vadd.f32 %v2355_v41, %v9187_v62  ;;  %v2550_v2 = vmax.f32 %v2354_v61, 0.0 }
 0x334   : > { %v2359_v11 = vpop.f32.mrf.mxu0 }
 0x335   : > { %v2551_v44 = vmax.f32 %v2356_v1, 0.0  ;;  %v2636_v18 = vpack.c.bf16 %v2550_v2, %v2548_v56  ;;  %v2360_v59 = vadd.f32 %v2359_v11, %v9193_v30 }
 0x336   : > { %v2361_v26 = vpop.f32.mrf.mxu0 }
 0x337   : > { %v2637_v46 = vpack.c.bf16 %v2551_v44, %v2549_v53  ;;  %v2362_v27 = vadd.f32 %v2361_v26, %v9187_v62  ;;  %v2552_v0 = vmax.f32 %v2360_v59, 0.0 }
 0x338   : > { %v2363_v32 = vpop.f32.mrf.mxu0 }
 0x339   : > { %v2364_v4 = vadd.f32 %v2363_v32, %v9193_v30  ;;  %3093 = vmatprep.mubr.bf16.mxu1 %v2637_v46  ;;  %v2553_v28 = vmax.f32 %v2362_v27, 0.0  ;;  %v8342_v32 = vld [vmem:[#allocation2 + $0x4e0] ss:$8 sps:$4 sm:$0xff]  }
 0x33a   : > { %v2365_v55 = vpop.f32.mrf.mxu0  ;;  %3094 = vmatmul.mubr.bf16.gmra.mxu1 %v2636_v18 }
 0x33b   : > { %v2366_v36 = vadd.f32 %v2365_v55, %v9187_v62  ;;  %v2554_v45 = vmax.f32 %v2364_v4, 0.0  ;;  %4372 = vmatpush2.bf16.msra.mxu1 %v8342_v32  ;;  %v8347_v32 = vld [vmem:[#allocation2 + $0x4d4] ss:$8 sps:$4 sm:$0xff]  }
 0x33c   : > { %v2369_v34 = vpop.f32.mrf.mxu0  ;;  %4373 = vmatprep.subr.bf16.mxu1 %v8347_v32 }
 0x33d   : > { %v2555_v9 = vmax.f32 %v2366_v36, 0.0  ;;  %v2638_v40 = vpack.c.bf16 %v2554_v45, %v2552_v0  ;;  %v2370_v41 = vadd.f32 %v2369_v34, %v9193_v30 }
 0x33e   : > { %v2371_v35 = vpop.f32.mrf.mxu0 }
 0x33f   : > { %v2639_v37 = vpack.c.bf16 %v2555_v9, %v2553_v28  ;;  %v2372_v13 = vadd.f32 %v2371_v35, %v9187_v62  ;;  %v2556_v26 = vmax.f32 %v2370_v41, 0.0 }
 0x340   : > { %v2373_v52 = vpop.f32.mrf.mxu0 }
 0x341   : > { %v2374_v12 = vadd.f32 %v2373_v52, %v9193_v30  ;;  %3103 = vmatprep.mubr.bf16.mxu1 %v2639_v37  ;;  %v2557_v11 = vmax.f32 %v2372_v13, 0.0 }
 0x342   : > { %v2375_v61 = vpop.f32.mrf.mxu0  ;;  %3104 = vmatmul.mubr.bf16.gmra.mxu1 %v2638_v40 }
 0x343   : > { %v2376_v19 = vadd.f32 %v2375_v61, %v9187_v62  ;;  %v2558_v53 = vmax.f32 %v2374_v12, 0.0 }
 0x344   : > { %v2379_v1 = vpop.f32.mrf.mxu0 }
 0x345   : > { %v2559_v2 = vmax.f32 %v2376_v19, 0.0  ;;  %v2640_v50 = vpack.c.bf16 %v2558_v53, %v2556_v26  ;;  %v2380_v55 = vadd.f32 %v2379_v1, %v9193_v30 }
 0x346   : > { %v2381_v44 = vpop.f32.mrf.mxu0 }
 0x347   : > { %v2641_v56 = vpack.c.bf16 %v2559_v2, %v2557_v11  ;;  %v2382_v18 = vadd.f32 %v2381_v44, %v9187_v62  ;;  %v2560_v35 = vmax.f32 %v2380_v55, 0.0 }
 0x348   : > { %v2383_v46 = vpop.f32.mrf.mxu0 }
 0x349   : > { %v2384_v27 = vadd.f32 %v2383_v46, %v9193_v30  ;;  %3113 = vmatprep.mubr.bf16.mxu1 %v2641_v56  ;;  %v2561_v34 = vmax.f32 %v2382_v18, 0.0  ;;  %v8345_v46 = vld [vmem:[#allocation2 + $0x4d0] ss:$8 sps:$4 sm:$0xff]  }
 0x34a   : > { %v2385_v4 = vpop.f32.mrf.mxu0  ;;  %3114 = vmatmul.mubr.bf16.gmra.mxu1 %v2640_v50 }
 0x34b   : > { %v2386_v59 = vadd.f32 %v2385_v4, %v9187_v62  ;;  %v2562_v28 = vmax.f32 %v2384_v27, 0.0  ;;  %v2695_v4 = vsub.s32 2, %v8869_v21  ;;  %4374 = vmatpush2.bf16.msra.mxu1 %v8345_v46 }
 0x34c   : > { %v2389_v36 = vpop.f32.mrf.mxu0 }
 0x34d   : > { %v2563_v45 = vmax.f32 %v2386_v59, 0.0  ;;  %v2642_v52 = vpack.c.bf16 %v2562_v28, %v2560_v35  ;;  %v2390_v61 = vadd.f32 %v2389_v36, %v9193_v30  ;;  %v8453_v35 = vld [vmem:[%s11071_s4 + $0x8] sm:$0x3f] }
 0x34e   : > { %v2391_v9 = vpop.f32.mrf.mxu0 }
 0x34f   : > { %v2643_v0 = vpack.c.bf16 %v2563_v45, %v2561_v34  ;;  %v2392_v40 = vadd.f32 %v2391_v9, %v9187_v62  ;;  %v2564_v44 = vmax.f32 %v2390_v61, 0.0 }
 0x350   : > { %v2393_v37 = vpop.f32.mrf.mxu0 }
 0x351   : > { %v2394_v13 = vadd.f32 %v2393_v37, %v9193_v30  ;;  %3123 = vmatprep.mubr.bf16.mxu1 %v2643_v0  ;;  %v2565_v1 = vmax.f32 %v2392_v40, 0.0  ;;  %v9327_v0 = vrot.slane %v8453_v35, %v2695_v4 }
 0x352   : > { %v2395_v12 = vpop.f32.mrf.mxu0  ;;  %3124 = vmatmul.mubr.bf16.gmra.mxu1 %v2642_v52  ;;  %v8454_v52 = vld [vmem:[%s11071_s4] sm:$0x3f] }
 0x353   : > { %v2396_v41 = vadd.f32 %v2395_v12, %v9187_v62  ;;  %v2566_v11 = vmax.f32 %v2394_v13, 0.0  ;;  %v9332_v40 = vrot.slane %v8454_v52, %v2695_v4 }
 0x354   : > { %v2399_v19 = vpop.f32.mrf.mxu0 }
 0x355   : > { %v2567_v53 = vmax.f32 %v2396_v41, 0.0  ;;  %v2644_v25 = vpack.c.bf16 %v2566_v11, %v2564_v44  ;;  %v2400_v55 = vadd.f32 %v2399_v19, %v9193_v30 }
 0x356   : > { %v2401_v2 = vpop.f32.mrf.mxu0 }
 0x357   : > { %v2645_v26 = vpack.c.bf16 %v2567_v53, %v2565_v1  ;;  %v2402_v50 = vadd.f32 %v2401_v2, %v9187_v62  ;;  %v2568_v13 = vmax.f32 %v2400_v55, 0.0 }
 0x358   : > { %v2403_v56 = vpop.f32.mrf.mxu0 }
 0x359   : > { %v2404_v18 = vadd.f32 %v2403_v56, %v9193_v30  ;;  %3133 = vmatprep.mubr.bf16.mxu1 %v2645_v26  ;;  %v2569_v34 = vmax.f32 %v2402_v50, 0.0 }
 0x35a   : > { %v2405_v27 = vpop.f32.mrf.mxu0  ;;  %v2895_v36 = vpop.f32.mrf.mxu1  ;;  %3134 = vmatmul.mubr.bf16.gmra.mxu1 %v2644_v25 }
 0x35b   : > { %v2406_v59 = vadd.f32 %v2405_v27, %v9187_v62  ;;  %v2570_v28 = vmax.f32 %v2404_v18, 0.0  ;;  %v2896_v44 = vadd.f32 %v2895_v36, %v9332_v40 }
 0x35c   : > { %v2409_v9 = vpop.f32.mrf.mxu0  ;;  %v2897_v37 = vpop.f32.mrf.mxu1 }
 0x35d   : > { %v2571_v45 = vmax.f32 %v2406_v59, 0.0  ;;  %v2646_v1 = vpack.c.bf16 %v2570_v28, %v2568_v13  ;;  %v2898_v11 = vadd.f32 %v2897_v37, %v9327_v0  ;;  %v2410_v50 = vadd.f32 %v2409_v9, %v9193_v30  ;;  %v8350_v9 = vld [vmem:[#allocation2 + $0x4c4] ss:$8 sps:$4 sm:$0xff]  }
 0x35e   : > { %v2411_v12 = vpop.f32.mrf.mxu0  ;;  %v2899_v61 = vpop.f32.mrf.mxu1  ;;  %v3214_v28 = vmax.f32 %v2896_v44, 0.0  ;;  %4375 = vmatprep.subr.bf16.mxu1 %v8350_v9 }
 0x35f   : > { %v2647_v41 = vpack.c.bf16 %v2571_v45, %v2569_v34  ;;  %v2900_v19 = vadd.f32 %v2899_v61, %v9332_v40  ;;  %v2412_v46 = vadd.f32 %v2411_v12, %v9187_v62  ;;  %v3215_v55 = vmax.f32 %v2898_v11, 0.0 }
 0x360   : > { %v2413_v53 = vpop.f32.mrf.mxu0  ;;  %v2901_v2 = vpop.f32.mrf.mxu1  ;;  %v2572_v12 = vmax.f32 %v2410_v50, 0.0 }
 0x361   : > { %3143 = vmatprep.mubr.bf16.mxu1 %v2647_v41  ;;  %v2414_v26 = vadd.f32 %v2413_v53, %v9193_v30  ;;  %v2902_v56 = vadd.f32 %v2901_v2, %v9327_v0  ;;  %v3216_v18 = vmax.f32 %v2900_v19, 0.0  ;;  %v2573_v35 = vmax.f32 %v2412_v46, 0.0 }
 0x362   : > { %v2415_v32 = vpop.f32.mrf.mxu0  ;;  %v2905_v25 = vpop.f32.mrf.mxu1  ;;  %3144 = vmatmul.mubr.bf16.gmra.mxu1 %v2646_v1  ;;  %v8348_v1 = vld [vmem:[#allocation2 + $0x4c0] ss:$8 sps:$4 sm:$0xff]  }
 0x363   : > { %v3217_v27 = vmax.f32 %v2902_v56, 0.0  ;;  %v2416_v4 = vadd.f32 %v2415_v32, %v9187_v62  ;;  %v2574_v36 = vmax.f32 %v2414_v26, 0.0  ;;  %v3342_v61 = vpack.c.bf16 %v3216_v18, %v3214_v28  ;;  %4376 = vmatpush2.bf16.msra.mxu1 %v8348_v1 }
 0x364   : > { %v2419_v59 = vpop.f32.mrf.mxu0  ;;  %v2907_v34 = vpop.f32.mrf.mxu1  ;;  %v2906_v19 = vadd.f32 %v2905_v25, %v9332_v40 }
 0x365   : > { %v2575_v45 = vmax.f32 %v2416_v4, 0.0  ;;  %v3343_v13 = vpack.c.bf16 %v3217_v27, %v3215_v55  ;;  %v2908_v53 = vadd.f32 %v2907_v34, %v9327_v0  ;;  %v2648_v26 = vpack.c.bf16 %v2574_v36, %v2572_v12 }
 0x366   : > { %v2421_v37 = vpop.f32.mrf.mxu0  ;;  %v2909_v52 = vpop.f32.mrf.mxu1  ;;  %v2420_v25 = vadd.f32 %v2419_v59, %v9193_v30 }
 0x367   : > { %v2910_v41 = vadd.f32 %v2909_v52, %v9332_v40  ;;  %3639 = vmatprep.mubr.bf16.mxu0 %v3343_v13  ;;  %v2649_v44 = vpack.c.bf16 %v2575_v45, %v2573_v35  ;;  %v2422_v32 = vadd.f32 %v2421_v37, %v9187_v62  ;;  %v3219_v34 = vmax.f32 %v2908_v53, 0.0 }
 0x368   : > { %v2423_v11 = vpop.f32.mrf.mxu0  ;;  %v2911_v2 = vpop.f32.mrf.mxu1  ;;  %3640 = vmatmul.mubr.bf16.vlgmr.msra.gmra.mxu0 %v3342_v61  ;;  %v3218_v45 = vmax.f32 %v2906_v19, 0.0  ;;  %v2576_v9 = vmax.f32 %v2420_v25, 0.0 }
 0x369   : > { %v2424_v56 = vadd.f32 %v2423_v11, %v9193_v30  ;;  %v2912_v46 = vadd.f32 %v2911_v2, %v9327_v0  ;;  %3153 = vmatprep.mubr.bf16.mxu1 %v2649_v44  ;;  %v3220_v27 = vmax.f32 %v2910_v41, 0.0  ;;  %v2577_v13 = vmax.f32 %v2422_v32, 0.0 }
 0x36a   : > { %v2425_v50 = vpop.f32.mrf.mxu0  ;;  %v2915_v18 = vpop.f32.mrf.mxu1  ;;  %3154 = vmatmul.mubr.bf16.gmra.mxu1 %v2648_v26 }
 0x36b   : > { %v3221_v4 = vmax.f32 %v2912_v46, 0.0  ;;  %v2426_v55 = vadd.f32 %v2425_v50, %v9187_v62  ;;  %v2578_v35 = vmax.f32 %v2424_v56, 0.0  ;;  %v3344_v11 = vpack.c.bf16 %v3220_v27, %v3218_v45 }
 0x36c   : > { %v2429_v28 = vpop.f32.mrf.mxu0  ;;  %v2917_v36 = vpop.f32.mrf.mxu1  ;;  %v2916_v26 = vadd.f32 %v2915_v18, %v9332_v40 }
 0x36d   : > { %v2579_v52 = vmax.f32 %v2426_v55, 0.0  ;;  %v3345_v61 = vpack.c.bf16 %v3221_v4, %v3219_v34  ;;  %v2918_v59 = vadd.f32 %v2917_v36, %v9327_v0  ;;  %v2650_v53 = vpack.c.bf16 %v2578_v35, %v2576_v9 }
 0x36e   : > { %v2431_v12 = vpop.f32.mrf.mxu0  ;;  %v2919_v37 = vpop.f32.mrf.mxu1  ;;  %v2430_v25 = vadd.f32 %v2429_v28, %v9193_v30  ;;  %v3222_v45 = vmax.f32 %v2916_v26, 0.0  ;;  %v8351_v28 = vld [vmem:[#allocation2 + $0x4b0] ss:$8 sps:$4 sm:$0xff]  }
 0x36f   : > { %v2920_v1 = vadd.f32 %v2919_v37, %v9332_v40  ;;  %3649 = vmatprep.mubr.bf16.mxu0 %v3345_v61  ;;  %v2651_v44 = vpack.c.bf16 %v2579_v52, %v2577_v13  ;;  %v2432_v46 = vadd.f32 %v2431_v12, %v9187_v62  ;;  %v3223_v34 = vmax.f32 %v2918_v59, 0.0 }
 0x370   : > { %v2433_v41 = vpop.f32.mrf.mxu0  ;;  %v2921_v2 = vpop.f32.mrf.mxu1  ;;  %3650 = vmatmul.mubr.bf16.gmra.mxu0 %v3344_v11  ;;  %v2580_v9 = vmax.f32 %v2430_v25, 0.0 }
 0x371   : > { %v2434_v19 = vadd.f32 %v2433_v41, %v9193_v30  ;;  %v2922_v56 = vadd.f32 %v2921_v2, %v9327_v0  ;;  %3163 = vmatprep.mubr.bf16.mxu1 %v2651_v44  ;;  %v3224_v27 = vmax.f32 %v2920_v1, 0.0  ;;  %v2581_v13 = vmax.f32 %v2432_v46, 0.0  ;;  %v8353_v1 = vld [vmem:[#allocation2 + $0x4b4] ss:$8 sps:$4 sm:$0xff]  }
 0x372   : > { %v2435_v32 = vpop.f32.mrf.mxu0  ;;  %v2925_v50 = vpop.f32.mrf.mxu1  ;;  %3164 = vmatmul.mubr.bf16.gmra.mxu1 %v2650_v53  ;;  %4377 = vmatprep.subr.bf16.mxu1 %v8353_v1 }
 0x373   : > { %v3225_v4 = vmax.f32 %v2922_v56, 0.0  ;;  %v2436_v55 = vadd.f32 %v2435_v32, %v9187_v62  ;;  %v2582_v35 = vmax.f32 %v2434_v19, 0.0  ;;  %v3346_v11 = vpack.c.bf16 %v3224_v27, %v3222_v45  ;;  %4378 = vmatpush2.bf16.msra.mxu1 %v8351_v28 }
 0x374   : > { %v2439_v36 = vpop.f32.mrf.mxu0  ;;  %v2927_v18 = vpop.f32.mrf.mxu1  ;;  %v2926_v2 = vadd.f32 %v2925_v50, %v9332_v40 }
 0x375   : > { %v2583_v52 = vmax.f32 %v2436_v55, 0.0  ;;  %v3347_v12 = vpack.c.bf16 %v3225_v4, %v3223_v34  ;;  %v2928_v44 = vadd.f32 %v2927_v18, %v9327_v0  ;;  %v2652_v19 = vpack.c.bf16 %v2582_v35, %v2580_v9 }
 0x376   : > { %v2441_v37 = vpop.f32.mrf.mxu0  ;;  %v2929_v61 = vpop.f32.mrf.mxu1  ;;  %v2440_v50 = vadd.f32 %v2439_v36, %v9193_v30 }
 0x377   : > { %v2930_v41 = vadd.f32 %v2929_v61, %v9332_v40  ;;  %3659 = vmatprep.mubr.bf16.mxu0 %v3347_v12  ;;  %v2653_v26 = vpack.c.bf16 %v2583_v52, %v2581_v13  ;;  %v2442_v32 = vadd.f32 %v2441_v37, %v9187_v62  ;;  %v3227_v18 = vmax.f32 %v2928_v44, 0.0 }
 0x378   : > { %v2443_v59 = vpop.f32.mrf.mxu0  ;;  %v2931_v53 = vpop.f32.mrf.mxu1  ;;  %3660 = vmatmul.mubr.bf16.gmra.mxu0 %v3346_v11  ;;  %v3226_v52 = vmax.f32 %v2926_v2, 0.0  ;;  %v2584_v1 = vmax.f32 %v2440_v50, 0.0 }
 0x379   : > { %v2444_v56 = vadd.f32 %v2443_v59, %v9193_v30  ;;  %v2932_v46 = vadd.f32 %v2931_v53, %v9327_v0  ;;  %3173 = vmatprep.mubr.bf16.mxu1 %v2653_v26  ;;  %v3228_v4 = vmax.f32 %v2930_v41, 0.0  ;;  %v2585_v12 = vmax.f32 %v2442_v32, 0.0 }
 0x37a   : > { %v2445_v25 = vpop.f32.mrf.mxu0  ;;  %v2935_v27 = vpop.f32.mrf.mxu1  ;;  %3174 = vmatmul.mubr.bf16.gmra.mxu1 %v2652_v19 }
 0x37b   : > { %v3229_v55 = vmax.f32 %v2932_v46, 0.0  ;;  %v2446_v34 = vadd.f32 %v2445_v25, %v9187_v62  ;;  %v2586_v13 = vmax.f32 %v2444_v56, 0.0  ;;  %v3348_v59 = vpack.c.bf16 %v3228_v4, %v3226_v52 }
 0x37c   : > { %v2449_v45 = vpop.f32.mrf.mxu0  ;;  %v2937_v35 = vpop.f32.mrf.mxu1  ;;  %v2936_v19 = vadd.f32 %v2935_v27, %v9332_v40 }
 0x37d   : > { %v2587_v61 = vmax.f32 %v2446_v34, 0.0  ;;  %v3349_v11 = vpack.c.bf16 %v3229_v55, %v3227_v18  ;;  %v2938_v36 = vadd.f32 %v2937_v35, %v9327_v0  ;;  %v2654_v44 = vpack.c.bf16 %v2586_v13, %v2584_v1 }
 0x37e   : > { %v2451_v9 = vpop.f32.mrf.mxu0  ;;  %v2939_v37 = vpop.f32.mrf.mxu1  ;;  %v2450_v46 = vadd.f32 %v2449_v45, %v9193_v30  ;;  %v3230_v13 = vmax.f32 %v2936_v19, 0.0 }
 0x37f   : > { %v2940_v28 = vadd.f32 %v2939_v37, %v9332_v40  ;;  %3669 = vmatprep.mubr.bf16.mxu0 %v3349_v11  ;;  %v2655_v26 = vpack.c.bf16 %v2587_v61, %v2585_v12  ;;  %v2452_v32 = vadd.f32 %v2451_v9, %v9187_v62  ;;  %v3231_v18 = vmax.f32 %v2938_v36, 0.0  ;;  %v8354_v12 = vld [vmem:[#allocation2 + $0x570] ss:$8 sps:$4 sm:$0xff]   ;;  %v8356_v37 = vld [vmem:[#allocation2 + $0x574] ss:$8 sps:$4 sm:$0xff]  }
 0x380   : > { %v2453_v41 = vpop.f32.mrf.mxu0  ;;  %v2941_v53 = vpop.f32.mrf.mxu1  ;;  %3670 = vmatmul.mubr.bf16.gmra.mxu0 %v3348_v59  ;;  %v2588_v11 = vmax.f32 %v2450_v46, 0.0  ;;  %5099 = vmatprep.subr.bf16.mxu0 %v8356_v37  ;;  %v8359_v36 = vld [vmem:[#allocation2 + $0x4a4] ss:$8 sps:$4 sm:$0xff]  }
 0x381   : > { %v2454_v2 = vadd.f32 %v2453_v41, %v9193_v30  ;;  %v2942_v56 = vadd.f32 %v2941_v53, %v9327_v0  ;;  %3183 = vmatprep.mubr.bf16.mxu1 %v2655_v26  ;;  %v3232_v4 = vmax.f32 %v2940_v28, 0.0  ;;  %v2589_v45 = vmax.f32 %v2452_v32, 0.0  ;;  %v8357_v26 = vld [vmem:[#allocation2 + $0x4a0] ss:$8 sps:$4 sm:$0xff]   ;;  %5100 = vmatpush1.bf16.msra.mxu0 %v8354_v12 }
 0x382   : > { %v2455_v25 = vpop.f32.mrf.mxu0  ;;  %v2945_v50 = vpop.f32.mrf.mxu1  ;;  %3184 = vmatmul.mubr.bf16.gmra.mxu1 %v2654_v44  ;;  %4379 = vmatprep.subr.bf16.mxu1 %v8359_v36 }
 0x383   : > { %v3233_v55 = vmax.f32 %v2942_v56, 0.0  ;;  %v2456_v34 = vadd.f32 %v2455_v25, %v9187_v62  ;;  %v2590_v35 = vmax.f32 %v2454_v2, 0.0  ;;  %v3350_v41 = vpack.c.bf16 %v3232_v4, %v3230_v13  ;;  %4380 = vmatpush2.bf16.msra.mxu1 %v8357_v26 }
 0x384   : > { %v2459_v27 = vpop.f32.mrf.mxu0  ;;  %v2947_v52 = vpop.f32.mrf.mxu1  ;;  %v2946_v2 = vadd.f32 %v2945_v50, %v9332_v40 }
 0x385   : > { %v2591_v61 = vmax.f32 %v2456_v34, 0.0  ;;  %v3351_v59 = vpack.c.bf16 %v3233_v55, %v3231_v18  ;;  %v2948_v28 = vadd.f32 %v2947_v52, %v9327_v0  ;;  %v2656_v44 = vpack.c.bf16 %v2590_v35, %v2588_v11 }
 0x386   : > { %v2461_v1 = vpop.f32.mrf.mxu0  ;;  %v2949_v9 = vpop.f32.mrf.mxu1  ;;  %v2460_v55 = vadd.f32 %v2459_v27, %v9193_v30 }
 0x387   : > { %v2950_v53 = vadd.f32 %v2949_v9, %v9332_v40  ;;  %3679 = vmatprep.mubr.bf16.mxu0 %v3351_v59  ;;  %v2657_v25 = vpack.c.bf16 %v2591_v61, %v2589_v45  ;;  %v2462_v46 = vadd.f32 %v2461_v1, %v9187_v62  ;;  %v3235_v50 = vmax.f32 %v2948_v28, 0.0 }
 0x388   : > { %v2463_v19 = vpop.f32.mrf.mxu0  ;;  %v2951_v56 = vpop.f32.mrf.mxu1  ;;  %3680 = vmatmul.mubr.bf16.gmra.mxu0 %v3350_v41  ;;  %v3234_v61 = vmax.f32 %v2946_v2, 0.0  ;;  %v2592_v9 = vmax.f32 %v2460_v55, 0.0  ;;  %v8362_v55 = vld [vmem:[#allocation2 + $0x564] ss:$8 sps:$4 sm:$0xff]  }
 0x389   : > { %v2464_v32 = vadd.f32 %v2463_v19, %v9193_v30  ;;  %v2952_v4 = vadd.f32 %v2951_v56, %v9327_v0  ;;  %3193 = vmatprep.mubr.bf16.mxu1 %v2657_v25  ;;  %v3236_v35 = vmax.f32 %v2950_v53, 0.0  ;;  %v2593_v37 = vmax.f32 %v2462_v46, 0.0  ;;  %5101 = vmatprep.subr.bf16.mxu0 %v8362_v55  ;;  %v8366_v55 = vld [vmem:[#allocation2 + $0x550] ss:$8 sps:$4 sm:$0xff]  }
 0x38a   : > { %v2465_v34 = vpop.f32.mrf.mxu0  ;;  %v2955_v18 = vpop.f32.mrf.mxu1  ;;  %3194 = vmatmul.mubr.bf16.gmra.mxu1 %v2656_v44 }
 0x38b   : > { %v3237_v52 = vmax.f32 %v2952_v4, 0.0  ;;  %v2466_v13 = vadd.f32 %v2465_v34, %v9187_v62  ;;  %v2594_v11 = vmax.f32 %v2464_v32, 0.0  ;;  %v3352_v41 = vpack.c.bf16 %v3236_v35, %v3234_v61  ;;  %v8360_v4 = vld [vmem:[#allocation2 + $0x560] ss:$8 sps:$4 sm:$0xff]  }
 0x38c   : > { %v2957_v12 = vpop.f32.mrf.mxu1  ;;  %v2956_v62 = vadd.f32 %v2955_v18, %v9332_v40  ;;  %5102 = vmatpush1.bf16.msra.mxu0 %v8360_v4 }
 0x38d   : > { %v2595_v45 = vmax.f32 %v2466_v13, 0.0  ;;  %v3353_v1 = vpack.c.bf16 %v3237_v52, %v3235_v50  ;;  %v2958_v30 = vadd.f32 %v2957_v12, %v9327_v0  ;;  %v2658_v26 = vpack.c.bf16 %v2594_v11, %v2592_v9  ;;  %v8363_v52 = vld [vmem:[#allocation2 + $0x490] ss:$8 sps:$4 sm:$0xff]   ;;  %v8365_v13 = vld [vmem:[#allocation2 + $0x494] ss:$8 sps:$4 sm:$0xff]  }
 0x38e   : > { %v2959_v59 = vpop.f32.mrf.mxu1  ;;  %v3238_v46 = vmax.f32 %v2956_v62, 0.0  ;;  %4381 = vmatprep.subr.bf16.mxu1 %v8365_v13  ;;  %v8369_v13 = vld [vmem:[#allocation2 + $0x480] ss:$8 sps:$4 sm:$0xff]  }
 0x38f   : > { %v2960_v27 = vadd.f32 %v2959_v59, %v9332_v40  ;;  %3689 = vmatprep.mubr.bf16.mxu0 %v3353_v1  ;;  %v2659_v28 = vpack.c.bf16 %v2595_v45, %v2593_v37  ;;  %v3239_v2 = vmax.f32 %v2958_v30, 0.0  ;;  %4382 = vmatpush2.bf16.msra.mxu1 %v8363_v52 }
 0x390   : > { %v2961_v53 = vpop.f32.mrf.mxu1  ;;  %3690 = vmatmul.mubr.bf16.gmra.mxu0 %v3352_v41 }
 0x391   : > { %v2962_v36 = vadd.f32 %v2961_v53, %v9327_v0  ;;  %3203 = vmatprep.mubr.bf16.mxu1 %v2659_v28  ;;  %v3240_v19 = vmax.f32 %v2960_v27, 0.0 }
 0x392   : > { %v2965_v44 = vpop.f32.mrf.mxu1  ;;  %3204 = vmatmul.mubr.bf16.gmra.mxu1 %v2658_v26 }
 0x393   : > { %v3241_v56 = vmax.f32 %v2962_v36, 0.0  ;;  %v3354_v50 = vpack.c.bf16 %v3240_v19, %v3238_v46  ;;  %v2966_v12 = vadd.f32 %v2965_v44, %v9332_v40 }
 0x394   : > { %v2967_v25 = vpop.f32.mrf.mxu1 }
 0x395   : > { %v3355_v32 = vpack.c.bf16 %v3241_v56, %v3239_v2  ;;  %v2968_v35 = vadd.f32 %v2967_v25, %v9327_v0  ;;  %v3242_v41 = vmax.f32 %v2966_v12, 0.0 }
 0x396   : > { %v2969_v34 = vpop.f32.mrf.mxu1 }
 0x397   : > { %v2970_v18 = vadd.f32 %v2969_v34, %v9332_v40  ;;  %3699 = vmatprep.mubr.bf16.mxu0 %v3355_v32  ;;  %v3243_v45 = vmax.f32 %v2968_v35, 0.0  ;;  %v8368_v34 = vld [vmem:[#allocation2 + $0x554] ss:$8 sps:$4 sm:$0xff]  }
 0x398   : > { %v2971_v61 = vpop.f32.mrf.mxu1  ;;  %3700 = vmatmul.mubr.bf16.gmra.mxu0 %v3354_v50  ;;  %5103 = vmatprep.subr.bf16.mxu0 %v8368_v34 }
 0x399   : > { %v2972_v37 = vadd.f32 %v2971_v61, %v9327_v0  ;;  %v3244_v1 = vmax.f32 %v2970_v18, 0.0  ;;  %v8371_v61 = vld [vmem:[#allocation2 + $0x484] ss:$8 sps:$4 sm:$0xff]   ;;  %5104 = vmatpush1.bf16.msra.mxu0 %v8366_v55 }
 0x39a   : > { %v2975_v11 = vpop.f32.mrf.mxu1  ;;  %4383 = vmatprep.subr.bf16.mxu1 %v8371_v61 }
 0x39b   : > { %v3245_v9 = vmax.f32 %v2972_v37, 0.0  ;;  %v3356_v28 = vpack.c.bf16 %v3244_v1, %v3242_v41  ;;  %v2976_v36 = vadd.f32 %v2975_v11, %v9332_v40  ;;  %4384 = vmatpush2.bf16.msra.mxu1 %v8369_v13 }
 0x39c   : > { %v2977_v59 = vpop.f32.mrf.mxu1 }
 0x39d   : > { %v3357_v30 = vpack.c.bf16 %v3245_v9, %v3243_v45  ;;  %v2978_v53 = vadd.f32 %v2977_v59, %v9327_v0  ;;  %v3246_v32 = vmax.f32 %v2976_v36, 0.0 }
 0x39e   : > { %v2979_v27 = vpop.f32.mrf.mxu1 }
 0x39f   : > { %v2980_v26 = vadd.f32 %v2979_v27, %v9332_v40  ;;  %3709 = vmatprep.mubr.bf16.mxu0 %v3357_v30  ;;  %v3247_v19 = vmax.f32 %v2978_v53, 0.0 }
 0x3a0   : > { %v2981_v62 = vpop.f32.mrf.mxu1  ;;  %3710 = vmatmul.mubr.bf16.gmra.mxu0 %v3356_v28 }
 0x3a1   : > { %v2982_v44 = vadd.f32 %v2981_v62, %v9327_v0  ;;  %v3248_v56 = vmax.f32 %v2980_v26, 0.0 }
 0x3a2   : > { %v2985_v2 = vpop.f32.mrf.mxu1 }
 0x3a3   : > { %v3249_v25 = vmax.f32 %v2982_v44, 0.0  ;;  %v3358_v35 = vpack.c.bf16 %v3248_v56, %v3246_v32  ;;  %v2986_v37 = vadd.f32 %v2985_v2, %v9332_v40 }
 0x3a4   : > { %v2987_v46 = vpop.f32.mrf.mxu1 }
 0x3a5   : > { %v3359_v4 = vpack.c.bf16 %v3249_v25, %v3247_v19  ;;  %v2988_v18 = vadd.f32 %v2987_v46, %v9327_v0  ;;  %v3250_v30 = vmax.f32 %v2986_v37, 0.0 }
 0x3a6   : > { %v2989_v50 = vpop.f32.mrf.mxu1 }
 0x3a7   : > { %v2990_v52 = vadd.f32 %v2989_v50, %v9332_v40  ;;  %3719 = vmatprep.mubr.bf16.mxu0 %v3359_v4  ;;  %v3251_v1 = vmax.f32 %v2988_v18, 0.0  ;;  %v8372_v50 = vld [vmem:[#allocation2 + $0x540] ss:$8 sps:$4 sm:$0xff]  }
 0x3a8   : > { %v2991_v12 = vpop.f32.mrf.mxu1  ;;  %3720 = vmatmul.mubr.bf16.gmra.mxu0 %v3358_v35  ;;  %v8374_v35 = vld [vmem:[#allocation2 + $0x544] ss:$8 sps:$4 sm:$0xff]  }
 0x3a9   : > { %v2992_v11 = vadd.f32 %v2991_v12, %v9327_v0  ;;  %v3252_v9 = vmax.f32 %v2990_v52, 0.0  ;;  %5105 = vmatprep.subr.bf16.mxu0 %v8374_v35 }
 0x3aa   : > { %v2995_v45 = vpop.f32.mrf.mxu1  ;;  %5106 = vmatpush1.bf16.msra.mxu0 %v8372_v50  ;;  %v8377_v50 = vld [vmem:[#allocation2 + $0x534] ss:$8 sps:$4 sm:$0xff]  }
 0x3ab   : > { %v3253_v59 = vmax.f32 %v2992_v11, 0.0  ;;  %v3360_v53 = vpack.c.bf16 %v3252_v9, %v3250_v30  ;;  %v2996_v44 = vadd.f32 %v2995_v45, %v9332_v40  ;;  %5107 = vmatprep.subr.bf16.mxu0 %v8377_v50  ;;  %v8380_v50 = vld [vmem:[#allocation2 + $0x524] ss:$8 sps:$4 sm:$0xff]  }
 0x3ac   : > { %v2997_v41 = vpop.f32.mrf.mxu1 }
 0x3ad   : > { %v3361_v27 = vpack.c.bf16 %v3253_v59, %v3251_v1  ;;  %v2998_v26 = vadd.f32 %v2997_v41, %v9327_v0  ;;  %v3254_v4 = vmax.f32 %v2996_v44, 0.0 }
 0x3ae   : > { %v2999_v28 = vpop.f32.mrf.mxu1 }
 0x3af   : > { %v3000_v62 = vadd.f32 %v2999_v28, %v9332_v40  ;;  %3729 = vmatprep.mubr.bf16.mxu0 %v3361_v27  ;;  %v3255_v56 = vmax.f32 %v2998_v26, 0.0 }
 0x3b0   : > { %v3001_v36 = vpop.f32.mrf.mxu1  ;;  %3730 = vmatmul.mubr.bf16.gmra.mxu0 %v3360_v53 }
 0x3b1   : > { %v3002_v2 = vadd.f32 %v3001_v36, %v9327_v0  ;;  %v3256_v25 = vmax.f32 %v3000_v62, 0.0 }
 0x3b2   : > { %v3005_v19 = vpop.f32.mrf.mxu1 }
 0x3b3   : > { %v3257_v46 = vmax.f32 %v3002_v2, 0.0  ;;  %v3362_v18 = vpack.c.bf16 %v3256_v25, %v3254_v4  ;;  %v3006_v12 = vadd.f32 %v3005_v19, %v9332_v40 }
 0x3b4   : > { %v3007_v32 = vpop.f32.mrf.mxu1 }
 0x3b5   : > { %v3363_v55 = vpack.c.bf16 %v3257_v46, %v3255_v56  ;;  %v3008_v52 = vadd.f32 %v3007_v32, %v9327_v0  ;;  %v3258_v41 = vmax.f32 %v3006_v12, 0.0 }
 0x3b6   : > { %v3009_v34 = vpop.f32.mrf.mxu1 }
 0x3b7   : > { %v3010_v13 = vadd.f32 %v3009_v34, %v9332_v40  ;;  %3739 = vmatprep.mubr.bf16.mxu0 %v3363_v55  ;;  %v3259_v45 = vmax.f32 %v3008_v52, 0.0  ;;  %v8375_v34 = vld [vmem:[#allocation2 + $0x530] ss:$8 sps:$4 sm:$0xff]  }
 0x3b8   : > { %v3011_v61 = vpop.f32.mrf.mxu1  ;;  %3740 = vmatmul.mubr.bf16.gmra.mxu0 %v3362_v18 }
 0x3b9   : > { %v3012_v37 = vadd.f32 %v3011_v61, %v9327_v0  ;;  %v3260_v1 = vmax.f32 %v3010_v13, 0.0  ;;  %5108 = vmatpush1.bf16.msra.mxu0 %v8375_v34  ;;  %v8378_v34 = vld [vmem:[#allocation2 + $0x520] ss:$8 sps:$4 sm:$0xff]  }
 0x3ba   : > { %v3015_v11 = vpop.f32.mrf.mxu1  ;;  %5109 = vmatprep.subr.bf16.mxu0 %v8380_v50  ;;  %v8383_v50 = vld [vmem:[#allocation2 + $0x514] ss:$8 sps:$4 sm:$0xff]  }
 0x3bb   : > { %v3261_v9 = vmax.f32 %v3012_v37, 0.0  ;;  %v3364_v28 = vpack.c.bf16 %v3260_v1, %v3258_v41  ;;  %v3016_v36 = vadd.f32 %v3015_v11, %v9332_v40 }
 0x3bc   : > { %v3017_v59 = vpop.f32.mrf.mxu1 }
 0x3bd   : > { %v3365_v30 = vpack.c.bf16 %v3261_v9, %v3259_v45  ;;  %v3018_v53 = vadd.f32 %v3017_v59, %v9327_v0  ;;  %v3262_v32 = vmax.f32 %v3016_v36, 0.0  ;;  %5110 = vmatpush1.bf16.msra.mxu0 %v8378_v34  ;;  %v8381_v34 = vld [vmem:[#allocation2 + $0x510] ss:$8 sps:$4 sm:$0xff]  }
 0x3be   : > { %v3019_v27 = vpop.f32.mrf.mxu1  ;;  %5111 = vmatprep.subr.bf16.mxu0 %v8383_v50  ;;  %v8386_v50 = vld [vmem:[#allocation2 + $0x504] ss:$8 sps:$4 sm:$0xff]  }
 0x3bf   : > { %v3020_v26 = vadd.f32 %v3019_v27, %v9332_v40  ;;  %3749 = vmatprep.mubr.bf16.mxu0 %v3365_v30  ;;  %v3263_v19 = vmax.f32 %v3018_v53, 0.0 }
 0x3c0   : > { %v3021_v62 = vpop.f32.mrf.mxu1  ;;  %3750 = vmatmul.mubr.bf16.gmra.mxu0 %v3364_v28 }
 0x3c1   : > { %v3022_v44 = vadd.f32 %v3021_v62, %v9327_v0  ;;  %v3264_v56 = vmax.f32 %v3020_v26, 0.0  ;;  %5112 = vmatpush1.bf16.msra.mxu0 %v8381_v34  ;;  %v8384_v34 = vld [vmem:[#allocation2 + $0x500] ss:$8 sps:$4 sm:$0xff]  }
 0x3c2   : > { %v3025_v2 = vpop.f32.mrf.mxu1  ;;  %5113 = vmatprep.subr.bf16.mxu0 %v8386_v50  ;;  %v8389_v50 = vld [vmem:[#allocation2 + $0x5f4] ss:$8 sps:$4 sm:$0xff]  }
 0x3c3   : > { %v3265_v25 = vmax.f32 %v3022_v44, 0.0  ;;  %v3366_v35 = vpack.c.bf16 %v3264_v56, %v3262_v32  ;;  %v3026_v61 = vadd.f32 %v3025_v2, %v9332_v40 }
 0x3c4   : > { %v3027_v46 = vpop.f32.mrf.mxu1 }
 0x3c5   : > { %v3367_v4 = vpack.c.bf16 %v3265_v25, %v3263_v19  ;;  %v3028_v18 = vadd.f32 %v3027_v46, %v9327_v0  ;;  %v3266_v59 = vmax.f32 %v3026_v61, 0.0  ;;  %5114 = vmatpush1.bf16.msra.mxu0 %v8384_v34  ;;  %v8387_v34 = vld [vmem:[#allocation2 + $0x5f0] ss:$8 sps:$4 sm:$0xff]  }
 0x3c6   : > { %v3029_v55 = vpop.f32.mrf.mxu1  ;;  %5115 = vmatprep.subr.bf16.mxu0 %v8389_v50  ;;  %v8392_v50 = vld [vmem:[#allocation2 + $0x5e4] ss:$8 sps:$4 sm:$0xff]  }
 0x3c7   : > { %v3030_v52 = vadd.f32 %v3029_v55, %v9332_v40  ;;  %3759 = vmatprep.mubr.bf16.mxu0 %v3367_v4  ;;  %v3267_v11 = vmax.f32 %v3028_v18, 0.0  ;;  %v9421_v4 = vld [vmem:[%s11073_s6] sm:$0x7] }
 0x3c8   : > { %v3031_v13 = vpop.f32.mrf.mxu1  ;;  %3760 = vmatmul.mubr.bf16.gmra.mxu0 %v3366_v35  ;;  %8065 = vmatprep.subr.msk.bf16.mxu1 %vm615_vm0, %v9421_v4 }
 0x3c9   : > { %v3032_v12 = vadd.f32 %v3031_v13, %v9327_v0  ;;  %v3268_v45 = vmax.f32 %v3030_v52, 0.0  ;;  %5116 = vmatpush2.bf16.msra.mxu0 %v8387_v34  ;;  %v8390_v34 = vld [vmem:[#allocation2 + $0x5e0] ss:$8 sps:$4 sm:$0xff]  }
 0x3ca   : > { %v3035_v37 = vpop.f32.mrf.mxu1  ;;  %5117 = vmatprep.subr.bf16.mxu0 %v8392_v50  ;;  %v8395_v50 = vld [vmem:[#allocation2 + $0x5d4] ss:$8 sps:$4 sm:$0xff]  }
 0x3cb   : > { %v3269_v1 = vmax.f32 %v3032_v12, 0.0  ;;  %v3368_v27 = vpack.c.bf16 %v3268_v45, %v3266_v59  ;;  %v3036_v62 = vadd.f32 %v3035_v37, %v9332_v40 }
 0x3cc   : > { %v3037_v9 = vpop.f32.mrf.mxu1 }
 0x3cd   : > { %v3369_v41 = vpack.c.bf16 %v3269_v1, %v3267_v11  ;;  %v3038_v28 = vadd.f32 %v3037_v9, %v9327_v0  ;;  %v3270_v46 = vmax.f32 %v3036_v62, 0.0  ;;  %5118 = vmatpush2.bf16.msra.mxu0 %v8390_v34  ;;  %v8393_v34 = vld [vmem:[#allocation2 + $0x5d0] ss:$8 sps:$4 sm:$0xff]  }
 0x3ce   : > { %v3039_v30 = vpop.f32.mrf.mxu1  ;;  %5119 = vmatprep.subr.bf16.mxu0 %v8395_v50 }
 0x3cf   : > { %v3040_v53 = vadd.f32 %v3039_v30, %v9332_v40  ;;  %3769 = vmatprep.mubr.bf16.mxu0 %v3369_v41  ;;  %v3271_v2 = vmax.f32 %v3038_v28, 0.0 }
 0x3d0   : > { %v3041_v26 = vpop.f32.mrf.mxu1  ;;  %3770 = vmatmul.mubr.bf16.gmra.mxu0 %v3368_v27 }
 0x3d1   : > { %v3042_v36 = vadd.f32 %v3041_v26, %v9327_v0  ;;  %v3272_v19 = vmax.f32 %v3040_v53, 0.0  ;;  %5120 = vmatpush2.bf16.msra.mxu0 %v8393_v34 }
 0x3d2   : > { %v3045_v44 = vpop.f32.mrf.mxu1 }
 0x3d3   : > { %v3273_v56 = vmax.f32 %v3042_v36, 0.0  ;;  %v3370_v35 = vpack.c.bf16 %v3272_v19, %v3270_v46  ;;  %v3046_v61 = vadd.f32 %v3045_v44, %v9332_v40 }
 0x3d4   : > { %v3047_v25 = vpop.f32.mrf.mxu1 }
 0x3d5   : > { %v3371_v32 = vpack.c.bf16 %v3273_v56, %v3271_v2  ;;  %v3048_v18 = vadd.f32 %v3047_v25, %v9327_v0  ;;  %v3274_v59 = vmax.f32 %v3046_v61, 0.0 }
 0x3d6   : > { %v3049_v55 = vpop.f32.mrf.mxu1 }
 0x3d7   : > { %v3050_v52 = vadd.f32 %v3049_v55, %v9332_v40  ;;  %3779 = vmatprep.mubr.bf16.mxu0 %v3371_v32  ;;  %v3275_v11 = vmax.f32 %v3048_v18, 0.0 }
 0x3d8   : > { %v3051_v13 = vpop.f32.mrf.mxu1  ;;  %3780 = vmatmul.mubr.bf16.gmra.mxu0 %v3370_v35 }
 0x3d9   : > { %v3052_v12 = vadd.f32 %v3051_v13, %v9327_v0  ;;  %v3276_v45 = vmax.f32 %v3050_v52, 0.0 }
 0x3da   : > { %v3055_v37 = vpop.f32.mrf.mxu1 }
 0x3db   : > { %v3277_v1 = vmax.f32 %v3052_v12, 0.0  ;;  %v3372_v27 = vpack.c.bf16 %v3276_v45, %v3274_v59  ;;  %v3056_v62 = vadd.f32 %v3055_v37, %v9332_v40 }
 0x3dc   : > { %v3057_v9 = vpop.f32.mrf.mxu1 }
 0x3dd   : > { %v3373_v41 = vpack.c.bf16 %v3277_v1, %v3275_v11  ;;  %v3058_v28 = vadd.f32 %v3057_v9, %v9327_v0  ;;  %v3278_v46 = vmax.f32 %v3056_v62, 0.0 }
 0x3de   : > { %v3059_v30 = vpop.f32.mrf.mxu1 }
 0x3df   : > { %v3060_v53 = vadd.f32 %v3059_v30, %v9332_v40  ;;  %3789 = vmatprep.mubr.bf16.mxu0 %v3373_v41  ;;  %v3279_v2 = vmax.f32 %v3058_v28, 0.0 }
 0x3e0   : > { %v3061_v26 = vpop.f32.mrf.mxu1  ;;  %3790 = vmatmul.mubr.bf16.gmra.mxu0 %v3372_v27 }
 0x3e1   : > { %v3062_v36 = vadd.f32 %v3061_v26, %v9327_v0  ;;  %v3280_v19 = vmax.f32 %v3060_v53, 0.0 }
 0x3e2   : > { %v3065_v44 = vpop.f32.mrf.mxu1 }
 0x3e3   : > { %v3281_v56 = vmax.f32 %v3062_v36, 0.0  ;;  %v3374_v35 = vpack.c.bf16 %v3280_v19, %v3278_v46  ;;  %v3066_v61 = vadd.f32 %v3065_v44, %v9332_v40 }
 0x3e4   : > { %v3067_v25 = vpop.f32.mrf.mxu1 }
 0x3e5   : > { %v3375_v32 = vpack.c.bf16 %v3281_v56, %v3279_v2  ;;  %v3068_v18 = vadd.f32 %v3067_v25, %v9327_v0  ;;  %v3282_v59 = vmax.f32 %v3066_v61, 0.0 }
 0x3e6   : > { %v3069_v55 = vpop.f32.mrf.mxu1 }
 0x3e7   : > { %v3070_v52 = vadd.f32 %v3069_v55, %v9332_v40  ;;  %3799 = vmatprep.mubr.bf16.mxu0 %v3375_v32  ;;  %v3283_v11 = vmax.f32 %v3068_v18, 0.0 }
 0x3e8   : > { %v3071_v13 = vpop.f32.mrf.mxu1  ;;  %3800 = vmatmul.mubr.bf16.gmra.mxu0 %v3374_v35 }
 0x3e9   : > { %v3072_v12 = vadd.f32 %v3071_v13, %v9327_v0  ;;  %v3284_v45 = vmax.f32 %v3070_v52, 0.0 }
 0x3ea   : > { %v3075_v37 = vpop.f32.mrf.mxu1 }
 0x3eb   : > { %v3285_v1 = vmax.f32 %v3072_v12, 0.0  ;;  %v3376_v27 = vpack.c.bf16 %v3284_v45, %v3282_v59  ;;  %v3076_v62 = vadd.f32 %v3075_v37, %v9332_v40 }
 0x3ec   : > { %v3077_v9 = vpop.f32.mrf.mxu1 }
 0x3ed   : > { %v3377_v41 = vpack.c.bf16 %v3285_v1, %v3283_v11  ;;  %v3078_v28 = vadd.f32 %v3077_v9, %v9327_v0  ;;  %v3286_v46 = vmax.f32 %v3076_v62, 0.0 }
 0x3ee   : > { %v3079_v30 = vpop.f32.mrf.mxu1 }
 0x3ef   : > { %v3080_v53 = vadd.f32 %v3079_v30, %v9332_v40  ;;  %3809 = vmatprep.mubr.bf16.mxu0 %v3377_v41  ;;  %v3287_v2 = vmax.f32 %v3078_v28, 0.0 }
 0x3f0   : > { %v3081_v26 = vpop.f32.mrf.mxu1  ;;  %3810 = vmatmul.mubr.bf16.gmra.mxu0 %v3376_v27 }
 0x3f1   : > { %v3082_v36 = vadd.f32 %v3081_v26, %v9327_v0  ;;  %v3288_v19 = vmax.f32 %v3080_v53, 0.0 }
 0x3f2   : > { %v3085_v44 = vpop.f32.mrf.mxu1 }
 0x3f3   : > { %v3289_v56 = vmax.f32 %v3082_v36, 0.0  ;;  %v3378_v35 = vpack.c.bf16 %v3288_v19, %v3286_v46  ;;  %v3086_v61 = vadd.f32 %v3085_v44, %v9332_v40 }
 0x3f4   : > { %v3087_v25 = vpop.f32.mrf.mxu1 }
 0x3f5   : > { %v3379_v32 = vpack.c.bf16 %v3289_v56, %v3287_v2  ;;  %v3088_v18 = vadd.f32 %v3087_v25, %v9327_v0  ;;  %v3290_v59 = vmax.f32 %v3086_v61, 0.0 }
 0x3f6   : > { %v3089_v55 = vpop.f32.mrf.mxu1 }
 0x3f7   : > { %v3090_v52 = vadd.f32 %v3089_v55, %v9332_v40  ;;  %3819 = vmatprep.mubr.bf16.mxu0 %v3379_v32  ;;  %v3291_v11 = vmax.f32 %v3088_v18, 0.0 }
 0x3f8   : > { %v3091_v13 = vpop.f32.mrf.mxu1  ;;  %3820 = vmatmul.mubr.bf16.gmra.mxu0 %v3378_v35 }
 0x3f9   : > { %v3092_v12 = vadd.f32 %v3091_v13, %v9327_v0  ;;  %v3292_v45 = vmax.f32 %v3090_v52, 0.0 }
 0x3fa   : > { %v3095_v37 = vpop.f32.mrf.mxu1 }
 0x3fb   : > { %v3293_v1 = vmax.f32 %v3092_v12, 0.0  ;;  %v3380_v27 = vpack.c.bf16 %v3292_v45, %v3290_v59  ;;  %v3096_v62 = vadd.f32 %v3095_v37, %v9332_v40 }
 0x3fc   : > { %v3097_v9 = vpop.f32.mrf.mxu1 }
 0x3fd   : > { %v3381_v41 = vpack.c.bf16 %v3293_v1, %v3291_v11  ;;  %v3098_v28 = vadd.f32 %v3097_v9, %v9327_v0  ;;  %v3294_v46 = vmax.f32 %v3096_v62, 0.0 }
 0x3fe   : > { %v3099_v30 = vpop.f32.mrf.mxu1 }
 0x3ff   : > { %v3100_v53 = vadd.f32 %v3099_v30, %v9332_v40  ;;  %3829 = vmatprep.mubr.bf16.mxu0 %v3381_v41  ;;  %v3295_v2 = vmax.f32 %v3098_v28, 0.0 }
 0x400   : > { %v3101_v26 = vpop.f32.mrf.mxu1  ;;  %3830 = vmatmul.mubr.bf16.gmra.mxu0 %v3380_v27 }
 0x401   : > { %v3102_v36 = vadd.f32 %v3101_v26, %v9327_v0  ;;  %v3296_v19 = vmax.f32 %v3100_v53, 0.0 }
 0x402   : > { %v3105_v44 = vpop.f32.mrf.mxu1 }
 0x403   : > { %v3297_v56 = vmax.f32 %v3102_v36, 0.0  ;;  %v3382_v35 = vpack.c.bf16 %v3296_v19, %v3294_v46  ;;  %v3106_v61 = vadd.f32 %v3105_v44, %v9332_v40 }
 0x404   : > { %v3107_v25 = vpop.f32.mrf.mxu1 }
 0x405   : > { %v3383_v32 = vpack.c.bf16 %v3297_v56, %v3295_v2  ;;  %v3108_v18 = vadd.f32 %v3107_v25, %v9327_v0  ;;  %v3298_v59 = vmax.f32 %v3106_v61, 0.0 }
 0x406   : > { %v3109_v55 = vpop.f32.mrf.mxu1 }
 0x407   : > { %v3110_v52 = vadd.f32 %v3109_v55, %v9332_v40  ;;  %3839 = vmatprep.mubr.bf16.mxu0 %v3383_v32  ;;  %v3299_v11 = vmax.f32 %v3108_v18, 0.0 }
 0x408   : > { %v3111_v13 = vpop.f32.mrf.mxu1  ;;  %3840 = vmatmul.mubr.bf16.gmra.mxu0 %v3382_v35 }
 0x409   : > { %v3112_v12 = vadd.f32 %v3111_v13, %v9327_v0  ;;  %v3300_v45 = vmax.f32 %v3110_v52, 0.0 }
 0x40a   : > { %v3115_v37 = vpop.f32.mrf.mxu1 }
 0x40b   : > { %v3301_v1 = vmax.f32 %v3112_v12, 0.0  ;;  %v3384_v27 = vpack.c.bf16 %v3300_v45, %v3298_v59  ;;  %v3116_v62 = vadd.f32 %v3115_v37, %v9332_v40 }
 0x40c   : > { %v3117_v9 = vpop.f32.mrf.mxu1 }
 0x40d   : > { %v3385_v41 = vpack.c.bf16 %v3301_v1, %v3299_v11  ;;  %v3118_v28 = vadd.f32 %v3117_v9, %v9327_v0  ;;  %v3302_v46 = vmax.f32 %v3116_v62, 0.0 }
 0x40e   : > { %v3119_v30 = vpop.f32.mrf.mxu1 }
 0x40f   : > { %v3120_v53 = vadd.f32 %v3119_v30, %v9332_v40  ;;  %3849 = vmatprep.mubr.bf16.mxu0 %v3385_v41  ;;  %v3303_v2 = vmax.f32 %v3118_v28, 0.0 }
 0x410   : > { %v3121_v26 = vpop.f32.mrf.mxu1  ;;  %3850 = vmatmul.mubr.bf16.gmra.mxu0 %v3384_v27 }
 0x411   : > { %v3122_v36 = vadd.f32 %v3121_v26, %v9327_v0  ;;  %v3304_v19 = vmax.f32 %v3120_v53, 0.0 }
 0x412   : > { %v3125_v44 = vpop.f32.mrf.mxu1 }
 0x413   : > { %v3305_v56 = vmax.f32 %v3122_v36, 0.0  ;;  %v3386_v35 = vpack.c.bf16 %v3304_v19, %v3302_v46  ;;  %v3126_v61 = vadd.f32 %v3125_v44, %v9332_v40 }
 0x414   : > { %v3127_v25 = vpop.f32.mrf.mxu1 }
 0x415   : > { %v3387_v32 = vpack.c.bf16 %v3305_v56, %v3303_v2  ;;  %v3128_v18 = vadd.f32 %v3127_v25, %v9327_v0  ;;  %v3306_v59 = vmax.f32 %v3126_v61, 0.0  ;;  %v3441_v61 = vsub.s32 3, %v8869_v21 }
 0x416   : > { %v3129_v55 = vpop.f32.mrf.mxu1 }
 0x417   : > { %v3130_v52 = vadd.f32 %v3129_v55, %v9332_v40  ;;  %3859 = vmatprep.mubr.bf16.mxu0 %v3387_v32  ;;  %v3307_v11 = vmax.f32 %v3128_v18, 0.0 }
 0x418   : > { %v3131_v13 = vpop.f32.mrf.mxu1  ;;  %3860 = vmatmul.mubr.bf16.gmra.mxu0 %v3386_v35 }
 0x419   : > { %v3132_v12 = vadd.f32 %v3131_v13, %v9327_v0  ;;  %v3308_v45 = vmax.f32 %v3130_v52, 0.0 }
 0x41a   : > { %v3135_v37 = vpop.f32.mrf.mxu1 }
 0x41b   : > { %v3309_v1 = vmax.f32 %v3132_v12, 0.0  ;;  %v3388_v27 = vpack.c.bf16 %v3308_v45, %v3306_v59  ;;  %v3136_v62 = vadd.f32 %v3135_v37, %v9332_v40 }
 0x41c   : > { %v3137_v9 = vpop.f32.mrf.mxu1 }
 0x41d   : > { %v3389_v41 = vpack.c.bf16 %v3309_v1, %v3307_v11  ;;  %v3138_v28 = vadd.f32 %v3137_v9, %v9327_v0  ;;  %v3310_v46 = vmax.f32 %v3136_v62, 0.0 }
 0x41e   : > { %v3139_v30 = vpop.f32.mrf.mxu1 }
 0x41f   : > { %v3140_v53 = vadd.f32 %v3139_v30, %v9332_v40  ;;  %3869 = vmatprep.mubr.bf16.mxu0 %v3389_v41  ;;  %v3311_v2 = vmax.f32 %v3138_v28, 0.0  ;;  %v8455_v41 = vld [vmem:[%s11071_s4 + $0x8] sm:$0x3f]  ;;  %v8456_v28 = vld [vmem:[%s11071_s4] sm:$0x3f] }
 0x420   : > { %v3141_v26 = vpop.f32.mrf.mxu1  ;;  %3870 = vmatmul.mubr.bf16.gmra.mxu0 %v3388_v27  ;;  %v9473_v30 = vrot.slane %v8455_v41, %v3441_v61 }
 0x421   : > { %v3142_v36 = vadd.f32 %v3141_v26, %v9327_v0  ;;  %v3312_v19 = vmax.f32 %v3140_v53, 0.0  ;;  %v9478_v53 = vrot.slane %v8456_v28, %v3441_v61 }
 0x422   : > { %v3145_v44 = vpop.f32.mrf.mxu1 }
 0x423   : > { %v3313_v56 = vmax.f32 %v3142_v36, 0.0  ;;  %v3390_v35 = vpack.c.bf16 %v3312_v19, %v3310_v46  ;;  %v3146_v12 = vadd.f32 %v3145_v44, %v9332_v40 }
 0x424   : > { %v3147_v25 = vpop.f32.mrf.mxu1 }
 0x425   : > { %v3391_v32 = vpack.c.bf16 %v3313_v56, %v3311_v2  ;;  %v3148_v18 = vadd.f32 %v3147_v25, %v9327_v0  ;;  %v3314_v26 = vmax.f32 %v3146_v12, 0.0 }
 0x426   : > { %v3149_v55 = vpop.f32.mrf.mxu1 }
 0x427   : > { %v3150_v52 = vadd.f32 %v3149_v55, %v9332_v40  ;;  %3879 = vmatprep.mubr.bf16.mxu0 %v3391_v32  ;;  %v3315_v45 = vmax.f32 %v3148_v18, 0.0 }
 0x428   : > { %v3151_v13 = vpop.f32.mrf.mxu1  ;;  %v3641_v11 = vpop.f32.mrf.mxu0  ;;  %3880 = vmatmul.mubr.bf16.gmra.mxu0 %v3390_v35 }
 0x429   : > { %v3152_v37 = vadd.f32 %v3151_v13, %v9327_v0  ;;  %v3316_v1 = vmax.f32 %v3150_v52, 0.0  ;;  %v3642_v32 = vadd.f32 %v3641_v11, %v9478_v53 }
 0x42a   : > { %v3155_v59 = vpop.f32.mrf.mxu1  ;;  %v3643_v27 = vpop.f32.mrf.mxu0 }
 0x42b   : > { %v3317_v9 = vmax.f32 %v3152_v37, 0.0  ;;  %v3392_v19 = vpack.c.bf16 %v3316_v1, %v3314_v26  ;;  %v3644_v56 = vadd.f32 %v3643_v27, %v9473_v30  ;;  %v3156_v52 = vadd.f32 %v3155_v59, %v9332_v40 }
 0x42c   : > { %v3157_v62 = vpop.f32.mrf.mxu1  ;;  %v3645_v36 = vpop.f32.mrf.mxu0  ;;  %v5678_v59 = vsel %vm615_vm0, %v9421_v4, 0 }
 0x42d   : > { %v3393_v44 = vpack.c.bf16 %v3317_v9, %v3315_v45  ;;  %v3646_v2 = vadd.f32 %v3645_v36, %v9478_v53  ;;  %v3158_v50 = vadd.f32 %v3157_v62, %v9327_v0  ;;  %v3961_v37 = vmax.f32 %v3644_v56, 0.0 }
 0x42e   : > { %v3159_v25 = vpop.f32.mrf.mxu1  ;;  %v3647_v46 = vpop.f32.mrf.mxu0  ;;  %v3960_v9 = vmax.f32 %v3642_v32, 0.0  ;;  %v3318_v62 = vmax.f32 %v3156_v52, 0.0 }
 0x42f   : > { %3889 = vmatprep.mubr.bf16.mxu0 %v3393_v44  ;;  %v3160_v55 = vadd.f32 %v3159_v25, %v9332_v40  ;;  %v3648_v34 = vadd.f32 %v3647_v46, %v9473_v30  ;;  %v3962_v13 = vmax.f32 %v3646_v2, 0.0  ;;  %v3319_v27 = vmax.f32 %v3158_v50, 0.0  ;;  %v8398_v2 = vld [vmem:[#allocation2 + $0x5c4] ss:$8 sps:$4 sm:$0xff]  }
 0x430   : > { %v3161_v35 = vpop.f32.mrf.mxu1  ;;  %v3651_v18 = vpop.f32.mrf.mxu0  ;;  %3890 = vmatmul.mubr.bf16.gmra.mxu0 %v3392_v19  ;;  %5121 = vmatprep.subr.bf16.mxu0 %v8398_v2 }
 0x431   : > { %v3963_v61 = vmax.f32 %v3648_v34, 0.0  ;;  %v3162_v12 = vadd.f32 %v3161_v35, %v9327_v0  ;;  %v3320_v11 = vmax.f32 %v3160_v55, 0.0  ;;  %v4088_v44 = vpack.c.bf16 %v3962_v13, %v3960_v9  ;;  %v8396_v34 = vld [vmem:[#allocation2 + $0x5c0] ss:$8 sps:$4 sm:$0xff]  }
 0x432   : > { %v3165_v45 = vpop.f32.mrf.mxu1  ;;  %v3653_v1 = vpop.f32.mrf.mxu0  ;;  %v3652_v25 = vadd.f32 %v3651_v18, %v9478_v53  ;;  %v11090_v9 = vmov 0   ;;  %5122 = vmatpush2.bf16.msra.mxu0 %v8396_v34 }
 0x433   : > { %v3321_v41 = vmax.f32 %v3162_v12, 0.0  ;;  %v4089_v36 = vpack.c.bf16 %v3963_v61, %v3961_v37  ;;  %v3654_v56 = vadd.f32 %v3653_v1, %v9473_v30  ;;  %v3394_v50 = vpack.c.bf16 %v3320_v11, %v3318_v62 }
 0x434   : > { %v3167_v28 = vpop.f32.mrf.mxu1  ;;  %v3655_v26 = vpop.f32.mrf.mxu0  ;;  %v3166_v18 = vadd.f32 %v3165_v45, %v9332_v40 }
 0x435   : > { %v3656_v19 = vadd.f32 %v3655_v26, %v9478_v53  ;;  %4385 = vmatprep.mubr.bf16.mxu1 %v4089_v36  ;;  %v3395_v55 = vpack.c.bf16 %v3321_v41, %v3319_v27  ;;  %v3168_v13 = vadd.f32 %v3167_v28, %v9327_v0  ;;  %v3965_v11 = vmax.f32 %v3654_v56, 0.0 }
 0x436   : > { %v3169_v46 = vpop.f32.mrf.mxu1  ;;  %v3657_v32 = vpop.f32.mrf.mxu0  ;;  %4386 = vmatmul.mubr.bf16.vlgmr.msra.gmra.mxu1 %v4088_v44  ;;  %v3964_v26 = vmax.f32 %v3652_v25, 0.0 }
 0x437   : > { %v3170_v35 = vadd.f32 %v3169_v46, %v9332_v40  ;;  %v3658_v52 = vadd.f32 %v3657_v32, %v9473_v30  ;;  %3899 = vmatprep.mubr.bf16.mxu0 %v3395_v55  ;;  %7904 = vmatpush3.bf16.msra.mxu1 %v5678_v59  ;;  %v3966_v12 = vmax.f32 %v3656_v19, 0.0  ;;  %v3323_v62 = vmax.f32 %v3168_v13, 0.0 }
 0x438   : > { %v3171_v4 = vpop.f32.mrf.mxu1  ;;  %v3661_v61 = vpop.f32.mrf.mxu0  ;;  %3900 = vmatmul.mubr.bf16.gmra.mxu0 %v3394_v50  ;;  %6065 = vmatprep.subr.bf16.mxu1 %v11090_v9  ;;  %v3322_v46 = vmax.f32 %v3166_v18, 0.0 }
 0x439   : > { %v3967_v37 = vmax.f32 %v3658_v52, 0.0  ;;  %v3172_v1 = vadd.f32 %v3171_v4, %v9327_v0  ;;  %v3324_v36 = vmax.f32 %v3170_v35, 0.0  ;;  %v4090_v45 = vpack.c.bf16 %v3966_v12, %v3964_v26 }
 0x43a   : > { %v3175_v41 = vpop.f32.mrf.mxu1  ;;  %v3663_v27 = vpop.f32.mrf.mxu0  ;;  %v3662_v34 = vadd.f32 %v3661_v61, %v9478_v53 }
 0x43b   : > { %v3325_v28 = vmax.f32 %v3172_v1, 0.0  ;;  %v4091_v59 = vpack.c.bf16 %v3967_v37, %v3965_v11  ;;  %v3664_v32 = vadd.f32 %v3663_v27, %v9473_v30  ;;  %v3396_v52 = vpack.c.bf16 %v3324_v36, %v3322_v46 }
 0x43c   : > { %v3177_v44 = vpop.f32.mrf.mxu1  ;;  %v3665_v2 = vpop.f32.mrf.mxu0  ;;  %v3176_v12 = vadd.f32 %v3175_v41, %v9332_v40  ;;  %v3968_v36 = vmax.f32 %v3662_v34, 0.0  ;;  %v8399_v41 = vld [vmem:[#allocation2 + $0x5b0] ss:$8 sps:$4 sm:$0xff]  }
 0x43d   : > { %v3666_v19 = vadd.f32 %v3665_v2, %v9478_v53  ;;  %4395 = vmatprep.mubr.bf16.mxu1 %v4091_v59  ;;  %v3397_v56 = vpack.c.bf16 %v3325_v28, %v3323_v62  ;;  %v3178_v13 = vadd.f32 %v3177_v44, %v9327_v0  ;;  %v3969_v27 = vmax.f32 %v3664_v32, 0.0 }
 0x43e   : > { %v3179_v55 = vpop.f32.mrf.mxu1  ;;  %v3667_v50 = vpop.f32.mrf.mxu0  ;;  %4396 = vmatmul.mubr.bf16.gmra.mxu1 %v4090_v45  ;;  %v3326_v45 = vmax.f32 %v3176_v12, 0.0 }
 0x43f   : > { %v3180_v25 = vadd.f32 %v3179_v55, %v9332_v40  ;;  %v3668_v35 = vadd.f32 %v3667_v50, %v9473_v30  ;;  %3909 = vmatprep.mubr.bf16.mxu0 %v3397_v56  ;;  %v3970_v37 = vmax.f32 %v3666_v19, 0.0  ;;  %v3327_v2 = vmax.f32 %v3178_v13, 0.0  ;;  %v8401_v19 = vld [vmem:[#allocation2 + $0x5b4] ss:$8 sps:$4 sm:$0xff]  }
 0x440   : > { %v3181_v4 = vpop.f32.mrf.mxu1  ;;  %v3671_v18 = vpop.f32.mrf.mxu0  ;;  %3910 = vmatmul.mubr.bf16.gmra.mxu0 %v3396_v52  ;;  %5123 = vmatprep.subr.bf16.mxu0 %v8401_v19 }
 0x441   : > { %v3971_v1 = vmax.f32 %v3668_v35, 0.0  ;;  %v3182_v11 = vadd.f32 %v3181_v4, %v9327_v0  ;;  %v3328_v28 = vmax.f32 %v3180_v25, 0.0  ;;  %v4092_v55 = vpack.c.bf16 %v3970_v37, %v3968_v36  ;;  %5124 = vmatpush2.bf16.msra.mxu0 %v8399_v41 }
 0x442   : > { %v3185_v26 = vpop.f32.mrf.mxu1  ;;  %v3673_v61 = vpop.f32.mrf.mxu0  ;;  %v3672_v56 = vadd.f32 %v3671_v18, %v9478_v53 }
 0x443   : > { %v3329_v62 = vmax.f32 %v3182_v11, 0.0  ;;  %v4093_v44 = vpack.c.bf16 %v3971_v1, %v3969_v27  ;;  %v3674_v52 = vadd.f32 %v3673_v61, %v9473_v30  ;;  %v3398_v25 = vpack.c.bf16 %v3328_v28, %v3326_v45 }
 0x444   : > { %v3187_v59 = vpop.f32.mrf.mxu1  ;;  %v3675_v46 = vpop.f32.mrf.mxu0  ;;  %v3186_v18 = vadd.f32 %v3185_v26, %v9332_v40 }
 0x445   : > { %v3676_v50 = vadd.f32 %v3675_v46, %v9478_v53  ;;  %4405 = vmatprep.mubr.bf16.mxu1 %v4093_v44  ;;  %v3399_v34 = vpack.c.bf16 %v3329_v62, %v3327_v2  ;;  %v3188_v12 = vadd.f32 %v3187_v59, %v9327_v0  ;;  %v3973_v36 = vmax.f32 %v3674_v52, 0.0 }
 0x446   : > { %v3189_v32 = vpop.f32.mrf.mxu1  ;;  %v3677_v35 = vpop.f32.mrf.mxu0  ;;  %4406 = vmatmul.mubr.bf16.gmra.mxu1 %v4092_v55  ;;  %v3972_v2 = vmax.f32 %v3672_v56, 0.0 }
 0x447   : > { %v3190_v13 = vadd.f32 %v3189_v32, %v9332_v40  ;;  %v3678_v4 = vadd.f32 %v3677_v35, %v9473_v30  ;;  %3919 = vmatprep.mubr.bf16.mxu0 %v3399_v34  ;;  %v3974_v11 = vmax.f32 %v3676_v50, 0.0  ;;  %v3331_v45 = vmax.f32 %v3188_v12, 0.0 }
 0x448   : > { %v3191_v37 = vpop.f32.mrf.mxu1  ;;  %v3681_v1 = vpop.f32.mrf.mxu0  ;;  %3920 = vmatmul.mubr.bf16.gmra.mxu0 %v3398_v25  ;;  %v3330_v32 = vmax.f32 %v3186_v18, 0.0 }
 0x449   : > { %v3975_v27 = vmax.f32 %v3678_v4, 0.0  ;;  %v3192_v61 = vadd.f32 %v3191_v37, %v9327_v0  ;;  %v3332_v46 = vmax.f32 %v3190_v13, 0.0  ;;  %v4094_v35 = vpack.c.bf16 %v3974_v11, %v3972_v2 }
 0x44a   : > { %v3195_v28 = vpop.f32.mrf.mxu1  ;;  %v3683_v62 = vpop.f32.mrf.mxu0  ;;  %v3682_v4 = vadd.f32 %v3681_v1, %v9478_v53 }
 0x44b   : > { %v3333_v44 = vmax.f32 %v3192_v61, 0.0  ;;  %v4095_v19 = vpack.c.bf16 %v3975_v27, %v3973_v36  ;;  %v3684_v26 = vadd.f32 %v3683_v62, %v9473_v30  ;;  %v3400_v52 = vpack.c.bf16 %v3332_v46, %v3330_v32 }
 0x44c   : > { %v3197_v55 = vpop.f32.mrf.mxu1  ;;  %v3685_v59 = vpop.f32.mrf.mxu0  ;;  %v3196_v12 = vadd.f32 %v3195_v28, %v9332_v40 }
 0x44d   : > { %v3686_v41 = vadd.f32 %v3685_v59, %v9478_v53  ;;  %4415 = vmatprep.mubr.bf16.mxu1 %v4095_v19  ;;  %v3401_v25 = vpack.c.bf16 %v3333_v44, %v3331_v45  ;;  %v3198_v37 = vadd.f32 %v3197_v55, %v9327_v0  ;;  %v3977_v62 = vmax.f32 %v3684_v26, 0.0 }
 0x44e   : > { %v3199_v50 = vpop.f32.mrf.mxu1  ;;  %v3687_v34 = vpop.f32.mrf.mxu0  ;;  %4416 = vmatmul.mubr.bf16.gmra.mxu1 %v4094_v35  ;;  %v3976_v44 = vmax.f32 %v3682_v4, 0.0  ;;  %v3334_v59 = vmax.f32 %v3196_v12, 0.0 }
 0x44f   : > { %v3200_v56 = vadd.f32 %v3199_v50, %v9332_v40  ;;  %v3688_v13 = vadd.f32 %v3687_v34, %v9473_v30  ;;  %3929 = vmatprep.mubr.bf16.mxu0 %v3401_v25  ;;  %v3978_v27 = vmax.f32 %v3686_v41, 0.0  ;;  %v3335_v19 = vmax.f32 %v3198_v37, 0.0  ;;  %v8402_v34 = vld [vmem:[#allocation2 + $0x5a0] ss:$8 sps:$4 sm:$0xff]   ;;  %v8404_v25 = vld [vmem:[#allocation2 + $0x5a4] ss:$8 sps:$4 sm:$0xff]  }
 0x450   : > { %v3201_v18 = vpop.f32.mrf.mxu1  ;;  %v3691_v11 = vpop.f32.mrf.mxu0  ;;  %3930 = vmatmul.mubr.bf16.gmra.mxu0 %v3400_v52  ;;  %5125 = vmatprep.subr.bf16.mxu0 %v8404_v25 }
 0x451   : > { %v3979_v61 = vmax.f32 %v3688_v13, 0.0  ;;  %v3202_v36 = vadd.f32 %v3201_v18, %v9327_v0  ;;  %v3336_v2 = vmax.f32 %v3200_v56, 0.0  ;;  %v4096_v55 = vpack.c.bf16 %v3978_v27, %v3976_v44  ;;  %5126 = vmatpush2.bf16.msra.mxu0 %v8402_v34 }
 0x452   : > { %v3205_v1 = vpop.f32.mrf.mxu1  ;;  %v3693_v46 = vpop.f32.mrf.mxu0  ;;  %v3692_v26 = vadd.f32 %v3691_v11, %v9478_v53 }
 0x453   : > { %v3337_v45 = vmax.f32 %v3202_v36, 0.0  ;;  %v4097_v35 = vpack.c.bf16 %v3979_v61, %v3977_v62  ;;  %v3694_v50 = vadd.f32 %v3693_v46, %v9473_v30  ;;  %v3402_v13 = vpack.c.bf16 %v3336_v2, %v3334_v59 }
 0x454   : > { %v3207_v32 = vpop.f32.mrf.mxu1  ;;  %v3695_v28 = vpop.f32.mrf.mxu0  ;;  %v3206_v27 = vadd.f32 %v3205_v1, %v9332_v40  ;;  %v3980_v44 = vmax.f32 %v3692_v26, 0.0 }
 0x455   : > { %v3696_v41 = vadd.f32 %v3695_v28, %v9478_v53  ;;  %4425 = vmatprep.mubr.bf16.mxu1 %v4097_v35  ;;  %v3403_v4 = vpack.c.bf16 %v3337_v45, %v3335_v19  ;;  %v3208_v12 = vadd.f32 %v3207_v32, %v9327_v0  ;;  %v3981_v62 = vmax.f32 %v3694_v50, 0.0 }
 0x456   : > { %v3209_v52 = vpop.f32.mrf.mxu1  ;;  %v3697_v56 = vpop.f32.mrf.mxu0  ;;  %4426 = vmatmul.mubr.bf16.gmra.mxu1 %v4096_v55  ;;  %v3338_v35 = vmax.f32 %v3206_v27, 0.0 }
 0x457   : > { %v3210_v37 = vadd.f32 %v3209_v52, %v9332_v40  ;;  %v3698_v18 = vadd.f32 %v3697_v56, %v9473_v30  ;;  %3939 = vmatprep.mubr.bf16.mxu0 %v3403_v4  ;;  %v3982_v11 = vmax.f32 %v3696_v41, 0.0  ;;  %v3339_v59 = vmax.f32 %v3208_v12, 0.0 }
 0x458   : > { %v3211_v61 = vpop.f32.mrf.mxu1  ;;  %v3701_v36 = vpop.f32.mrf.mxu0  ;;  %3940 = vmatmul.mubr.bf16.gmra.mxu0 %v3402_v13 }
 0x459   : > { %v3983_v2 = vmax.f32 %v3698_v18, 0.0  ;;  %v3212_v46 = vadd.f32 %v3211_v61, %v9327_v0  ;;  %v3340_v19 = vmax.f32 %v3210_v37, 0.0  ;;  %v4098_v25 = vpack.c.bf16 %v3982_v11, %v3980_v44 }
 0x45a   : > { %v3703_v45 = vpop.f32.mrf.mxu0  ;;  %v3702_v0 = vadd.f32 %v3701_v36, %v9478_v53  ;;  %v8405_v36 = vld [vmem:[#allocation2 + $0x590] ss:$8 sps:$4 sm:$0xff]  }
 0x45b   : > { %v3341_v32 = vmax.f32 %v3212_v46, 0.0  ;;  %v4099_v28 = vpack.c.bf16 %v3983_v2, %v3981_v62  ;;  %v3704_v40 = vadd.f32 %v3703_v45, %v9473_v30  ;;  %v3404_v34 = vpack.c.bf16 %v3340_v19, %v3338_v35  ;;  %v8407_v2 = vld [vmem:[#allocation2 + $0x594] ss:$8 sps:$4 sm:$0xff]  }
 0x45c   : > { %v3705_v55 = vpop.f32.mrf.mxu0  ;;  %v3984_v37 = vmax.f32 %v3702_v0, 0.0  ;;  %5127 = vmatprep.subr.bf16.mxu0 %v8407_v2  ;;  %v8410_v2 = vld [vmem:[#allocation2 + $0x584] ss:$8 sps:$4 sm:$0xff]  }
 0x45d   : > { %v3706_v1 = vadd.f32 %v3705_v55, %v9478_v53  ;;  %4435 = vmatprep.mubr.bf16.mxu1 %v4099_v28  ;;  %v3405_v50 = vpack.c.bf16 %v3341_v32, %v3339_v59  ;;  %v3985_v52 = vmax.f32 %v3704_v40, 0.0  ;;  %5128 = vmatpush2.bf16.msra.mxu0 %v8405_v36  ;;  %v8408_v36 = vld [vmem:[#allocation2 + $0x580] ss:$8 sps:$4 sm:$0xff]  }
 0x45e   : > { %v3707_v41 = vpop.f32.mrf.mxu0  ;;  %4436 = vmatmul.mubr.bf16.gmra.mxu1 %v4098_v25  ;;  %5129 = vmatprep.subr.bf16.mxu0 %v8410_v2 }
 0x45f   : > { %v3708_v13 = vadd.f32 %v3707_v41, %v9473_v30  ;;  %3949 = vmatprep.mubr.bf16.mxu0 %v3405_v50  ;;  %v3986_v56 = vmax.f32 %v3706_v1, 0.0 }
 0x460   : > { %v3711_v26 = vpop.f32.mrf.mxu0  ;;  %3950 = vmatmul.mubr.bf16.gmra.mxu0 %v3404_v34 }
 0x461   : > { %v3987_v4 = vmax.f32 %v3708_v13, 0.0  ;;  %v4100_v61 = vpack.c.bf16 %v3986_v56, %v3984_v37  ;;  %v3712_v44 = vadd.f32 %v3711_v26, %v9478_v53  ;;  %5130 = vmatpush2.bf16.msra.mxu0 %v8408_v36 }
 0x462   : > { %v3713_v12 = vpop.f32.mrf.mxu0  ;;  %6665 = vmatprep.subr.bf16.mxu0 %v11090_v9 }
 0x463   : > { %v4101_v18 = vpack.c.bf16 %v3987_v4, %v3985_v52  ;;  %v3714_v62 = vadd.f32 %v3713_v12, %v9473_v30  ;;  %v3988_v55 = vmax.f32 %v3712_v44, 0.0 }
 0x464   : > { %v3715_v27 = vpop.f32.mrf.mxu0 }
 0x465   : > { %v3716_v11 = vadd.f32 %v3715_v27, %v9478_v53  ;;  %4445 = vmatprep.mubr.bf16.mxu1 %v4101_v18  ;;  %v3989_v19 = vmax.f32 %v3714_v62, 0.0 }
 0x466   : > { %v3717_v46 = vpop.f32.mrf.mxu0  ;;  %4446 = vmatmul.mubr.bf16.gmra.mxu1 %v4100_v61 }
 0x467   : > { %v3718_v45 = vadd.f32 %v3717_v46, %v9473_v30  ;;  %v3990_v32 = vmax.f32 %v3716_v11, 0.0 }
 0x468   : > { %v3721_v59 = vpop.f32.mrf.mxu0 }
 0x469   : > { %v3991_v28 = vmax.f32 %v3718_v45, 0.0  ;;  %v4102_v1 = vpack.c.bf16 %v3990_v32, %v3988_v55  ;;  %v3722_v0 = vadd.f32 %v3721_v59, %v9478_v53 }
 0x46a   : > { %v3723_v35 = vpop.f32.mrf.mxu0 }
 0x46b   : > { %v4103_v25 = vpack.c.bf16 %v3991_v28, %v3989_v19  ;;  %v3724_v50 = vadd.f32 %v3723_v35, %v9473_v30  ;;  %v3992_v37 = vmax.f32 %v3722_v0, 0.0 }
 0x46c   : > { %v3725_v40 = vpop.f32.mrf.mxu0 }
 0x46d   : > { %v3726_v41 = vadd.f32 %v3725_v40, %v9478_v53  ;;  %4455 = vmatprep.mubr.bf16.mxu1 %v4103_v25  ;;  %v3993_v52 = vmax.f32 %v3724_v50, 0.0 }
 0x46e   : > { %v3727_v34 = vpop.f32.mrf.mxu0  ;;  %4456 = vmatmul.mubr.bf16.gmra.mxu1 %v4102_v1 }
 0x46f   : > { %v3728_v13 = vadd.f32 %v3727_v34, %v9473_v30  ;;  %v3994_v56 = vmax.f32 %v3726_v41, 0.0 }
 0x470   : > { %v3731_v26 = vpop.f32.mrf.mxu0 }
 0x471   : > { %v3995_v4 = vmax.f32 %v3728_v13, 0.0  ;;  %v4104_v61 = vpack.c.bf16 %v3994_v56, %v3992_v37  ;;  %v3732_v44 = vadd.f32 %v3731_v26, %v9478_v53 }
 0x472   : > { %v3733_v12 = vpop.f32.mrf.mxu0 }
 0x473   : > { %v4105_v18 = vpack.c.bf16 %v3995_v4, %v3993_v52  ;;  %v3734_v62 = vadd.f32 %v3733_v12, %v9473_v30  ;;  %v3996_v55 = vmax.f32 %v3732_v44, 0.0 }
 0x474   : > { %v3735_v27 = vpop.f32.mrf.mxu0 }
 0x475   : > { %v3736_v11 = vadd.f32 %v3735_v27, %v9478_v53  ;;  %4465 = vmatprep.mubr.bf16.mxu1 %v4105_v18  ;;  %v3997_v19 = vmax.f32 %v3734_v62, 0.0 }
 0x476   : > { %v3737_v46 = vpop.f32.mrf.mxu0  ;;  %4466 = vmatmul.mubr.bf16.gmra.mxu1 %v4104_v61 }
 0x477   : > { %v3738_v45 = vadd.f32 %v3737_v46, %v9473_v30  ;;  %v3998_v32 = vmax.f32 %v3736_v11, 0.0 }
 0x478   : > { %v3741_v59 = vpop.f32.mrf.mxu0 }
 0x479   : > { %v3999_v28 = vmax.f32 %v3738_v45, 0.0  ;;  %v4106_v1 = vpack.c.bf16 %v3998_v32, %v3996_v55  ;;  %v3742_v0 = vadd.f32 %v3741_v59, %v9478_v53 }
 0x47a   : > { %v3743_v35 = vpop.f32.mrf.mxu0 }
 0x47b   : > { %v4107_v25 = vpack.c.bf16 %v3999_v28, %v3997_v19  ;;  %v3744_v50 = vadd.f32 %v3743_v35, %v9473_v30  ;;  %v4000_v37 = vmax.f32 %v3742_v0, 0.0 }
 0x47c   : > { %v3745_v40 = vpop.f32.mrf.mxu0 }
 0x47d   : > { %v3746_v41 = vadd.f32 %v3745_v40, %v9478_v53  ;;  %4475 = vmatprep.mubr.bf16.mxu1 %v4107_v25  ;;  %v4001_v52 = vmax.f32 %v3744_v50, 0.0 }
 0x47e   : > { %v3747_v34 = vpop.f32.mrf.mxu0  ;;  %4476 = vmatmul.mubr.bf16.gmra.mxu1 %v4106_v1 }
 0x47f   : > { %v3748_v13 = vadd.f32 %v3747_v34, %v9473_v30  ;;  %v4002_v56 = vmax.f32 %v3746_v41, 0.0 }
 0x480   : > { %v3751_v26 = vpop.f32.mrf.mxu0 }
 0x481   : > { %v4003_v4 = vmax.f32 %v3748_v13, 0.0  ;;  %v4108_v61 = vpack.c.bf16 %v4002_v56, %v4000_v37  ;;  %v3752_v2 = vadd.f32 %v3751_v26, %v9478_v53 }
 0x482   : > { %v3753_v12 = vpop.f32.mrf.mxu0 }
 0x483   : > { %v4109_v18 = vpack.c.bf16 %v4003_v4, %v4001_v52  ;;  %v3754_v62 = vadd.f32 %v3753_v12, %v9473_v30  ;;  %v4004_v28 = vmax.f32 %v3752_v2, 0.0 }
 0x484   : > { %v3755_v27 = vpop.f32.mrf.mxu0 }
 0x485   : > { %v3756_v11 = vadd.f32 %v3755_v27, %v9478_v53  ;;  %4485 = vmatprep.mubr.bf16.mxu1 %v4109_v18  ;;  %v4005_v45 = vmax.f32 %v3754_v62, 0.0 }
 0x486   : > { %v3757_v36 = vpop.f32.mrf.mxu0  ;;  %4486 = vmatmul.mubr.bf16.gmra.mxu1 %v4108_v61 }
 0x487   : > { %v3758_v46 = vadd.f32 %v3757_v36, %v9473_v30  ;;  %v4006_v59 = vmax.f32 %v3756_v11, 0.0 }
 0x488   : > { %v3761_v44 = vpop.f32.mrf.mxu0 }
 0x489   : > { %v4007_v19 = vmax.f32 %v3758_v46, 0.0  ;;  %v4110_v25 = vpack.c.bf16 %v4006_v59, %v4004_v28  ;;  %v3762_v41 = vadd.f32 %v3761_v44, %v9478_v53 }
 0x48a   : > { %v3763_v32 = vpop.f32.mrf.mxu0 }
 0x48b   : > { %v4111_v35 = vpack.c.bf16 %v4007_v19, %v4005_v45  ;;  %v3764_v40 = vadd.f32 %v3763_v32, %v9473_v30  ;;  %v4008_v4 = vmax.f32 %v3762_v41, 0.0 }
 0x48c   : > { %v3765_v55 = vpop.f32.mrf.mxu0 }
 0x48d   : > { %v3766_v1 = vadd.f32 %v3765_v55, %v9478_v53  ;;  %4495 = vmatprep.mubr.bf16.mxu1 %v4111_v35  ;;  %v4009_v13 = vmax.f32 %v3764_v40, 0.0 }
 0x48e   : > { %v3767_v50 = vpop.f32.mrf.mxu0  ;;  %4496 = vmatmul.mubr.bf16.gmra.mxu1 %v4110_v25 }
 0x48f   : > { %v3768_v34 = vadd.f32 %v3767_v50, %v9473_v30  ;;  %v4010_v26 = vmax.f32 %v3766_v1, 0.0 }
 0x490   : > { %v3771_v0 = vpop.f32.mrf.mxu0 }
 0x491   : > { %v4011_v52 = vmax.f32 %v3768_v34, 0.0  ;;  %v4112_v18 = vpack.c.bf16 %v4010_v26, %v4008_v4  ;;  %v3772_v11 = vadd.f32 %v3771_v0, %v9478_v53 }
 0x492   : > { %v3773_v56 = vpop.f32.mrf.mxu0 }
 0x493   : > { %v4113_v12 = vpack.c.bf16 %v4011_v52, %v4009_v13  ;;  %v3774_v27 = vadd.f32 %v3773_v56, %v9473_v30  ;;  %v4012_v19 = vmax.f32 %v3772_v11, 0.0 }
 0x494   : > { %v3775_v37 = vpop.f32.mrf.mxu0 }
 0x495   : > { %v3776_v61 = vadd.f32 %v3775_v37, %v9478_v53  ;;  %4505 = vmatprep.mubr.bf16.mxu1 %v4113_v12  ;;  %v4013_v46 = vmax.f32 %v3774_v27, 0.0 }
 0x496   : > { %v3777_v62 = vpop.f32.mrf.mxu0  ;;  %4506 = vmatmul.mubr.bf16.gmra.mxu1 %v4112_v18 }
 0x497   : > { %v3778_v36 = vadd.f32 %v3777_v62, %v9473_v30  ;;  %v4014_v44 = vmax.f32 %v3776_v61, 0.0 }
 0x498   : > { %v3781_v2 = vpop.f32.mrf.mxu0 }
 0x499   : > { %v4015_v45 = vmax.f32 %v3778_v36, 0.0  ;;  %v4114_v35 = vpack.c.bf16 %v4014_v44, %v4012_v19  ;;  %v3782_v1 = vadd.f32 %v3781_v2, %v9478_v53 }
 0x49a   : > { %v3783_v59 = vpop.f32.mrf.mxu0 }
 0x49b   : > { %v4115_v32 = vpack.c.bf16 %v4015_v45, %v4013_v46  ;;  %v3784_v55 = vadd.f32 %v3783_v59, %v9473_v30  ;;  %v4016_v52 = vmax.f32 %v3782_v1, 0.0 }
 0x49c   : > { %v3785_v28 = vpop.f32.mrf.mxu0 }
 0x49d   : > { %v3786_v25 = vadd.f32 %v3785_v28, %v9478_v53  ;;  %4515 = vmatprep.mubr.bf16.mxu1 %v4115_v32  ;;  %v4017_v34 = vmax.f32 %v3784_v55, 0.0 }
 0x49e   : > { %v3787_v40 = vpop.f32.mrf.mxu0  ;;  %4516 = vmatmul.mubr.bf16.gmra.mxu1 %v4114_v35 }
 0x49f   : > { %v3788_v50 = vadd.f32 %v3787_v40, %v9473_v30  ;;  %v4018_v0 = vmax.f32 %v3786_v25, 0.0 }
 0x4a0   : > { %v3791_v41 = vpop.f32.mrf.mxu0 }
 0x4a1   : > { %v4019_v13 = vmax.f32 %v3788_v50, 0.0  ;;  %v4116_v12 = vpack.c.bf16 %v4018_v0, %v4016_v52  ;;  %v3792_v61 = vadd.f32 %v3791_v41, %v9478_v53 }
 0x4a2   : > { %v3793_v26 = vpop.f32.mrf.mxu0 }
 0x4a3   : > { %v4117_v56 = vpack.c.bf16 %v4019_v13, %v4017_v34  ;;  %v3794_v37 = vadd.f32 %v3793_v26, %v9473_v30  ;;  %v4020_v45 = vmax.f32 %v3792_v61, 0.0 }
 0x4a4   : > { %v3795_v4 = vpop.f32.mrf.mxu0 }
 0x4a5   : > { %v3796_v18 = vadd.f32 %v3795_v4, %v9478_v53  ;;  %4525 = vmatprep.mubr.bf16.mxu1 %v4117_v56  ;;  %v4021_v36 = vmax.f32 %v3794_v37, 0.0 }
 0x4a6   : > { %v3797_v27 = vpop.f32.mrf.mxu0  ;;  %4526 = vmatmul.mubr.bf16.gmra.mxu1 %v4116_v12 }
 0x4a7   : > { %v3798_v62 = vadd.f32 %v3797_v27, %v9473_v30  ;;  %v4022_v2 = vmax.f32 %v3796_v18, 0.0 }
 0x4a8   : > { %v3801_v11 = vpop.f32.mrf.mxu0 }
 0x4a9   : > { %v4023_v46 = vmax.f32 %v3798_v62, 0.0  ;;  %v4118_v32 = vpack.c.bf16 %v4022_v2, %v4020_v45  ;;  %v3802_v25 = vadd.f32 %v3801_v11, %v9478_v53 }
 0x4aa   : > { %v3803_v44 = vpop.f32.mrf.mxu0 }
 0x4ab   : > { %v4119_v59 = vpack.c.bf16 %v4023_v46, %v4021_v36  ;;  %v3804_v28 = vadd.f32 %v3803_v44, %v9473_v30  ;;  %v4024_v13 = vmax.f32 %v3802_v25, 0.0 }
 0x4ac   : > { %v3805_v19 = vpop.f32.mrf.mxu0 }
 0x4ad   : > { %v3806_v35 = vadd.f32 %v3805_v19, %v9478_v53  ;;  %4535 = vmatprep.mubr.bf16.mxu1 %v4119_v59  ;;  %v4025_v50 = vmax.f32 %v3804_v28, 0.0 }
 0x4ae   : > { %v3807_v55 = vpop.f32.mrf.mxu0  ;;  %4536 = vmatmul.mubr.bf16.gmra.mxu1 %v4118_v32 }
 0x4af   : > { %v3808_v40 = vadd.f32 %v3807_v55, %v9473_v30  ;;  %v4026_v41 = vmax.f32 %v3806_v35, 0.0 }
 0x4b0   : > { %v3811_v1 = vpop.f32.mrf.mxu0 }
 0x4b1   : > { %v4027_v34 = vmax.f32 %v3808_v40, 0.0  ;;  %v4120_v56 = vpack.c.bf16 %v4026_v41, %v4024_v13  ;;  %v3812_v18 = vadd.f32 %v3811_v1, %v9478_v53 }
 0x4b2   : > { %v3813_v0 = vpop.f32.mrf.mxu0 }
 0x4b3   : > { %v4121_v26 = vpack.c.bf16 %v4027_v34, %v4025_v50  ;;  %v3814_v4 = vadd.f32 %v3813_v0, %v9473_v30  ;;  %v4028_v46 = vmax.f32 %v3812_v18, 0.0 }
 0x4b4   : > { %v3815_v52 = vpop.f32.mrf.mxu0 }
 0x4b5   : > { %v3816_v12 = vadd.f32 %v3815_v52, %v9478_v53  ;;  %4545 = vmatprep.mubr.bf16.mxu1 %v4121_v26  ;;  %v4029_v62 = vmax.f32 %v3814_v4, 0.0 }
 0x4b6   : > { %v3817_v37 = vpop.f32.mrf.mxu0  ;;  %4546 = vmatmul.mubr.bf16.gmra.mxu1 %v4120_v56 }
 0x4b7   : > { %v3818_v27 = vadd.f32 %v3817_v37, %v9473_v30  ;;  %v4030_v11 = vmax.f32 %v3816_v12, 0.0 }
 0x4b8   : > { %v3821_v61 = vpop.f32.mrf.mxu0 }
 0x4b9   : > { %v4031_v36 = vmax.f32 %v3818_v27, 0.0  ;;  %v4122_v59 = vpack.c.bf16 %v4030_v11, %v4028_v46  ;;  %v3822_v35 = vadd.f32 %v3821_v61, %v9478_v53 }
 0x4ba   : > { %v3823_v2 = vpop.f32.mrf.mxu0 }
 0x4bb   : > { %v4123_v44 = vpack.c.bf16 %v4031_v36, %v4029_v62  ;;  %v3824_v19 = vadd.f32 %v3823_v2, %v9473_v30  ;;  %v4032_v34 = vmax.f32 %v3822_v35, 0.0 }
 0x4bc   : > { %v3825_v45 = vpop.f32.mrf.mxu0 }
 0x4bd   : > { %v3826_v32 = vadd.f32 %v3825_v45, %v9478_v53  ;;  %4555 = vmatprep.mubr.bf16.mxu1 %v4123_v44  ;;  %v4033_v40 = vmax.f32 %v3824_v19, 0.0 }
 0x4be   : > { %v3827_v28 = vpop.f32.mrf.mxu0  ;;  %4556 = vmatmul.mubr.bf16.gmra.mxu1 %v4122_v59 }
 0x4bf   : > { %v3828_v55 = vadd.f32 %v3827_v28, %v9473_v30  ;;  %v4034_v1 = vmax.f32 %v3826_v32, 0.0 }
 0x4c0   : > { %v3831_v25 = vpop.f32.mrf.mxu0 }
 0x4c1   : > { %v4035_v50 = vmax.f32 %v3828_v55, 0.0  ;;  %v4124_v26 = vpack.c.bf16 %v4034_v1, %v4032_v34  ;;  %v3832_v12 = vadd.f32 %v3831_v25, %v9478_v53 }
 0x4c2   : > { %v3833_v41 = vpop.f32.mrf.mxu0 }
 0x4c3   : > { %v4125_v0 = vpack.c.bf16 %v4035_v50, %v4033_v40  ;;  %v3834_v52 = vadd.f32 %v3833_v41, %v9473_v30  ;;  %v4036_v36 = vmax.f32 %v3832_v12, 0.0 }
 0x4c4   : > { %v3835_v13 = vpop.f32.mrf.mxu0 }
 0x4c5   : > { %v3836_v56 = vadd.f32 %v3835_v13, %v9478_v53  ;;  %4565 = vmatprep.mubr.bf16.mxu1 %v4125_v0  ;;  %v4037_v27 = vmax.f32 %v3834_v52, 0.0 }
 0x4c6   : > { %v3837_v4 = vpop.f32.mrf.mxu0  ;;  %4566 = vmatmul.mubr.bf16.gmra.mxu1 %v4124_v26 }
 0x4c7   : > { %v3838_v37 = vadd.f32 %v3837_v4, %v9473_v30  ;;  %v4038_v61 = vmax.f32 %v3836_v56, 0.0 }
 0x4c8   : > { %v3841_v18 = vpop.f32.mrf.mxu0 }
 0x4c9   : > { %v4039_v62 = vmax.f32 %v3838_v37, 0.0  ;;  %v4126_v44 = vpack.c.bf16 %v4038_v61, %v4036_v36  ;;  %v3842_v32 = vadd.f32 %v3841_v18, %v9478_v53 }
 0x4ca   : > { %v3843_v11 = vpop.f32.mrf.mxu0 }
 0x4cb   : > { %v4127_v2 = vpack.c.bf16 %v4039_v62, %v4037_v27  ;;  %v3844_v45 = vadd.f32 %v3843_v11, %v9473_v30  ;;  %v4040_v50 = vmax.f32 %v3842_v32, 0.0 }
 0x4cc   : > { %v3845_v46 = vpop.f32.mrf.mxu0 }
 0x4cd   : > { %v3846_v59 = vadd.f32 %v3845_v46, %v9478_v53  ;;  %4575 = vmatprep.mubr.bf16.mxu1 %v4127_v2  ;;  %v4041_v55 = vmax.f32 %v3844_v45, 0.0 }
 0x4ce   : > { %v3847_v19 = vpop.f32.mrf.mxu0  ;;  %4576 = vmatmul.mubr.bf16.gmra.mxu1 %v4126_v44 }
 0x4cf   : > { %v3848_v28 = vadd.f32 %v3847_v19, %v9473_v30  ;;  %v4042_v25 = vmax.f32 %v3846_v59, 0.0 }
 0x4d0   : > { %v3851_v35 = vpop.f32.mrf.mxu0 }
 0x4d1   : > { %v4043_v40 = vmax.f32 %v3848_v28, 0.0  ;;  %v4128_v0 = vpack.c.bf16 %v4042_v25, %v4040_v50  ;;  %v3852_v56 = vadd.f32 %v3851_v35, %v9478_v53 }
 0x4d2   : > { %v3853_v1 = vpop.f32.mrf.mxu0 }
 0x4d3   : > { %v4129_v41 = vpack.c.bf16 %v4043_v40, %v4041_v55  ;;  %v3854_v13 = vadd.f32 %v3853_v1, %v9473_v30  ;;  %v4044_v62 = vmax.f32 %v3852_v56, 0.0 }
 0x4d4   : > { %v3855_v34 = vpop.f32.mrf.mxu0 }
 0x4d5   : > { %v3856_v26 = vadd.f32 %v3855_v34, %v9478_v53  ;;  %4585 = vmatprep.mubr.bf16.mxu1 %v4129_v41  ;;  %v4045_v37 = vmax.f32 %v3854_v13, 0.0 }
 0x4d6   : > { %v3857_v52 = vpop.f32.mrf.mxu0  ;;  %4586 = vmatmul.mubr.bf16.gmra.mxu1 %v4128_v0 }
 0x4d7   : > { %v3858_v4 = vadd.f32 %v3857_v52, %v9473_v30  ;;  %v4046_v18 = vmax.f32 %v3856_v26, 0.0 }
 0x4d8   : > { %v3861_v12 = vpop.f32.mrf.mxu0 }
 0x4d9   : > { %v4047_v27 = vmax.f32 %v3858_v4, 0.0  ;;  %v4130_v2 = vpack.c.bf16 %v4046_v18, %v4044_v62  ;;  %v3862_v59 = vadd.f32 %v3861_v12, %v9478_v53 }
 0x4da   : > { %v3863_v61 = vpop.f32.mrf.mxu0 }
 0x4db   : > { %v4131_v11 = vpack.c.bf16 %v4047_v27, %v4045_v37  ;;  %v3864_v46 = vadd.f32 %v3863_v61, %v9473_v30  ;;  %v4048_v40 = vmax.f32 %v3862_v59, 0.0 }
 0x4dc   : > { %v3865_v36 = vpop.f32.mrf.mxu0 }
 0x4dd   : > { %v3866_v44 = vadd.f32 %v3865_v36, %v9478_v53  ;;  %4595 = vmatprep.mubr.bf16.mxu1 %v4131_v11  ;;  %v4049_v28 = vmax.f32 %v3864_v46, 0.0 }
 0x4de   : > { %v3867_v45 = vpop.f32.mrf.mxu0  ;;  %4596 = vmatmul.mubr.bf16.gmra.mxu1 %v4130_v2 }
 0x4df   : > { %v3868_v19 = vadd.f32 %v3867_v45, %v9473_v30  ;;  %v4050_v35 = vmax.f32 %v3866_v44, 0.0 }
 0x4e0   : > { %v3871_v32 = vpop.f32.mrf.mxu0 }
 0x4e1   : > { %v4051_v55 = vmax.f32 %v3868_v19, 0.0  ;;  %v4132_v41 = vpack.c.bf16 %v4050_v35, %v4048_v40  ;;  %v3872_v26 = vadd.f32 %v3871_v32, %v9478_v53 }
 0x4e2   : > { %v3873_v25 = vpop.f32.mrf.mxu0 }
 0x4e3   : > { %v4133_v1 = vpack.c.bf16 %v4051_v55, %v4049_v28  ;;  %v3874_v34 = vadd.f32 %v3873_v25, %v9473_v30  ;;  %v4052_v27 = vmax.f32 %v3872_v26, 0.0 }
 0x4e4   : > { %v3875_v50 = vpop.f32.mrf.mxu0 }
 0x4e5   : > { %v3876_v0 = vadd.f32 %v3875_v50, %v9478_v53  ;;  %4605 = vmatprep.mubr.bf16.mxu1 %v4133_v1  ;;  %v4053_v4 = vmax.f32 %v3874_v34, 0.0 }
 0x4e6   : > { %v3877_v13 = vpop.f32.mrf.mxu0  ;;  %4606 = vmatmul.mubr.bf16.gmra.mxu1 %v4132_v41 }
 0x4e7   : > { %v3878_v52 = vadd.f32 %v3877_v13, %v9473_v30  ;;  %v4054_v12 = vmax.f32 %v3876_v0, 0.0  ;;  %v4187_v0 = vsub.s32 4, %v8869_v21 }
 0x4e8   : > { %v3881_v56 = vpop.f32.mrf.mxu0 }
 0x4e9   : > { %v4055_v37 = vmax.f32 %v3878_v52, 0.0  ;;  %v4134_v11 = vpack.c.bf16 %v4054_v12, %v4052_v27  ;;  %v3882_v44 = vadd.f32 %v3881_v56, %v9478_v53 }
 0x4ea   : > { %v3883_v18 = vpop.f32.mrf.mxu0 }
 0x4eb   : > { %v4135_v61 = vpack.c.bf16 %v4055_v37, %v4053_v4  ;;  %v3884_v36 = vadd.f32 %v3883_v18, %v9473_v30  ;;  %v4056_v55 = vmax.f32 %v3882_v44, 0.0  ;;  %v8457_v18 = vld [vmem:[%s11071_s4 + $0x8] sm:$0x3f] }
 0x4ec   : > { %v3885_v62 = vpop.f32.mrf.mxu0  ;;  %v9616_v27 = vrot.slane %v8457_v18, %v4187_v0 }
 0x4ed   : > { %v3886_v2 = vadd.f32 %v3885_v62, %v9478_v53  ;;  %4615 = vmatprep.mubr.bf16.mxu1 %v4135_v61  ;;  %v4057_v19 = vmax.f32 %v3884_v36, 0.0  ;;  %v8458_v62 = vld [vmem:[%s11071_s4] sm:$0x3f] }
 0x4ee   : > { %v3887_v46 = vpop.f32.mrf.mxu0  ;;  %4616 = vmatmul.mubr.bf16.gmra.mxu1 %v4134_v11  ;;  %v9621_v11 = vrot.slane %v8458_v62, %v4187_v0 }
 0x4ef   : > { %v3888_v45 = vadd.f32 %v3887_v46, %v9473_v30  ;;  %v4058_v32 = vmax.f32 %v3886_v2, 0.0 }
 0x4f0   : > { %v3891_v59 = vpop.f32.mrf.mxu0 }
 0x4f1   : > { %v4059_v28 = vmax.f32 %v3888_v45, 0.0  ;;  %v4136_v1 = vpack.c.bf16 %v4058_v32, %v4056_v55  ;;  %v3892_v13 = vadd.f32 %v3891_v59, %v9478_v53 }
 0x4f2   : > { %v3893_v35 = vpop.f32.mrf.mxu0 }
 0x4f3   : > { %v4137_v25 = vpack.c.bf16 %v4059_v28, %v4057_v19  ;;  %v3894_v50 = vadd.f32 %v3893_v35, %v9473_v30  ;;  %v4060_v36 = vmax.f32 %v3892_v13, 0.0 }
 0x4f4   : > { %v3895_v40 = vpop.f32.mrf.mxu0 }
 0x4f5   : > { %v3896_v41 = vadd.f32 %v3895_v40, %v9478_v53  ;;  %4625 = vmatprep.mubr.bf16.mxu1 %v4137_v25  ;;  %v4061_v56 = vmax.f32 %v3894_v50, 0.0 }
 0x4f6   : > { %v3897_v34 = vpop.f32.mrf.mxu0  ;;  %v4387_v52 = vpop.f32.mrf.mxu1  ;;  %4626 = vmatmul.mubr.bf16.gmra.mxu1 %v4136_v1 }
 0x4f7   : > { %v3898_v26 = vadd.f32 %v3897_v34, %v9473_v30  ;;  %v4062_v4 = vmax.f32 %v3896_v41, 0.0  ;;  %v4388_v35 = vadd.f32 %v4387_v52, %v9621_v11 }
 0x4f8   : > { %v3901_v37 = vpop.f32.mrf.mxu0  ;;  %v4389_v61 = vpop.f32.mrf.mxu1 }
 0x4f9   : > { %v4063_v12 = vmax.f32 %v3898_v26, 0.0  ;;  %v4138_v59 = vpack.c.bf16 %v4062_v4, %v4060_v36  ;;  %v4390_v19 = vadd.f32 %v4389_v61, %v9616_v27  ;;  %v3902_v41 = vadd.f32 %v3901_v37, %v9478_v53 }
 0x4fa   : > { %v3903_v2 = vpop.f32.mrf.mxu0  ;;  %v4391_v46 = vpop.f32.mrf.mxu1 }
 0x4fb   : > { %v4139_v44 = vpack.c.bf16 %v4063_v12, %v4061_v56  ;;  %v4392_v45 = vadd.f32 %v4391_v46, %v9621_v11  ;;  %v3904_v40 = vadd.f32 %v3903_v2, %v9473_v30  ;;  %v4707_v26 = vmax.f32 %v4390_v19, 0.0 }
 0x4fc   : > { %v3905_v32 = vpop.f32.mrf.mxu0  ;;  %v4393_v28 = vpop.f32.mrf.mxu1  ;;  %v4706_v12 = vmax.f32 %v4388_v35, 0.0  ;;  %v4064_v2 = vmax.f32 %v3902_v41, 0.0 }
 0x4fd   : > { %4635 = vmatprep.mubr.bf16.mxu1 %v4139_v44  ;;  %v3906_v55 = vadd.f32 %v3905_v32, %v9478_v53  ;;  %v4394_v25 = vadd.f32 %v4393_v28, %v9616_v27  ;;  %v4708_v34 = vmax.f32 %v4392_v45, 0.0  ;;  %v4065_v61 = vmax.f32 %v3904_v40, 0.0 }
 0x4fe   : > { %v3907_v1 = vpop.f32.mrf.mxu0  ;;  %v4397_v50 = vpop.f32.mrf.mxu1  ;;  %4636 = vmatmul.mubr.bf16.gmra.mxu1 %v4138_v59 }
 0x4ff   : > { %v4709_v0 = vmax.f32 %v4394_v25, 0.0  ;;  %v3908_v13 = vadd.f32 %v3907_v1, %v9473_v30  ;;  %v4066_v52 = vmax.f32 %v3906_v55, 0.0  ;;  %v4834_v44 = vpack.c.bf16 %v4708_v34, %v4706_v12 }
 0x500   : > { %v3911_v56 = vpop.f32.mrf.mxu0  ;;  %v4399_v4 = vpop.f32.mrf.mxu1  ;;  %v4398_v25 = vadd.f32 %v4397_v50, %v9621_v11 }
 0x501   : > { %v4067_v18 = vmax.f32 %v3908_v13, 0.0  ;;  %v4835_v46 = vpack.c.bf16 %v4709_v0, %v4707_v26  ;;  %v4400_v37 = vadd.f32 %v4399_v4, %v9616_v27  ;;  %v4140_v19 = vpack.c.bf16 %v4066_v52, %v4064_v2 }
 0x502   : > { %v3913_v62 = vpop.f32.mrf.mxu0  ;;  %v4401_v36 = vpop.f32.mrf.mxu1  ;;  %v3912_v34 = vadd.f32 %v3911_v56, %v9478_v53  ;;  %v4710_v52 = vmax.f32 %v4398_v25, 0.0 }
 0x503   : > { %v4402_v59 = vadd.f32 %v4401_v36, %v9621_v11  ;;  %5131 = vmatprep.mubr.bf16.mxu0 %v4835_v46  ;;  %v4141_v28 = vpack.c.bf16 %v4067_v18, %v4065_v61  ;;  %v3914_v40 = vadd.f32 %v3913_v62, %v9473_v30  ;;  %v4711_v4 = vmax.f32 %v4400_v37, 0.0  ;;  %v8418_v62 = vld [vmem:[%s11076_s9 + $0x38] sm:$0xff]  }
 0x504   : > { %v3915_v45 = vpop.f32.mrf.mxu0  ;;  %v4403_v32 = vpop.f32.mrf.mxu1  ;;  %5132 = vmatmul.mubr.bf16.vlgmr.msra.gmra.mxu0 %v4834_v44  ;;  %v4068_v56 = vmax.f32 %v3912_v34, 0.0 }
 0x505   : > { %v3916_v35 = vadd.f32 %v3915_v45, %v9478_v53  ;;  %v4404_v55 = vadd.f32 %v4403_v32, %v9616_v27  ;;  %4645 = vmatprep.mubr.bf16.mxu1 %v4141_v28  ;;  %v4712_v0 = vmax.f32 %v4402_v59, 0.0  ;;  %v4069_v36 = vmax.f32 %v3914_v40, 0.0  ;;  %6666 = vmatpush1.bf16.msra.mxu0 %v8418_v62 }
 0x506   : > { %v3917_v1 = vpop.f32.mrf.mxu0  ;;  %v4407_v41 = vpop.f32.mrf.mxu1  ;;  %4646 = vmatmul.mubr.bf16.gmra.mxu1 %v4140_v19  ;;  %6667 = vmatprep.subr.bf16.mxu0 %v11090_v9 }
 0x507   : > { %v4713_v13 = vmax.f32 %v4404_v55, 0.0  ;;  %v3918_v26 = vadd.f32 %v3917_v1, %v9473_v30  ;;  %v4070_v18 = vmax.f32 %v3916_v35, 0.0  ;;  %v4836_v59 = vpack.c.bf16 %v4712_v0, %v4710_v52 }
 0x508   : > { %v3921_v12 = vpop.f32.mrf.mxu0  ;;  %v4409_v50 = vpop.f32.mrf.mxu1  ;;  %v4408_v35 = vadd.f32 %v4407_v41, %v9621_v11 }
 0x509   : > { %v4071_v61 = vmax.f32 %v3918_v26, 0.0  ;;  %v4837_v44 = vpack.c.bf16 %v4713_v13, %v4711_v4  ;;  %v4410_v37 = vadd.f32 %v4409_v50, %v9616_v27  ;;  %v4142_v25 = vpack.c.bf16 %v4070_v18, %v4068_v56 }
 0x50a   : > { %v3923_v46 = vpop.f32.mrf.mxu0  ;;  %v4411_v2 = vpop.f32.mrf.mxu1  ;;  %v3922_v13 = vadd.f32 %v3921_v12, %v9478_v53 }
 0x50b   : > { %v4412_v45 = vadd.f32 %v4411_v2, %v9621_v11  ;;  %5141 = vmatprep.mubr.bf16.mxu0 %v4837_v44  ;;  %v4143_v19 = vpack.c.bf16 %v4071_v61, %v4069_v36  ;;  %v3924_v1 = vadd.f32 %v3923_v46, %v9473_v30  ;;  %v4715_v52 = vmax.f32 %v4410_v37, 0.0 }
 0x50c   : > { %v3925_v32 = vpop.f32.mrf.mxu0  ;;  %v4413_v28 = vpop.f32.mrf.mxu1  ;;  %5142 = vmatmul.mubr.bf16.gmra.mxu0 %v4836_v59  ;;  %v4714_v61 = vmax.f32 %v4408_v35, 0.0  ;;  %v4072_v59 = vmax.f32 %v3922_v13, 0.0 }
 0x50d   : > { %v3926_v55 = vadd.f32 %v3925_v32, %v9478_v53  ;;  %v4414_v40 = vadd.f32 %v4413_v28, %v9616_v27  ;;  %4655 = vmatprep.mubr.bf16.mxu1 %v4143_v19  ;;  %v4716_v26 = vmax.f32 %v4412_v45, 0.0  ;;  %v4073_v2 = vmax.f32 %v3924_v1, 0.0 }
 0x50e   : > { %v3927_v34 = vpop.f32.mrf.mxu0  ;;  %v4417_v0 = vpop.f32.mrf.mxu1  ;;  %4656 = vmatmul.mubr.bf16.gmra.mxu1 %v4142_v25 }
 0x50f   : > { %v4717_v4 = vmax.f32 %v4414_v40, 0.0  ;;  %v3928_v50 = vadd.f32 %v3927_v34, %v9473_v30  ;;  %v4074_v62 = vmax.f32 %v3926_v55, 0.0  ;;  %v4838_v32 = vpack.c.bf16 %v4716_v26, %v4714_v61 }
 0x510   : > { %v3931_v18 = vpop.f32.mrf.mxu0  ;;  %v4419_v41 = vpop.f32.mrf.mxu1  ;;  %v4418_v40 = vadd.f32 %v4417_v0, %v9621_v11 }
 0x511   : > { %v4075_v36 = vmax.f32 %v3928_v50, 0.0  ;;  %v4839_v46 = vpack.c.bf16 %v4717_v4, %v4715_v52  ;;  %v4420_v12 = vadd.f32 %v4419_v41, %v9616_v27  ;;  %v4144_v37 = vpack.c.bf16 %v4074_v62, %v4072_v59 }
 0x512   : > { %v3933_v44 = vpop.f32.mrf.mxu0  ;;  %v4421_v56 = vpop.f32.mrf.mxu1  ;;  %v3932_v26 = vadd.f32 %v3931_v18, %v9478_v53  ;;  %v4718_v62 = vmax.f32 %v4418_v40, 0.0 }
 0x513   : > { %v4422_v28 = vadd.f32 %v4421_v56, %v9621_v11  ;;  %5151 = vmatprep.mubr.bf16.mxu0 %v4839_v46  ;;  %v4145_v25 = vpack.c.bf16 %v4075_v36, %v4073_v2  ;;  %v3934_v1 = vadd.f32 %v3933_v44, %v9473_v30  ;;  %v4719_v41 = vmax.f32 %v4420_v12, 0.0  ;;  %v8421_v44 = vld [vmem:[%s11076_s9 + $0x30] sm:$0xff]  }
 0x514   : > { %v3935_v45 = vpop.f32.mrf.mxu0  ;;  %v4423_v19 = vpop.f32.mrf.mxu1  ;;  %5152 = vmatmul.mubr.bf16.gmra.mxu0 %v4838_v32  ;;  %v4076_v18 = vmax.f32 %v3932_v26, 0.0 }
 0x515   : > { %v3936_v35 = vadd.f32 %v3935_v45, %v9478_v53  ;;  %v4424_v55 = vadd.f32 %v4423_v19, %v9616_v27  ;;  %4665 = vmatprep.mubr.bf16.mxu1 %v4145_v25  ;;  %v4720_v4 = vmax.f32 %v4422_v28, 0.0  ;;  %v4077_v56 = vmax.f32 %v3934_v1, 0.0  ;;  %6668 = vmatpush1.bf16.msra.mxu0 %v8421_v44 }
 0x516   : > { %v3937_v34 = vpop.f32.mrf.mxu0  ;;  %v4427_v13 = vpop.f32.mrf.mxu1  ;;  %4666 = vmatmul.mubr.bf16.gmra.mxu1 %v4144_v37  ;;  %6669 = vmatprep.subr.bf16.mxu0 %v11090_v9 }
 0x517   : > { %v4721_v50 = vmax.f32 %v4424_v55, 0.0  ;;  %v3938_v52 = vadd.f32 %v3937_v34, %v9473_v30  ;;  %v4078_v36 = vmax.f32 %v3936_v35, 0.0  ;;  %v4840_v28 = vpack.c.bf16 %v4720_v4, %v4718_v62 }
 0x518   : > { %v3941_v61 = vpop.f32.mrf.mxu0  ;;  %v4429_v0 = vpop.f32.mrf.mxu1  ;;  %v4428_v35 = vadd.f32 %v4427_v13, %v9621_v11 }
 0x519   : > { %v4079_v2 = vmax.f32 %v3938_v52, 0.0  ;;  %v4841_v32 = vpack.c.bf16 %v4721_v50, %v4719_v41  ;;  %v4430_v12 = vadd.f32 %v4429_v0, %v9616_v27  ;;  %v4146_v40 = vpack.c.bf16 %v4078_v36, %v4076_v18 }
 0x51a   : > { %v3943_v46 = vpop.f32.mrf.mxu0  ;;  %v4431_v59 = vpop.f32.mrf.mxu1  ;;  %v3942_v50 = vadd.f32 %v3941_v61, %v9478_v53 }
 0x51b   : > { %v4432_v45 = vadd.f32 %v4431_v59, %v9621_v11  ;;  %5161 = vmatprep.mubr.bf16.mxu0 %v4841_v32  ;;  %v4147_v37 = vpack.c.bf16 %v4079_v2, %v4077_v56  ;;  %v3944_v34 = vadd.f32 %v3943_v46, %v9473_v30  ;;  %v4723_v62 = vmax.f32 %v4430_v12, 0.0 }
 0x51c   : > { %v3945_v19 = vpop.f32.mrf.mxu0  ;;  %v4433_v25 = vpop.f32.mrf.mxu1  ;;  %5162 = vmatmul.mubr.bf16.gmra.mxu0 %v4840_v28  ;;  %v4722_v2 = vmax.f32 %v4428_v35, 0.0  ;;  %v4080_v28 = vmax.f32 %v3942_v50, 0.0 }
 0x51d   : > { %v3946_v55 = vadd.f32 %v3945_v19, %v9478_v53  ;;  %v4434_v1 = vadd.f32 %v4433_v25, %v9616_v27  ;;  %4675 = vmatprep.mubr.bf16.mxu1 %v4147_v37  ;;  %v4724_v52 = vmax.f32 %v4432_v45, 0.0  ;;  %v4081_v59 = vmax.f32 %v3944_v34, 0.0 }
 0x51e   : > { %v3947_v26 = vpop.f32.mrf.mxu0  ;;  %v4437_v4 = vpop.f32.mrf.mxu1  ;;  %4676 = vmatmul.mubr.bf16.gmra.mxu1 %v4146_v40 }
 0x51f   : > { %v4725_v41 = vmax.f32 %v4434_v1, 0.0  ;;  %v3948_v0 = vadd.f32 %v3947_v26, %v9473_v30  ;;  %v4082_v44 = vmax.f32 %v3946_v55, 0.0  ;;  %v4842_v19 = vpack.c.bf16 %v4724_v52, %v4722_v2 }
 0x520   : > { %v3951_v36 = vpop.f32.mrf.mxu0  ;;  %v4439_v13 = vpop.f32.mrf.mxu1  ;;  %v4438_v45 = vadd.f32 %v4437_v4, %v9621_v11 }
 0x521   : > { %v4083_v56 = vmax.f32 %v3948_v0, 0.0  ;;  %v4843_v46 = vpack.c.bf16 %v4725_v41, %v4723_v62  ;;  %v4440_v25 = vadd.f32 %v4439_v13, %v9616_v27  ;;  %v4148_v1 = vpack.c.bf16 %v4082_v44, %v4080_v28 }
 0x522   : > { %v3953_v32 = vpop.f32.mrf.mxu0  ;;  %v4441_v18 = vpop.f32.mrf.mxu1  ;;  %v3952_v41 = vadd.f32 %v3951_v36, %v9478_v53  ;;  %v4726_v13 = vmax.f32 %v4438_v45, 0.0 }
 0x523   : > { %v4442_v61 = vadd.f32 %v4441_v18, %v9621_v11  ;;  %5171 = vmatprep.mubr.bf16.mxu0 %v4843_v46  ;;  %v4149_v40 = vpack.c.bf16 %v4083_v56, %v4081_v59  ;;  %v3954_v35 = vadd.f32 %v3953_v32, %v9473_v30  ;;  %v4727_v0 = vmax.f32 %v4440_v25, 0.0  ;;  %v8424_v18 = vld [vmem:[%s11076_s9 + $0x28] sm:$0xff]  }
 0x524   : > { %v3955_v37 = vpop.f32.mrf.mxu0  ;;  %v4443_v12 = vpop.f32.mrf.mxu1  ;;  %5172 = vmatmul.mubr.bf16.gmra.mxu0 %v4842_v19  ;;  %v4084_v19 = vmax.f32 %v3952_v41, 0.0 }
 0x525   : > { %v3956_v55 = vadd.f32 %v3955_v37, %v9478_v53  ;;  %v4444_v34 = vadd.f32 %v4443_v12, %v9616_v27  ;;  %v4728_v26 = vmax.f32 %v4442_v61, 0.0  ;;  %4685 = vmatprep.mubr.bf16.mxu1 %v4149_v40  ;;  %v4085_v44 = vmax.f32 %v3954_v35, 0.0  ;;  %6670 = vmatpush1.bf16.msra.mxu0 %v8424_v18  ;;  %v8412_v18 = vld [vmem:[%s11072_s5 + $0x30] sm:$0xff]  }
 0x526   : > { %v3957_v50 = vpop.f32.mrf.mxu0  ;;  %v4447_v52 = vpop.f32.mrf.mxu1  ;;  %4686 = vmatmul.mubr.bf16.gmra.mxu1 %v4148_v1  ;;  %6671 = vmatprep.subr.bf16.mxu0 %v11090_v9 }
 0x527   : > { %v4729_v4 = vmax.f32 %v4444_v34, 0.0  ;;  %v3958_v62 = vadd.f32 %v3957_v50, %v9473_v30  ;;  %v4086_v56 = vmax.f32 %v3956_v55, 0.0  ;;  %v4844_v46 = vpack.c.bf16 %v4728_v26, %v4726_v13 }
 0x528   : > { %v4449_v2 = vpop.f32.mrf.mxu1  ;;  %v4448_v45 = vadd.f32 %v4447_v52, %v9621_v11 }
 0x529   : > { %v4087_v59 = vmax.f32 %v3958_v62, 0.0  ;;  %v4845_v32 = vpack.c.bf16 %v4729_v4, %v4727_v0  ;;  %v4450_v53 = vadd.f32 %v4449_v2, %v9616_v27  ;;  %v4150_v61 = vpack.c.bf16 %v4086_v56, %v4084_v19  ;;  %v8411_v62 = vld [vmem:[%s11072_s5 + $0x38] sm:$0xff]   ;;  %v8427_v19 = vld [vmem:[%s11076_s9 + $0x20] sm:$0xff]  }
 0x52a   : > { %v4451_v28 = vpop.f32.mrf.mxu1  ;;  %v4730_v34 = vmax.f32 %v4448_v45, 0.0  ;;  %6672 = vmatpush1.bf16.msra.mxu0 %v8427_v19 }
 0x52b   : > { %v4452_v36 = vadd.f32 %v4451_v28, %v9621_v11  ;;  %5181 = vmatprep.mubr.bf16.mxu0 %v4845_v32  ;;  %v4151_v30 = vpack.c.bf16 %v4087_v59, %v4085_v44  ;;  %v4731_v40 = vmax.f32 %v4450_v53, 0.0  ;;  %6673 = vmatprep.subr.bf16.mxu0 %v11090_v9 }
 0x52c   : > { %v4453_v25 = vpop.f32.mrf.mxu1  ;;  %5182 = vmatmul.mubr.bf16.gmra.mxu0 %v4844_v46 }
 0x52d   : > { %v4454_v37 = vadd.f32 %v4453_v25, %v9616_v27  ;;  %4695 = vmatprep.mubr.bf16.mxu1 %v4151_v30  ;;  %v4732_v1 = vmax.f32 %v4452_v36, 0.0  ;;  %v8413_v25 = vld [vmem:[%s11072_s5 + $0x28] sm:$0xff]  }
 0x52e   : > { %v4457_v12 = vpop.f32.mrf.mxu1  ;;  %4696 = vmatmul.mubr.bf16.gmra.mxu1 %v4150_v61 }
 0x52f   : > { %v4733_v35 = vmax.f32 %v4454_v37, 0.0  ;;  %7905 = vmatprep.mubr.msk.bf16.mxu1 %vm518_vm1, %v8701_v7  ;;  %v4846_v41 = vpack.c.bf16 %v4732_v1, %v4730_v34  ;;  %v4458_v13 = vadd.f32 %v4457_v12, %v9621_v11 }
 0x530   : > { %v4459_v55 = vpop.f32.mrf.mxu1 }
 0x531   : > { %v4847_v26 = vpack.c.bf16 %v4733_v35, %v4731_v40  ;;  %v4460_v0 = vadd.f32 %v4459_v55, %v9616_v27  ;;  %v4734_v46 = vmax.f32 %v4458_v13, 0.0  ;;  %v8414_v55 = vld [vmem:[%s11072_s5 + $0x20] sm:$0xff]  }
 0x532   : > { %v4461_v50 = vpop.f32.mrf.mxu1 }
 0x533   : > { %v4462_v52 = vadd.f32 %v4461_v50, %v9621_v11  ;;  %5191 = vmatprep.mubr.bf16.mxu0 %v4847_v26  ;;  %v4735_v44 = vmax.f32 %v4460_v0, 0.0 }
 0x534   : > { %v4463_v4 = vpop.f32.mrf.mxu1  ;;  %5192 = vmatmul.mubr.bf16.gmra.mxu0 %v4846_v41 }
 0x535   : > { %v4464_v2 = vadd.f32 %v4463_v4, %v9616_v27  ;;  %v4736_v56 = vmax.f32 %v4462_v52, 0.0 }
 0x536   : > { %v4467_v7 = vpop.f32.mrf.mxu1  ;;  %7906 = vmatmul.mubr.msk.bf16.vlgmr.msra.gmra.mxu1 %vm518_vm1, %v8708_v10 }
 0x537   : > { %v4737_v59 = vmax.f32 %v4464_v2, 0.0  ;;  %6066 = vmatpush1.bf16.msra.mxu1 %v8411_v62  ;;  %7909 = vmatprep.mubr.msk.bf16.mxu1 %vm518_vm1, %v8715_v15  ;;  %v4848_v36 = vpack.c.bf16 %v4736_v56, %v4734_v46  ;;  %v4468_v61 = vadd.f32 %v4467_v7, %v9621_v11 }
 0x538   : > { %v4469_v32 = vpop.f32.mrf.mxu1  ;;  %6067 = vmatprep.subr.bf16.mxu1 %v11090_v9 }
 0x539   : > { %v4849_v28 = vpack.c.bf16 %v4737_v59, %v4735_v44  ;;  %v4470_v10 = vadd.f32 %v4469_v32, %v9616_v27  ;;  %v4738_v34 = vmax.f32 %v4468_v61, 0.0  ;;  %v8416_v59 = vld [vmem:[%s11072_s5 + $0x10] sm:$0xff]  }
 0x53a   : > { %v4471_v53 = vpop.f32.mrf.mxu1 }
 0x53b   : > { %v4472_v30 = vadd.f32 %v4471_v53, %v9621_v11  ;;  %5201 = vmatprep.mubr.bf16.mxu0 %v4849_v28  ;;  %6068 = vmatpush1.bf16.msra.mxu1 %v8412_v18  ;;  %v4739_v12 = vmax.f32 %v4470_v10, 0.0  ;;  %v8430_v28 = vld [vmem:[%s11076_s9 + $0x18] sm:$0xff]  }
 0x53c   : > { %v4473_v15 = vpop.f32.mrf.mxu1  ;;  %5202 = vmatmul.mubr.bf16.gmra.mxu0 %v4848_v36  ;;  %6069 = vmatprep.subr.bf16.mxu1 %v11090_v9  ;;  %v8417_v36 = vld [vmem:[%s11072_s5 + $0x8] sm:$0xff]  }
 0x53d   : > { %v4474_v45 = vadd.f32 %v4473_v15, %v9616_v27  ;;  %v4740_v40 = vmax.f32 %v4472_v30, 0.0  ;;  %6674 = vmatpush1.bf16.msra.mxu0 %v8430_v28  ;;  %v8433_v28 = vld [vmem:[%s11076_s9 + $0x8] sm:$0xff]  }
 0x53e   : > { %v4477_v37 = vpop.f32.mrf.mxu1  ;;  %7910 = vmatmul.mubr.msk.bf16.gmra.mxu1 %vm518_vm1, %v8722_v22  ;;  %6675 = vmatprep.subr.bf16.mxu0 %v11090_v9 }
 0x53f   : > { %v4741_v1 = vmax.f32 %v4474_v45, 0.0  ;;  %7913 = vmatprep.mubr.msk.bf16.mxu1 %vm518_vm1, %v8729_v31  ;;  %6070 = vmatpush1.bf16.msra.mxu1 %v8413_v25  ;;  %v4850_v41 = vpack.c.bf16 %v4740_v40, %v4738_v34  ;;  %v8415_v31 = vld [vmem:[%s11072_s5 + $0x18] sm:$0xff]   ;;  %v4478_v4 = vadd.f32 %v4477_v37, %v9621_v11 }
 0x540   : > { %v4479_v35 = vpop.f32.mrf.mxu1  ;;  %6071 = vmatprep.subr.bf16.mxu1 %v11090_v9 }
 0x541   : > { %v4851_v26 = vpack.c.bf16 %v4741_v1, %v4739_v12  ;;  %v4480_v0 = vadd.f32 %v4479_v35, %v9616_v27  ;;  %v4742_v32 = vmax.f32 %v4478_v4, 0.0  ;;  %v8419_v12 = vld [vmem:[%s11072_s5] sm:$0xff]  }
 0x542   : > { %v4481_v50 = vpop.f32.mrf.mxu1 }
 0x543   : > { %v4482_v52 = vadd.f32 %v4481_v50, %v9621_v11  ;;  %5211 = vmatprep.mubr.bf16.mxu0 %v4851_v26  ;;  %6072 = vmatpush1.bf16.msra.mxu1 %v8414_v55  ;;  %v4743_v2 = vmax.f32 %v4480_v0, 0.0 }
 0x544   : > { %v4483_v22 = vpop.f32.mrf.mxu1  ;;  %5212 = vmatmul.mubr.bf16.gmra.mxu0 %v4850_v41  ;;  %6073 = vmatprep.subr.bf16.mxu1 %v11090_v9 }
 0x545   : > { %v4484_v62 = vadd.f32 %v4483_v22, %v9616_v27  ;;  %v4744_v7 = vmax.f32 %v4482_v52, 0.0 }
 0x546   : > { %v4487_v13 = vpop.f32.mrf.mxu1  ;;  %7914 = vmatmul.mubr.msk.bf16.gmra.mxu1 %vm518_vm1, %v8736_v38 }
 0x547   : > { %v4745_v44 = vmax.f32 %v4484_v62, 0.0  ;;  %7917 = vmatprep.mubr.msk.bf16.mxu1 %vm518_vm1, %v8743_v47  ;;  %6074 = vmatpush1.bf16.msra.mxu1 %v8415_v31  ;;  %v4852_v19 = vpack.c.bf16 %v4744_v7, %v4742_v32  ;;  %v4488_v10 = vadd.f32 %v4487_v13, %v9621_v11  ;;  %v8422_v62 = vld [vmem:[%s11072_s5 + $0x70] sm:$0xff]   ;;  %v8423_v32 = vld [vmem:[%s11072_s5 + $0x68] sm:$0xff]  }
 0x548   : > { %v4489_v56 = vpop.f32.mrf.mxu1  ;;  %6075 = vmatprep.subr.bf16.mxu1 %v11090_v9  ;;  %v8432_v7 = vld [vmem:[%s11076_s9 + $0x10] sm:$0xff]  }
 0x549   : > { %v4853_v18 = vpack.c.bf16 %v4745_v44, %v4743_v2  ;;  %v4490_v38 = vadd.f32 %v4489_v56, %v9616_v27  ;;  %v4746_v40 = vmax.f32 %v4488_v10, 0.0  ;;  %6676 = vmatpush1.bf16.msra.mxu0 %v8432_v7  ;;  %v8425_v10 = vld [vmem:[%s11072_s5 + $0x60] sm:$0xff]   ;;  %v8437_v7 = vld [vmem:[%s11076_s9 + $0x68] sm:$0xff]  }
 0x54a   : > { %v4491_v46 = vpop.f32.mrf.mxu1  ;;  %6677 = vmatprep.subr.bf16.mxu0 %v11090_v9 }
 0x54b   : > { %v4492_v53 = vadd.f32 %v4491_v46, %v9621_v11  ;;  %5221 = vmatprep.mubr.bf16.mxu0 %v4853_v18  ;;  %6076 = vmatpush1.bf16.msra.mxu1 %v8416_v59  ;;  %v4747_v25 = vmax.f32 %v4490_v38, 0.0 }
 0x54c   : > { %v4493_v47 = vpop.f32.mrf.mxu1  ;;  %5222 = vmatmul.mubr.bf16.gmra.mxu0 %v4852_v19  ;;  %6077 = vmatprep.subr.bf16.mxu1 %v11090_v9 }
 0x54d   : > { %v4494_v30 = vadd.f32 %v4493_v47, %v9616_v27  ;;  %v4748_v61 = vmax.f32 %v4492_v53, 0.0  ;;  %6678 = vmatpush1.bf16.msra.mxu0 %v8433_v28 }
 0x54e   : > { %v4497_v15 = vpop.f32.mrf.mxu1  ;;  %7918 = vmatmul.mubr.msk.bf16.gmra.mxu1 %vm518_vm1, %v8750_v54  ;;  %6679 = vmatprep.subr.bf16.mxu0 %v11090_v9 }
 0x54f   : > { %v4749_v45 = vmax.f32 %v4494_v30, 0.0  ;;  %7921 = vmatprep.mubr.msk.bf16.mxu1 %vm518_vm1, %v8757_v63  ;;  %6078 = vmatpush1.bf16.msra.mxu1 %v8417_v36  ;;  %v4854_v55 = vpack.c.bf16 %v4748_v61, %v4746_v40  ;;  %v8420_v63 = vld [vmem:[%s11072_s5 + $0x78] sm:$0xff]   ;;  %v4498_v50 = vadd.f32 %v4497_v15, %v9621_v11 }
 0x550   : > { %v4499_v37 = vpop.f32.mrf.mxu1  ;;  %6079 = vmatprep.subr.bf16.mxu1 %v11090_v9 }
 0x551   : > { %v4855_v1 = vpack.c.bf16 %v4749_v45, %v4747_v25  ;;  %v4500_v34 = vadd.f32 %v4499_v37, %v9616_v27  ;;  %v4750_v13 = vmax.f32 %v4498_v50, 0.0  ;;  %v8428_v50 = vld [vmem:[%s11072_s5 + $0x50] sm:$0xff]  }
 0x552   : > { %v4501_v35 = vpop.f32.mrf.mxu1 }
 0x553   : > { %v4502_v26 = vadd.f32 %v4501_v35, %v9621_v11  ;;  %5231 = vmatprep.mubr.bf16.mxu0 %v4855_v1  ;;  %6080 = vmatpush1.bf16.msra.mxu1 %v8419_v12  ;;  %v4751_v52 = vmax.f32 %v4500_v34, 0.0  ;;  %v8426_v12 = vld [vmem:[%s11072_s5 + $0x58] sm:$0xff]  }
 0x554   : > { %v4503_v54 = vpop.f32.mrf.mxu1  ;;  %5232 = vmatmul.mubr.bf16.gmra.mxu0 %v4854_v55  ;;  %6081 = vmatprep.subr.bf16.mxu1 %v11090_v9  ;;  %v8435_v35 = vld [vmem:[%s11076_s9 + $0x78] sm:$0xff]  }
 0x555   : > { %v4504_v41 = vadd.f32 %v4503_v54, %v9616_v27  ;;  %v4752_v22 = vmax.f32 %v4502_v26, 0.0 }
 0x556   : > { %v4507_v0 = vpop.f32.mrf.mxu1  ;;  %7922 = vmatmul.mubr.msk.bf16.gmra.mxu1 %vm518_vm1, %v8764_v5 }
 0x557   : > { %v4753_v31 = vmax.f32 %v4504_v41, 0.0  ;;  %7925 = vmatprep.mubr.msk.bf16.mxu1 %vm518_vm1, %v8771_v14  ;;  %6082 = vmatpush2.bf16.msra.mxu1 %v8420_v63  ;;  %v4856_v56 = vpack.c.bf16 %v4752_v22, %v4750_v13  ;;  %v4508_v18 = vadd.f32 %v4507_v0, %v9621_v11 }
 0x558   : > { %v4509_v4 = vpop.f32.mrf.mxu1  ;;  %6083 = vmatprep.subr.bf16.mxu1 %v11090_v9 }
 0x559   : > { %v4857_v2 = vpack.c.bf16 %v4753_v31, %v4751_v52  ;;  %v4510_v5 = vadd.f32 %v4509_v4, %v9616_v27  ;;  %v4754_v30 = vmax.f32 %v4508_v18, 0.0 }
 0x55a   : > { %v4511_v44 = vpop.f32.mrf.mxu1 }
 0x55b   : > { %v4512_v59 = vadd.f32 %v4511_v44, %v9621_v11  ;;  %5241 = vmatprep.mubr.bf16.mxu0 %v4857_v2  ;;  %6084 = vmatpush2.bf16.msra.mxu1 %v8422_v62  ;;  %v4755_v38 = vmax.f32 %v4510_v5, 0.0  ;;  %v8429_v62 = vld [vmem:[%s11072_s5 + $0x48] sm:$0xff]  }
 0x55c   : > { %v4513_v14 = vpop.f32.mrf.mxu1  ;;  %5242 = vmatmul.mubr.bf16.gmra.mxu0 %v4856_v56  ;;  %6085 = vmatprep.subr.bf16.mxu1 %v11090_v9 }
 0x55d   : > { %v4514_v46 = vadd.f32 %v4513_v14, %v9616_v27  ;;  %v4756_v53 = vmax.f32 %v4512_v59, 0.0 }
 0x55e   : > { %v4517_v19 = vpop.f32.mrf.mxu1  ;;  %7926 = vmatmul.mubr.msk.bf16.gmra.mxu1 %vm518_vm1, %v8778_v20  ;;  %v8434_v20 = vld [vmem:[%s11076_s9] sm:$0xff]  }
 0x55f   : > { %v4757_v47 = vmax.f32 %v4514_v46, 0.0  ;;  %7929 = vmatprep.mubr.msk.bf16.mxu1 %vm518_vm1, %v8785_v24  ;;  %6086 = vmatpush2.bf16.msra.mxu1 %v8423_v32  ;;  %v4858_v61 = vpack.c.bf16 %v4756_v53, %v4754_v30  ;;  %v4518_v40 = vadd.f32 %v4517_v19, %v9621_v11  ;;  %v8431_v32 = vld [vmem:[%s11072_s5 + $0x40] sm:$0xff]  }
 0x560   : > { %v4519_v36 = vpop.f32.mrf.mxu1  ;;  %6087 = vmatprep.subr.bf16.mxu1 %v11090_v9  ;;  %6680 = vmatpush1.bf16.msra.mxu0 %v8434_v20 }
 0x561   : > { %v4859_v15 = vpack.c.bf16 %v4757_v47, %v4755_v38  ;;  %v4520_v45 = vadd.f32 %v4519_v36, %v9616_v27  ;;  %6681 = vmatprep.subr.bf16.mxu0 %v11090_v9  ;;  %v4758_v41 = vmax.f32 %v4518_v40, 0.0 }
 0x562   : > { %v4521_v25 = vpop.f32.mrf.mxu1 }
 0x563   : > { %v4522_v24 = vadd.f32 %v4521_v25, %v9621_v11  ;;  %5251 = vmatprep.mubr.bf16.mxu0 %v4859_v15  ;;  %6088 = vmatpush2.bf16.msra.mxu1 %v8425_v10  ;;  %v4759_v34 = vmax.f32 %v4520_v45, 0.0  ;;  %v8439_v10 = vld [vmem:[%s11076_s9 + $0x58] sm:$0xff]  }
 0x564   : > { %v4523_v37 = vpop.f32.mrf.mxu1  ;;  %5252 = vmatmul.mubr.bf16.gmra.mxu0 %v4858_v61  ;;  %6089 = vmatprep.subr.bf16.mxu1 %v11090_v9 }
 0x565   : > { %v4524_v1 = vadd.f32 %v4523_v37, %v9616_v27  ;;  %v4760_v26 = vmax.f32 %v4522_v24, 0.0  ;;  %6682 = vmatpush2.bf16.msra.mxu0 %v8435_v35  ;;  %v8440_v37 = vld [vmem:[%s11076_s9 + $0x50] sm:$0xff]  }
 0x566   : > { %v4527_v55 = vpop.f32.mrf.mxu1  ;;  %7930 = vmatmul.mubr.msk.bf16.gmra.mxu1 %vm518_vm1, %v8792_v29  ;;  %6683 = vmatprep.subr.bf16.mxu0 %v11090_v9  ;;  %v8436_v29 = vld [vmem:[%s11076_s9 + $0x70] sm:$0xff]  }
 0x567   : > { %v4761_v54 = vmax.f32 %v4524_v1, 0.0  ;;  %7933 = vmatprep.mubr.msk.bf16.mxu1 %vm518_vm1, %v8799_v33  ;;  %6090 = vmatpush2.bf16.msra.mxu1 %v8426_v12  ;;  %v4860_v22 = vpack.c.bf16 %v4760_v26, %v4758_v41  ;;  %v4528_v13 = vadd.f32 %v4527_v55, %v9621_v11 }
 0x568   : > { %v4529_v63 = vpop.f32.mrf.mxu1  ;;  %6091 = vmatprep.subr.bf16.mxu1 %v11090_v9 }
 0x569   : > { %v4861_v0 = vpack.c.bf16 %v4761_v54, %v4759_v34  ;;  %v4530_v31 = vadd.f32 %v4529_v63, %v9616_v27  ;;  %6684 = vmatpush2.bf16.msra.mxu0 %v8436_v29  ;;  %v4762_v18 = vmax.f32 %v4528_v13, 0.0  ;;  %v8441_v34 = vld [vmem:[%s11076_s9 + $0x48] sm:$0xff]  }
 0x56a   : > { %v4531_v52 = vpop.f32.mrf.mxu1  ;;  %6685 = vmatprep.subr.bf16.mxu0 %v11090_v9 }
 0x56b   : > { %v4532_v33 = vadd.f32 %v4531_v52, %v9621_v11  ;;  %5261 = vmatprep.mubr.bf16.mxu0 %v4861_v0  ;;  %6092 = vmatpush2.bf16.msra.mxu1 %v8428_v50  ;;  %v4763_v56 = vmax.f32 %v4530_v31, 0.0  ;;  %v8442_v52 = vld [vmem:[%s11076_s9 + $0x40] sm:$0xff]  }
 0x56c   : > { %v4533_v4 = vpop.f32.mrf.mxu1  ;;  %5262 = vmatmul.mubr.bf16.gmra.mxu0 %v4860_v22  ;;  %6093 = vmatprep.subr.bf16.mxu1 %v11090_v9 }
 0x56d   : > { %v4534_v2 = vadd.f32 %v4533_v4, %v9616_v27  ;;  %v4764_v5 = vmax.f32 %v4532_v33, 0.0  ;;  %6686 = vmatpush2.bf16.msra.mxu0 %v8437_v7 }
 0x56e   : > { %v4537_v44 = vpop.f32.mrf.mxu1  ;;  %7934 = vmatmul.mubr.msk.bf16.gmra.mxu1 %vm518_vm1, %v8806_v39  ;;  %6687 = vmatprep.subr.bf16.mxu0 %v11090_v9  ;;  %v8438_v39 = vld [vmem:[%s11076_s9 + $0x60] sm:$0xff]  }
 0x56f   : > { %v4765_v59 = vmax.f32 %v4534_v2, 0.0  ;;  %7937 = vmatprep.mubr.msk.bf16.mxu1 %vm518_vm1, %v8813_v42  ;;  %6094 = vmatpush2.bf16.msra.mxu1 %v8429_v62  ;;  %v4862_v19 = vpack.c.bf16 %v4764_v5, %v4762_v18  ;;  %v4538_v47 = vadd.f32 %v4537_v44, %v9621_v11 }
 0x570   : > { %v4539_v14 = vpop.f32.mrf.mxu1  ;;  %6095 = vmatprep.subr.bf16.mxu1 %v11090_v9 }
 0x571   : > { %v4863_v46 = vpack.c.bf16 %v4765_v59, %v4763_v56  ;;  %v4540_v38 = vadd.f32 %v4539_v14, %v9616_v27  ;;  %6688 = vmatpush2.bf16.msra.mxu0 %v8438_v39  ;;  %v4766_v45 = vmax.f32 %v4538_v47, 0.0 }
 0x572   : > { %v4541_v28 = vpop.f32.mrf.mxu1  ;;  %6689 = vmatprep.subr.bf16.mxu0 %v11090_v9 }
 0x573   : > { %v4542_v42 = vadd.f32 %v4541_v28, %v9621_v11  ;;  %5271 = vmatprep.mubr.bf16.mxu0 %v4863_v46  ;;  %6096 = vmatpush2.bf16.msra.mxu1 %v8431_v32  ;;  %v4767_v15 = vmax.f32 %v4540_v38, 0.0 }
 0x574   : > { %v4543_v53 = vpop.f32.mrf.mxu1  ;;  %5272 = vmatmul.mubr.bf16.gmra.mxu0 %v4862_v19 }
 0x575   : > { %v4544_v36 = vadd.f32 %v4543_v53, %v9616_v27  ;;  %v4768_v20 = vmax.f32 %v4542_v42, 0.0  ;;  %6690 = vmatpush2.bf16.msra.mxu0 %v8439_v10 }
 0x576   : > { %v4547_v30 = vpop.f32.mrf.mxu1  ;;  %7938 = vmatmul.mubr.msk.bf16.gmra.mxu1 %vm518_vm1, %v8820_v48  ;;  %6691 = vmatprep.subr.bf16.mxu0 %v11090_v9 }
 0x577   : > { %v4769_v25 = vmax.f32 %v4544_v36, 0.0  ;;  %7941 = vmatprep.mubr.msk.bf16.mxu1 %vm518_vm1, %v8827_v51  ;;  %v4864_v40 = vpack.c.bf16 %v4768_v20, %v4766_v45  ;;  %v4548_v51 = vadd.f32 %v4547_v30, %v9621_v11 }
 0x578   : > { %v4549_v61 = vpop.f32.mrf.mxu1 }
 0x579   : > { %v4865_v24 = vpack.c.bf16 %v4769_v25, %v4767_v15  ;;  %v4550_v1 = vadd.f32 %v4549_v61, %v9616_v27  ;;  %6692 = vmatpush2.bf16.msra.mxu0 %v8440_v37  ;;  %v4770_v0 = vmax.f32 %v4548_v51, 0.0 }
 0x57a   : > { %v4551_v12 = vpop.f32.mrf.mxu1  ;;  %6693 = vmatprep.subr.bf16.mxu0 %v11090_v9 }
 0x57b   : > { %v4552_v35 = vadd.f32 %v4551_v12, %v9621_v11  ;;  %5281 = vmatprep.mubr.bf16.mxu0 %v4865_v24  ;;  %v4771_v54 = vmax.f32 %v4550_v1, 0.0 }
 0x57c   : > { %v4553_v48 = vpop.f32.mrf.mxu1  ;;  %5282 = vmatmul.mubr.bf16.gmra.mxu0 %v4864_v40 }
 0x57d   : > { %v4554_v55 = vadd.f32 %v4553_v48, %v9616_v27  ;;  %v4772_v63 = vmax.f32 %v4552_v35, 0.0  ;;  %6694 = vmatpush2.bf16.msra.mxu0 %v8441_v34 }
 0x57e   : > { %v4557_v26 = vpop.f32.mrf.mxu1  ;;  %7942 = vmatmul.mubr.msk.bf16.gmra.mxu1 %vm518_vm1, %v8834_v57  ;;  %6695 = vmatprep.subr.bf16.mxu0 %v11090_v9 }
 0x57f   : > { %v4773_v50 = vmax.f32 %v4554_v55, 0.0  ;;  %7945 = vmatprep.mubr.msk.bf16.mxu1 %vm518_vm1, %v8841_v60  ;;  %v4866_v31 = vpack.c.bf16 %v4772_v63, %v4770_v0  ;;  %v4558_v62 = vadd.f32 %v4557_v26, %v9621_v11 }
 0x580   : > { %v4559_v41 = vpop.f32.mrf.mxu1 }
 0x581   : > { %v4867_v29 = vpack.c.bf16 %v4773_v50, %v4771_v54  ;;  %v4560_v33 = vadd.f32 %v4559_v41, %v9616_v27  ;;  %6696 = vmatpush2.bf16.msra.mxu0 %v8442_v52  ;;  %v4774_v56 = vmax.f32 %v4558_v62, 0.0 }
 0x582   : > { %v4561_v22 = vpop.f32.mrf.mxu1 }
 0x583   : > { %v4562_v4 = vadd.f32 %v4561_v22, %v9621_v11  ;;  %5291 = vmatprep.mubr.bf16.mxu0 %v4867_v29  ;;  %v4775_v13 = vmax.f32 %v4560_v33, 0.0 }
 0x584   : > { %v4563_v57 = vpop.f32.mrf.mxu1  ;;  %5292 = vmatmul.mubr.bf16.gmra.mxu0 %v4866_v31 }
 0x585   : > { %v4564_v60 = vadd.f32 %v4563_v57, %v9616_v27  ;;  %v4776_v2 = vmax.f32 %v4562_v4, 0.0 }
 0x586   : > { %v4567_v9 = vpop.f32.mrf.mxu1  ;;  %7946 = vmatmul.mubr.msk.bf16.gmra.mxu1 %vm518_vm1, %v8848_v3 }
 0x587   : > { %v4777_v7 = vmax.f32 %v4564_v60, 0.0  ;;  %7949 = vmatprep.mubr.msk.bf16.mxu1 %vm518_vm1, %v8855_v8  ;;  %v4868_v14 = vpack.c.bf16 %v4776_v2, %v4774_v56  ;;  %v4568_v39 = vadd.f32 %v4567_v9, %v9621_v11 }
 0x588   : > { %v4569_v44 = vpop.f32.mrf.mxu1 }
 0x589   : > { %v4869_v5 = vpack.c.bf16 %v4777_v7, %v4775_v13  ;;  %v4570_v32 = vadd.f32 %v4569_v44, %v9616_v27  ;;  %v4778_v53 = vmax.f32 %v4568_v39, 0.0  ;;  %v11091_v13 = vld [vmem:[#allocation8_spill] sm:$0xff] }
 0x58a   : > { %v4571_v59 = vpop.f32.mrf.mxu1 }
 0x58b   : > { %v4572_v18 = vadd.f32 %v4571_v59, %v9621_v11  ;;  %5301 = vmatprep.mubr.bf16.mxu0 %v4869_v5  ;;  %v4779_v19 = vmax.f32 %v4570_v32, 0.0 }
 0x58c   : > { %v4573_v46 = vpop.f32.mrf.mxu1  ;;  %5302 = vmatmul.mubr.bf16.gmra.mxu0 %v4868_v14 }
 0x58d   : > { %v4574_v28 = vadd.f32 %v4573_v46, %v9616_v27  ;;  %v4780_v38 = vmax.f32 %v4572_v18, 0.0 }
 0x58e   : > { %v4577_v3 = vpop.f32.mrf.mxu1  ;;  %7950 = vmatmul.mubr.msk.bf16.gmra.mxu1 %vm518_vm1, %v8862_v16 }
 0x58f   : > { %v4781_v42 = vmax.f32 %v4574_v28, 0.0  ;;  %7953 = vmatprep.mubr.msk.bf16.mxu1 %vm518_vm1, %v8871_v23  ;;  %v4870_v10 = vpack.c.bf16 %v4780_v38, %v4778_v53  ;;  %v4578_v25 = vadd.f32 %v4577_v3, %v9621_v11  ;;  %v11092_v3 = vld [vmem:[#allocation9_spill] sm:$0xff] }
 0x590   : > { %v4579_v8 = vpop.f32.mrf.mxu1 }
 0x591   : > { %v4871_v47 = vpack.c.bf16 %v4781_v42, %v4779_v19  ;;  %v4580_v30 = vadd.f32 %v4579_v8, %v9616_v27  ;;  %v4782_v12 = vmax.f32 %v4578_v25, 0.0 }
 0x592   : > { %v4581_v36 = vpop.f32.mrf.mxu1 }
 0x593   : > { %v4582_v15 = vadd.f32 %v4581_v36, %v9621_v11  ;;  %5311 = vmatprep.mubr.bf16.mxu0 %v4871_v47  ;;  %v4783_v45 = vmax.f32 %v4580_v30, 0.0 }
 0x594   : > { %v4583_v20 = vpop.f32.mrf.mxu1  ;;  %5312 = vmatmul.mubr.bf16.gmra.mxu0 %v4870_v10 }
 0x595   : > { %v4584_v61 = vadd.f32 %v4583_v20, %v9616_v27  ;;  %v4784_v24 = vmax.f32 %v4582_v15, 0.0 }
 0x596   : > { %v4587_v16 = vpop.f32.mrf.mxu1  ;;  %7954 = vmatmul.mubr.msk.bf16.gmra.mxu1 %vm518_vm1, %v8893_v43 }
 0x597   : > { %v4785_v37 = vmax.f32 %v4584_v61, 0.0  ;;  %7957 = vmatprep.mubr.msk.bf16.mxu1 %vm518_vm1, %v8904_v6  ;;  %v4872_v35 = vpack.c.bf16 %v4784_v24, %v4782_v12  ;;  %v4588_v34 = vadd.f32 %v4587_v16, %v9621_v11  ;;  %v9936_v12 = vld [vmem:[%s11075_s8 + $0x38] sm:$0xff]  }
 0x598   : > { %v4589_v23 = vpop.f32.mrf.mxu1  ;;  %8049 = vmatprep.subr.bf16.mxu1 %v9936_v12  ;;  %7969 = vmatprep.subr.bf16.mxu0 %v9936_v12 }
 0x599   : > { %v4873_v40 = vpack.c.bf16 %v4785_v37, %v4783_v45  ;;  %v4590_v48 = vadd.f32 %v4589_v23, %v9616_v27  ;;  %v4786_v41 = vmax.f32 %v4588_v34, 0.0 }
 0x59a   : > { %v4591_v1 = vpop.f32.mrf.mxu1 }
 0x59b   : > { %v4592_v51 = vadd.f32 %v4591_v1, %v9621_v11  ;;  %5321 = vmatprep.mubr.bf16.mxu0 %v4873_v40  ;;  %v4787_v54 = vmax.f32 %v4590_v48, 0.0 }
 0x59c   : > { %v4593_v55 = vpop.f32.mrf.mxu1  ;;  %5322 = vmatmul.mubr.bf16.gmra.mxu0 %v4872_v35 }
 0x59d   : > { %v4594_v26 = vadd.f32 %v4593_v55, %v9616_v27  ;;  %v4788_v63 = vmax.f32 %v4592_v51, 0.0 }
 0x59e   : > { %v4597_v43 = vpop.f32.mrf.mxu1  ;;  %7958 = vmatmul.mubr.msk.bf16.gmra.mxu1 %vm518_vm1, %v8915_v49 }
 0x59f   : > { %v4789_v50 = vmax.f32 %v4594_v26, 0.0  ;;  %7961 = vmatprep.mubr.msk.bf16.mxu1 %vm518_vm1, %v8926_v17  ;;  %v4874_v52 = vpack.c.bf16 %v4788_v63, %v4786_v41  ;;  %v4598_v4 = vadd.f32 %v4597_v43, %v9621_v11 }
 0x5a0   : > { %v4599_v6 = vpop.f32.mrf.mxu1 }
 0x5a1   : > { %v4875_v0 = vpack.c.bf16 %v4789_v50, %v4787_v54  ;;  %v4600_v22 = vadd.f32 %v4599_v6, %v9616_v27  ;;  %v4790_v2 = vmax.f32 %v4598_v4, 0.0 }
 0x5a2   : > { %v4601_v29 = vpop.f32.mrf.mxu1 }
 0x5a3   : > { %v4602_v31 = vadd.f32 %v4601_v29, %v9621_v11  ;;  %5331 = vmatprep.mubr.bf16.mxu0 %v4875_v0  ;;  %v4791_v62 = vmax.f32 %v4600_v22, 0.0 }
 0x5a4   : > { %v4603_v33 = vpop.f32.mrf.mxu1  ;;  %5332 = vmatmul.mubr.bf16.gmra.mxu0 %v4874_v52 }
 0x5a5   : > { %v4604_v57 = vadd.f32 %v4603_v33, %v9616_v27  ;;  %v4792_v60 = vmax.f32 %v4602_v31, 0.0  ;;  %v4933_v31 = vsub.s32 5, %v8869_v21  ;;  %v8460_v21 = vld [vmem:[%s11071_s4] sm:$0x3f] }
 0x5a6   : > { %v4607_v49 = vpop.f32.mrf.mxu1  ;;  %7962 = vmatmul.mubr.msk.bf16.gmra.mxu1 %vm518_vm1, %v8937_v58 }
 0x5a7   : > { %v4793_v9 = vmax.f32 %v4604_v57, 0.0  ;;  %7965 = vmatprep.mubr.msk.bf16.mxu1 %vm518_vm1, %v11091_v13  ;;  %v4876_v56 = vpack.c.bf16 %v4792_v60, %v4790_v2  ;;  %v4608_v32 = vadd.f32 %v4607_v49, %v9621_v11 }
 0x5a8   : > { %v4609_v17 = vpop.f32.mrf.mxu1 }
 0x5a9   : > { %v4877_v7 = vpack.c.bf16 %v4793_v9, %v4791_v62  ;;  %v4610_v5 = vadd.f32 %v4609_v17, %v9616_v27  ;;  %v4794_v38 = vmax.f32 %v4608_v32, 0.0  ;;  %v8459_v17 = vld [vmem:[%s11071_s4 + $0x8] sm:$0x3f] }
 0x5aa   : > { %v4611_v44 = vpop.f32.mrf.mxu1  ;;  %v9952_v13 = vrot.slane %v8459_v17, %v4933_v31 }
 0x5ab   : > { %v4612_v59 = vadd.f32 %v4611_v44, %v9621_v11  ;;  %5341 = vmatprep.mubr.bf16.mxu0 %v4877_v7  ;;  %v4795_v46 = vmax.f32 %v4610_v5, 0.0  ;;  %v9957_v7 = vrot.slane %v8460_v21, %v4933_v31 }
 0x5ac   : > { %v4613_v14 = vpop.f32.mrf.mxu1  ;;  %5342 = vmatmul.mubr.bf16.gmra.mxu0 %v4876_v56 }
 0x5ad   : > { %v4614_v18 = vadd.f32 %v4613_v14, %v9616_v27  ;;  %v4796_v39 = vmax.f32 %v4612_v59, 0.0 }
 0x5ae   : > { %v4617_v58 = vpop.f32.mrf.mxu1  ;;  %7966 = vmatmul.mubr.msk.bf16.gmra.mxu1 %vm518_vm1, %v11092_v3 }
 0x5af   : > { %v4797_v28 = vmax.f32 %v4614_v18, 0.0  ;;  %v4878_v53 = vpack.c.bf16 %v4796_v39, %v4794_v38  ;;  %v4618_v30 = vadd.f32 %v4617_v58, %v9621_v11 }
 0x5b0   : > { %v4619_v19 = vpop.f32.mrf.mxu1 }
 0x5b1   : > { %v4879_v42 = vpack.c.bf16 %v4797_v28, %v4795_v46  ;;  %v4620_v47 = vadd.f32 %v4619_v19, %v9616_v27  ;;  %v4798_v24 = vmax.f32 %v4618_v30, 0.0 }
 0x5b2   : > { %v4621_v8 = vpop.f32.mrf.mxu1 }
 0x5b3   : > { %v4622_v36 = vadd.f32 %v4621_v8, %v9621_v11  ;;  %5351 = vmatprep.mubr.bf16.mxu0 %v4879_v42  ;;  %v4799_v25 = vmax.f32 %v4620_v47, 0.0 }
 0x5b4   : > { %v4623_v10 = vpop.f32.mrf.mxu1  ;;  %5352 = vmatmul.mubr.bf16.gmra.mxu0 %v4878_v53 }
 0x5b5   : > { %v4624_v15 = vadd.f32 %v4623_v10, %v9616_v27  ;;  %v4800_v61 = vmax.f32 %v4622_v36, 0.0 }
 0x5b6   : > { %v4627_v20 = vpop.f32.mrf.mxu1 }
 0x5b7   : > { %v4801_v16 = vmax.f32 %v4624_v15, 0.0  ;;  %v4880_v40 = vpack.c.bf16 %v4800_v61, %v4798_v24  ;;  %v4628_v51 = vadd.f32 %v4627_v20, %v9621_v11 }
 0x5b8   : > { %v4629_v45 = vpop.f32.mrf.mxu1 }
 0x5b9   : > { %v4881_v37 = vpack.c.bf16 %v4801_v16, %v4799_v25  ;;  %v4630_v1 = vadd.f32 %v4629_v45, %v9616_v27  ;;  %v4802_v50 = vmax.f32 %v4628_v51, 0.0 }
 0x5ba   : > { %v4631_v23 = vpop.f32.mrf.mxu1 }
 0x5bb   : > { %v4632_v35 = vadd.f32 %v4631_v23, %v9621_v11  ;;  %5361 = vmatprep.mubr.bf16.mxu0 %v4881_v37  ;;  %v4803_v26 = vmax.f32 %v4630_v1, 0.0 }
 0x5bc   : > { %v4633_v48 = vpop.f32.mrf.mxu1  ;;  %5362 = vmatmul.mubr.bf16.gmra.mxu0 %v4880_v40 }
 0x5bd   : > { %v4634_v55 = vadd.f32 %v4633_v48, %v9616_v27  ;;  %v4804_v43 = vmax.f32 %v4632_v35, 0.0 }
 0x5be   : > { %v4637_v34 = vpop.f32.mrf.mxu1 }
 0x5bf   : > { %v4805_v54 = vmax.f32 %v4634_v55, 0.0  ;;  %v4882_v0 = vpack.c.bf16 %v4804_v43, %v4802_v50  ;;  %v4638_v33 = vadd.f32 %v4637_v34, %v9621_v11 }
 0x5c0   : > { %v4639_v63 = vpop.f32.mrf.mxu1 }
 0x5c1   : > { %v4883_v6 = vpack.c.bf16 %v4805_v54, %v4803_v26  ;;  %v4640_v29 = vadd.f32 %v4639_v63, %v9616_v27  ;;  %v4806_v44 = vmax.f32 %v4638_v33, 0.0 }
 0x5c2   : > { %v4641_v41 = vpop.f32.mrf.mxu1 }
 0x5c3   : > { %v4642_v52 = vadd.f32 %v4641_v41, %v9621_v11  ;;  %5371 = vmatprep.mubr.bf16.mxu0 %v4883_v6  ;;  %v4807_v49 = vmax.f32 %v4640_v29, 0.0 }
 0x5c4   : > { %v4643_v22 = vpop.f32.mrf.mxu1  ;;  %v5133_v57 = vpop.f32.mrf.mxu0  ;;  %5372 = vmatmul.mubr.bf16.gmra.mxu0 %v4882_v0 }
 0x5c5   : > { %v4644_v4 = vadd.f32 %v4643_v22, %v9616_v27  ;;  %v4808_v62 = vmax.f32 %v4642_v52, 0.0  ;;  %v5134_v39 = vadd.f32 %v5133_v57, %v9957_v7 }
 0x5c6   : > { %v4647_v9 = vpop.f32.mrf.mxu1  ;;  %v5135_v2 = vpop.f32.mrf.mxu0 }
 0x5c7   : > { %v4809_v60 = vmax.f32 %v4644_v4, 0.0  ;;  %v4884_v32 = vpack.c.bf16 %v4808_v62, %v4806_v44  ;;  %v5136_v18 = vadd.f32 %v5135_v2, %v9952_v13  ;;  %v4648_v8 = vadd.f32 %v4647_v9, %v9621_v11 }
 0x5c8   : > { %v4649_v56 = vpop.f32.mrf.mxu1  ;;  %v5137_v5 = vpop.f32.mrf.mxu0  ;;  %v5452_v20 = vmax.f32 %v5134_v39, 0.0 }
 0x5c9   : > { %v4885_v59 = vpack.c.bf16 %v4809_v60, %v4807_v49  ;;  %v5138_v14 = vadd.f32 %v5137_v5, %v9957_v7  ;;  %v4650_v19 = vadd.f32 %v4649_v56, %v9616_v27  ;;  %v5453_v10 = vmax.f32 %v5136_v18, 0.0  ;;  %v9990_v56 = vld [vmem:[%s11075_s8 + $0x30] sm:$0xff]  }
 0x5ca   : > { %v4651_v58 = vpop.f32.mrf.mxu1  ;;  %v5139_v46 = vpop.f32.mrf.mxu0  ;;  %v4810_v23 = vmax.f32 %v4648_v8, 0.0 }
 0x5cb   : > { %5381 = vmatprep.mubr.bf16.mxu0 %v4885_v59  ;;  %v4652_v28 = vadd.f32 %v4651_v58, %v9621_v11  ;;  %v5140_v3 = vadd.f32 %v5139_v46, %v9952_v13  ;;  %v5454_v53 = vmax.f32 %v5138_v14, 0.0  ;;  %v4811_v16 = vmax.f32 %v4650_v19, 0.0 }
 0x5cc   : > { %v4653_v38 = vpop.f32.mrf.mxu1  ;;  %v5143_v42 = vpop.f32.mrf.mxu0  ;;  %5382 = vmatmul.mubr.bf16.gmra.mxu0 %v4884_v32 }
 0x5cd   : > { %v5455_v47 = vmax.f32 %v5140_v3, 0.0  ;;  %v4654_v36 = vadd.f32 %v4653_v38, %v9616_v27  ;;  %v4812_v25 = vmax.f32 %v4652_v28, 0.0  ;;  %v9969_v40 = vpack.c.bf16 %v5454_v53, %v5452_v20 }
 0x5ce   : > { %v4657_v30 = vpop.f32.mrf.mxu1  ;;  %v5145_v15 = vpop.f32.mrf.mxu0  ;;  %v5144_v26 = vadd.f32 %v5143_v42, %v9957_v7 }
 0x5cf   : > { %v4813_v61 = vmax.f32 %v4654_v36, 0.0  ;;  %v9967_v37 = vpack.c.bf16 %v5455_v47, %v5453_v10  ;;  %v5146_v35 = vadd.f32 %v5145_v15, %v9952_v13  ;;  %v4886_v34 = vpack.c.bf16 %v4812_v25, %v4810_v23 }
 0x5d0   : > { %v4659_v45 = vpop.f32.mrf.mxu1  ;;  %v5147_v24 = vpop.f32.mrf.mxu0  ;;  %v4658_v41 = vadd.f32 %v4657_v30, %v9621_v11  ;;  %v5456_v4 = vmax.f32 %v5144_v26, 0.0 }
 0x5d1   : > { %v5148_v1 = vadd.f32 %v5147_v24, %v9957_v7  ;;  %6097 = vmatprep.mubr.bf16.mxu1 %v9967_v37  ;;  %v4887_v55 = vpack.c.bf16 %v4813_v61, %v4811_v16  ;;  %v4660_v63 = vadd.f32 %v4659_v45, %v9616_v27  ;;  %v5457_v22 = vmax.f32 %v5146_v35, 0.0 }
 0x5d2   : > { %v4661_v48 = vpop.f32.mrf.mxu1  ;;  %v5149_v51 = vpop.f32.mrf.mxu0  ;;  %6098 = vmatmul.mubr.bf16.vlgmr.msra.gmra.mxu1 %v9969_v40  ;;  %v4814_v2 = vmax.f32 %v4658_v41, 0.0 }
 0x5d3   : > { %v4662_v43 = vadd.f32 %v4661_v48, %v9621_v11  ;;  %v5150_v54 = vadd.f32 %v5149_v51, %v9952_v13  ;;  %5391 = vmatprep.mubr.bf16.mxu0 %v4887_v55  ;;  %8057 = vmatpush3.bf16.msra.mxu1 %v9936_v12  ;;  %v5458_v0 = vmax.f32 %v5148_v1, 0.0  ;;  %v4815_v62 = vmax.f32 %v4660_v63, 0.0 }
 0x5d4   : > { %v4663_v50 = vpop.f32.mrf.mxu1  ;;  %v5153_v6 = vpop.f32.mrf.mxu0  ;;  %5392 = vmatmul.mubr.bf16.gmra.mxu0 %v4886_v34  ;;  %8050 = vmatprep.subr.bf16.mxu1 %v9990_v56 }
 0x5d5   : > { %v5459_v29 = vmax.f32 %v5150_v54, 0.0  ;;  %v4664_v52 = vadd.f32 %v4663_v50, %v9616_v27  ;;  %v4816_v57 = vmax.f32 %v4662_v43, 0.0  ;;  %v9984_v21 = vpack.c.bf16 %v5458_v0, %v5456_v4 }
 0x5d6   : > { %v4667_v31 = vpop.f32.mrf.mxu1  ;;  %v5155_v33 = vpop.f32.mrf.mxu0  ;;  %v5154_v5 = vadd.f32 %v5153_v6, %v9957_v7 }
 0x5d7   : > { %v4817_v49 = vmax.f32 %v4664_v52, 0.0  ;;  %v9982_v17 = vpack.c.bf16 %v5459_v29, %v5457_v22  ;;  %v5156_v59 = vadd.f32 %v5155_v33, %v9952_v13  ;;  %v4888_v58 = vpack.c.bf16 %v4816_v57, %v4814_v2  ;;  %8058 = vmatpush3.bf16.msra.mxu1 %v9990_v56 }
 0x5d8   : > { %v4669_v60 = vpop.f32.mrf.mxu1  ;;  %v5157_v9 = vpop.f32.mrf.mxu0  ;;  %v4668_v38 = vadd.f32 %v4667_v31, %v9621_v11  ;;  %v5460_v30 = vmax.f32 %v5154_v5, 0.0 }
 0x5d9   : > { %v5158_v44 = vadd.f32 %v5157_v9, %v9957_v7  ;;  %6105 = vmatprep.mubr.bf16.mxu1 %v9982_v17  ;;  %v4889_v18 = vpack.c.bf16 %v4817_v49, %v4815_v62  ;;  %v4670_v28 = vadd.f32 %v4669_v60, %v9616_v27  ;;  %v5461_v47 = vmax.f32 %v5156_v59, 0.0 }
 0x5da   : > { %v4671_v14 = vpop.f32.mrf.mxu1  ;;  %v5159_v32 = vpop.f32.mrf.mxu0  ;;  %6106 = vmatmul.mubr.bf16.gmra.mxu1 %v9984_v21  ;;  %v4818_v24 = vmax.f32 %v4668_v38, 0.0 }
 0x5db   : > { %v4672_v46 = vadd.f32 %v4671_v14, %v9621_v11  ;;  %v5160_v39 = vadd.f32 %v5159_v32, %v9952_v13  ;;  %5401 = vmatprep.mubr.bf16.mxu0 %v4889_v18  ;;  %v5462_v42 = vmax.f32 %v5158_v44, 0.0  ;;  %v4819_v25 = vmax.f32 %v4670_v28, 0.0 }
 0x5dc   : > { %v4673_v3 = vpop.f32.mrf.mxu1  ;;  %v5163_v19 = vpop.f32.mrf.mxu0  ;;  %5402 = vmatmul.mubr.bf16.gmra.mxu0 %v4888_v58 }
 0x5dd   : > { %v5463_v8 = vmax.f32 %v5160_v39, 0.0  ;;  %v4674_v53 = vadd.f32 %v4673_v3, %v9616_v27  ;;  %v4820_v15 = vmax.f32 %v4672_v46, 0.0  ;;  %v10005_v23 = vpack.c.bf16 %v5462_v42, %v5460_v30 }
 0x5de   : > { %v4677_v36 = vpop.f32.mrf.mxu1  ;;  %v5165_v10 = vpop.f32.mrf.mxu0  ;;  %v5164_v26 = vadd.f32 %v5163_v19, %v9957_v7 }
 0x5df   : > { %v4821_v20 = vmax.f32 %v4674_v53, 0.0  ;;  %v10003_v45 = vpack.c.bf16 %v5463_v8, %v5461_v47  ;;  %v5166_v35 = vadd.f32 %v5165_v10, %v9952_v13  ;;  %v4890_v34 = vpack.c.bf16 %v4820_v15, %v4818_v24 }
 0x5e0   : > { %v4679_v61 = vpop.f32.mrf.mxu1  ;;  %v5167_v16 = vpop.f32.mrf.mxu0  ;;  %v4678_v41 = vadd.f32 %v4677_v36, %v9621_v11  ;;  %v5464_v4 = vmax.f32 %v5164_v26, 0.0 }
 0x5e1   : > { %v5168_v1 = vadd.f32 %v5167_v16, %v9957_v7  ;;  %6113 = vmatprep.mubr.bf16.mxu1 %v10003_v45  ;;  %v4891_v55 = vpack.c.bf16 %v4821_v20, %v4819_v25  ;;  %v4680_v63 = vadd.f32 %v4679_v61, %v9616_v27  ;;  %v5465_v22 = vmax.f32 %v5166_v35, 0.0 }
 0x5e2   : > { %v4681_v48 = vpop.f32.mrf.mxu1  ;;  %v5169_v51 = vpop.f32.mrf.mxu0  ;;  %6114 = vmatmul.mubr.bf16.gmra.mxu1 %v10005_v23  ;;  %v4822_v44 = vmax.f32 %v4678_v41, 0.0 }
 0x5e3   : > { %v4682_v43 = vadd.f32 %v4681_v48, %v9621_v11  ;;  %v5170_v54 = vadd.f32 %v5169_v51, %v9952_v13  ;;  %5411 = vmatprep.mubr.bf16.mxu0 %v4891_v55  ;;  %v5466_v0 = vmax.f32 %v5168_v1, 0.0  ;;  %v4823_v62 = vmax.f32 %v4680_v63, 0.0 }
 0x5e4   : > { %v4683_v50 = vpop.f32.mrf.mxu1  ;;  %v5173_v6 = vpop.f32.mrf.mxu0  ;;  %5412 = vmatmul.mubr.bf16.gmra.mxu0 %v4890_v34 }
 0x5e5   : > { %v5467_v29 = vmax.f32 %v5170_v54, 0.0  ;;  %v4684_v52 = vadd.f32 %v4683_v50, %v9616_v27  ;;  %v4824_v57 = vmax.f32 %v4682_v43, 0.0  ;;  %v10019_v5 = vpack.c.bf16 %v5466_v0, %v5464_v4 }
 0x5e6   : > { %v4687_v31 = vpop.f32.mrf.mxu1  ;;  %v5175_v33 = vpop.f32.mrf.mxu0  ;;  %v5174_v39 = vadd.f32 %v5173_v6, %v9957_v7 }
 0x5e7   : > { %v4825_v49 = vmax.f32 %v4684_v52, 0.0  ;;  %v10017_v2 = vpack.c.bf16 %v5467_v29, %v5465_v22  ;;  %v5176_v14 = vadd.f32 %v5175_v33, %v9952_v13  ;;  %v4892_v46 = vpack.c.bf16 %v4824_v57, %v4822_v44 }
 0x5e8   : > { %v4689_v60 = vpop.f32.mrf.mxu1  ;;  %v5177_v9 = vpop.f32.mrf.mxu0  ;;  %v4688_v8 = vadd.f32 %v4687_v31, %v9621_v11  ;;  %v5468_v20 = vmax.f32 %v5174_v39, 0.0 }
 0x5e9   : > { %v5178_v59 = vadd.f32 %v5177_v9, %v9957_v7  ;;  %6121 = vmatprep.mubr.bf16.mxu1 %v10017_v2  ;;  %v4893_v58 = vpack.c.bf16 %v4825_v49, %v4823_v62  ;;  %v4690_v19 = vadd.f32 %v4689_v60, %v9616_v27  ;;  %v5469_v10 = vmax.f32 %v5176_v14, 0.0 }
 0x5ea   : > { %v4691_v32 = vpop.f32.mrf.mxu1  ;;  %v5179_v18 = vpop.f32.mrf.mxu0  ;;  %6122 = vmatmul.mubr.bf16.gmra.mxu1 %v10019_v5  ;;  %v4826_v48 = vmax.f32 %v4688_v8, 0.0 }
 0x5eb   : > { %v4692_v28 = vadd.f32 %v4691_v32, %v9621_v11  ;;  %v5180_v3 = vadd.f32 %v5179_v18, %v9952_v13  ;;  %5421 = vmatprep.mubr.bf16.mxu0 %v4893_v58  ;;  %v5470_v53 = vmax.f32 %v5178_v59, 0.0  ;;  %v4827_v16 = vmax.f32 %v4690_v19, 0.0 }
 0x5ec   : > { %v4693_v38 = vpop.f32.mrf.mxu1  ;;  %v5183_v42 = vpop.f32.mrf.mxu0  ;;  %5422 = vmatmul.mubr.bf16.gmra.mxu0 %v4892_v46 }
 0x5ed   : > { %v5471_v47 = vmax.f32 %v5180_v3, 0.0  ;;  %v4694_v36 = vadd.f32 %v4693_v38, %v9616_v27  ;;  %v4828_v25 = vmax.f32 %v4692_v28, 0.0  ;;  %v10033_v51 = vpack.c.bf16 %v5470_v53, %v5468_v20  ;;  %v10059_v28 = vld [vmem:[%s11075_s8 + $0x28] sm:$0xff]  }
 0x5ee   : > { %v4697_v30 = vpop.f32.mrf.mxu1  ;;  %v5185_v15 = vpop.f32.mrf.mxu0  ;;  %v5184_v26 = vadd.f32 %v5183_v42, %v9957_v7  ;;  %8051 = vmatprep.subr.bf16.mxu1 %v10059_v28 }
 0x5ef   : > { %v4829_v61 = vmax.f32 %v4694_v36, 0.0  ;;  %v10031_v35 = vpack.c.bf16 %v5471_v47, %v5469_v10  ;;  %v5186_v55 = vadd.f32 %v5185_v15, %v9952_v13  ;;  %v4894_v50 = vpack.c.bf16 %v4828_v25, %v4826_v48  ;;  %8059 = vmatpush3.bf16.msra.mxu1 %v10059_v28 }
 0x5f0   : > { %v4699_v24 = vpop.f32.mrf.mxu1  ;;  %v5187_v1 = vpop.f32.mrf.mxu0  ;;  %v4698_v29 = vadd.f32 %v4697_v30, %v9621_v11  ;;  %v5472_v49 = vmax.f32 %v5184_v26, 0.0 }
 0x5f1   : > { %v5188_v34 = vadd.f32 %v5187_v1, %v9957_v7  ;;  %6129 = vmatprep.mubr.bf16.mxu1 %v10031_v35  ;;  %v4895_v63 = vpack.c.bf16 %v4829_v61, %v4827_v16  ;;  %v4700_v6 = vadd.f32 %v4699_v24, %v9616_v27  ;;  %v5473_v31 = vmax.f32 %v5186_v55, 0.0 }
 0x5f2   : > { %v4701_v43 = vpop.f32.mrf.mxu1  ;;  %v5189_v54 = vpop.f32.mrf.mxu0  ;;  %6130 = vmatmul.mubr.bf16.gmra.mxu1 %v10033_v51  ;;  %v4830_v32 = vmax.f32 %v4698_v29, 0.0 }
 0x5f3   : > { %v4702_v41 = vadd.f32 %v4701_v43, %v9621_v11  ;;  %v5190_v0 = vadd.f32 %v5189_v54, %v9952_v13  ;;  %5431 = vmatprep.mubr.bf16.mxu0 %v4895_v63  ;;  %v5474_v33 = vmax.f32 %v5188_v34, 0.0  ;;  %v4831_v9 = vmax.f32 %v4700_v6, 0.0 }
 0x5f4   : > { %v4703_v52 = vpop.f32.mrf.mxu1  ;;  %v5193_v22 = vpop.f32.mrf.mxu0  ;;  %5432 = vmatmul.mubr.bf16.gmra.mxu0 %v4894_v50 }
 0x5f5   : > { %v5475_v4 = vmax.f32 %v5190_v0, 0.0  ;;  %v4704_v57 = vadd.f32 %v4703_v52, %v9616_v27  ;;  %v4832_v44 = vmax.f32 %v4702_v41, 0.0  ;;  %v10051_v58 = vpack.c.bf16 %v5474_v33, %v5472_v49 }
 0x5f6   : > { %v5195_v62 = vpop.f32.mrf.mxu0  ;;  %v10045_v60 = vpop.f32.mrf.mxu1  ;;  %v5194_v42 = vadd.f32 %v5193_v22, %v9957_v7 }
 0x5f7   : > { %v4833_v59 = vmax.f32 %v4704_v57, 0.0  ;;  %v10047_v14 = vpack.c.bf16 %v5475_v4, %v5473_v31  ;;  %v5196_v46 = vadd.f32 %v5195_v62, %v9952_v13  ;;  %v4896_v38 = vpack.c.bf16 %v4832_v44, %v4830_v32 }
 0x5f8   : > { %v5197_v11 = vpop.f32.mrf.mxu0  ;;  %v10049_v18 = vpop.f32.mrf.mxu1  ;;  %v5476_v25 = vmax.f32 %v5194_v42, 0.0 }
 0x5f9   : > { %v5198_v27 = vadd.f32 %v5197_v11, %v9957_v7  ;;  %6137 = vmatprep.mubr.bf16.mxu1 %v10047_v14  ;;  %v4897_v39 = vpack.c.bf16 %v4833_v59, %v4831_v9  ;;  %v5477_v36 = vmax.f32 %v5196_v46, 0.0 }
 0x5fa   : > { %v5199_v3 = vpop.f32.mrf.mxu0  ;;  %v10061_v19 = vpop.f32.mrf.mxu1  ;;  %6138 = vmatmul.mubr.bf16.gmra.mxu1 %v10051_v58 }
 0x5fb   : > { %v5200_v8 = vadd.f32 %v5199_v3, %v9952_v13  ;;  %5441 = vmatprep.mubr.bf16.mxu0 %v4897_v39  ;;  %v5478_v10 = vmax.f32 %v5198_v27, 0.0 }
 0x5fc   : > { %v5203_v53 = vpop.f32.mrf.mxu0  ;;  %v10066_v47 = vpop.f32.mrf.mxu1  ;;  %5442 = vmatmul.mubr.bf16.gmra.mxu0 %v4896_v38 }
 0x5fd   : > { %v5479_v30 = vmax.f32 %v5200_v8, 0.0  ;;  %6697 = vmatprep.mubr.bf16.mxu0 %v9967_v37  ;;  %v10077_v1 = vpack.c.bf16 %v5478_v10, %v5476_v25  ;;  %v5204_v37 = vadd.f32 %v5203_v53, %v9957_v7 }
 0x5fe   : > { %v5205_v15 = vpop.f32.mrf.mxu0  ;;  %v10071_v20 = vpop.f32.mrf.mxu1 }
 0x5ff   : > { %v10073_v61 = vpack.c.bf16 %v5479_v30, %v5477_v36  ;;  %v5206_v48 = vadd.f32 %v5205_v15, %v9952_v13  ;;  %v5480_v52 = vmax.f32 %v5204_v37, 0.0 }
 0x600   : > { %v5207_v16 = vpop.f32.mrf.mxu0  ;;  %v10075_v24 = vpop.f32.mrf.mxu1 }
 0x601   : > { %v5208_v55 = vadd.f32 %v5207_v16, %v9957_v7  ;;  %6145 = vmatprep.mubr.bf16.mxu1 %v10073_v61  ;;  %v5481_v50 = vmax.f32 %v5206_v48, 0.0 }
 0x602   : > { %v5209_v34 = vpop.f32.mrf.mxu0  ;;  %v10082_v26 = vpop.f32.mrf.mxu1  ;;  %6146 = vmatmul.mubr.bf16.gmra.mxu1 %v10077_v1 }
 0x603   : > { %v5210_v43 = vadd.f32 %v5209_v34, %v9952_v13  ;;  %v5482_v6 = vmax.f32 %v5208_v55, 0.0 }
 0x604   : > { %v5213_v54 = vpop.f32.mrf.mxu0  ;;  %v10087_v63 = vpop.f32.mrf.mxu1  ;;  %6698 = vmatmul.mubr.bf16.vlgmr.msra.gmra.mxu0 %v9969_v40 }
 0x605   : > { %v5483_v41 = vmax.f32 %v5210_v43, 0.0  ;;  %6705 = vmatprep.mubr.bf16.mxu0 %v9982_v17  ;;  %7970 = vmatpush3.bf16.msra.mxu0 %v9936_v12  ;;  %v10099_v4 = vpack.c.bf16 %v5482_v6, %v5480_v52  ;;  %v5214_v12 = vadd.f32 %v5213_v54, %v9957_v7 }
 0x606   : > { %v5215_v0 = vpop.f32.mrf.mxu0  ;;  %v10091_v29 = vpop.f32.mrf.mxu1  ;;  %7971 = vmatprep.subr.bf16.mxu0 %v9990_v56 }
 0x607   : > { %v10094_v22 = vpack.c.bf16 %v5483_v41, %v5481_v50  ;;  %v5216_v57 = vadd.f32 %v5215_v0, %v9952_v13  ;;  %v5484_v27 = vmax.f32 %v5214_v12, 0.0 }
 0x608   : > { %v5217_v31 = vpop.f32.mrf.mxu0  ;;  %v10097_v33 = vpop.f32.mrf.mxu1 }
 0x609   : > { %v5218_v40 = vadd.f32 %v5217_v31, %v9957_v7  ;;  %6153 = vmatprep.mubr.bf16.mxu1 %v10094_v22  ;;  %7972 = vmatpush3.bf16.msra.mxu0 %v9990_v56  ;;  %v5485_v59 = vmax.f32 %v5216_v57, 0.0 }
 0x60a   : > { %v5219_v17 = vpop.f32.mrf.mxu0  ;;  %v10104_v49 = vpop.f32.mrf.mxu1  ;;  %6154 = vmatmul.mubr.bf16.gmra.mxu1 %v10099_v4  ;;  %7973 = vmatprep.subr.bf16.mxu0 %v10059_v28 }
 0x60b   : > { %v5220_v62 = vadd.f32 %v5219_v17, %v9952_v13  ;;  %v5486_v32 = vmax.f32 %v5218_v40, 0.0  ;;  %v8446_v40 = vld [vmem:[%s11075_s8 + $0x20] sm:$0xff]  }
 0x60c   : > { %v5223_v9 = vpop.f32.mrf.mxu0  ;;  %v10111_v44 = vpop.f32.mrf.mxu1  ;;  %6706 = vmatmul.mubr.bf16.gmra.mxu0 %v9984_v21  ;;  %8052 = vmatprep.subr.bf16.mxu1 %v8446_v40 }
 0x60d   : > { %v5487_v11 = vmax.f32 %v5220_v62, 0.0  ;;  %6713 = vmatprep.mubr.bf16.mxu0 %v10003_v45  ;;  %7974 = vmatpush3.bf16.msra.mxu0 %v10059_v28  ;;  %v10122_v42 = vpack.c.bf16 %v5486_v32, %v5484_v27  ;;  %v5224_v36 = vadd.f32 %v5223_v9, %v9957_v7 }
 0x60e   : > { %v5225_v46 = vpop.f32.mrf.mxu0  ;;  %v10115_v56 = vpop.f32.mrf.mxu1  ;;  %8060 = vmatpush3.bf16.msra.mxu1 %v8446_v40  ;;  %7975 = vmatprep.subr.bf16.mxu0 %v8446_v40 }
 0x60f   : > { %v10118_v39 = vpack.c.bf16 %v5487_v11, %v5485_v59  ;;  %v5226_v8 = vadd.f32 %v5225_v46, %v9952_v13  ;;  %v5488_v34 = vmax.f32 %v5224_v36, 0.0 }
 0x610   : > { %v5227_v3 = vpop.f32.mrf.mxu0  ;;  %v10120_v38 = vpop.f32.mrf.mxu1 }
 0x611   : > { %v5228_v53 = vadd.f32 %v5227_v3, %v9957_v7  ;;  %6161 = vmatprep.mubr.bf16.mxu1 %v10118_v39  ;;  %v5489_v15 = vmax.f32 %v5226_v8, 0.0  ;;  %7976 = vmatpush3.bf16.msra.mxu0 %v8446_v40 }
 0x612   : > { %v5229_v21 = vpop.f32.mrf.mxu0  ;;  %v10127_v45 = vpop.f32.mrf.mxu1  ;;  %6162 = vmatmul.mubr.bf16.gmra.mxu1 %v10122_v42 }
 0x613   : > { %v5230_v28 = vadd.f32 %v5229_v21, %v9952_v13  ;;  %v5490_v25 = vmax.f32 %v5228_v53, 0.0 }
 0x614   : > { %v5233_v10 = vpop.f32.mrf.mxu0  ;;  %v10132_v30 = vpop.f32.mrf.mxu1  ;;  %6714 = vmatmul.mubr.bf16.gmra.mxu0 %v10005_v23 }
 0x615   : > { %v5491_v16 = vmax.f32 %v5230_v28, 0.0  ;;  %6721 = vmatprep.mubr.bf16.mxu0 %v10017_v2  ;;  %v10142_v50 = vpack.c.bf16 %v5490_v25, %v5488_v34  ;;  %v5234_v2 = vadd.f32 %v5233_v10, %v9957_v7 }
 0x616   : > { %v5235_v48 = vpop.f32.mrf.mxu0  ;;  %v10136_v55 = vpop.f32.mrf.mxu1 }
 0x617   : > { %v10138_v37 = vpack.c.bf16 %v5491_v16, %v5489_v15  ;;  %v5236_v6 = vadd.f32 %v5235_v48, %v9952_v13  ;;  %v5492_v32 = vmax.f32 %v5234_v2, 0.0 }
 0x618   : > { %v5237_v43 = vpop.f32.mrf.mxu0  ;;  %v10140_v54 = vpop.f32.mrf.mxu1 }
 0x619   : > { %v5238_v41 = vadd.f32 %v5237_v43, %v9957_v7  ;;  %6169 = vmatprep.mubr.bf16.mxu1 %v10138_v37  ;;  %v5493_v17 = vmax.f32 %v5236_v6, 0.0 }
 0x61a   : > { %v5239_v23 = vpop.f32.mrf.mxu0  ;;  %v10147_v0 = vpop.f32.mrf.mxu1  ;;  %6170 = vmatmul.mubr.bf16.gmra.mxu1 %v10142_v50 }
 0x61b   : > { %v5240_v52 = vadd.f32 %v5239_v23, %v9952_v13  ;;  %v5494_v12 = vmax.f32 %v5238_v41, 0.0 }
 0x61c   : > { %v5243_v31 = vpop.f32.mrf.mxu0  ;;  %v10152_v57 = vpop.f32.mrf.mxu1  ;;  %6722 = vmatmul.mubr.bf16.gmra.mxu0 %v10019_v5 }
 0x61d   : > { %v5495_v62 = vmax.f32 %v5240_v52, 0.0  ;;  %6729 = vmatprep.mubr.bf16.mxu0 %v10031_v35  ;;  %v10165_v3 = vpack.c.bf16 %v5494_v12, %v5492_v32  ;;  %v5244_v21 = vadd.f32 %v5243_v31, %v9957_v7 }
 0x61e   : > { %v5245_v9 = vpop.f32.mrf.mxu0  ;;  %v10159_v59 = vpop.f32.mrf.mxu1 }
 0x61f   : > { %v10161_v11 = vpack.c.bf16 %v5495_v62, %v5493_v17  ;;  %v5246_v8 = vadd.f32 %v5245_v9, %v9952_v13  ;;  %v5496_v43 = vmax.f32 %v5244_v21, 0.0 }
 0x620   : > { %v5247_v46 = vpop.f32.mrf.mxu0  ;;  %v10163_v27 = vpop.f32.mrf.mxu1 }
 0x621   : > { %v5248_v5 = vadd.f32 %v5247_v46, %v9957_v7  ;;  %6177 = vmatprep.mubr.bf16.mxu1 %v10161_v11  ;;  %v5497_v15 = vmax.f32 %v5246_v8, 0.0 }
 0x622   : > { %v5249_v35 = vpop.f32.mrf.mxu0  ;;  %v10170_v53 = vpop.f32.mrf.mxu1  ;;  %6178 = vmatmul.mubr.bf16.gmra.mxu1 %v10165_v3 }
 0x623   : > { %v5250_v36 = vadd.f32 %v5249_v35, %v9952_v13  ;;  %v5498_v25 = vmax.f32 %v5248_v5, 0.0 }
 0x624   : > { %v5253_v28 = vpop.f32.mrf.mxu0  ;;  %v10175_v10 = vpop.f32.mrf.mxu1  ;;  %6730 = vmatmul.mubr.bf16.gmra.mxu0 %v10033_v51 }
 0x625   : > { %v5499_v16 = vmax.f32 %v5250_v36, 0.0  ;;  %6737 = vmatprep.mubr.bf16.mxu0 %v10047_v14  ;;  %v10185_v2 = vpack.c.bf16 %v5498_v25, %v5496_v43  ;;  %v5254_v14 = vadd.f32 %v5253_v28, %v9957_v7 }
 0x626   : > { %v5255_v48 = vpop.f32.mrf.mxu0  ;;  %v10179_v34 = vpop.f32.mrf.mxu1 }
 0x627   : > { %v10181_v6 = vpack.c.bf16 %v5499_v16, %v5497_v15  ;;  %v5256_v52 = vadd.f32 %v5255_v48, %v9952_v13  ;;  %v5500_v35 = vmax.f32 %v5254_v14, 0.0 }
 0x628   : > { %v5257_v41 = vpop.f32.mrf.mxu0  ;;  %v10183_v23 = vpop.f32.mrf.mxu1 }
 0x629   : > { %v5258_v31 = vadd.f32 %v5257_v41, %v9957_v7  ;;  %6185 = vmatprep.mubr.bf16.mxu1 %v10181_v6  ;;  %v5501_v9 = vmax.f32 %v5256_v52, 0.0 }
 0x62a   : > { %v5259_v51 = vpop.f32.mrf.mxu0  ;;  %v10190_v40 = vpop.f32.mrf.mxu1  ;;  %6186 = vmatmul.mubr.bf16.gmra.mxu1 %v10185_v2 }
 0x62b   : > { %v5260_v17 = vadd.f32 %v5259_v51, %v9952_v13  ;;  %v5502_v32 = vmax.f32 %v5258_v31, 0.0 }
 0x62c   : > { %v5263_v12 = vpop.f32.mrf.mxu0  ;;  %v10195_v62 = vpop.f32.mrf.mxu1  ;;  %6738 = vmatmul.mubr.bf16.gmra.mxu0 %v10051_v58 }
 0x62d   : > { %v5503_v46 = vmax.f32 %v5260_v17, 0.0  ;;  %6745 = vmatprep.mubr.bf16.mxu0 %v10073_v61  ;;  %v10205_v15 = vpack.c.bf16 %v5502_v32, %v5500_v35  ;;  %v5264_v61 = vadd.f32 %v5263_v12, %v9957_v7 }
 0x62e   : > { %v5265_v8 = vpop.f32.mrf.mxu0  ;;  %v10199_v5 = vpop.f32.mrf.mxu1 }
 0x62f   : > { %11093 = vst [vmem:[#allocation8_spill] sm:$0xff] %v10199_v5  ;;  %v10201_v21 = vpack.c.bf16 %v5503_v46, %v5501_v9  ;;  %v5266_v25 = vadd.f32 %v5265_v8, %v9952_v13  ;;  %v5504_v32 = vmax.f32 %v5264_v61, 0.0 }
 0x630   : > { %v5267_v36 = vpop.f32.mrf.mxu0  ;;  %v10203_v28 = vpop.f32.mrf.mxu1 }
 0x631   : > { %v5268_v16 = vadd.f32 %v5267_v36, %v9957_v7  ;;  %6193 = vmatprep.mubr.bf16.mxu1 %v10201_v21  ;;  %v5505_v31 = vmax.f32 %v5266_v25, 0.0 }
 0x632   : > { %v5269_v58 = vpop.f32.mrf.mxu0  ;;  %v10210_v48 = vpop.f32.mrf.mxu1  ;;  %6194 = vmatmul.mubr.bf16.gmra.mxu1 %v10205_v15 }
 0x633   : > { %11094 = vst [vmem:[#allocation9_spill] sm:$0xff] %v10210_v48  ;;  %v5270_v43 = vadd.f32 %v5269_v58, %v9952_v13  ;;  %v5506_v51 = vmax.f32 %v5268_v16, 0.0 }
 0x634   : > { %v5273_v41 = vpop.f32.mrf.mxu0  ;;  %v10215_v52 = vpop.f32.mrf.mxu1  ;;  %6746 = vmatmul.mubr.bf16.gmra.mxu0 %v10077_v1 }
 0x635   : > { %v5507_v14 = vmax.f32 %v5270_v43, 0.0  ;;  %6753 = vmatprep.mubr.bf16.mxu0 %v10094_v22  ;;  %v10225_v35 = vpack.c.bf16 %v5506_v51, %v5504_v32  ;;  %v5274_v22 = vadd.f32 %v5273_v41, %v9957_v7 }
 0x636   : > { %v5275_v17 = vpop.f32.mrf.mxu0  ;;  %v10219_v9 = vpop.f32.mrf.mxu1 }
 0x637   : > { %11095 = vst [vmem:[#allocation10_spill] sm:$0xff] %v10219_v9  ;;  %v10221_v46 = vpack.c.bf16 %v5507_v14, %v5505_v31  ;;  %v5276_v36 = vadd.f32 %v5275_v17, %v9952_v13  ;;  %v8447_v31 = vld [vmem:[%s11075_s8 + $0x18] sm:$0xff]  }
 0x638   : > { %v5277_v12 = vpop.f32.mrf.mxu0  ;;  %v10223_v8 = vpop.f32.mrf.mxu1  ;;  %8053 = vmatprep.subr.bf16.mxu1 %v8447_v31  ;;  %7977 = vmatprep.subr.bf16.mxu0 %v8447_v31 }
 0x639   : > { %11096 = vst [vmem:[#allocation11_spill] sm:$0xff] %v10223_v8  ;;  %v5278_v25 = vadd.f32 %v5277_v12, %v9957_v7  ;;  %6201 = vmatprep.mubr.bf16.mxu1 %v10221_v46  ;;  %v5509_v51 = vmax.f32 %v5276_v36, 0.0  ;;  %v5508_v12 = vmax.f32 %v5274_v22, 0.0  ;;  %8061 = vmatpush3.bf16.msra.mxu1 %v8447_v31 }
 0x63a   : > { %v5279_v1 = vpop.f32.mrf.mxu0  ;;  %v10230_v16 = vpop.f32.mrf.mxu1  ;;  %6202 = vmatmul.mubr.bf16.gmra.mxu1 %v10225_v35  ;;  %7978 = vmatpush3.bf16.msra.mxu0 %v8447_v31 }
 0x63b   : > { %11097 = vst [vmem:[#allocation12_spill] sm:$0xff] %v10230_v16  ;;  %v5280_v58 = vadd.f32 %v5279_v1, %v9952_v13  ;;  %v5510_v14 = vmax.f32 %v5278_v25, 0.0 }
 0x63c   : > { %v5283_v61 = vpop.f32.mrf.mxu0  ;;  %v10235_v43 = vpop.f32.mrf.mxu1  ;;  %6754 = vmatmul.mubr.bf16.gmra.mxu0 %v10099_v4 }
 0x63d   : > { %11098 = vst [vmem:[#allocation13_spill] sm:$0xff] %v10235_v43  ;;  %v5511_v17 = vmax.f32 %v5280_v58, 0.0  ;;  %6761 = vmatprep.mubr.bf16.mxu0 %v10118_v39  ;;  %v10248_v36 = vpack.c.bf16 %v5510_v14, %v5508_v12  ;;  %v5284_v22 = vadd.f32 %v5283_v61, %v9957_v7 }
 0x63e   : > { %v5285_v32 = vpop.f32.mrf.mxu0  ;;  %v10242_v41 = vpop.f32.mrf.mxu1 }
 0x63f   : > { %11099 = vst [vmem:[#allocation14_spill] sm:$0xff] %v10242_v41  ;;  %v10244_v1 = vpack.c.bf16 %v5511_v17, %v5509_v51  ;;  %v5286_v25 = vadd.f32 %v5285_v32, %v9952_v13 }
 0x640   : > { %v5287_v16 = vpop.f32.mrf.mxu0  ;;  %v10246_v9 = vpop.f32.mrf.mxu1 }
 0x641   : > { %11100 = vst [vmem:[#allocation15_spill] sm:$0xff] %v10246_v9  ;;  %v5288_v4 = vadd.f32 %v5287_v16, %v9957_v7  ;;  %6209 = vmatprep.mubr.bf16.mxu1 %v10244_v1  ;;  %v5513_v31 = vmax.f32 %v5286_v25, 0.0 }
 0x642   : > { %v5289_v39 = vpop.f32.mrf.mxu0  ;;  %v10253_v58 = vpop.f32.mrf.mxu1  ;;  %6210 = vmatmul.mubr.bf16.gmra.mxu1 %v10248_v36 }
 0x643   : > { %11101 = vst [vmem:[#allocation16_spill] sm:$0xff] %v10253_v58  ;;  %v5290_v51 = vadd.f32 %v5289_v39, %v9952_v13  ;;  %v5514_v14 = vmax.f32 %v5288_v4, 0.0  ;;  %v5512_v58 = vmax.f32 %v5284_v22, 0.0 }
 0x644   : > { %v5293_v17 = vpop.f32.mrf.mxu0  ;;  %v10258_v41 = vpop.f32.mrf.mxu1  ;;  %6762 = vmatmul.mubr.bf16.gmra.mxu0 %v10122_v42 }
 0x645   : > { %11102 = vst [vmem:[#allocation17_spill] sm:$0xff] %v10258_v41  ;;  %v5515_v12 = vmax.f32 %v5290_v51, 0.0  ;;  %6769 = vmatprep.mubr.bf16.mxu0 %v10138_v37  ;;  %v10268_v43 = vpack.c.bf16 %v5514_v14, %v5512_v58  ;;  %v5294_v37 = vadd.f32 %v5293_v17, %v9957_v7  ;;  %v8448_v58 = vld [vmem:[%s11075_s8 + $0x10] sm:$0xff]  }
 0x646   : > { %v5295_v16 = vpop.f32.mrf.mxu0  ;;  %v10262_v32 = vpop.f32.mrf.mxu1  ;;  %8054 = vmatprep.subr.bf16.mxu1 %v8448_v58  ;;  %7979 = vmatprep.subr.bf16.mxu0 %v8448_v58 }
 0x647   : > { %11103 = vst [vmem:[#allocation18_spill] sm:$0xff] %v10262_v32  ;;  %v10264_v9 = vpack.c.bf16 %v5515_v12, %v5513_v31  ;;  %v5296_v41 = vadd.f32 %v5295_v16, %v9952_v13  ;;  %8062 = vmatpush3.bf16.msra.mxu1 %v8448_v58  ;;  %v8449_v32 = vld [vmem:[%s11075_s8 + $0x8] sm:$0xff]   ;;  %7980 = vmatpush3.bf16.msra.mxu0 %v8448_v58  ;;  %v8450_v58 = vld [vmem:[%s11075_s8] sm:$0xff]  }
 0x648   : > { %v5297_v61 = vpop.f32.mrf.mxu0  ;;  %v10266_v39 = vpop.f32.mrf.mxu1  ;;  %8055 = vmatprep.subr.bf16.mxu1 %v8449_v32  ;;  %7981 = vmatprep.subr.bf16.mxu0 %v8449_v32 }
 0x649   : > { %11104 = vst [vmem:[#allocation19_spill] sm:$0xff] %v10266_v39  ;;  %v5298_v25 = vadd.f32 %v5297_v61, %v9957_v7  ;;  %6217 = vmatprep.mubr.bf16.mxu1 %v10264_v9  ;;  %v5517_v14 = vmax.f32 %v5296_v41, 0.0 }
 0x64a   : > { %v5299_v42 = vpop.f32.mrf.mxu0  ;;  %v10273_v4 = vpop.f32.mrf.mxu1  ;;  %6218 = vmatmul.mubr.bf16.gmra.mxu1 %v10268_v43 }
 0x64b   : > { %11105 = vst [vmem:[#allocation20_spill] sm:$0xff] %v10273_v4  ;;  %v5300_v22 = vadd.f32 %v5299_v42, %v9952_v13  ;;  %v5518_v12 = vmax.f32 %v5298_v25, 0.0  ;;  %v5516_v42 = vmax.f32 %v5294_v37, 0.0  ;;  %8063 = vmatpush3.bf16.msra.mxu1 %v8449_v32  ;;  %7982 = vmatpush3.bf16.msra.mxu0 %v8449_v32 }
 0x64c   : > { %v5303_v51 = vpop.f32.mrf.mxu0  ;;  %v10281_v31 = vpop.f32.mrf.mxu1  ;;  %6770 = vmatmul.mubr.bf16.gmra.mxu0 %v10142_v50  ;;  %8056 = vmatprep.subr.bf16.mxu1 %v8450_v58 }
 0x64d   : > { %11106 = vst [vmem:[#allocation21_spill] sm:$0xff] %v10281_v31  ;;  %v5519_v16 = vmax.f32 %v5300_v22, 0.0  ;;  %6777 = vmatprep.mubr.bf16.mxu0 %v10161_v11  ;;  %v10294_v50 = vpack.c.bf16 %v5518_v12, %v5516_v42  ;;  %7983 = vmatprep.subr.bf16.mxu0 %v8450_v58 }
 0x64e   : > { %v5305_v17 = vpop.f32.mrf.mxu0  ;;  %v10285_v61 = vpop.f32.mrf.mxu1 }
 0x64f   : > { %11107 = vst [vmem:[#allocation22_spill] sm:$0xff] %v10285_v61  ;;  %v10287_v4 = vpack.c.bf16 %v5519_v16, %v5517_v14  ;;  %v5306_v11 = vadd.f32 %v5305_v17, %v9952_v13  ;;  %v5304_v16 = vadd.f32 %v5303_v51, %v9957_v7  ;;  %8064 = vmatpush3.bf16.msra.mxu1 %v8450_v58 }
 0x650   : > { %v5307_v41 = vpop.f32.mrf.mxu0  ;;  %v10292_v25 = vpop.f32.mrf.mxu1  ;;  %7984 = vmatpush3.bf16.msra.mxu0 %v8450_v58 }
 0x651   : > { %11108 = vst [vmem:[#allocation23_spill] sm:$0xff] %v10292_v25  ;;  %v5308_v22 = vadd.f32 %v5307_v41, %v9957_v7  ;;  %6225 = vmatprep.mubr.bf16.mxu1 %v10287_v4  ;;  %v5521_v42 = vmax.f32 %v5306_v11, 0.0 }
 0x652   : > { %v5309_v37 = vpop.f32.mrf.mxu0  ;;  %v10299_v14 = vpop.f32.mrf.mxu1  ;;  %6226 = vmatmul.mubr.bf16.gmra.mxu1 %v10294_v50 }
 0x653   : > { %11109 = vst [vmem:[#allocation24_spill] sm:$0xff] %v10299_v14  ;;  %v5310_v61 = vadd.f32 %v5309_v37, %v9952_v13  ;;  %v5522_v41 = vmax.f32 %v5308_v22, 0.0  ;;  %v5520_v14 = vmax.f32 %v5304_v16, 0.0 }
 0x654   : > { %v5313_v12 = vpop.f32.mrf.mxu0  ;;  %v10307_v17 = vpop.f32.mrf.mxu1  ;;  %6778 = vmatmul.mubr.bf16.gmra.mxu0 %v10165_v3 }
 0x655   : > { %11110 = vst [vmem:[#allocation25_spill] sm:$0xff] %v10307_v17  ;;  %v5523_v25 = vmax.f32 %v5310_v61, 0.0  ;;  %6785 = vmatprep.mubr.bf16.mxu0 %v10181_v6  ;;  %v10315_v17 = vpack.c.bf16 %v5522_v41, %v5520_v14  ;;  %v5314_v11 = vadd.f32 %v5313_v12, %v9957_v7 }
 0x656   : > { %v5315_v51 = vpop.f32.mrf.mxu0  ;;  %v10311_v37 = vpop.f32.mrf.mxu1 }
 0x657   : > { %11111 = vst [vmem:[#allocation26_spill] sm:$0xff] %v10311_v37  ;;  %v10313_v31 = vpack.c.bf16 %v5523_v25, %v5521_v42  ;;  %v5316_v32 = vadd.f32 %v5315_v51, %v9952_v13  ;;  %v5524_v41 = vmax.f32 %v5314_v11, 0.0 }
 0x658   : > { %v5317_v39 = vpop.f32.mrf.mxu0  ;;  %v10320_v3 = vpop.f32.mrf.mxu1 }
 0x659   : > { %v5318_v61 = vadd.f32 %v5317_v39, %v9957_v7  ;;  %6233 = vmatprep.mubr.bf16.mxu1 %v10313_v31  ;;  %11112 = vst [vmem:[#allocation27_spill] sm:$0xff] %v10320_v3  ;;  %v5525_v16 = vmax.f32 %v5316_v32, 0.0 }
 0x65a   : > { %v5319_v6 = vpop.f32.mrf.mxu0  ;;  %6234 = vmatmul.mubr.bf16.gmra.mxu1 %v10315_v17  ;;  %v10326_v42 = vpop.f32.mrf.mxu1 }
 0x65b   : > { %v5320_v22 = vadd.f32 %v5319_v6, %v9952_v13  ;;  %v5526_v58 = vmax.f32 %v5318_v61, 0.0  ;;  %11113 = vst [vmem:[#allocation28_spill] sm:$0xff] %v10326_v42 }
 0x65c   : > { %v5323_v25 = vpop.f32.mrf.mxu0  ;;  %6786 = vmatmul.mubr.bf16.gmra.mxu0 %v10185_v2  ;;  %v10336_v32 = vpop.f32.mrf.mxu1 }
 0x65d   : > { %v5527_v14 = vmax.f32 %v5320_v22, 0.0  ;;  %6793 = vmatprep.mubr.bf16.mxu0 %v10201_v21  ;;  %v10331_v12 = vpack.c.bf16 %v5526_v58, %v5524_v41  ;;  %11114 = vst [vmem:[#allocation29_spill] sm:$0xff] %v10336_v32  ;;  %v5324_v61 = vadd.f32 %v5323_v25, %v9957_v7 }
 0x65e   : > { %v5325_v39 = vpop.f32.mrf.mxu0 }
 0x65f   : > { %v10329_v51 = vpack.c.bf16 %v5527_v14, %v5525_v16  ;;  %v5326_v6 = vadd.f32 %v5325_v39, %v9952_v13  ;;  %v10342_v14 = vpop.f32.mrf.mxu1  ;;  %v5528_v39 = vmax.f32 %v5324_v61, 0.0 }
 0x660   : > { %v5327_v37 = vpop.f32.mrf.mxu0  ;;  %11115 = vst [vmem:[#allocation30_spill] sm:$0xff] %v10342_v14 }
 0x661   : > { %v5328_v3 = vadd.f32 %v5327_v37, %v9957_v7  ;;  %6241 = vmatprep.mubr.bf16.mxu1 %v10329_v51  ;;  %v5529_v22 = vmax.f32 %v5326_v6, 0.0 }
 0x662   : > { %v5329_v2 = vpop.f32.mrf.mxu0  ;;  %6242 = vmatmul.mubr.bf16.gmra.mxu1 %v10331_v12 }
 0x663   : > { %v5330_v21 = vadd.f32 %v5329_v2, %v9952_v13  ;;  %v5530_v16 = vmax.f32 %v5328_v3, 0.0  ;;  %v10352_v3 = vpop.f32.mrf.mxu1 }
 0x664   : > { %v5333_v11 = vpop.f32.mrf.mxu0  ;;  %6794 = vmatmul.mubr.bf16.gmra.mxu0 %v10205_v15  ;;  %11116 = vst [vmem:[#allocation31_spill] sm:$0xff] %v10352_v3 }
 0x665   : > { %v5531_v58 = vmax.f32 %v5330_v21, 0.0  ;;  %6801 = vmatprep.mubr.bf16.mxu0 %v10221_v46  ;;  %v10347_v25 = vpack.c.bf16 %v5530_v16, %v5528_v39  ;;  %v5334_v6 = vadd.f32 %v5333_v11, %v9957_v7 }
 0x666   : > { %v5335_v37 = vpop.f32.mrf.mxu0 }
 0x667   : > { %v10345_v41 = vpack.c.bf16 %v5531_v58, %v5529_v22  ;;  %v5336_v2 = vadd.f32 %v5335_v37, %v9952_v13  ;;  %v10358_v58 = vpop.f32.mrf.mxu1  ;;  %v5532_v37 = vmax.f32 %v5334_v6, 0.0 }
 0x668   : > { %v5337_v42 = vpop.f32.mrf.mxu0  ;;  %11117 = vst [vmem:[#allocation32_spill] sm:$0xff] %v10358_v58 }
 0x669   : > { %v5338_v32 = vadd.f32 %v5337_v42, %v9957_v7  ;;  %6249 = vmatprep.mubr.bf16.mxu1 %v10345_v41  ;;  %v5533_v21 = vmax.f32 %v5336_v2, 0.0 }
 0x66a   : > { %v5339_v15 = vpop.f32.mrf.mxu0  ;;  %6250 = vmatmul.mubr.bf16.gmra.mxu1 %v10347_v25 }
 0x66b   : > { %v5340_v46 = vadd.f32 %v5339_v15, %v9952_v13  ;;  %v5534_v22 = vmax.f32 %v5338_v32, 0.0  ;;  %v10368_v32 = vpop.f32.mrf.mxu1 }
 0x66c   : > { %v5343_v61 = vpop.f32.mrf.mxu0  ;;  %6802 = vmatmul.mubr.bf16.gmra.mxu0 %v10225_v35  ;;  %11118 = vst [vmem:[#allocation33_spill] sm:$0xff] %v10368_v32 }
 0x66d   : > { %v5535_v16 = vmax.f32 %v5340_v46, 0.0  ;;  %6809 = vmatprep.mubr.bf16.mxu0 %v10244_v1  ;;  %v10363_v11 = vpack.c.bf16 %v5534_v22, %v5532_v37  ;;  %v5344_v2 = vadd.f32 %v5343_v61, %v9957_v7 }
 0x66e   : > { %v5345_v42 = vpop.f32.mrf.mxu0 }
 0x66f   : > { %v10361_v39 = vpack.c.bf16 %v5535_v16, %v5533_v21  ;;  %v5346_v15 = vadd.f32 %v5345_v42, %v9952_v13  ;;  %v10374_v16 = vpop.f32.mrf.mxu1  ;;  %v5536_v42 = vmax.f32 %v5344_v2, 0.0 }
 0x670   : > { %v5347_v14 = vpop.f32.mrf.mxu0  ;;  %11119 = vst [vmem:[#allocation34_spill] sm:$0xff] %v10374_v16 }
 0x671   : > { %v5348_v3 = vadd.f32 %v5347_v14, %v9957_v7  ;;  %6257 = vmatprep.mubr.bf16.mxu1 %v10361_v39  ;;  %v5537_v46 = vmax.f32 %v5346_v15, 0.0 }
 0x672   : > { %v5349_v35 = vpop.f32.mrf.mxu0  ;;  %6258 = vmatmul.mubr.bf16.gmra.mxu1 %v10363_v11 }
 0x673   : > { %v5350_v1 = vadd.f32 %v5349_v35, %v9952_v13  ;;  %v5538_v21 = vmax.f32 %v5348_v3, 0.0  ;;  %v10384_v3 = vpop.f32.mrf.mxu1 }
 0x674   : > { %v5353_v6 = vpop.f32.mrf.mxu0  ;;  %6810 = vmatmul.mubr.bf16.gmra.mxu0 %v10248_v36  ;;  %11120 = vst [vmem:[#allocation35_spill] sm:$0xff] %v10384_v3 }
 0x675   : > { %v5539_v22 = vmax.f32 %v5350_v1, 0.0  ;;  %6817 = vmatprep.mubr.bf16.mxu0 %v10264_v9  ;;  %v10379_v61 = vpack.c.bf16 %v5538_v21, %v5536_v42  ;;  %v5354_v15 = vadd.f32 %v5353_v6, %v9957_v7 }
 0x676   : > { %v5355_v14 = vpop.f32.mrf.mxu0 }
 0x677   : > { %v10377_v37 = vpack.c.bf16 %v5539_v22, %v5537_v46  ;;  %v5356_v35 = vadd.f32 %v5355_v14, %v9952_v13  ;;  %v10390_v22 = vpop.f32.mrf.mxu1  ;;  %v5540_v14 = vmax.f32 %v5354_v15, 0.0 }
 0x678   : > { %v5357_v58 = vpop.f32.mrf.mxu0  ;;  %11121 = vst [vmem:[#allocation36_spill] sm:$0xff] %v10390_v22 }
 0x679   : > { %v5358_v32 = vadd.f32 %v5357_v58, %v9957_v7  ;;  %6265 = vmatprep.mubr.bf16.mxu1 %v10377_v37  ;;  %v5541_v1 = vmax.f32 %v5356_v35, 0.0 }
 0x67a   : > { %v5359_v36 = vpop.f32.mrf.mxu0  ;;  %6266 = vmatmul.mubr.bf16.gmra.mxu1 %v10379_v61 }
 0x67b   : > { %v5360_v9 = vadd.f32 %v5359_v36, %v9952_v13  ;;  %v5542_v46 = vmax.f32 %v5358_v32, 0.0  ;;  %v10400_v32 = vpop.f32.mrf.mxu1 }
 0x67c   : > { %v5363_v2 = vpop.f32.mrf.mxu0  ;;  %6818 = vmatmul.mubr.bf16.gmra.mxu0 %v10268_v43  ;;  %11122 = vst [vmem:[#allocation37_spill] sm:$0xff] %v10400_v32 }
 0x67d   : > { %v5543_v21 = vmax.f32 %v5360_v9, 0.0  ;;  %6825 = vmatprep.mubr.bf16.mxu0 %v10287_v4  ;;  %v10395_v6 = vpack.c.bf16 %v5542_v46, %v5540_v14  ;;  %v5364_v35 = vadd.f32 %v5363_v2, %v9957_v7 }
 0x67e   : > { %v5365_v58 = vpop.f32.mrf.mxu0 }
 0x67f   : > { %v10393_v42 = vpack.c.bf16 %v5543_v21, %v5541_v1  ;;  %v5366_v36 = vadd.f32 %v5365_v58, %v9952_v13  ;;  %v10405_v21 = vpop.f32.mrf.mxu1  ;;  %v5544_v58 = vmax.f32 %v5364_v35, 0.0 }
 0x680   : > { %v5367_v16 = vpop.f32.mrf.mxu0  ;;  %11123 = vst [vmem:[#allocation38_spill] sm:$0xff] %v10405_v21 }
 0x681   : > { %v5368_v3 = vadd.f32 %v5367_v16, %v9957_v7  ;;  %6273 = vmatprep.mubr.bf16.mxu1 %v10393_v42  ;;  %v5545_v9 = vmax.f32 %v5366_v36, 0.0  ;;  %v10414_v32 = vpop.f32.mrf.mxu1 }
 0x682   : > { %v5369_v43 = vpop.f32.mrf.mxu0  ;;  %6274 = vmatmul.mubr.bf16.gmra.mxu1 %v10395_v6  ;;  %11124 = vst [vmem:[#allocation39_spill] sm:$0xff] %v10414_v32 }
 0x683   : > { %v5370_v4 = vadd.f32 %v5369_v43, %v9952_v13  ;;  %v5546_v1 = vmax.f32 %v5368_v3, 0.0 }
 0x684   : > { %v5373_v15 = vpop.f32.mrf.mxu0  ;;  %6826 = vmatmul.mubr.bf16.gmra.mxu0 %v10294_v50 }
 0x685   : > { %v5547_v46 = vmax.f32 %v5370_v4, 0.0  ;;  %6833 = vmatprep.mubr.bf16.mxu0 %v10313_v31  ;;  %v10411_v2 = vpack.c.bf16 %v5546_v1, %v5544_v58  ;;  %v5374_v50 = vadd.f32 %v5373_v15, %v9957_v7  ;;  %v10421_v1 = vpop.f32.mrf.mxu1 }
 0x686   : > { %v5375_v16 = vpop.f32.mrf.mxu0  ;;  %11125 = vst [vmem:[#allocation40_spill] sm:$0xff] %v10421_v1 }
 0x687   : > { %v10409_v14 = vpack.c.bf16 %v5547_v46, %v5545_v9  ;;  %v5376_v43 = vadd.f32 %v5375_v16, %v9952_v13  ;;  %v5548_v16 = vmax.f32 %v5374_v50, 0.0 }
 0x688   : > { %v5377_v22 = vpop.f32.mrf.mxu0 }
 0x689   : > { %v5378_v3 = vadd.f32 %v5377_v22, %v9957_v7  ;;  %6281 = vmatprep.mubr.bf16.mxu1 %v10409_v14  ;;  %v5549_v4 = vmax.f32 %v5376_v43, 0.0 }
 0x68a   : > { %v5379_v36 = vpop.f32.mrf.mxu0  ;;  %6282 = vmatmul.mubr.bf16.gmra.mxu1 %v10411_v2 }
 0x68b   : > { %v5380_v31 = vadd.f32 %v5379_v36, %v9952_v13  ;;  %v5550_v9 = vmax.f32 %v5378_v3, 0.0  ;;  %v10429_v36 = vpop.f32.mrf.mxu1 }
 0x68c   : > { %v5383_v35 = vpop.f32.mrf.mxu0  ;;  %6834 = vmatmul.mubr.bf16.gmra.mxu0 %v10315_v17  ;;  %11126 = vst [vmem:[#allocation41_spill] sm:$0xff] %v10429_v36 }
 0x68d   : > { %v5551_v46 = vmax.f32 %v5380_v31, 0.0  ;;  %6841 = vmatprep.mubr.bf16.mxu0 %v10329_v51  ;;  %v10427_v15 = vpack.c.bf16 %v5550_v9, %v5548_v16  ;;  %v5384_v17 = vadd.f32 %v5383_v35, %v9957_v7 }
 0x68e   : > { %v5385_v22 = vpop.f32.mrf.mxu0 }
 0x68f   : > { %v10425_v58 = vpack.c.bf16 %v5551_v46, %v5549_v4  ;;  %v5386_v32 = vadd.f32 %v5385_v22, %v9952_v13  ;;  %v5552_v35 = vmax.f32 %v5384_v17, 0.0 }
 0x690   : > { %v5387_v21 = vpop.f32.mrf.mxu0 }
 0x691   : > { %v5388_v43 = vadd.f32 %v5387_v21, %v9957_v7  ;;  %6289 = vmatprep.mubr.bf16.mxu1 %v10425_v58  ;;  %v5553_v50 = vmax.f32 %v5386_v32, 0.0  ;;  %v10442_v21 = vld [vmem:[%s11074_s7] ss:$0 sm:$0xff] }
 0x692   : > { %v5389_v3 = vpop.f32.mrf.mxu0  ;;  %v6099_v31 = vpop.f32.mrf.mxu1  ;;  %6290 = vmatmul.mubr.bf16.gmra.mxu1 %v10427_v15 }
 0x693   : > { %v5390_v51 = vadd.f32 %v5389_v3, %v9952_v13  ;;  %v5554_v4 = vmax.f32 %v5388_v43, 0.0  ;;  %v6100_v46 = vadd.f32 %v6099_v31, %v10049_v18 }
 0x694   : > { %v5393_v16 = vpop.f32.mrf.mxu0  ;;  %v6101_v1 = vpop.f32.mrf.mxu1  ;;  %6842 = vmatmul.mubr.bf16.gmra.mxu0 %v10331_v12 }
 0x695   : > { %v5555_v9 = vmax.f32 %v5390_v51, 0.0  ;;  %6849 = vmatprep.mubr.bf16.mxu0 %v10345_v41  ;;  %v10448_v43 = vpack.c.bf16 %v5554_v4, %v5552_v35  ;;  %v6361_v18 = vadd.f32 %v10442_v21, %v6100_v46 }
 0x696   : > { %v5395_v22 = vpop.f32.mrf.mxu0  ;;  %v6102_v3 = vpop.f32.mrf.mxu1 }
 0x697   : > { %v10445_v36 = vpack.c.bf16 %v5555_v9, %v5553_v50  ;;  %v6103_v32 = vadd.f32 %v6102_v3, %v10066_v47  ;;  %v5396_v41 = vadd.f32 %v5395_v22, %v9952_v13  ;;  %v5394_v47 = vadd.f32 %v5393_v16, %v9957_v7 }
 0x698   : > { %v5397_v1 = vpop.f32.mrf.mxu0  ;;  %v6104_v12 = vpop.f32.mrf.mxu1  ;;  %v6425_v46 = vmax.f32 %v6361_v18, 0.0 }
 0x699   : > { %6297 = vmatprep.mubr.bf16.mxu1 %v10445_v36  ;;  %v6362_v51 = vadd.f32 %v10442_v21, %v6103_v32  ;;  %v5398_v31 = vadd.f32 %v5397_v1, %v9957_v7  ;;  %v5557_v22 = vmax.f32 %v5396_v41, 0.0  ;;  %v5556_v16 = vmax.f32 %v5394_v47, 0.0 }
 0x69a   : > { %v5399_v17 = vpop.f32.mrf.mxu0  ;;  %v6107_v8 = vpop.f32.mrf.mxu1  ;;  %6298 = vmatmul.mubr.bf16.gmra.mxu1 %v10448_v43 }
 0x69b   : > { %v6426_v50 = vmax.f32 %v6362_v51, 0.0  ;;  %v5400_v4 = vadd.f32 %v5399_v17, %v9952_v13  ;;  %v6108_v9 = vadd.f32 %v10045_v60, %v6107_v8  ;;  %v5558_v32 = vmax.f32 %v5398_v31, 0.0 }
 0x69c   : > { %v5403_v35 = vpop.f32.mrf.mxu0  ;;  %v6109_v3 = vpop.f32.mrf.mxu1  ;;  %6850 = vmatmul.mubr.bf16.gmra.mxu0 %v10347_v25 }
 0x69d   : > { %v5559_v1 = vmax.f32 %v5400_v4, 0.0  ;;  %6857 = vmatprep.mubr.bf16.mxu0 %v10361_v39  ;;  %v10461_v5 = vpack.c.bf16 %v6426_v50, %v6425_v46  ;;  %v6363_v51 = vadd.f32 %v10442_v21, %v6108_v9  ;;  %v10467_v3 = vpack.c.bf16 %v5558_v32, %v5556_v16 }
 0x69e   : > { %v5405_v12 = vpop.f32.mrf.mxu0  ;;  %v6110_v48 = vpop.f32.mrf.mxu1  ;;  %v5404_v4 = vadd.f32 %v5403_v35, %v9957_v7 }
 0x69f   : > { %v6111_v17 = vadd.f32 %v10061_v19, %v6110_v48  ;;  %v10465_v18 = vpack.c.bf16 %v5559_v1, %v5557_v22  ;;  %v5406_v25 = vadd.f32 %v5405_v12, %v9952_v13  ;;  %v6427_v50 = vmax.f32 %v6363_v51, 0.0 }
 0x6a0   : > { %v5407_v60 = vpop.f32.mrf.mxu0  ;;  %v6112_v8 = vpop.f32.mrf.mxu1 }
 0x6a1   : > { %v6364_v39 = vadd.f32 %v10442_v21, %v6111_v17  ;;  %v5408_v31 = vadd.f32 %v5407_v60, %v9957_v7  ;;  %6305 = vmatprep.mubr.bf16.mxu1 %v10465_v18  ;;  %v5561_v1 = vmax.f32 %v5406_v25, 0.0  ;;  %v5560_v17 = vmax.f32 %v5404_v4, 0.0 }
 0x6a2   : > { %v5409_v41 = vpop.f32.mrf.mxu0  ;;  %v6115_v47 = vpop.f32.mrf.mxu1  ;;  %6306 = vmatmul.mubr.bf16.gmra.mxu1 %v10467_v3 }
 0x6a3   : > { %v6428_v19 = vmax.f32 %v6364_v39, 0.0  ;;  %v5410_v48 = vadd.f32 %v5409_v41, %v9952_v13  ;;  %v6116_v9 = vadd.f32 %v6115_v47, %v10075_v24  ;;  %v5562_v12 = vmax.f32 %v5408_v31, 0.0 }
 0x6a4   : > { %v5413_v46 = vpop.f32.mrf.mxu0  ;;  %v6117_v32 = vpop.f32.mrf.mxu1  ;;  %6858 = vmatmul.mubr.bf16.gmra.mxu0 %v10363_v11 }
 0x6a5   : > { %v10478_v22 = vpack.c.bf16 %v6428_v19, %v6427_v50  ;;  %v5563_v16 = vmax.f32 %v5410_v48, 0.0  ;;  %6865 = vmatprep.mubr.bf16.mxu0 %v10377_v37  ;;  %v6365_v24 = vadd.f32 %v10442_v21, %v6116_v9  ;;  %v10485_v47 = vpack.c.bf16 %v5562_v12, %v5560_v17 }
 0x6a6   : > { %v5415_v51 = vpop.f32.mrf.mxu0  ;;  %v6118_v35 = vpop.f32.mrf.mxu1 }
 0x6a7   : > { %v6119_v60 = vadd.f32 %v6118_v35, %v10087_v63  ;;  %v10482_v8 = vpack.c.bf16 %v5563_v16, %v5561_v1  ;;  %v5416_v37 = vadd.f32 %v5415_v51, %v9952_v13  ;;  %v5414_v63 = vadd.f32 %v5413_v46, %v9957_v7 }
 0x6a8   : > { %v5417_v39 = vpop.f32.mrf.mxu0  ;;  %v6120_v41 = vpop.f32.mrf.mxu1  ;;  %v6429_v9 = vmax.f32 %v6365_v24, 0.0 }
 0x6a9   : > { %v6366_v11 = vadd.f32 %v10442_v21, %v6119_v60  ;;  %v5418_v25 = vadd.f32 %v5417_v39, %v9957_v7  ;;  %6313 = vmatprep.mubr.bf16.mxu1 %v10482_v8  ;;  %v5565_v51 = vmax.f32 %v5416_v37, 0.0  ;;  %v5564_v60 = vmax.f32 %v5414_v63, 0.0 }
 0x6aa   : > { %v5419_v31 = vpop.f32.mrf.mxu0  ;;  %v6123_v50 = vpop.f32.mrf.mxu1  ;;  %6314 = vmatmul.mubr.bf16.gmra.mxu1 %v10485_v47 }
 0x6ab   : > { %v6430_v4 = vmax.f32 %v6366_v11, 0.0  ;;  %v5420_v19 = vadd.f32 %v5419_v31, %v9952_v13  ;;  %v6124_v48 = vadd.f32 %v10071_v20, %v6123_v50  ;;  %v5566_v12 = vmax.f32 %v5418_v25, 0.0 }
 0x6ac   : > { %v5423_v32 = vpop.f32.mrf.mxu0  ;;  %v6125_v1 = vpop.f32.mrf.mxu1  ;;  %6866 = vmatmul.mubr.bf16.gmra.mxu0 %v10379_v61 }
 0x6ad   : > { %v5567_v16 = vmax.f32 %v5420_v19, 0.0  ;;  %6873 = vmatprep.mubr.bf16.mxu0 %v10393_v42  ;;  %v10497_v46 = vpack.c.bf16 %v6430_v4, %v6429_v9  ;;  %v6367_v39 = vadd.f32 %v10442_v21, %v6124_v48  ;;  %v10503_v31 = vpack.c.bf16 %v5566_v12, %v5564_v60 }
 0x6ae   : > { %v5425_v35 = vpop.f32.mrf.mxu0  ;;  %v6126_v17 = vpop.f32.mrf.mxu1  ;;  %v5424_v4 = vadd.f32 %v5423_v32, %v9957_v7 }
 0x6af   : > { %v6127_v20 = vadd.f32 %v10082_v26, %v6126_v17  ;;  %v10501_v11 = vpack.c.bf16 %v5567_v16, %v5565_v51  ;;  %v5426_v61 = vadd.f32 %v5425_v35, %v9952_v13  ;;  %v6431_v63 = vmax.f32 %v6367_v39, 0.0 }
 0x6b0   : > { %v5427_v41 = vpop.f32.mrf.mxu0  ;;  %v6128_v24 = vpop.f32.mrf.mxu1  ;;  %v5568_v60 = vmax.f32 %v5424_v4, 0.0 }
 0x6b1   : > { %v6368_v42 = vadd.f32 %v10442_v21, %v6127_v20  ;;  %v5428_v25 = vadd.f32 %v5427_v41, %v9957_v7  ;;  %6321 = vmatprep.mubr.bf16.mxu1 %v10501_v11  ;;  %v5569_v12 = vmax.f32 %v5426_v61, 0.0 }
 0x6b2   : > { %v5429_v37 = vpop.f32.mrf.mxu0  ;;  %v6131_v50 = vpop.f32.mrf.mxu1  ;;  %6322 = vmatmul.mubr.bf16.gmra.mxu1 %v10503_v31 }
 0x6b3   : > { %v6432_v26 = vmax.f32 %v6368_v42, 0.0  ;;  %v5430_v19 = vadd.f32 %v5429_v37, %v9952_v13  ;;  %v6132_v48 = vadd.f32 %v6131_v50, %v10097_v33  ;;  %v5570_v51 = vmax.f32 %v5428_v25, 0.0 }
 0x6b4   : > { %v5433_v9 = vpop.f32.mrf.mxu0  ;;  %v6133_v1 = vpop.f32.mrf.mxu1  ;;  %6874 = vmatmul.mubr.bf16.gmra.mxu0 %v10395_v6 }
 0x6b5   : > { %v10514_v16 = vpack.c.bf16 %v6432_v26, %v6431_v63  ;;  %v5571_v35 = vmax.f32 %v5430_v19, 0.0  ;;  %6881 = vmatprep.mubr.bf16.mxu0 %v10409_v14  ;;  %v6369_v33 = vadd.f32 %v10442_v21, %v6132_v48  ;;  %v10521_v42 = vpack.c.bf16 %v5570_v51, %v5568_v60 }
 0x6b6   : > { %v5435_v17 = vpop.f32.mrf.mxu0  ;;  %v6134_v32 = vpop.f32.mrf.mxu1 }
 0x6b7   : > { %v6135_v39 = vadd.f32 %v6134_v32, %v10111_v44  ;;  %v10518_v20 = vpack.c.bf16 %v5571_v35, %v5569_v12  ;;  %v5436_v14 = vadd.f32 %v5435_v17, %v9952_v13  ;;  %v5434_v44 = vadd.f32 %v5433_v9, %v9957_v7 }
 0x6b8   : > { %v5437_v41 = vpop.f32.mrf.mxu0  ;;  %v6136_v24 = vpop.f32.mrf.mxu1  ;;  %v6433_v26 = vmax.f32 %v6369_v33, 0.0 }
 0x6b9   : > { %v6370_v6 = vadd.f32 %v10442_v21, %v6135_v39  ;;  %v5438_v61 = vadd.f32 %v5437_v41, %v9957_v7  ;;  %6329 = vmatprep.mubr.bf16.mxu1 %v10518_v20  ;;  %v5573_v51 = vmax.f32 %v5436_v14, 0.0  ;;  %v5572_v32 = vmax.f32 %v5434_v44, 0.0 }
 0x6ba   : > { %v5439_v25 = vpop.f32.mrf.mxu0  ;;  %v6139_v37 = vpop.f32.mrf.mxu1  ;;  %6330 = vmatmul.mubr.bf16.gmra.mxu1 %v10521_v42 }
 0x6bb   : > { %v6434_v50 = vmax.f32 %v6370_v6, 0.0  ;;  %v5440_v63 = vadd.f32 %v5439_v25, %v9952_v13  ;;  %v6140_v4 = vadd.f32 %v10091_v29, %v6139_v37  ;;  %v5574_v1 = vmax.f32 %v5438_v61, 0.0 }
 0x6bc   : > { %v5443_v19 = vpop.f32.mrf.mxu0  ;;  %v6141_v48 = vpop.f32.mrf.mxu1  ;;  %6882 = vmatmul.mubr.bf16.gmra.mxu0 %v10411_v2 }
 0x6bd   : > { %v5575_v12 = vmax.f32 %v5440_v63, 0.0  ;;  %6889 = vmatprep.mubr.bf16.mxu0 %v10425_v58  ;;  %v10533_v9 = vpack.c.bf16 %v6434_v50, %v6433_v26  ;;  %v6371_v60 = vadd.f32 %v10442_v21, %v6140_v4  ;;  %v10539_v24 = vpack.c.bf16 %v5574_v1, %v5572_v32 }
 0x6be   : > { %v5445_v35 = vpop.f32.mrf.mxu0  ;;  %v6142_v17 = vpop.f32.mrf.mxu1  ;;  %v5444_v61 = vadd.f32 %v5443_v19, %v9957_v7 }
 0x6bf   : > { %v6143_v29 = vadd.f32 %v10104_v49, %v6142_v17  ;;  %v10537_v41 = vpack.c.bf16 %v5575_v12, %v5573_v51  ;;  %v5446_v2 = vadd.f32 %v5445_v35, %v9952_v13  ;;  %v6435_v37 = vmax.f32 %v6371_v60, 0.0 }
 0x6c0   : > { %v5447_v39 = vpop.f32.mrf.mxu0  ;;  %v6144_v33 = vpop.f32.mrf.mxu1  ;;  %v5576_v51 = vmax.f32 %v5444_v61, 0.0 }
 0x6c1   : > { %v6372_v58 = vadd.f32 %v10442_v21, %v6143_v29  ;;  %v5448_v6 = vadd.f32 %v5447_v39, %v9957_v7  ;;  %6337 = vmatprep.mubr.bf16.mxu1 %v10537_v41  ;;  %v5577_v26 = vmax.f32 %v5446_v2, 0.0 }
 0x6c2   : > { %v5449_v14 = vpop.f32.mrf.mxu0  ;;  %v6147_v25 = vpop.f32.mrf.mxu1  ;;  %6338 = vmatmul.mubr.bf16.gmra.mxu1 %v10539_v24 }
 0x6c3   : > { %v6436_v49 = vmax.f32 %v6372_v58, 0.0  ;;  %v5450_v44 = vadd.f32 %v5449_v14, %v9952_v13  ;;  %v6148_v50 = vadd.f32 %v6147_v25, %v10120_v38  ;;  %v5578_v7 = vmax.f32 %v5448_v6, 0.0 }
 0x6c4   : > { %v6149_v63 = vpop.f32.mrf.mxu1  ;;  %v10549_v4 = vpop.f32.mrf.mxu0  ;;  %6890 = vmatmul.mubr.bf16.gmra.mxu0 %v10427_v15 }
 0x6c5   : > { %v10552_v48 = vpack.c.bf16 %v6436_v49, %v6435_v37  ;;  %v5579_v19 = vmax.f32 %v5450_v44, 0.0  ;;  %6897 = vmatprep.mubr.bf16.mxu0 %v10445_v36  ;;  %v6373_v13 = vadd.f32 %v10442_v21, %v6148_v50  ;;  %v10561_v15 = vpack.c.bf16 %v5578_v7, %v5576_v51 }
 0x6c6   : > { %v6150_v1 = vpop.f32.mrf.mxu1  ;;  %v6701_v12 = vpop.f32.mrf.mxu0 }
 0x6c7   : > { %v6151_v38 = vadd.f32 %v6150_v1, %v10132_v30  ;;  %v10557_v35 = vpack.c.bf16 %v5579_v19, %v5577_v26  ;;  %v6437_v39 = vmax.f32 %v6373_v13, 0.0 }
 0x6c8   : > { %v6152_v17 = vpop.f32.mrf.mxu1  ;;  %v10559_v32 = vpop.f32.mrf.mxu0 }
 0x6c9   : > { %v6374_v60 = vadd.f32 %v10442_v21, %v6151_v38  ;;  %6345 = vmatprep.mubr.bf16.mxu1 %v10557_v35 }
 0x6ca   : > { %v6155_v29 = vpop.f32.mrf.mxu1  ;;  %v6704_v36 = vpop.f32.mrf.mxu0  ;;  %6346 = vmatmul.mubr.bf16.gmra.mxu1 %v10561_v15 }
 0x6cb   : > { %v6438_v33 = vmax.f32 %v6374_v60, 0.0  ;;  %v6156_v2 = vadd.f32 %v10115_v56, %v6155_v29 }
 0x6cc   : > { %v6157_v30 = vpop.f32.mrf.mxu1  ;;  %v10567_v58 = vpop.f32.mrf.mxu0  ;;  %6898 = vmatmul.mubr.bf16.gmra.mxu0 %v10448_v43 }
 0x6cd   : > { %6905 = vmatprep.mubr.bf16.mxu0 %v10465_v18  ;;  %v6495_v6 = vpack.c.bf16 %v6438_v33, %v6437_v39  ;;  %v6375_v25 = vadd.f32 %v10442_v21, %v6156_v2 }
 0x6ce   : > { %v6158_v61 = vpop.f32.mrf.mxu1  ;;  %v6709_v14 = vpop.f32.mrf.mxu0 }
 0x6cf   : > { %v6159_v37 = vadd.f32 %v10127_v45, %v6158_v61  ;;  %7997 = vmatprep.mubr.bf16.mxu1 %v6495_v6  ;;  %v6439_v26 = vmax.f32 %v6375_v25, 0.0 }
 0x6d0   : > { %v6160_v49 = vpop.f32.mrf.mxu1  ;;  %v10573_v44 = vpop.f32.mrf.mxu0 }
 0x6d1   : > { %v6376_v56 = vadd.f32 %v10442_v21, %v6159_v37 }
 0x6d2   : > { %v6163_v50 = vpop.f32.mrf.mxu1  ;;  %v6712_v63 = vpop.f32.mrf.mxu0 }
 0x6d3   : > { %v6440_v7 = vmax.f32 %v6376_v56, 0.0  ;;  %v6164_v43 = vadd.f32 %v6163_v50, %v10140_v54 }
 0x6d4   : > { %v6165_v18 = vpop.f32.mrf.mxu1  ;;  %v10577_v19 = vpop.f32.mrf.mxu0  ;;  %6906 = vmatmul.mubr.bf16.gmra.mxu0 %v10467_v3 }
 0x6d5   : > { %v6496_v1 = vpack.c.bf16 %v6440_v7, %v6439_v26  ;;  %6913 = vmatprep.mubr.bf16.mxu0 %v10482_v8  ;;  %v6377_v51 = vadd.f32 %v10442_v21, %v6164_v43 }
 0x6d6   : > { %v6166_v45 = vpop.f32.mrf.mxu1  ;;  %v6717_v12 = vpop.f32.mrf.mxu0 }
 0x6d7   : > { %v6167_v13 = vadd.f32 %v6166_v45, %v10152_v57  ;;  %7998 = vmatmul.mubr.bf16.vlgmr.msra.gmra.mxu1 %v6496_v1  ;;  %v6441_v36 = vmax.f32 %v6377_v51, 0.0 }
 0x6d8   : > { %v6168_v38 = vpop.f32.mrf.mxu1  ;;  %v10583_v17 = vpop.f32.mrf.mxu0 }
 0x6d9   : > { %v6378_v54 = vadd.f32 %v10442_v21, %v6167_v13 }
 0x6da   : > { %v6171_v60 = vpop.f32.mrf.mxu1  ;;  %v6720_v29 = vpop.f32.mrf.mxu0 }
 0x6db   : > { %v6442_v39 = vmax.f32 %v6378_v54, 0.0  ;;  %v6172_v3 = vadd.f32 %v10136_v55, %v6171_v60 }
 0x6dc   : > { %v6173_v33 = vpop.f32.mrf.mxu1  ;;  %v10587_v8 = vpop.f32.mrf.mxu0  ;;  %6914 = vmatmul.mubr.bf16.gmra.mxu0 %v10485_v47 }
 0x6dd   : > { %6921 = vmatprep.mubr.bf16.mxu0 %v10501_v11  ;;  %v6497_v57 = vpack.c.bf16 %v6442_v39, %v6441_v36  ;;  %v6379_v6 = vadd.f32 %v10442_v21, %v6172_v3 }
 0x6de   : > { %v6174_v2 = vpop.f32.mrf.mxu1  ;;  %v6725_v30 = vpop.f32.mrf.mxu0 }
 0x6df   : > { %v6175_v61 = vadd.f32 %v10147_v0, %v6174_v2  ;;  %8001 = vmatprep.mubr.bf16.mxu1 %v6497_v57  ;;  %v6443_v56 = vmax.f32 %v6379_v6, 0.0 }
 0x6e0   : > { %v6176_v14 = vpop.f32.mrf.mxu1  ;;  %v10593_v25 = vpop.f32.mrf.mxu0 }
 0x6e1   : > { %v6380_v55 = vadd.f32 %v10442_v21, %v6175_v61 }
 0x6e2   : > { %v6179_v37 = vpop.f32.mrf.mxu1  ;;  %v6728_v49 = vpop.f32.mrf.mxu0 }
 0x6e3   : > { %v6444_v50 = vmax.f32 %v6380_v55, 0.0  ;;  %v6180_v47 = vadd.f32 %v6179_v37, %v10163_v27 }
 0x6e4   : > { %v6181_v11 = vpop.f32.mrf.mxu1  ;;  %v10597_v63 = vpop.f32.mrf.mxu0  ;;  %6922 = vmatmul.mubr.bf16.gmra.mxu0 %v10503_v31 }
 0x6e5   : > { %v6498_v26 = vpack.c.bf16 %v6444_v50, %v6443_v56  ;;  %6929 = vmatprep.mubr.bf16.mxu0 %v10518_v20  ;;  %v6381_v43 = vadd.f32 %v10442_v21, %v6180_v47 }
 0x6e6   : > { %v6182_v0 = vpop.f32.mrf.mxu1  ;;  %v6733_v7 = vpop.f32.mrf.mxu0 }
 0x6e7   : > { %v6183_v18 = vadd.f32 %v6182_v0, %v10175_v10  ;;  %8002 = vmatmul.mubr.bf16.gmra.mxu1 %v6498_v26  ;;  %v6445_v13 = vmax.f32 %v6381_v43, 0.0 }
 0x6e8   : > { %v6184_v1 = vpop.f32.mrf.mxu1  ;;  %v10603_v45 = vpop.f32.mrf.mxu0 }
 0x6e9   : > { %v6382_v27 = vadd.f32 %v10442_v21, %v6183_v18 }
 0x6ea   : > { %v6187_v12 = vpop.f32.mrf.mxu1  ;;  %v6736_v51 = vpop.f32.mrf.mxu0 }
 0x6eb   : > { %v6446_v38 = vmax.f32 %v6382_v27, 0.0  ;;  %v6188_v31 = vadd.f32 %v10159_v59, %v6187_v12 }
 0x6ec   : > { %v6189_v54 = vpop.f32.mrf.mxu1  ;;  %v10607_v20 = vpop.f32.mrf.mxu0  ;;  %6930 = vmatmul.mubr.bf16.gmra.mxu0 %v10521_v42 }
 0x6ed   : > { %6937 = vmatprep.mubr.bf16.mxu0 %v10537_v41  ;;  %v6499_v10 = vpack.c.bf16 %v6446_v38, %v6445_v13  ;;  %v6383_v36 = vadd.f32 %v10442_v21, %v6188_v31 }
 0x6ee   : > { %v6190_v60 = vpop.f32.mrf.mxu1  ;;  %v6741_v29 = vpop.f32.mrf.mxu0 }
 0x6ef   : > { %v6191_v39 = vadd.f32 %v10170_v53, %v6190_v60  ;;  %8005 = vmatprep.mubr.bf16.mxu1 %v6499_v10  ;;  %v6447_v30 = vmax.f32 %v6383_v36, 0.0 }
 0x6f0   : > { %v6192_v3 = vpop.f32.mrf.mxu1  ;;  %v10613_v33 = vpop.f32.mrf.mxu0 }
 0x6f1   : > { %v6384_v59 = vadd.f32 %v10442_v21, %v6191_v39 }
 0x6f2   : > { %v6195_v57 = vpop.f32.mrf.mxu1  ;;  %v6744_v2 = vpop.f32.mrf.mxu0 }
 0x6f3   : > { %v6448_v6 = vmax.f32 %v6384_v59, 0.0  ;;  %v6196_v42 = vadd.f32 %v6195_v57, %v10183_v23 }
 0x6f4   : > { %v6197_v41 = vpop.f32.mrf.mxu1  ;;  %v10617_v61 = vpop.f32.mrf.mxu0  ;;  %6938 = vmatmul.mubr.bf16.gmra.mxu0 %v10539_v24 }
 0x6f5   : > { %v6500_v14 = vpack.c.bf16 %v6448_v6, %v6447_v30  ;;  %6945 = vmatprep.mubr.bf16.mxu0 %v10557_v35  ;;  %v6385_v37 = vadd.f32 %v10442_v21, %v6196_v42 }
 0x6f6   : > { %v6198_v53 = vpop.f32.mrf.mxu1  ;;  %v6749_v55 = vpop.f32.mrf.mxu0 }
 0x6f7   : > { %v6199_v49 = vadd.f32 %v6198_v53, %v10195_v62  ;;  %8006 = vmatmul.mubr.bf16.gmra.mxu1 %v6500_v14  ;;  %v6449_v26 = vmax.f32 %v6385_v37, 0.0  ;;  %v11128_v37 = vld [vmem:[#allocation9_spill] sm:$0xff] }
 0x6f8   : > { %v6200_v56 = vpop.f32.mrf.mxu1  ;;  %v10623_v50 = vpop.f32.mrf.mxu0 }
 0x6f9   : > { %v6386_v23 = vadd.f32 %v10442_v21, %v6199_v49 }
 0x6fa   : > { %v6203_v47 = vpop.f32.mrf.mxu1  ;;  %v6752_v11 = vpop.f32.mrf.mxu0 }
 0x6fb   : > { %v6450_v0 = vmax.f32 %v6386_v23, 0.0  ;;  %v6204_v24 = vadd.f32 %v10179_v34, %v6203_v47 }
 0x6fc   : > { %v6205_v7 = vpop.f32.mrf.mxu1  ;;  %v10627_v35 = vpop.f32.mrf.mxu0  ;;  %6946 = vmatmul.mubr.bf16.gmra.mxu0 %v10561_v15 }
 0x6fd   : > { %7985 = vmatprep.mubr.bf16.mxu0 %v10461_v5  ;;  %v6501_v62 = vpack.c.bf16 %v6450_v0, %v6449_v26  ;;  %v6387_v1 = vadd.f32 %v10442_v21, %v6204_v24 }
 0x6fe   : > { %v6206_v43 = vpop.f32.mrf.mxu1  ;;  %v6757_v18 = vpop.f32.mrf.mxu0 }
 0x6ff   : > { %v6207_v27 = vadd.f32 %v10190_v40, %v6206_v43  ;;  %8009 = vmatprep.mubr.bf16.mxu1 %v6501_v62  ;;  %v6451_v31 = vmax.f32 %v6387_v1, 0.0 }
 0x700   : > { %v6208_v12 = vpop.f32.mrf.mxu1  ;;  %v10633_v51 = vpop.f32.mrf.mxu0 }
 0x701   : > { %v6388_v34 = vadd.f32 %v10442_v21, %v6207_v27  ;;  %v11130_v12 = vld [vmem:[#allocation13_spill] sm:$0xff] }
 0x702   : > { %v6211_v13 = vpop.f32.mrf.mxu1  ;;  %v6760_v38 = vpop.f32.mrf.mxu0 }
 0x703   : > { %v6452_v54 = vmax.f32 %v6388_v34, 0.0  ;;  %v6212_v15 = vadd.f32 %v6211_v13, %v10203_v28 }
 0x704   : > { %v6213_v5 = vpop.f32.mrf.mxu1  ;;  %v10637_v10 = vpop.f32.mrf.mxu0  ;;  %7986 = vmatmul.mubr.bf16.vlgmr.msra.gmra.mxu0 %v10478_v22  ;;  %v11127_v22 = vld [vmem:[#allocation8_spill] sm:$0xff] }
 0x705   : > { %v6502_v60 = vpack.c.bf16 %v6452_v54, %v6451_v31  ;;  %7989 = vmatprep.mubr.bf16.mxu0 %v10497_v46  ;;  %v6389_v36 = vadd.f32 %v10442_v21, %v6212_v15 }
 0x706   : > { %v6214_v40 = vpop.f32.mrf.mxu1  ;;  %v6765_v29 = vpop.f32.mrf.mxu0 }
 0x707   : > { %v6215_v39 = vadd.f32 %v6214_v40, %v10215_v52  ;;  %8010 = vmatmul.mubr.bf16.gmra.mxu1 %v6502_v60  ;;  %v6453_v30 = vmax.f32 %v6389_v36, 0.0  ;;  %v11131_v40 = vld [vmem:[#allocation10_spill] sm:$0xff] }
 0x708   : > { %v6216_v3 = vpop.f32.mrf.mxu1  ;;  %v10643_v59 = vpop.f32.mrf.mxu0 }
 0x709   : > { %v6390_v28 = vadd.f32 %v10442_v21, %v6215_v39 }
 0x70a   : > { %v6219_v57 = vpop.f32.mrf.mxu1  ;;  %v6768_v2 = vpop.f32.mrf.mxu0 }
 0x70b   : > { %v6454_v6 = vmax.f32 %v6390_v28, 0.0  ;;  %v6220_v42 = vadd.f32 %v11127_v22, %v6219_v57  ;;  %v11132_v2 = vld [vmem:[#allocation12_spill] sm:$0xff] }
 0x70c   : > { %v6221_v41 = vpop.f32.mrf.mxu1  ;;  %v10647_v46 = vpop.f32.mrf.mxu0  ;;  %7990 = vmatmul.mubr.bf16.gmra.mxu0 %v10514_v16  ;;  %v11129_v16 = vld [vmem:[#allocation11_spill] sm:$0xff] }
 0x70d   : > { %7993 = vmatprep.mubr.bf16.mxu0 %v10533_v9  ;;  %v6503_v52 = vpack.c.bf16 %v6454_v6, %v6453_v30  ;;  %v6391_v55 = vadd.f32 %v10442_v21, %v6220_v42 }
 0x70e   : > { %v6222_v14 = vpop.f32.mrf.mxu1  ;;  %v6773_v53 = vpop.f32.mrf.mxu0 }
 0x70f   : > { %v6223_v49 = vadd.f32 %v11128_v37, %v6222_v14  ;;  %8013 = vmatprep.mubr.bf16.mxu1 %v6503_v52  ;;  %v6455_v0 = vmax.f32 %v6391_v55, 0.0  ;;  %v11133_v55 = vld [vmem:[#allocation15_spill] sm:$0xff] }
 0x710   : > { %v6224_v56 = vpop.f32.mrf.mxu1  ;;  %v10653_v23 = vpop.f32.mrf.mxu0 }
 0x711   : > { %v6392_v47 = vadd.f32 %v10442_v21, %v6223_v49 }
 0x712   : > { %v6227_v11 = vpop.f32.mrf.mxu1  ;;  %v6776_v26 = vpop.f32.mrf.mxu0 }
 0x713   : > { %v6456_v24 = vmax.f32 %v6392_v47, 0.0  ;;  %v6228_v7 = vadd.f32 %v6227_v11, %v11129_v16 }
 0x714   : > { %v6229_v9 = vpop.f32.mrf.mxu1  ;;  %v10657_v62 = vpop.f32.mrf.mxu0  ;;  %7994 = vmatmul.mubr.bf16.gmra.mxu0 %v10552_v48 }
 0x715   : > { %v6504_v43 = vpack.c.bf16 %v6456_v24, %v6455_v0  ;;  %v6393_v27 = vadd.f32 %v10442_v21, %v6228_v7  ;;  %v11134_v24 = vld [vmem:[#allocation17_spill] sm:$0xff] }
 0x716   : > { %v6230_v18 = vpop.f32.mrf.mxu1  ;;  %v6781_v1 = vpop.f32.mrf.mxu0 }
 0x717   : > { %v6231_v34 = vadd.f32 %v6230_v18, %v11130_v12  ;;  %8014 = vmatmul.mubr.bf16.gmra.mxu1 %v6504_v43  ;;  %v6457_v5 = vmax.f32 %v6393_v27, 0.0 }
 0x718   : > { %v6232_v13 = vpop.f32.mrf.mxu1  ;;  %v10662_v38 = vpop.f32.mrf.mxu0 }
 0x719   : > { %v6394_v31 = vadd.f32 %v10442_v21, %v6231_v34  ;;  %v11135_v34 = vld [vmem:[#allocation14_spill] sm:$0xff] }
 0x71a   : > { %v6235_v54 = vpop.f32.mrf.mxu1  ;;  %v6784_v15 = vpop.f32.mrf.mxu0 }
 0x71b   : > { %v6458_v60 = vmax.f32 %v6394_v31, 0.0  ;;  %v6236_v29 = vadd.f32 %v11131_v40, %v6235_v54 }
 0x71c   : > { %v6237_v48 = vpop.f32.mrf.mxu1  ;;  %v10666_v36 = vpop.f32.mrf.mxu0 }
 0x71d   : > { %v6505_v39 = vpack.c.bf16 %v6458_v60, %v6457_v5  ;;  %v6395_v57 = vadd.f32 %v10442_v21, %v6236_v29  ;;  %v11136_v29 = vld [vmem:[#allocation16_spill] sm:$0xff] }
 0x71e   : > { %v6238_v3 = vpop.f32.mrf.mxu1  ;;  %v6789_v28 = vpop.f32.mrf.mxu0 }
 0x71f   : > { %v6239_v30 = vadd.f32 %v11132_v2, %v6238_v3  ;;  %8017 = vmatprep.mubr.bf16.mxu1 %v6505_v39  ;;  %v6459_v14 = vmax.f32 %v6395_v57, 0.0 }
 0x720   : > { %v6240_v6 = vpop.f32.mrf.mxu1  ;;  %v10670_v22 = vpop.f32.mrf.mxu0 }
 0x721   : > { %v6396_v42 = vadd.f32 %v10442_v21, %v6239_v30 }
 0x722   : > { %v6243_v41 = vpop.f32.mrf.mxu1  ;;  %v6792_v52 = vpop.f32.mrf.mxu0 }
 0x723   : > { %v6460_v53 = vmax.f32 %v6396_v42, 0.0  ;;  %v6244_v37 = vadd.f32 %v6243_v41, %v11133_v55  ;;  %v11137_v42 = vld [vmem:[#allocation19_spill] sm:$0xff] }
 0x724   : > { %v6245_v49 = vpop.f32.mrf.mxu1  ;;  %v10674_v56 = vpop.f32.mrf.mxu0 }
 0x725   : > { %v6506_v47 = vpack.c.bf16 %v6460_v53, %v6459_v14  ;;  %v6397_v0 = vadd.f32 %v10442_v21, %v6244_v37 }
 0x726   : > { %v6246_v11 = vpop.f32.mrf.mxu1  ;;  %v6797_v26 = vpop.f32.mrf.mxu0 }
 0x727   : > { %v6247_v16 = vadd.f32 %v6246_v11, %v11134_v24  ;;  %8018 = vmatmul.mubr.bf16.gmra.mxu1 %v6506_v47  ;;  %v6461_v27 = vmax.f32 %v6397_v0, 0.0  ;;  %v11138_v47 = vld [vmem:[#allocation21_spill] sm:$0xff] }
 0x728   : > { %v6248_v7 = vpop.f32.mrf.mxu1  ;;  %v10678_v9 = vpop.f32.mrf.mxu0 }
 0x729   : > { %v6398_v43 = vadd.f32 %v10442_v21, %v6247_v16 }
 0x72a   : > { %v6251_v18 = vpop.f32.mrf.mxu1  ;;  %v6800_v1 = vpop.f32.mrf.mxu0 }
 0x72b   : > { %v6462_v12 = vmax.f32 %v6398_v43, 0.0  ;;  %v6252_v13 = vadd.f32 %v11135_v34, %v6251_v18  ;;  %v11139_v1 = vld [vmem:[#allocation18_spill] sm:$0xff] }
 0x72c   : > { %v6253_v31 = vpop.f32.mrf.mxu1  ;;  %v10682_v54 = vpop.f32.mrf.mxu0 }
 0x72d   : > { %v6507_v15 = vpack.c.bf16 %v6462_v12, %v6461_v27  ;;  %v6399_v40 = vadd.f32 %v10442_v21, %v6252_v13 }
 0x72e   : > { %v6254_v5 = vpop.f32.mrf.mxu1  ;;  %v6805_v60 = vpop.f32.mrf.mxu0 }
 0x72f   : > { %v6255_v48 = vadd.f32 %v11136_v29, %v6254_v5  ;;  %8021 = vmatprep.mubr.bf16.mxu1 %v6507_v15  ;;  %v6463_v30 = vmax.f32 %v6399_v40, 0.0  ;;  %v11140_v60 = vld [vmem:[#allocation20_spill] sm:$0xff] }
 0x730   : > { %v6256_v39 = vpop.f32.mrf.mxu1  ;;  %v10686_v3 = vpop.f32.mrf.mxu0 }
 0x731   : > { %v6400_v28 = vadd.f32 %v10442_v21, %v6255_v48 }
 0x732   : > { %v6259_v57 = vpop.f32.mrf.mxu1  ;;  %v6808_v2 = vpop.f32.mrf.mxu0 }
 0x733   : > { %v6464_v6 = vmax.f32 %v6400_v28, 0.0  ;;  %v6260_v41 = vadd.f32 %v6259_v57, %v11137_v42 }
 0x734   : > { %v6261_v52 = vpop.f32.mrf.mxu1  ;;  %v10690_v14 = vpop.f32.mrf.mxu0 }
 0x735   : > { %v6508_v53 = vpack.c.bf16 %v6464_v6, %v6463_v30  ;;  %v6401_v49 = vadd.f32 %v10442_v21, %v6260_v41  ;;  %v11141_v6 = vld [vmem:[#allocation23_spill] sm:$0xff] }
 0x736   : > { %v6262_v55 = vpop.f32.mrf.mxu1  ;;  %v6813_v37 = vpop.f32.mrf.mxu0 }
 0x737   : > { %v6263_v11 = vadd.f32 %v6262_v55, %v11138_v47  ;;  %8022 = vmatmul.mubr.bf16.gmra.mxu1 %v6508_v53  ;;  %v6465_v43 = vmax.f32 %v6401_v49, 0.0  ;;  %v11142_v47 = vld [vmem:[#allocation25_spill] sm:$0xff] }
 0x738   : > { %v6264_v26 = vpop.f32.mrf.mxu1  ;;  %v10694_v0 = vpop.f32.mrf.mxu0 }
 0x739   : > { %v6402_v24 = vadd.f32 %v10442_v21, %v6263_v11 }
 0x73a   : > { %v6267_v16 = vpop.f32.mrf.mxu1  ;;  %v6816_v7 = vpop.f32.mrf.mxu0 }
 0x73b   : > { %v6466_v18 = vmax.f32 %v6402_v24, 0.0  ;;  %v6268_v27 = vadd.f32 %v11139_v1, %v6267_v16 }
 0x73c   : > { %v6269_v12 = vpop.f32.mrf.mxu1  ;;  %v10698_v34 = vpop.f32.mrf.mxu0 }
 0x73d   : > { %v6509_v13 = vpack.c.bf16 %v6466_v18, %v6465_v43  ;;  %v6403_v5 = vadd.f32 %v10442_v21, %v6268_v27  ;;  %v11143_v27 = vld [vmem:[#allocation22_spill] sm:$0xff] }
 0x73e   : > { %v6270_v31 = vpop.f32.mrf.mxu1  ;;  %v6821_v15 = vpop.f32.mrf.mxu0 }
 0x73f   : > { %v6271_v40 = vadd.f32 %v11140_v60, %v6270_v31  ;;  %8025 = vmatprep.mubr.bf16.mxu1 %v6509_v13  ;;  %v6467_v2 = vmax.f32 %v6403_v5, 0.0 }
 0x740   : > { %v6272_v29 = vpop.f32.mrf.mxu1  ;;  %v10702_v48 = vpop.f32.mrf.mxu0 }
 0x741   : > { %v6404_v39 = vadd.f32 %v10442_v21, %v6271_v40  ;;  %v11144_v29 = vld [vmem:[#allocation24_spill] sm:$0xff] }
 0x742   : > { %v6275_v28 = vpop.f32.mrf.mxu1  ;;  %v6824_v57 = vpop.f32.mrf.mxu0 }
 0x743   : > { %v6468_v30 = vmax.f32 %v6404_v39, 0.0  ;;  %v6276_v42 = vadd.f32 %v6275_v28, %v11141_v6 }
 0x744   : > { %v6277_v41 = vpop.f32.mrf.mxu1  ;;  %v10706_v52 = vpop.f32.mrf.mxu0 }
 0x745   : > { %v6510_v53 = vpack.c.bf16 %v6468_v30, %v6467_v2  ;;  %v6405_v49 = vadd.f32 %v10442_v21, %v6276_v42 }
 0x746   : > { %v6278_v55 = vpop.f32.mrf.mxu1  ;;  %v6829_v37 = vpop.f32.mrf.mxu0 }
 0x747   : > { %v6279_v11 = vadd.f32 %v6278_v55, %v11142_v47  ;;  %8026 = vmatmul.mubr.bf16.gmra.mxu1 %v6510_v53  ;;  %v6469_v18 = vmax.f32 %v6405_v49, 0.0  ;;  %v11145_v53 = vld [vmem:[#allocation27_spill] sm:$0xff] }
 0x748   : > { %v6280_v26 = vpop.f32.mrf.mxu1  ;;  %v10710_v24 = vpop.f32.mrf.mxu0 }
 0x749   : > { %v6406_v16 = vadd.f32 %v10442_v21, %v6279_v11 }
 0x74a   : > { %v6283_v7 = vpop.f32.mrf.mxu1  ;;  %v6832_v43 = vpop.f32.mrf.mxu0 }
 0x74b   : > { %v6470_v1 = vmax.f32 %v6406_v16, 0.0  ;;  %v6284_v12 = vadd.f32 %v11143_v27, %v6283_v7  ;;  %v11146_v7 = vld [vmem:[#allocation29_spill] sm:$0xff] }
 0x74c   : > { %v6285_v13 = vpop.f32.mrf.mxu1  ;;  %v10714_v31 = vpop.f32.mrf.mxu0 }
 0x74d   : > { %v6511_v15 = vpack.c.bf16 %v6470_v1, %v6469_v18  ;;  %v6407_v40 = vadd.f32 %v10442_v21, %v6284_v12 }
 0x74e   : > { %v6286_v5 = vpop.f32.mrf.mxu1  ;;  %v6837_v60 = vpop.f32.mrf.mxu0 }
 0x74f   : > { %v6287_v39 = vadd.f32 %v11144_v29, %v6286_v5  ;;  %8029 = vmatprep.mubr.bf16.mxu1 %v6511_v15  ;;  %v6471_v42 = vmax.f32 %v6407_v40, 0.0  ;;  %v11147_v60 = vld [vmem:[#allocation26_spill] sm:$0xff] }
 0x750   : > { %v6288_v28 = vpop.f32.mrf.mxu1  ;;  %v10718_v57 = vpop.f32.mrf.mxu0 }
 0x751   : > { %v6408_v2 = vadd.f32 %v10442_v21, %v6287_v39 }
 0x752   : > { %v6291_v30 = vpop.f32.mrf.mxu1  ;;  %v6840_v6 = vpop.f32.mrf.mxu0 }
 0x753   : > { %v6472_v41 = vmax.f32 %v6408_v2, 0.0  ;;  %v6292_v55 = vadd.f32 %v6291_v30, %v11145_v53 }
 0x754   : > { %v6293_v37 = vpop.f32.mrf.mxu1  ;;  %v10722_v49 = vpop.f32.mrf.mxu0 }
 0x755   : > { %v6512_v47 = vpack.c.bf16 %v6472_v41, %v6471_v42  ;;  %v6409_v16 = vadd.f32 %v10442_v21, %v6292_v55  ;;  %v11148_v42 = vld [vmem:[#allocation28_spill] sm:$0xff] }
 0x756   : > { %v6294_v11 = vpop.f32.mrf.mxu1  ;;  %v6845_v26 = vpop.f32.mrf.mxu0 }
 0x757   : > { %v6295_v43 = vadd.f32 %v6294_v11, %v11146_v7  ;;  %8030 = vmatmul.mubr.bf16.gmra.mxu1 %v6512_v47  ;;  %v6473_v15 = vmax.f32 %v6409_v16, 0.0  ;;  %v11149_v7 = vld [vmem:[#allocation31_spill] sm:$0xff] }
 0x758   : > { %v6296_v18 = vpop.f32.mrf.mxu1  ;;  %v10726_v1 = vpop.f32.mrf.mxu0 }
 0x759   : > { %v6410_v27 = vadd.f32 %v10442_v21, %v6295_v43 }
 0x75a   : > { %v6299_v12 = vpop.f32.mrf.mxu1  ;;  %v6848_v13 = vpop.f32.mrf.mxu0 }
 0x75b   : > { %v6474_v5 = vmax.f32 %v6410_v27, 0.0  ;;  %v6300_v40 = vadd.f32 %v11147_v60, %v6299_v12  ;;  %v11150_v60 = vld [vmem:[#allocation33_spill] sm:$0xff] }
 0x75c   : > { %v6301_v29 = vpop.f32.mrf.mxu1  ;;  %v10730_v39 = vpop.f32.mrf.mxu0 }
 0x75d   : > { %v6513_v28 = vpack.c.bf16 %v6474_v5, %v6473_v15  ;;  %v6411_v6 = vadd.f32 %v10442_v21, %v6300_v40  ;;  %v10743_v5 = vld [vmem:[%s11074_s7] ss:$0 sm:$0xff] }
 0x75e   : > { %v6302_v2 = vpop.f32.mrf.mxu1  ;;  %v6853_v30 = vpop.f32.mrf.mxu0 }
 0x75f   : > { %v6303_v41 = vadd.f32 %v11148_v42, %v6302_v2  ;;  %8033 = vmatprep.mubr.bf16.mxu1 %v6513_v28  ;;  %v6475_v11 = vmax.f32 %v6411_v6, 0.0 }
 0x760   : > { %v6304_v53 = vpop.f32.mrf.mxu1  ;;  %v10734_v55 = vpop.f32.mrf.mxu0 }
 0x761   : > { %v6412_v37 = vadd.f32 %v10442_v21, %v6303_v41  ;;  %v11151_v53 = vld [vmem:[#allocation30_spill] sm:$0xff] }
 0x762   : > { %v6856_v47 = vpop.f32.mrf.mxu0  ;;  %v6307_v16 = vpop.f32.mrf.mxu1 }
 0x763   : > { %v6476_v26 = vmax.f32 %v6412_v37, 0.0  ;;  %v6308_v43 = vadd.f32 %v6307_v16, %v11149_v7 }
 0x764   : > { %v10738_v18 = vpop.f32.mrf.mxu0  ;;  %v6309_v12 = vpop.f32.mrf.mxu1 }
 0x765   : > { %v6514_v27 = vpack.c.bf16 %v6476_v26, %v6475_v11  ;;  %v6413_v21 = vadd.f32 %v10743_v5, %v6308_v43 }
 0x766   : > { %v6861_v13 = vpop.f32.mrf.mxu0  ;;  %v6310_v15 = vpop.f32.mrf.mxu1 }
 0x767   : > { %8034 = vmatmul.mubr.bf16.gmra.mxu1 %v6514_v27  ;;  %v6311_v40 = vadd.f32 %v6310_v15, %v11150_v60  ;;  %v6477_v42 = vmax.f32 %v6413_v21, 0.0  ;;  %v11152_v27 = vld [vmem:[#allocation32_spill] sm:$0xff] }
 0x768   : > { %v10747_v29 = vpop.f32.mrf.mxu0  ;;  %v6312_v28 = vpop.f32.mrf.mxu1 }
 0x769   : > { %v6414_v2 = vadd.f32 %v10743_v5, %v6311_v40 }
 0x76a   : > { %v6864_v30 = vpop.f32.mrf.mxu0  ;;  %v6315_v6 = vpop.f32.mrf.mxu1 }
 0x76b   : > { %v6478_v41 = vmax.f32 %v6414_v2, 0.0  ;;  %v6316_v37 = vadd.f32 %v11151_v53, %v6315_v6  ;;  %v11153_v30 = vld [vmem:[#allocation35_spill] sm:$0xff] }
 0x76c   : > { %v10751_v47 = vpop.f32.mrf.mxu0  ;;  %v6317_v11 = vpop.f32.mrf.mxu1 }
 0x76d   : > { %v6515_v16 = vpack.c.bf16 %v6478_v41, %v6477_v42  ;;  %v6415_v43 = vadd.f32 %v10743_v5, %v6316_v37 }
 0x76e   : > { %v6869_v26 = vpop.f32.mrf.mxu0  ;;  %v6318_v7 = vpop.f32.mrf.mxu1 }
 0x76f   : > { %v6319_v12 = vadd.f32 %v11152_v27, %v6318_v7  ;;  %8037 = vmatprep.mubr.bf16.mxu1 %v6515_v16  ;;  %v6479_v28 = vmax.f32 %v6415_v43, 0.0  ;;  %v11155_v16 = vld [vmem:[#allocation37_spill] sm:$0xff] }
 0x770   : > { %v10755_v13 = vpop.f32.mrf.mxu0  ;;  %v6320_v15 = vpop.f32.mrf.mxu1 }
 0x771   : > { %v6416_v60 = vadd.f32 %v10743_v5, %v6319_v12 }
 0x772   : > { %v6872_v21 = vpop.f32.mrf.mxu0  ;;  %v6323_v40 = vpop.f32.mrf.mxu1 }
 0x773   : > { %v6480_v2 = vmax.f32 %v6416_v60, 0.0  ;;  %v6324_v6 = vadd.f32 %v6323_v40, %v11153_v30  ;;  %v11157_v30 = vld [vmem:[#allocation34_spill] sm:$0xff] }
 0x774   : > { %v10759_v53 = vpop.f32.mrf.mxu0  ;;  %v6325_v42 = vpop.f32.mrf.mxu1 }
 0x775   : > { %11154 = vst [vmem:[#allocation8_spill] sm:$0xff] %v10759_v53  ;;  %v6516_v41 = vpack.c.bf16 %v6480_v2, %v6479_v28  ;;  %v6417_v26 = vadd.f32 %v10743_v5, %v6324_v6 }
 0x776   : > { %v6877_v11 = vpop.f32.mrf.mxu0  ;;  %v6326_v37 = vpop.f32.mrf.mxu1 }
 0x777   : > { %v6327_v7 = vadd.f32 %v6326_v37, %v11155_v16  ;;  %8038 = vmatmul.mubr.bf16.gmra.mxu1 %v6516_v41  ;;  %v6481_v21 = vmax.f32 %v6417_v26, 0.0  ;;  %v11159_v41 = vld [vmem:[#allocation36_spill] sm:$0xff] }
 0x778   : > { %v10763_v27 = vpop.f32.mrf.mxu0  ;;  %v6328_v12 = vpop.f32.mrf.mxu1 }
 0x779   : > { %11156 = vst [vmem:[#allocation9_spill] sm:$0xff] %v10763_v27  ;;  %v6418_v15 = vadd.f32 %v10743_v5, %v6327_v7 }
 0x77a   : > { %v6880_v43 = vpop.f32.mrf.mxu0  ;;  %v6331_v60 = vpop.f32.mrf.mxu1 }
 0x77b   : > { %v6482_v40 = vmax.f32 %v6418_v15, 0.0  ;;  %v6332_v53 = vadd.f32 %v11157_v30, %v6331_v60  ;;  %v11160_v30 = vld [vmem:[#allocation39_spill] sm:$0xff] }
 0x77c   : > { %v10767_v42 = vpop.f32.mrf.mxu0  ;;  %v6333_v28 = vpop.f32.mrf.mxu1 }
 0x77d   : > { %11158 = vst [vmem:[#allocation11_spill] sm:$0xff] %v10767_v42  ;;  %v6517_v11 = vpack.c.bf16 %v6482_v40, %v6481_v21  ;;  %v6419_v37 = vadd.f32 %v10743_v5, %v6332_v53 }
 0x77e   : > { %v6885_v2 = vpop.f32.mrf.mxu0  ;;  %v6334_v6 = vpop.f32.mrf.mxu1 }
 0x77f   : > { %v6335_v16 = vadd.f32 %v11159_v41, %v6334_v6  ;;  %8041 = vmatprep.mubr.bf16.mxu1 %v6517_v11  ;;  %v6483_v27 = vmax.f32 %v6419_v37, 0.0  ;;  %v11162_v11 = vld [vmem:[#allocation41_spill] sm:$0xff] }
 0x780   : > { %v10771_v12 = vpop.f32.mrf.mxu0  ;;  %v6336_v7 = vpop.f32.mrf.mxu1 }
 0x781   : > { %v6420_v43 = vadd.f32 %v10743_v5, %v6335_v16 }
 0x782   : > { %v6888_v26 = vpop.f32.mrf.mxu0  ;;  %v6339_v15 = vpop.f32.mrf.mxu1 }
 0x783   : > { %v6484_v60 = vmax.f32 %v6420_v43, 0.0  ;;  %v6340_v42 = vadd.f32 %v6339_v15, %v11160_v30 }
 0x784   : > { %v10775_v28 = vpop.f32.mrf.mxu0  ;;  %v6341_v21 = vpop.f32.mrf.mxu1 }
 0x785   : > { %11161 = vst [vmem:[#allocation13_spill] sm:$0xff] %v10775_v28  ;;  %v6518_v40 = vpack.c.bf16 %v6484_v60, %v6483_v27  ;;  %v6421_v6 = vadd.f32 %v10743_v5, %v6340_v42  ;;  %v11164_v28 = vld [vmem:[#allocation38_spill] sm:$0xff] }
 0x786   : > { %v6893_v2 = vpop.f32.mrf.mxu0  ;;  %v6342_v53 = vpop.f32.mrf.mxu1 }
 0x787   : > { %v6343_v41 = vadd.f32 %v6342_v53, %v11162_v11  ;;  %8042 = vmatmul.mubr.bf16.gmra.mxu1 %v6518_v40  ;;  %v6485_v15 = vmax.f32 %v6421_v6, 0.0  ;;  %v11165_v11 = vld [vmem:[#allocation40_spill] sm:$0xff] }
 0x788   : > { %v10779_v7 = vpop.f32.mrf.mxu0  ;;  %v6344_v16 = vpop.f32.mrf.mxu1 }
 0x789   : > { %11163 = vst [vmem:[#allocation10_spill] sm:$0xff] %v10779_v7  ;;  %v6422_v26 = vadd.f32 %v10743_v5, %v6343_v41 }
 0x78a   : > { %v6896_v37 = vpop.f32.mrf.mxu0  ;;  %v6347_v43 = vpop.f32.mrf.mxu1 }
 0x78b   : > { %v6486_v30 = vmax.f32 %v6422_v26, 0.0  ;;  %v6348_v21 = vadd.f32 %v11164_v28, %v6347_v43 }
 0x78c   : > { %v10783_v27 = vpop.f32.mrf.mxu0  ;;  %v6349_v60 = vpop.f32.mrf.mxu1 }
 0x78d   : > { %v6519_v42 = vpack.c.bf16 %v6486_v30, %v6485_v15  ;;  %v6423_v40 = vadd.f32 %v10743_v5, %v6348_v21  ;;  %v10798_v30 = vld [vmem:[%s11077_s10] ss:$0 sm:$0xff] }
 0x78e   : > { %v6901_v2 = vpop.f32.mrf.mxu0  ;;  %v6350_v53 = vpop.f32.mrf.mxu1 }
 0x78f   : > { %v6351_v16 = vadd.f32 %v11165_v11, %v6350_v53  ;;  %8045 = vmatprep.mubr.bf16.mxu1 %v6519_v42  ;;  %v6487_v28 = vmax.f32 %v6423_v40, 0.0 }
 0x790   : > { %v10787_v41 = vpop.f32.mrf.mxu0  ;;  %v6352_v37 = vpop.f32.mrf.mxu1 }
 0x791   : > { %v6424_v6 = vadd.f32 %v10743_v5, %v6351_v16 }
 0x792   : > { %v6904_v26 = vpop.f32.mrf.mxu0 }
 0x793   : > { %v6488_v43 = vmax.f32 %v6424_v6, 0.0 }
 0x794   : > { %v10791_v7 = vpop.f32.mrf.mxu0 }
 0x795   : > { %v6520_v60 = vpack.c.bf16 %v6488_v43, %v6487_v28 }
 0x796   : > { %v6909_v2 = vpop.f32.mrf.mxu0 }
 0x797   : > { %v7999_v15 = vpop.f32.mrf.mxu1  ;;  %8046 = vmatmul.mubr.bf16.gmra.mxu1 %v6520_v60 }
 0x798   : > { %v7093_v21 = vadd.f32 %v7999_v15, %v10627_v35  ;;  %v10801_v5 = vpop.f32.mrf.mxu0 }
 0x799   : > { %v7084_v42 = vpop.f32.mrf.mxu1 }
 0x79a   : > { %v7312_v53 = vadd.f32 %v10798_v30, %v7093_v21  ;;  %v7085_v40 = vadd.f32 %v7084_v42, %v10617_v61  ;;  %v6912_v11 = vpop.f32.mrf.mxu0 }
 0x79b   : > { %v8000_v16 = vpop.f32.mrf.mxu1 }
 0x79c   : > { %7376 = vst [vmem:[%s10805_s13 + $0x70] sm:$0xff] %v7312_v53  ;;  %v7310_v37 = vadd.f32 %v10798_v30, %v7085_v40  ;;  %v7096_v35 = vadd.f32 %v8000_v16, %v10633_v51  ;;  %v10810_v6 = vpop.f32.mrf.mxu0 }
 0x79d   : > { %v7087_v26 = vpop.f32.mrf.mxu1 }
 0x79e   : > { %7374 = vst [vmem:[%s10805_s13 + $0x60] sm:$0xff] %v7310_v37  ;;  %v7313_v28 = vadd.f32 %v10798_v30, %v7096_v35  ;;  %v7088_v61 = vadd.f32 %v7087_v26, %v10623_v50  ;;  %v6917_v43 = vpop.f32.mrf.mxu0 }
 0x7a0   : > { %7377 = vst [vmem:[%s10805_s13 + $0x78] sm:$0xff] %v7313_v28  ;;  %v7311_v60 = vadd.f32 %v10798_v30, %v7088_v61  ;;  %v10817_v2 = vpop.f32.mrf.mxu0 }
 0x7a2   : > { %7375 = vst [vmem:[%s10805_s13 + $0x68] sm:$0xff] %v7311_v60  ;;  %v6920_v15 = vpop.f32.mrf.mxu0 }
 0x7a4   : > { %v10820_v21 = vpop.f32.mrf.mxu0 }
 0x7a6   : > { %v6925_v51 = vpop.f32.mrf.mxu0 }
 0x7a7   : > { %v8003_v42 = vpop.f32.mrf.mxu1 }
 0x7a8   : > { %v7109_v53 = vadd.f32 %v8003_v42, %v10647_v46  ;;  %v10823_v40 = vpop.f32.mrf.mxu0 }
 0x7a9   : > { %v7100_v50 = vpop.f32.mrf.mxu1 }
 0x7aa   : > { %v7316_v11 = vadd.f32 %v10798_v30, %v7109_v53  ;;  %v7101_v16 = vadd.f32 %v7100_v50, %v10637_v10  ;;  %v6928_v37 = vpop.f32.mrf.mxu0 }
 0x7ab   : > { %v8004_v35 = vpop.f32.mrf.mxu1 }
 0x7ac   : > { %7380 = vst [vmem:[%s10805_s13 + $0x90] sm:$0xff] %v7316_v11  ;;  %v7314_v26 = vadd.f32 %v10798_v30, %v7101_v16  ;;  %v7112_v28 = vadd.f32 %v8004_v35, %v10653_v23  ;;  %v10830_v61 = vpop.f32.mrf.mxu0 }
 0x7ad   : > { %v7103_v43 = vpop.f32.mrf.mxu1 }
 0x7ae   : > { %7378 = vst [vmem:[%s10805_s13 + $0x80] sm:$0xff] %v7314_v26  ;;  %v7317_v46 = vadd.f32 %v10798_v30, %v7112_v28  ;;  %v7104_v60 = vadd.f32 %v7103_v43, %v10643_v59  ;;  %v6933_v15 = vpop.f32.mrf.mxu0 }
 0x7b0   : > { %7381 = vst [vmem:[%s10805_s13 + $0x98] sm:$0xff] %v7317_v46  ;;  %v7315_v10 = vadd.f32 %v10798_v30, %v7104_v60  ;;  %v10837_v51 = vpop.f32.mrf.mxu0 }
 0x7b2   : > { %7379 = vst [vmem:[%s10805_s13 + $0x88] sm:$0xff] %v7315_v10  ;;  %v6936_v42 = vpop.f32.mrf.mxu0 }
 0x7b4   : > { %v10840_v53 = vpop.f32.mrf.mxu0 }
 0x7b6   : > { %v6941_v23 = vpop.f32.mrf.mxu0 }
 0x7b7   : > { %v8007_v50 = vpop.f32.mrf.mxu1 }
 0x7b8   : > { %v7125_v11 = vadd.f32 %v8007_v50, %v10666_v36  ;;  %v10843_v16 = vpop.f32.mrf.mxu0 }
 0x7b9   : > { %v7116_v59 = vpop.f32.mrf.mxu1 }
 0x7ba   : > { %v7320_v37 = vadd.f32 %v10798_v30, %v7125_v11  ;;  %v7117_v35 = vadd.f32 %v7116_v59, %v10657_v62  ;;  %v6944_v26 = vpop.f32.mrf.mxu0 }
 0x7bb   : > { %v8008_v28 = vpop.f32.mrf.mxu1 }
 0x7bc   : > { %7384 = vst [vmem:[%s10805_s13 + $0xb0] sm:$0xff] %v7320_v37  ;;  %v7318_v43 = vadd.f32 %v10798_v30, %v7117_v35  ;;  %v7128_v46 = vadd.f32 %v8008_v28, %v10670_v22  ;;  %v10850_v60 = vpop.f32.mrf.mxu0 }
 0x7bd   : > { %v7119_v15 = vpop.f32.mrf.mxu1 }
 0x7be   : > { %7382 = vst [vmem:[%s10805_s13 + $0xa0] sm:$0xff] %v7318_v43  ;;  %v7321_v36 = vadd.f32 %v10798_v30, %v7128_v46  ;;  %v7120_v10 = vadd.f32 %v7119_v15, %v10662_v38  ;;  %v6949_v42 = vpop.f32.mrf.mxu0 }
 0x7c0   : > { %7385 = vst [vmem:[%s10805_s13 + $0xb8] sm:$0xff] %v7321_v36  ;;  %v7319_v62 = vadd.f32 %v10798_v30, %v7120_v10  ;;  %v10857_v23 = vpop.f32.mrf.mxu0 }
 0x7c2   : > { %7383 = vst [vmem:[%s10805_s13 + $0xa8] sm:$0xff] %v7319_v62  ;;  %v6952_v50 = vpop.f32.mrf.mxu0 }
 0x7c4   : > { %v7987_v11 = vpop.f32.mrf.mxu0 }
 0x7c5   : > { %v7045_v22 = vadd.f32 %v7987_v11, %v10567_v58 }
 0x7c6   : > { %v7036_v59 = vpop.f32.mrf.mxu0 }
 0x7c7   : > { %v7300_v37 = vadd.f32 %v10798_v30, %v7045_v22  ;;  %v7037_v35 = vadd.f32 %v7036_v59, %v10549_v4  ;;  %v8011_v26 = vpop.f32.mrf.mxu1 }
 0x7c8   : > { %v7141_v38 = vadd.f32 %v8011_v26, %v10682_v54  ;;  %v7988_v28 = vpop.f32.mrf.mxu0 }
 0x7c9   : > { %7364 = vst [vmem:[%s10805_s13 + $0x10] sm:$0xff] %v7300_v37  ;;  %v7298_v43 = vadd.f32 %v10798_v30, %v7037_v35  ;;  %v7048_v46 = vadd.f32 %v7988_v28, %v10573_v44  ;;  %v7132_v15 = vpop.f32.mrf.mxu1 }
 0x7ca   : > { %v7324_v58 = vadd.f32 %v10798_v30, %v7141_v38  ;;  %v7133_v36 = vadd.f32 %v7132_v15, %v10674_v56  ;;  %v7039_v10 = vpop.f32.mrf.mxu0 }
 0x7cb   : > { %7362 = vst [vmem:[%s10805_s13] sm:$0xff] %v7298_v43  ;;  %v7301_v4 = vadd.f32 %v10798_v30, %v7048_v46  ;;  %v7040_v54 = vadd.f32 %v7039_v10, %v10559_v32  ;;  %v8012_v42 = vpop.f32.mrf.mxu1 }
 0x7cc   : > { %7388 = vst [vmem:[%s10805_s13 + $0xd0] sm:$0xff] %v7324_v58  ;;  %v7322_v62 = vadd.f32 %v10798_v30, %v7133_v36  ;;  %v7144_v44 = vadd.f32 %v8012_v42, %v10686_v3  ;;  %v7991_v50 = vpop.f32.mrf.mxu0 }
 0x7cd   : > { %7365 = vst [vmem:[%s10805_s13 + $0x18] sm:$0xff] %v7301_v4  ;;  %v7299_v11 = vadd.f32 %v10798_v30, %v7040_v54  ;;  %v7061_v56 = vadd.f32 %v7991_v50, %v10587_v8  ;;  %v7135_v22 = vpop.f32.mrf.mxu1 }
 0x7ce   : > { %7386 = vst [vmem:[%s10805_s13 + $0xc0] sm:$0xff] %v7322_v62  ;;  %v7325_v32 = vadd.f32 %v10798_v30, %v7144_v44  ;;  %v7136_v59 = vadd.f32 %v7135_v22, %v10678_v9  ;;  %v7052_v37 = vpop.f32.mrf.mxu0 }
 0x7cf   : > { %7363 = vst [vmem:[%s10805_s13 + $0x8] sm:$0xff] %v7299_v11  ;;  %v7304_v3 = vadd.f32 %v10798_v30, %v7061_v56  ;;  %v7053_v35 = vadd.f32 %v7052_v37, %v10577_v19 }
 0x7d0   : > { %7389 = vst [vmem:[%s10805_s13 + $0xd8] sm:$0xff] %v7325_v32  ;;  %v7323_v26 = vadd.f32 %v10798_v30, %v7136_v59  ;;  %v7992_v38 = vpop.f32.mrf.mxu0 }
 0x7d1   : > { %7368 = vst [vmem:[%s10805_s13 + $0x30] sm:$0xff] %v7304_v3  ;;  %v7302_v8 = vadd.f32 %v10798_v30, %v7053_v35  ;;  %v7064_v28 = vadd.f32 %v7992_v38, %v10593_v25 }
 0x7d2   : > { %7387 = vst [vmem:[%s10805_s13 + $0xc8] sm:$0xff] %v7323_v26  ;;  %v7055_v9 = vpop.f32.mrf.mxu0 }
 0x7d3   : > { %7366 = vst [vmem:[%s10805_s13 + $0x20] sm:$0xff] %v7302_v8  ;;  %v7305_v43 = vadd.f32 %v10798_v30, %v7064_v28  ;;  %v7056_v46 = vadd.f32 %v7055_v9, %v10583_v17 }
 0x7d4   : > { %v7995_v15 = vpop.f32.mrf.mxu0 }
 0x7d5   : > { %7369 = vst [vmem:[%s10805_s13 + $0x38] sm:$0xff] %v7305_v43  ;;  %v7303_v19 = vadd.f32 %v10798_v30, %v7056_v46  ;;  %v7077_v58 = vadd.f32 %v7995_v15, %v10607_v20 }
 0x7d6   : > { %v7068_v36 = vpop.f32.mrf.mxu0 }
 0x7d7   : > { %7367 = vst [vmem:[%s10805_s13 + $0x28] sm:$0xff] %v7303_v19  ;;  %v7308_v10 = vadd.f32 %v10798_v30, %v7077_v58  ;;  %v7069_v25 = vadd.f32 %v7068_v36, %v10597_v63  ;;  %v8015_v4 = vpop.f32.mrf.mxu1 }
 0x7d8   : > { %v7157_v54 = vadd.f32 %v8015_v4, %v10698_v34  ;;  %v7996_v42 = vpop.f32.mrf.mxu0 }
 0x7d9   : > { %7372 = vst [vmem:[%s10805_s13 + $0x50] sm:$0xff] %v7308_v10  ;;  %v7306_v17 = vadd.f32 %v10798_v30, %v7069_v25  ;;  %v7080_v62 = vadd.f32 %v7996_v42, %v10613_v33  ;;  %v7148_v44 = vpop.f32.mrf.mxu1 }
 0x7da   : > { %v7328_v20 = vadd.f32 %v10798_v30, %v7157_v54  ;;  %v7149_v50 = vadd.f32 %v7148_v44, %v10690_v14  ;;  %v7071_v11 = vpop.f32.mrf.mxu0 }
 0x7db   : > { %7370 = vst [vmem:[%s10805_s13 + $0x40] sm:$0xff] %v7306_v17  ;;  %v7309_v63 = vadd.f32 %v10798_v30, %v7080_v62  ;;  %v7072_v34 = vadd.f32 %v7071_v11, %v10603_v45  ;;  %v8016_v56 = vpop.f32.mrf.mxu1 }
 0x7dc   : > { %7392 = vst [vmem:[%s10805_s13 + $0xf0] sm:$0xff] %v7328_v20  ;;  %v7326_v22 = vadd.f32 %v10798_v30, %v7149_v50  ;;  %v7160_v33 = vadd.f32 %v8016_v56, %v10702_v48 }
 0x7dd   : > { %7373 = vst [vmem:[%s10805_s13 + $0x58] sm:$0xff] %v7309_v63  ;;  %v7307_v32 = vadd.f32 %v10798_v30, %v7072_v34  ;;  %v7151_v59 = vpop.f32.mrf.mxu1  ;;  %v11166_v34 = vld [vmem:[#allocation11_spill] sm:$0xff] }
 0x7de   : > { %7390 = vst [vmem:[%s10805_s13 + $0xe0] sm:$0xff] %v7326_v22  ;;  %v7329_v14 = vadd.f32 %v10798_v30, %v7160_v33  ;;  %v7152_v37 = vadd.f32 %v7151_v59, %v10694_v0 }
 0x7df   : > { %7371 = vst [vmem:[%s10805_s13 + $0x48] sm:$0xff] %v7307_v32 }
 0x7e0   : > { %7393 = vst [vmem:[%s10805_s13 + $0xf8] sm:$0xff] %v7329_v14  ;;  %v7327_v45 = vadd.f32 %v10798_v30, %v7152_v37 }
 0x7e2   : > { %7391 = vst [vmem:[%s10805_s13 + $0xe8] sm:$0xff] %v7327_v45 }
 0x7e7   : > { %v8019_v3 = vpop.f32.mrf.mxu1 }
 0x7e8   : > { %v7173_v48 = vadd.f32 %v8019_v3, %v10714_v31  ;;  %v11168_v3 = vld [vmem:[#allocation9_spill] sm:$0xff] }
 0x7e9   : > { %v7164_v35 = vpop.f32.mrf.mxu1 }
 0x7ea   : > { %v7332_v26 = vadd.f32 %v10798_v30, %v7173_v48  ;;  %v7165_v38 = vadd.f32 %v7164_v35, %v10706_v52 }
 0x7eb   : > { %v8020_v8 = vpop.f32.mrf.mxu1 }
 0x7ec   : > { %7396 = vst [vmem:[%s10805_s13 + $0x110] sm:$0xff] %v7332_v26  ;;  %v7330_v0 = vadd.f32 %v10798_v30, %v7165_v38  ;;  %v7176_v28 = vadd.f32 %v8020_v8, %v10718_v57 }
 0x7ed   : > { %v7167_v9 = vpop.f32.mrf.mxu1 }
 0x7ee   : > { %7394 = vst [vmem:[%s10805_s13 + $0x100] sm:$0xff] %v7330_v0  ;;  %v7333_v43 = vadd.f32 %v10798_v30, %v7176_v28  ;;  %v7168_v46 = vadd.f32 %v7167_v9, %v10710_v24 }
 0x7f0   : > { %7397 = vst [vmem:[%s10805_s13 + $0x118] sm:$0xff] %v7333_v43  ;;  %v7331_v31 = vadd.f32 %v10798_v30, %v7168_v46 }
 0x7f2   : > { %7395 = vst [vmem:[%s10805_s13 + $0x108] sm:$0xff] %v7331_v31 }
 0x7f7   : > { %v8023_v52 = vpop.f32.mrf.mxu1 }
 0x7f8   : > { %v7189_v15 = vadd.f32 %v8023_v52, %v10730_v39 }
 0x7f9   : > { %v7180_v19 = vpop.f32.mrf.mxu1 }
 0x7fa   : > { %v7336_v58 = vadd.f32 %v10798_v30, %v7189_v15  ;;  %v7181_v57 = vadd.f32 %v7180_v19, %v10722_v49  ;;  %v11170_v15 = vld [vmem:[#allocation10_spill] sm:$0xff] }
 0x7fb   : > { %v8024_v36 = vpop.f32.mrf.mxu1 }
 0x7fc   : > { %7400 = vst [vmem:[%s10805_s13 + $0x130] sm:$0xff] %v7336_v58  ;;  %v7334_v10 = vadd.f32 %v10798_v30, %v7181_v57  ;;  %v7192_v24 = vadd.f32 %v8024_v36, %v10734_v55 }
 0x7fd   : > { %v7183_v25 = vpop.f32.mrf.mxu1 }
 0x7fe   : > { %7398 = vst [vmem:[%s10805_s13 + $0x120] sm:$0xff] %v7334_v10  ;;  %v7337_v4 = vadd.f32 %v10798_v30, %v7192_v24  ;;  %v7184_v54 = vadd.f32 %v7183_v25, %v10726_v1 }
 0x800   : > { %7401 = vst [vmem:[%s10805_s13 + $0x138] sm:$0xff] %v7337_v4  ;;  %v7335_v39 = vadd.f32 %v10798_v30, %v7184_v54 }
 0x802   : > { %7399 = vst [vmem:[%s10805_s13 + $0x128] sm:$0xff] %v7335_v39 }
 0x807   : > { %v8027_v49 = vpop.f32.mrf.mxu1 }
 0x808   : > { %v7205_v42 = vadd.f32 %v8027_v49, %v10751_v47 }
 0x809   : > { %v7196_v17 = vpop.f32.mrf.mxu1 }
 0x80a   : > { %v7340_v62 = vadd.f32 %v10798_v30, %v7205_v42  ;;  %v7197_v55 = vadd.f32 %v7196_v17, %v10738_v18 }
 0x80b   : > { %v8028_v44 = vpop.f32.mrf.mxu1 }
 0x80c   : > { %7404 = vst [vmem:[%s10805_s13 + $0x150] sm:$0xff] %v7340_v62  ;;  %v7338_v20 = vadd.f32 %v10798_v30, %v7197_v55  ;;  %v7208_v1 = vadd.f32 %v8028_v44, %v10755_v13  ;;  %v11167_v13 = vld [vmem:[#allocation8_spill] sm:$0xff] }
 0x80d   : > { %v7199_v50 = vpop.f32.mrf.mxu1 }
 0x80e   : > { %7402 = vst [vmem:[%s10805_s13 + $0x140] sm:$0xff] %v7338_v20  ;;  %v7341_v11 = vadd.f32 %v10798_v30, %v7208_v1  ;;  %v7200_v63 = vadd.f32 %v7199_v50, %v10747_v29 }
 0x810   : > { %7405 = vst [vmem:[%s10805_s13 + $0x158] sm:$0xff] %v7341_v11  ;;  %v7339_v47 = vadd.f32 %v10798_v30, %v7200_v63 }
 0x812   : > { %7403 = vst [vmem:[%s10805_s13 + $0x148] sm:$0xff] %v7339_v47 }
 0x817   : > { %v8031_v18 = vpop.f32.mrf.mxu1 }
 0x818   : > { %v7221_v56 = vadd.f32 %v8031_v18, %v11166_v34 }
 0x819   : > { %v7212_v22 = vpop.f32.mrf.mxu1 }
 0x81a   : > { %v7344_v33 = vadd.f32 %v10798_v30, %v7221_v56  ;;  %v7213_v32 = vadd.f32 %v7212_v22, %v11167_v13 }
 0x81b   : > { %v8032_v59 = vpop.f32.mrf.mxu1 }
 0x81c   : > { %7408 = vst [vmem:[%s10805_s13 + $0x170] sm:$0xff] %v7344_v33  ;;  %v7342_v14 = vadd.f32 %v10798_v30, %v7213_v32  ;;  %v7224_v29 = vadd.f32 %v8032_v59, %v10771_v12  ;;  %v11169_v12 = vld [vmem:[#allocation13_spill] sm:$0xff] }
 0x81d   : > { %v7215_v37 = vpop.f32.mrf.mxu1 }
 0x81e   : > { %7406 = vst [vmem:[%s10805_s13 + $0x160] sm:$0xff] %v7342_v14  ;;  %v7345_v45 = vadd.f32 %v10798_v30, %v7224_v29  ;;  %v7216_v48 = vadd.f32 %v7215_v37, %v11168_v3 }
 0x820   : > { %7409 = vst [vmem:[%s10805_s13 + $0x178] sm:$0xff] %v7345_v45  ;;  %v7343_v35 = vadd.f32 %v10798_v30, %v7216_v48 }
 0x822   : > { %7407 = vst [vmem:[%s10805_s13 + $0x168] sm:$0xff] %v7343_v35 }
 0x827   : > { %v8035_v26 = vpop.f32.mrf.mxu1 }
 0x828   : > { %v7237_v38 = vadd.f32 %v8035_v26, %v10783_v27 }
 0x829   : > { %v7228_v8 = vpop.f32.mrf.mxu1 }
 0x82a   : > { %v7348_v0 = vadd.f32 %v10798_v30, %v7237_v38  ;;  %v7229_v28 = vadd.f32 %v7228_v8, %v11169_v12 }
 0x82b   : > { %v8036_v9 = vpop.f32.mrf.mxu1 }
 0x82c   : > { %7412 = vst [vmem:[%s10805_s13 + $0x190] sm:$0xff] %v7348_v0  ;;  %v7346_v43 = vadd.f32 %v10798_v30, %v7229_v28  ;;  %v7240_v46 = vadd.f32 %v8036_v9, %v10787_v41 }
 0x82d   : > { %v7231_v31 = vpop.f32.mrf.mxu1 }
 0x82e   : > { %7410 = vst [vmem:[%s10805_s13 + $0x180] sm:$0xff] %v7346_v43  ;;  %v7349_v52 = vadd.f32 %v10798_v30, %v7240_v46  ;;  %v7232_v19 = vadd.f32 %v7231_v31, %v11170_v15 }
 0x830   : > { %7413 = vst [vmem:[%s10805_s13 + $0x198] sm:$0xff] %v7349_v52  ;;  %v7347_v27 = vadd.f32 %v10798_v30, %v7232_v19 }
 0x832   : > { %7411 = vst [vmem:[%s10805_s13 + $0x188] sm:$0xff] %v7347_v27 }
 0x837   : > { %v8039_v58 = vpop.f32.mrf.mxu1 }
 0x838   : > { %v7253_v57 = vadd.f32 %v8039_v58, %v10810_v6 }
 0x839   : > { %v7244_v36 = vpop.f32.mrf.mxu1 }
 0x83a   : > { %v7352_v10 = vadd.f32 %v10798_v30, %v7253_v57  ;;  %v7245_v41 = vadd.f32 %v7244_v36, %v10791_v7 }
 0x83b   : > { %v8040_v24 = vpop.f32.mrf.mxu1 }
 0x83c   : > { %7416 = vst [vmem:[%s10805_s13 + $0x1b0] sm:$0xff] %v7352_v10  ;;  %v7350_v25 = vadd.f32 %v10798_v30, %v7245_v41  ;;  %v7256_v4 = vadd.f32 %v8040_v24, %v10817_v2 }
 0x83d   : > { %v7247_v54 = vpop.f32.mrf.mxu1 }
 0x83e   : > { %7414 = vst [vmem:[%s10805_s13 + $0x1a0] sm:$0xff] %v7350_v25  ;;  %v7353_v39 = vadd.f32 %v10798_v30, %v7256_v4  ;;  %v7248_v49 = vadd.f32 %v7247_v54, %v10801_v5 }
 0x840   : > { %7417 = vst [vmem:[%s10805_s13 + $0x1b8] sm:$0xff] %v7353_v39  ;;  %v7351_v6 = vadd.f32 %v10798_v30, %v7248_v49 }
 0x842   : > { %7415 = vst [vmem:[%s10805_s13 + $0x1a8] sm:$0xff] %v7351_v6 }
 0x847   : > { %v8043_v7 = vpop.f32.mrf.mxu1 }
 0x848   : > { %v7269_v42 = vadd.f32 %v8043_v7, %v10830_v61 }
 0x849   : > { %v7260_v17 = vpop.f32.mrf.mxu1 }
 0x84a   : > { %v7356_v62 = vadd.f32 %v10798_v30, %v7269_v42  ;;  %v7261_v2 = vadd.f32 %v7260_v17, %v10820_v21 }
 0x84b   : > { %v8044_v55 = vpop.f32.mrf.mxu1 }
 0x84c   : > { %7420 = vst [vmem:[%s10805_s13 + $0x1d0] sm:$0xff] %v7356_v62  ;;  %v7354_v44 = vadd.f32 %v10798_v30, %v7261_v2  ;;  %v7272_v5 = vadd.f32 %v8044_v55, %v10837_v51 }
 0x84d   : > { %v7263_v20 = vpop.f32.mrf.mxu1 }
 0x84e   : > { %7418 = vst [vmem:[%s10805_s13 + $0x1c0] sm:$0xff] %v7354_v44  ;;  %v7357_v1 = vadd.f32 %v10798_v30, %v7272_v5  ;;  %v7264_v61 = vadd.f32 %v7263_v20, %v10823_v40 }
 0x850   : > { %7421 = vst [vmem:[%s10805_s13 + $0x1d8] sm:$0xff] %v7357_v1  ;;  %v7355_v50 = vadd.f32 %v10798_v30, %v7264_v61 }
 0x852   : > { %7419 = vst [vmem:[%s10805_s13 + $0x1c8] sm:$0xff] %v7355_v50 }
 0x857   : > { %v8047_v21 = vpop.f32.mrf.mxu1 }
 0x858   : > { %v7285_v11 = vadd.f32 %v8047_v21, %v10850_v60 }
 0x859   : > { %v7276_v63 = vpop.f32.mrf.mxu1 }
 0x85a   : > { %v7360_v51 = vadd.f32 %v10798_v30, %v7285_v11  ;;  %v7277_v47 = vadd.f32 %v7276_v63, %v10840_v53 }
 0x85b   : > { %v8048_v18 = vpop.f32.mrf.mxu1 }
 0x85c   : > { %7424 = vst [vmem:[%s10805_s13 + $0x1f0] sm:$0xff] %v7360_v51  ;;  %v7358_v40 = vadd.f32 %v10798_v30, %v7277_v47  ;;  %v7288_v34 = vadd.f32 %v8048_v18, %v10857_v23 }
 0x85d   : > { %v7279_v56 = vpop.f32.mrf.mxu1 }
 0x85e   : > { %7422 = vst [vmem:[%s10805_s13 + $0x1e0] sm:$0xff] %v7358_v40  ;;  %v7361_v60 = vadd.f32 %v10798_v30, %v7288_v34  ;;  %v7280_v22 = vadd.f32 %v7279_v56, %v10843_v16 }
 0x860   : > { %7425 = vst [vmem:[%s10805_s13 + $0x1f8] sm:$0xff] %v7361_v60  ;;  %v7359_v53 = vadd.f32 %v10798_v30, %v7280_v22 }
 0x862   : > { %7423 = vst [vmem:[%s10805_s13 + $0x1e8] sm:$0xff] %v7359_v53 }
 0x863   : > { %8501 = shalt.err (!%p8498_p0)
}
 0x864   : > { %s8502_s22 = scalar_lea.hbm %s11018_s16, 8192  ;;  %s8506_s15 = scalar_lea.hbm %s11078_s11, 16384 }
 0x865   : > { %p8503_p1 = scmp.ne.s32.totalorder %s11018_s16, %s8502_s22  ;;  %p8507_p4 = scmp.lt.s32.totalorder %s11018_s16, %s11078_s11 }
 0x866   : > { %p8508_p7 = scmp.lt.s32.totalorder %s8506_s15, %s8502_s22 }
 0x867   : > { %p8504_p2 = pnand %p8503_p1, %p8659_p5 }
 0x868   : > { %p8509_p6 = por %p8508_p7, %p8507_p4 }
 0x869   : > { %p8505_p3 = pneg %p8504_p2 }
 0x86b   : > { %p8510_p8 = pnand %p8509_p6, %p8505_p3 }
 0x86d   : > { %8513 = shalt.err (!%p8510_p8)
}
 0x86e   : > { %s8559_s24 = smov 128   ;;  %s8560_s30 = smov 8  }
 0x86f   : > { %8070 = dma.vmem_to_hbm [thread:$0]  (%p8659_p5), %s11020_s29, 8192, %s11018_s16, %s11027_s21, %s8559_s24, %s8559_s24, %s8560_s30  }
 0x870 PF: > { %p8082_p9 = scmp.ge.s32.totalorder %s8552_s20, 2  ;;  %s7455_s12 = sand.u32 1, %s8540_s17  }
 0x871   : > { %p11171_p10 = scmp.ne.s32.totalorder %s11085_s28, 0  ;;  %s7456_s0 = scalar_lea.sflag [#allocation4], %s7455_s12 }
 0x873   : > { %p8077_p11 = pnand %p8082_p9, %p11171_p10 }
 0x875   : > { %p8078_p12 = pneg %p8077_p11 }
 0x877   : > { %8535 = dma.done.wait (%p8078_p12), %s7456_s0, 8192  }
 0x878   : > { %8537 = vsyncadd (%p8078_p12), %s7456_s0, 4294959104  ;;  %p22_p13 = scmp.ge.s32.totalorder %s8646_s23, 4   ;;  %s11172_s17 = smov %s8544_s18 }
 0x879   : > { %s11173_s18 = smov %s8548_s19  ;;  %s11174_s19 = smov %s8657_s26 }
 0x87a   : > { %s11175_s20 = smov %s8646_s23  ;;  %24 = sbr.rel (!%p22_p13) target bundleno = 6 (0x6), region = 109 }
 0x87f   :  { %7461 = vsyncpa [#allocation3], 1 }
 0x880   :  { %7463 = vsyncpa [#allocation3 + $0x1], 1 }
 0x881   :  { %7464 = vsyncpa [#allocation4], 1 }
 0x882   :  { %7466 = vsyncpa [#allocation4 + $0x1], 1 }

</bundles_post_ra>
